<compile_context>
chip_gen: v5e
topology: v5e:2x2
jax: 0.10.0
libtpu: 0.0.40
codegen_flags: <defaults>
</compile_context>

<pallas_src>
import jax
import jax.numpy as jnp
from jax.experimental import pallas as pl
from jax.experimental.pallas import tpu as pltpu

VMEM_LIMIT = 48 * 1024 * 1024
NB_MAX = 128          # batch tile: fills MXU rows; sized for v7x's 64 MiB VMEM
BN_EPS = 1e-5

_PARAM_ORDER = [
    "w1", "s1", "b1", "w2", "s2", "b2", "w3", "s3", "b3",
    "w4", "s4", "b4", "w5", "s5", "b5", "w6", "s6", "b6",
    "fw1", "fb1", "fw2", "fb2", "fw3", "fb3",
]


# ----------------------------------------------------------------------------
# In-kernel helpers (operate on values, not refs)
# ----------------------------------------------------------------------------
def _maxpool2x2(x):
    """Floor-mode 2x2 stride-2 max pool on an NHWC value.

    H-pool uses only untiled-dim reshape + integer indexing (layout-free);
    W-pool needs a single sublane relayout but keeps C on lanes.
    """
    N, H, W, C = x.shape
    Ho, Wo = H // 2, W // 2
    x = x[:, : 2 * Ho, : 2 * Wo, :]
    x = x.reshape(N, Ho, 2, 2 * Wo, C)                 # split H (untiled dims only)
    x = jnp.maximum(x[:, :, 0, :, :], x[:, :, 1, :, :])
    x = x.reshape(N, Ho, Wo, 2, C)                     # split W (one relayout)
    x = jnp.maximum(x[:, :, :, 0, :], x[:, :, :, 1, :])
    return x


def _im2col_from_padded(pad_ref, H, W, C):
    """Read 9 shifted (NB,H,W,C) windows from a zero-padded scratch, cast to
    bf16 and concatenate along channels -> (NB*H*W, 9*C) bf16 im2col matrix.
    K-order is (ky, kx, ci), matching the (9*C, Cout) weight reshape."""
    NB = pad_ref.shape[0]
    wins = [pad_ref[:, ky:ky + H, kx:kx + W, :].astype(jnp.bfloat16)
            for ky in range(3) for kx in range(3)]
    return jnp.concatenate(wins, axis=-1).reshape(NB * H * W, 9 * C)


# ----------------------------------------------------------------------------
# Fused Pallas kernel: entire Model1 forward pass for one batch tile
# ----------------------------------------------------------------------------
def fused_model1_kernel(
    p1_ref,                        # (NB*196, 36) bf16  conv1 im2col patches
    w1_ref, s1_ref, b1_ref,        # (36, 64) bf16, (1, 64) f32, (1, 64) f32
    w2_ref, s2_ref, b2_ref,        # (576, 128) bf16, (1, 128), (1, 128)
    w3_ref, s3_ref, b3_ref,        # (1152, 256) bf16, (1, 256), (1, 256)
    w4_ref, s4_ref, b4_ref,        # (256, 256) bf16 centre tap, (1, 256) x2
    w5_ref, s5_ref, b5_ref,        # (256, 512) bf16 centre tap, (1, 512) x2
    w6_ref, s6_ref, b6_ref,        # (512, 512) bf16 centre tap, (1, 512) x2
    fw1_ref, fb1_ref,              # (512, 128) bf16 49-folded fc1, (1, 128)
    fw2_ref, fb2_ref,              # (128, 128) bf16, (1, 128)
    fw3_ref, fb3_ref,              # (128, 128) bf16 (col 0 real), (1, 128)
    o_ref,                         # (NB, 128) f32, column 0 is the logit
    pad2_ref, pad3_ref,            # VMEM scratch (NB,9,9,64), (NB,5,5,128) f32
):
    NB = o_ref.shape[0]
    bf16, f32 = jnp.bfloat16, jnp.float32

    # ---- conv1 (4->64, valid): single im2col GEMM (M=NB*196, K=36) + BN/ReLU
    y = jnp.dot(p1_ref[...], w1_ref[...], preferred_element_type=f32)
    y = jnp.maximum(y * s1_ref[...] + b1_ref[...], 0.0)
    a = _maxpool2x2(y.reshape(NB, 14, 14, 64))              # -> (NB, 7, 7, 64)

    # ---- conv2 (64->128, pad=1): zero-pad in scratch, ONE K=576 im2col GEMM
    pad2_ref[...] = jnp.zeros_like(pad2_ref)
    pad2_ref[:, 1:8, 1:8, :] = a
    m = _im2col_from_padded(pad2_ref, 7, 7, 64)             # (NB*49, 576) bf16
    y = jnp.dot(m, w2_ref[...], preferred_element_type=f32)
    y = jnp.maximum(y * s2_ref[...] + b2_ref[...], 0.0)
    a = _maxpool2x2(y.reshape(NB, 7, 7, 128))               # -> (NB, 3, 3, 128)

    # ---- conv3 (128->256, pad=1): ONE K=1152 im2col GEMM
    pad3_ref[...] = jnp.zeros_like(pad3_ref)
    pad3_ref[:, 1:4, 1:4, :] = a
    m = _im2col_from_padded(pad3_ref, 3, 3, 128)            # (NB*9, 1152) bf16
    y = jnp.dot(m, w3_ref[...], preferred_element_type=f32)
    y = jnp.maximum(y * s3_ref[...] + b3_ref[...], 0.0)
    a = _maxpool2x2(y.reshape(NB, 3, 3, 256))               # -> (NB, 1, 1, 256)

    # ---- convs 4-6: spatial is 1x1, so the zero-padded 3x3 conv is exactly
    # the centre-tap 1x1 conv -> plain (M=NB) feature GEMMs (+ BN + ReLU).
    f = a.reshape(NB, 256)
    f = jnp.maximum(jnp.dot(f.astype(bf16), w4_ref[...], preferred_element_type=f32)
                    * s4_ref[...] + b4_ref[...], 0.0)
    f = jnp.maximum(jnp.dot(f.astype(bf16), w5_ref[...], preferred_element_type=f32)
                    * s5_ref[...] + b5_ref[...], 0.0)
    f = jnp.maximum(jnp.dot(f.astype(bf16), w6_ref[...], preferred_element_type=f32)
                    * s6_ref[...] + b6_ref[...], 0.0)

    # ---- AdaptiveAvgPool(7,7) of a 1x1 map == 49-way broadcast, folded into
    # fc1's weights. Dropout(p=0.5) is identity in eval. fc3 is padded to 128
    # output columns so the final store is lane-dense (no masked vst).
    h = jnp.maximum(jnp.dot(f.astype(bf16), fw1_ref[...], preferred_element_type=f32)
                    + fb1_ref[...], 0.0)
    h = jnp.maximum(jnp.dot(h.astype(bf16), fw2_ref[...], preferred_element_type=f32)
                    + fb2_ref[...], 0.0)
    o_ref[...] = (jnp.dot(h.astype(bf16), fw3_ref[...], preferred_element_type=f32)
                  + fb3_ref[...])


# ----------------------------------------------------------------------------
# Wrapper
# ----------------------------------------------------------------------------
def model1_forward_fused(x_nchw, kp):
    N, C, H, W = x_nchw.shape
    # Guard: kernel is specialised to the 16x16x4 geometry (pre-pool 1x1 map).
    assert (C, H, W) == (4, 16, 16), "fused kernel specialised to (4,16,16) inputs"

    NB = min(N, NB_MAX)
    G = pl.cdiv(N, NB)
    N_pad = G * NB

    x = jnp.transpose(x_nchw, (0, 2, 3, 1))                 # NCHW -> NHWC
    if N_pad != N:
        x = jnp.concatenate(
            [x, jnp.zeros((N_pad - N, 16, 16, 4), x.dtype)], axis=0)

    # conv1 im2col built in the wrapper (bf16 to halve its HBM traffic); rows
    # are batch-major so the batch grid tiles it with a simple index_map.
    Ho = Wo = 14
    cols = [x[:, ky:ky + Ho, kx:kx + Wo, :] for ky in range(3) for kx in range(3)]
    p1 = (jnp.concatenate(cols, axis=-1)
          .reshape(N_pad * Ho * Wo, 36).astype(jnp.bfloat16))

    params = [kp[k] for k in _PARAM_ORDER]

    def const_spec(a):
        nd = a.ndim
        return pl.BlockSpec(a.shape, lambda i: (0,) * nd)   # resident weights

    in_specs = [pl.BlockSpec((NB * Ho * Wo, 36), lambda i: (i, 0))]
    in_specs += [const_spec(a) for a in params]

    out = pl.pallas_call(
        fused_model1_kernel,
        out_shape=jax.ShapeDtypeStruct((N_pad, 128), jnp.float32),
        grid_spec=pltpu.PrefetchScalarGridSpec(
            num_scalar_prefetch=0,
            grid=(G,),
            in_specs=in_specs,
            out_specs=pl.BlockSpec((NB, 128), lambda i: (i, 0)),
            scratch_shapes=[
                pltpu.VMEM((NB, 9, 9, 64), jnp.float32),     # conv2 padded input
                pltpu.VMEM((NB, 5, 5, 128), jnp.float32),    # conv3 padded input
            ],
        ),
        compiler_params=pltpu.CompilerParams(
            dimension_semantics=("parallel",),               # v7x: 2nd TC takes half the batch
            vmem_limit_bytes=VMEM_LIMIT,
        ),
    )(p1, *params)

    return out[:N, :1]


model1_forward = jax.jit(model1_forward_fused)


# ----------------------------------------------------------------------------
# Parameter init (deterministic) + one-time kernel-ready preparation
# ----------------------------------------------------------------------------
def fuse_bn(conv_bias, gamma, beta, mean, var):
    scale = gamma / jnp.sqrt(var + BN_EPS)
    bias = beta + (conv_bias - mean) * scale
    return scale, bias


def init_params(key):
    conv_cfg = [(4, 64, False), (64, 128, True), (128, 256, True),
                (256, 256, True), (256, 512, True), (512, 512, True)]
    convs = []
    for i, (cin, cout, has_bias) in enumerate(conv_cfg):
        k = jax.random.fold_in(key, i)
        kw, kb, kg, kbe, km, kv = jax.random.split(k, 6)
        # Weights are generated directly in HWIO; loading a real PyTorch OIHW
        # checkpoint would need a transpose before the kernel-ready reshapes.
        w = jax.random.normal(kw, (3, 3, cin, cout), jnp.float32) / jnp.sqrt(9.0 * cin)
        cb = (jax.random.normal(kb, (cout,), jnp.float32) * 0.01
              if has_bias else jnp.zeros((cout,), jnp.float32))
        gamma = jax.random.uniform(kg, (cout,), jnp.float32, 0.5, 1.5)
        beta = jax.random.normal(kbe, (cout,), jnp.float32) * 0.1
        mean = jax.random.normal(km, (cout,), jnp.float32) * 0.1
        var = jax.random.uniform(kv, (cout,), jnp.float32, 0.5, 1.5)
        scale, bias = fuse_bn(cb, gamma, beta, mean, var)
        convs.append((w, scale, bias))

    fc_cfg = [(512 * 7 * 7, 128), (128, 128), (128, 1)]
    fcs = []
    for i, (fin, fout) in enumerate(fc_cfg):
        k = jax.random.fold_in(key, 100 + i)
        kw, kb = jax.random.split(k)
        w = jax.random.normal(kw, (fin, fout), jnp.float32) / jnp.sqrt(float(fin))
        b = jax.random.normal(kb, (fout,), jnp.float32) * 0.01
        fcs.append((w, b))

    # ---- kernel-ready forms (done once at init, not per forward) ----------
    bf16 = jnp.bfloat16
    kp = {}
    # conv1: HWIO (3,3,4,64) -> im2col weight (36,64); K-order = (ky,kx,ci).
    w, s, b = convs[0]
    kp["w1"] = w.reshape(36, 64).astype(bf16)
    kp["s1"], kp["b1"] = s.reshape(1, -1), b.reshape(1, -1)
    # conv2/conv3: (3,3,Cin,Cout) -> fused im2col weight (9*Cin, Cout).
    for name, (w, s, b) in (("2", convs[1]), ("3", convs[2])):
        kp["w" + name] = w.reshape(9 * w.shape[2], w.shape[3]).astype(bf16)
        kp["s" + name] = s.reshape(1, -1)
        kp["b" + name] = b.reshape(1, -1)
    # convs 4-6: 1x1 zero-padded feature map -> only the centre tap matters.
    for name, (w, s, b) in (("4", convs[3]), ("5", convs[4]), ("6", convs[5])):
        kp["w" + name] = w[1, 1].astype(bf16)
        kp["s" + name] = s.reshape(1, -1)
        kp["b" + name] = b.reshape(1, -1)
    # fc1: PyTorch NCHW flatten gives row index c*49 + p; the 1x1 -> 7x7
    # adaptive pool broadcasts channel c to all 49 positions, so fold rows.
    (w1, b1), (w2, b2), (w3, b3) = fcs
    kp["fw1"] = w1.reshape(512, 49, 128).sum(axis=1).astype(bf16)   # (512, 128)
    kp["fb1"] = b1.reshape(1, -1)
    kp["fw2"], kp["fb2"] = w2.astype(bf16), b2.reshape(1, -1)
    # fc3 padded to 128 output columns (only column 0 real) for lane-dense store.
    kp["fw3"] = jnp.zeros((128, 128), jnp.float32).at[:, 0:1].set(w3).astype(bf16)
    kp["fb3"] = jnp.zeros((1, 128), jnp.float32).at[0, 0].set(b3[0])
    return kp


if __name__ == "__main__":
    key = jax.random.PRNGKey(0)
    pkey, xkey = jax.random.split(key)
    params = init_params(pkey)
    x = jax.random.normal(xkey, (2, 4, 16, 16), jnp.float32)   # NCHW like PyTorch
    out = model1_forward(x, params)
    out = jax.block_until_ready(out)
    assert out.shape == (2, 1) and out.dtype == jnp.float32
    print("KERNEL_OK")
</pallas_src>

<mosaic_0001>
module attributes {stable_mosaic.version = 11 : i64} {
  func.func @fused_model1_kernel(%arg0: i32, %arg1: memref<392x36xbf16, #tpu.memory_space<vmem>>, %arg2: memref<36x64xbf16, #tpu.memory_space<vmem>>, %arg3: memref<1x64xf32, #tpu.memory_space<vmem>>, %arg4: memref<1x64xf32, #tpu.memory_space<vmem>>, %arg5: memref<576x128xbf16, #tpu.memory_space<vmem>>, %arg6: memref<1x128xf32, #tpu.memory_space<vmem>>, %arg7: memref<1x128xf32, #tpu.memory_space<vmem>>, %arg8: memref<1152x256xbf16, #tpu.memory_space<vmem>>, %arg9: memref<1x256xf32, #tpu.memory_space<vmem>>, %arg10: memref<1x256xf32, #tpu.memory_space<vmem>>, %arg11: memref<256x256xbf16, #tpu.memory_space<vmem>>, %arg12: memref<1x256xf32, #tpu.memory_space<vmem>>, %arg13: memref<1x256xf32, #tpu.memory_space<vmem>>, %arg14: memref<256x512xbf16, #tpu.memory_space<vmem>>, %arg15: memref<1x512xf32, #tpu.memory_space<vmem>>, %arg16: memref<1x512xf32, #tpu.memory_space<vmem>>, %arg17: memref<512x512xbf16, #tpu.memory_space<vmem>>, %arg18: memref<1x512xf32, #tpu.memory_space<vmem>>, %arg19: memref<1x512xf32, #tpu.memory_space<vmem>>, %arg20: memref<512x128xbf16, #tpu.memory_space<vmem>>, %arg21: memref<1x128xf32, #tpu.memory_space<vmem>>, %arg22: memref<128x128xbf16, #tpu.memory_space<vmem>>, %arg23: memref<1x128xf32, #tpu.memory_space<vmem>>, %arg24: memref<128x128xbf16, #tpu.memory_space<vmem>>, %arg25: memref<1x128xf32, #tpu.memory_space<vmem>>, %arg26: memref<2x128xf32, #tpu.memory_space<vmem>>, %arg27: memref<2x9x9x64xf32, #tpu.memory_space<vmem>>, %arg28: memref<2x5x5x128xf32, #tpu.memory_space<vmem>>) attributes {dimension_semantics = [#tpu.dimension_semantics<parallel>], iteration_bounds = array<i64: 1>, scalar_prefetch = 0 : i64, scratch_operands = 2 : i64, tpu.core_type = #tpu.core_type<tc>, window_params = [{transform_indices = @transform_0, window_bounds = array<i64: 392, 36>}, {pipeline_mode = #tpu.pipeline_mode<synchronous>, transform_indices = @transform_1, window_bounds = array<i64: 36, 64>}, {pipeline_mode = #tpu.pipeline_mode<synchronous>, transform_indices = @transform_2, window_bounds = array<i64: 1, 64>}, {pipeline_mode = #tpu.pipeline_mode<synchronous>, transform_indices = @transform_3, window_bounds = array<i64: 1, 64>}, {pipeline_mode = #tpu.pipeline_mode<synchronous>, transform_indices = @transform_4, window_bounds = array<i64: 576, 128>}, {pipeline_mode = #tpu.pipeline_mode<synchronous>, transform_indices = @transform_5, window_bounds = array<i64: 1, 128>}, {pipeline_mode = #tpu.pipeline_mode<synchronous>, transform_indices = @transform_6, window_bounds = array<i64: 1, 128>}, {pipeline_mode = #tpu.pipeline_mode<synchronous>, transform_indices = @transform_7, window_bounds = array<i64: 1152, 256>}, {pipeline_mode = #tpu.pipeline_mode<synchronous>, transform_indices = @transform_8, window_bounds = array<i64: 1, 256>}, {pipeline_mode = #tpu.pipeline_mode<synchronous>, transform_indices = @transform_9, window_bounds = array<i64: 1, 256>}, {pipeline_mode = #tpu.pipeline_mode<synchronous>, transform_indices = @transform_10, window_bounds = array<i64: 256, 256>}, {pipeline_mode = #tpu.pipeline_mode<synchronous>, transform_indices = @transform_11, window_bounds = array<i64: 1, 256>}, {pipeline_mode = #tpu.pipeline_mode<synchronous>, transform_indices = @transform_12, window_bounds = array<i64: 1, 256>}, {pipeline_mode = #tpu.pipeline_mode<synchronous>, transform_indices = @transform_13, window_bounds = array<i64: 256, 512>}, {pipeline_mode = #tpu.pipeline_mode<synchronous>, transform_indices = @transform_14, window_bounds = array<i64: 1, 512>}, {pipeline_mode = #tpu.pipeline_mode<synchronous>, transform_indices = @transform_15, window_bounds = array<i64: 1, 512>}, {pipeline_mode = #tpu.pipeline_mode<synchronous>, transform_indices = @transform_16, window_bounds = array<i64: 512, 512>}, {pipeline_mode = #tpu.pipeline_mode<synchronous>, transform_indices = @transform_17, window_bounds = array<i64: 1, 512>}, {pipeline_mode = #tpu.pipeline_mode<synchronous>, transform_indices = @transform_18, window_bounds = array<i64: 1, 512>}, {pipeline_mode = #tpu.pipeline_mode<synchronous>, transform_indices = @transform_19, window_bounds = array<i64: 512, 128>}, {pipeline_mode = #tpu.pipeline_mode<synchronous>, transform_indices = @transform_20, window_bounds = array<i64: 1, 128>}, {pipeline_mode = #tpu.pipeline_mode<synchronous>, transform_indices = @transform_21, window_bounds = array<i64: 128, 128>}, {pipeline_mode = #tpu.pipeline_mode<synchronous>, transform_indices = @transform_22, window_bounds = array<i64: 1, 128>}, {pipeline_mode = #tpu.pipeline_mode<synchronous>, transform_indices = @transform_23, window_bounds = array<i64: 128, 128>}, {pipeline_mode = #tpu.pipeline_mode<synchronous>, transform_indices = @transform_24, window_bounds = array<i64: 1, 128>}, {transform_indices = @transform_25, window_bounds = array<i64: 2, 128>}]} {
    %c0 = arith.constant 0 : index
    %c0_0 = arith.constant 0 : index
    %0 = vector.load %arg1[%c0, %c0_0] : memref<392x36xbf16, #tpu.memory_space<vmem>>, vector<392x36xbf16>
    %c0_1 = arith.constant 0 : index
    %c0_2 = arith.constant 0 : index
    %1 = vector.load %arg2[%c0_1, %c0_2] : memref<36x64xbf16, #tpu.memory_space<vmem>>, vector<36x64xbf16>
    %cst = arith.constant dense<0.000000e+00> : vector<392x64xf32>
    %2 = tpu.matmul %0, %1, %cst {dimension_numbers = #tpu.dot_dimension_numbers<[1], [0], [0], [1], [0, 0, 1, 1], [], []>} : vector<392x36xbf16>, vector<36x64xbf16>, vector<392x64xf32> -> vector<392x64xf32>
    %c0_3 = arith.constant 0 : index
    %c0_4 = arith.constant 0 : index
    %3 = vector.load %arg3[%c0_3, %c0_4] : memref<1x64xf32, #tpu.memory_space<vmem>>, vector<1x64xf32>
    %4 = vector.broadcast %3 : vector<1x64xf32> to vector<392x64xf32>
    %5 = arith.mulf %2, %4 : vector<392x64xf32>
    %c0_5 = arith.constant 0 : index
    %c0_6 = arith.constant 0 : index
    %6 = vector.load %arg4[%c0_5, %c0_6] : memref<1x64xf32, #tpu.memory_space<vmem>>, vector<1x64xf32>
    %7 = vector.broadcast %6 : vector<1x64xf32> to vector<392x64xf32>
    %8 = arith.addf %5, %7 : vector<392x64xf32>
    %cst_7 = arith.constant 0.000000e+00 : f32
    %9 = vector.broadcast %cst_7 : f32 to vector<392x64xf32>
    %10 = arith.maximumf %8, %9 : vector<392x64xf32>
    %11 = vector.shape_cast %10 : vector<392x64xf32> to vector<2x14x14x64xf32>
    %12 = vector.shape_cast %11 : vector<2x14x14x64xf32> to vector<2x7x2x14x64xf32>
    %13 = vector.extract_strided_slice %12 {offsets = [0, 0, 0, 0, 0], sizes = [2, 7, 1, 14, 64], strides = [1, 1, 1, 1, 1]} : vector<2x7x2x14x64xf32> to vector<2x7x1x14x64xf32>
    %14 = vector.shape_cast %13 : vector<2x7x1x14x64xf32> to vector<2x7x14x64xf32>
    %15 = vector.extract_strided_slice %12 {offsets = [0, 0, 1, 0, 0], sizes = [2, 7, 1, 14, 64], strides = [1, 1, 1, 1, 1]} : vector<2x7x2x14x64xf32> to vector<2x7x1x14x64xf32>
    %16 = vector.shape_cast %15 : vector<2x7x1x14x64xf32> to vector<2x7x14x64xf32>
    %17 = arith.maximumf %14, %16 : vector<2x7x14x64xf32>
    %18 = vector.shape_cast %17 : vector<2x7x14x64xf32> to vector<2x7x7x2x64xf32>
    %19 = vector.extract_strided_slice %18 {offsets = [0, 0, 0, 0, 0], sizes = [2, 7, 7, 1, 64], strides = [1, 1, 1, 1, 1]} : vector<2x7x7x2x64xf32> to vector<2x7x7x1x64xf32>
    %20 = vector.shape_cast %19 : vector<2x7x7x1x64xf32> to vector<2x7x7x64xf32>
    %21 = vector.extract_strided_slice %18 {offsets = [0, 0, 0, 1, 0], sizes = [2, 7, 7, 1, 64], strides = [1, 1, 1, 1, 1]} : vector<2x7x7x2x64xf32> to vector<2x7x7x1x64xf32>
    %22 = vector.shape_cast %21 : vector<2x7x7x1x64xf32> to vector<2x7x7x64xf32>
    %23 = arith.maximumf %20, %22 : vector<2x7x7x64xf32>
    %cst_8 = arith.constant 0.000000e+00 : f32
    %24 = vector.broadcast %cst_8 : f32 to vector<2x9x9x64xf32>
    %c0_9 = arith.constant 0 : index
    %c0_10 = arith.constant 0 : index
    %c0_11 = arith.constant 0 : index
    %c0_12 = arith.constant 0 : index
    %25 = vector.load %arg27[%c0_9, %c0_10, %c0_11, %c0_12] : memref<2x9x9x64xf32, #tpu.memory_space<vmem>>, vector<2x9x9x64xf32>
    tpu.vector_store %arg27[%c0_9, %c0_10, %c0_11, %c0_12], %24 {strides = array<i32>} : memref<2x9x9x64xf32, #tpu.memory_space<vmem>>, vector<2x9x9x64xf32>,
    %c0_13 = arith.constant 0 : index
    %c1 = arith.constant 1 : index
    %c1_14 = arith.constant 1 : index
    %c0_15 = arith.constant 0 : index
    %26 = vector.load %arg27[%c0_13, %c1, %c1_14, %c0_15] : memref<2x9x9x64xf32, #tpu.memory_space<vmem>>, vector<2x7x7x64xf32>
    tpu.vector_store %arg27[%c0_13, %c1, %c1_14, %c0_15], %23 {strides = array<i32>} : memref<2x9x9x64xf32, #tpu.memory_space<vmem>>, vector<2x7x7x64xf32>,
    %c0_16 = arith.constant 0 : index
    %c0_17 = arith.constant 0 : index
    %c0_18 = arith.constant 0 : index
    %c0_19 = arith.constant 0 : index
    %27 = vector.load %arg27[%c0_16, %c0_17, %c0_18, %c0_19] : memref<2x9x9x64xf32, #tpu.memory_space<vmem>>, vector<2x7x7x64xf32>
    %28 = arith.truncf %27 : vector<2x7x7x64xf32> to vector<2x7x7x64xbf16>
    %c0_20 = arith.constant 0 : index
    %c0_21 = arith.constant 0 : index
    %c1_22 = arith.constant 1 : index
    %c0_23 = arith.constant 0 : index
    %29 = vector.load %arg27[%c0_20, %c0_21, %c1_22, %c0_23] : memref<2x9x9x64xf32, #tpu.memory_space<vmem>>, vector<2x7x7x64xf32>
    %30 = arith.truncf %29 : vector<2x7x7x64xf32> to vector<2x7x7x64xbf16>
    %c0_24 = arith.constant 0 : index
    %c0_25 = arith.constant 0 : index
    %c2 = arith.constant 2 : index
    %c0_26 = arith.constant 0 : index
    %31 = vector.load %arg27[%c0_24, %c0_25, %c2, %c0_26] : memref<2x9x9x64xf32, #tpu.memory_space<vmem>>, vector<2x7x7x64xf32>
    %32 = arith.truncf %31 : vector<2x7x7x64xf32> to vector<2x7x7x64xbf16>
    %c0_27 = arith.constant 0 : index
    %c1_28 = arith.constant 1 : index
    %c0_29 = arith.constant 0 : index
    %c0_30 = arith.constant 0 : index
    %33 = vector.load %arg27[%c0_27, %c1_28, %c0_29, %c0_30] : memref<2x9x9x64xf32, #tpu.memory_space<vmem>>, vector<2x7x7x64xf32>
    %34 = arith.truncf %33 : vector<2x7x7x64xf32> to vector<2x7x7x64xbf16>
    %c0_31 = arith.constant 0 : index
    %c1_32 = arith.constant 1 : index
    %c1_33 = arith.constant 1 : index
    %c0_34 = arith.constant 0 : index
    %35 = vector.load %arg27[%c0_31, %c1_32, %c1_33, %c0_34] : memref<2x9x9x64xf32, #tpu.memory_space<vmem>>, vector<2x7x7x64xf32>
    %36 = arith.truncf %35 : vector<2x7x7x64xf32> to vector<2x7x7x64xbf16>
    %c0_35 = arith.constant 0 : index
    %c1_36 = arith.constant 1 : index
    %c2_37 = arith.constant 2 : index
    %c0_38 = arith.constant 0 : index
    %37 = vector.load %arg27[%c0_35, %c1_36, %c2_37, %c0_38] : memref<2x9x9x64xf32, #tpu.memory_space<vmem>>, vector<2x7x7x64xf32>
    %38 = arith.truncf %37 : vector<2x7x7x64xf32> to vector<2x7x7x64xbf16>
    %c0_39 = arith.constant 0 : index
    %c2_40 = arith.constant 2 : index
    %c0_41 = arith.constant 0 : index
    %c0_42 = arith.constant 0 : index
    %39 = vector.load %arg27[%c0_39, %c2_40, %c0_41, %c0_42] : memref<2x9x9x64xf32, #tpu.memory_space<vmem>>, vector<2x7x7x64xf32>
    %40 = arith.truncf %39 : vector<2x7x7x64xf32> to vector<2x7x7x64xbf16>
    %c0_43 = arith.constant 0 : index
    %c2_44 = arith.constant 2 : index
    %c1_45 = arith.constant 1 : index
    %c0_46 = arith.constant 0 : index
    %41 = vector.load %arg27[%c0_43, %c2_44, %c1_45, %c0_46] : memref<2x9x9x64xf32, #tpu.memory_space<vmem>>, vector<2x7x7x64xf32>
    %42 = arith.truncf %41 : vector<2x7x7x64xf32> to vector<2x7x7x64xbf16>
    %c0_47 = arith.constant 0 : index
    %c2_48 = arith.constant 2 : index
    %c2_49 = arith.constant 2 : index
    %c0_50 = arith.constant 0 : index
    %43 = vector.load %arg27[%c0_47, %c2_48, %c2_49, %c0_50] : memref<2x9x9x64xf32, #tpu.memory_space<vmem>>, vector<2x7x7x64xf32>
    %44 = arith.truncf %43 : vector<2x7x7x64xf32> to vector<2x7x7x64xbf16>
    %45 = tpu.concatenate %28, %30, %32, %34, %36, %38, %40, %42, %44 in 3 : vector<2x7x7x64xbf16>, vector<2x7x7x64xbf16>, vector<2x7x7x64xbf16>, vector<2x7x7x64xbf16>, vector<2x7x7x64xbf16>, vector<2x7x7x64xbf16>, vector<2x7x7x64xbf16>, vector<2x7x7x64xbf16>, vector<2x7x7x64xbf16> -> vector<2x7x7x576xbf16>
    %46 = vector.shape_cast %45 : vector<2x7x7x576xbf16> to vector<98x576xbf16>
    %c0_51 = arith.constant 0 : index
    %c0_52 = arith.constant 0 : index
    %47 = vector.load %arg5[%c0_51, %c0_52] : memref<576x128xbf16, #tpu.memory_space<vmem>>, vector<576x128xbf16>
    %cst_53 = arith.constant dense<0.000000e+00> : vector<98x128xf32>
    %48 = tpu.matmul %46, %47, %cst_53 {dimension_numbers = #tpu.dot_dimension_numbers<[1], [0], [0], [1], [0, 0, 1, 1], [], []>} : vector<98x576xbf16>, vector<576x128xbf16>, vector<98x128xf32> -> vector<98x128xf32>
    %c0_54 = arith.constant 0 : index
    %c0_55 = arith.constant 0 : index
    %49 = vector.load %arg6[%c0_54, %c0_55] : memref<1x128xf32, #tpu.memory_space<vmem>>, vector<1x128xf32>
    %50 = vector.broadcast %49 : vector<1x128xf32> to vector<98x128xf32>
    %51 = arith.mulf %48, %50 : vector<98x128xf32>
    %c0_56 = arith.constant 0 : index
    %c0_57 = arith.constant 0 : index
    %52 = vector.load %arg7[%c0_56, %c0_57] : memref<1x128xf32, #tpu.memory_space<vmem>>, vector<1x128xf32>
    %53 = vector.broadcast %52 : vector<1x128xf32> to vector<98x128xf32>
    %54 = arith.addf %51, %53 : vector<98x128xf32>
    %cst_58 = arith.constant 0.000000e+00 : f32
    %55 = vector.broadcast %cst_58 : f32 to vector<98x128xf32>
    %56 = arith.maximumf %54, %55 : vector<98x128xf32>
    %57 = vector.shape_cast %56 : vector<98x128xf32> to vector<2x7x7x128xf32>
    %58 = vector.extract_strided_slice %57 {offsets = [0, 0, 0, 0], sizes = [2, 6, 6, 128], strides = [1, 1, 1, 1]} : vector<2x7x7x128xf32> to vector<2x6x6x128xf32>
    %59 = vector.shape_cast %58 : vector<2x6x6x128xf32> to vector<2x3x2x6x128xf32>
    %60 = vector.extract_strided_slice %59 {offsets = [0, 0, 0, 0, 0], sizes = [2, 3, 1, 6, 128], strides = [1, 1, 1, 1, 1]} : vector<2x3x2x6x128xf32> to vector<2x3x1x6x128xf32>
    %61 = vector.shape_cast %60 : vector<2x3x1x6x128xf32> to vector<2x3x6x128xf32>
    %62 = vector.extract_strided_slice %59 {offsets = [0, 0, 1, 0, 0], sizes = [2, 3, 1, 6, 128], strides = [1, 1, 1, 1, 1]} : vector<2x3x2x6x128xf32> to vector<2x3x1x6x128xf32>
    %63 = vector.shape_cast %62 : vector<2x3x1x6x128xf32> to vector<2x3x6x128xf32>
    %64 = arith.maximumf %61, %63 : vector<2x3x6x128xf32>
    %65 = vector.shape_cast %64 : vector<2x3x6x128xf32> to vector<2x3x3x2x128xf32>
    %66 = vector.extract_strided_slice %65 {offsets = [0, 0, 0, 0, 0], sizes = [2, 3, 3, 1, 128], strides = [1, 1, 1, 1, 1]} : vector<2x3x3x2x128xf32> to vector<2x3x3x1x128xf32>
    %67 = vector.shape_cast %66 : vector<2x3x3x1x128xf32> to vector<2x3x3x128xf32>
    %68 = vector.extract_strided_slice %65 {offsets = [0, 0, 0, 1, 0], sizes = [2, 3, 3, 1, 128], strides = [1, 1, 1, 1, 1]} : vector<2x3x3x2x128xf32> to vector<2x3x3x1x128xf32>
    %69 = vector.shape_cast %68 : vector<2x3x3x1x128xf32> to vector<2x3x3x128xf32>
    %70 = arith.maximumf %67, %69 : vector<2x3x3x128xf32>
    %cst_59 = arith.constant 0.000000e+00 : f32
    %71 = vector.broadcast %cst_59 : f32 to vector<2x5x5x128xf32>
    %c0_60 = arith.constant 0 : index
    %c0_61 = arith.constant 0 : index
    %c0_62 = arith.constant 0 : index
    %c0_63 = arith.constant 0 : index
    %72 = vector.load %arg28[%c0_60, %c0_61, %c0_62, %c0_63] : memref<2x5x5x128xf32, #tpu.memory_space<vmem>>, vector<2x5x5x128xf32>
    tpu.vector_store %arg28[%c0_60, %c0_61, %c0_62, %c0_63], %71 {strides = array<i32>} : memref<2x5x5x128xf32, #tpu.memory_space<vmem>>, vector<2x5x5x128xf32>,
    %c0_64 = arith.constant 0 : index
    %c1_65 = arith.constant 1 : index
    %c1_66 = arith.constant 1 : index
    %c0_67 = arith.constant 0 : index
    %73 = vector.load %arg28[%c0_64, %c1_65, %c1_66, %c0_67] : memref<2x5x5x128xf32, #tpu.memory_space<vmem>>, vector<2x3x3x128xf32>
    tpu.vector_store %arg28[%c0_64, %c1_65, %c1_66, %c0_67], %70 {strides = array<i32>} : memref<2x5x5x128xf32, #tpu.memory_space<vmem>>, vector<2x3x3x128xf32>,
    %c0_68 = arith.constant 0 : index
    %c0_69 = arith.constant 0 : index
    %c0_70 = arith.constant 0 : index
    %c0_71 = arith.constant 0 : index
    %74 = vector.load %arg28[%c0_68, %c0_69, %c0_70, %c0_71] : memref<2x5x5x128xf32, #tpu.memory_space<vmem>>, vector<2x3x3x128xf32>
    %75 = arith.truncf %74 : vector<2x3x3x128xf32> to vector<2x3x3x128xbf16>
    %c0_72 = arith.constant 0 : index
    %c0_73 = arith.constant 0 : index
    %c1_74 = arith.constant 1 : index
    %c0_75 = arith.constant 0 : index
    %76 = vector.load %arg28[%c0_72, %c0_73, %c1_74, %c0_75] : memref<2x5x5x128xf32, #tpu.memory_space<vmem>>, vector<2x3x3x128xf32>
    %77 = arith.truncf %76 : vector<2x3x3x128xf32> to vector<2x3x3x128xbf16>
    %c0_76 = arith.constant 0 : index
    %c0_77 = arith.constant 0 : index
    %c2_78 = arith.constant 2 : index
    %c0_79 = arith.constant 0 : index
    %78 = vector.load %arg28[%c0_76, %c0_77, %c2_78, %c0_79] : memref<2x5x5x128xf32, #tpu.memory_space<vmem>>, vector<2x3x3x128xf32>
    %79 = arith.truncf %78 : vector<2x3x3x128xf32> to vector<2x3x3x128xbf16>
    %c0_80 = arith.constant 0 : index
    %c1_81 = arith.constant 1 : index
    %c0_82 = arith.constant 0 : index
    %c0_83 = arith.constant 0 : index
    %80 = vector.load %arg28[%c0_80, %c1_81, %c0_82, %c0_83] : memref<2x5x5x128xf32, #tpu.memory_space<vmem>>, vector<2x3x3x128xf32>
    %81 = arith.truncf %80 : vector<2x3x3x128xf32> to vector<2x3x3x128xbf16>
    %c0_84 = arith.constant 0 : index
    %c1_85 = arith.constant 1 : index
    %c1_86 = arith.constant 1 : index
    %c0_87 = arith.constant 0 : index
    %82 = vector.load %arg28[%c0_84, %c1_85, %c1_86, %c0_87] : memref<2x5x5x128xf32, #tpu.memory_space<vmem>>, vector<2x3x3x128xf32>
    %83 = arith.truncf %82 : vector<2x3x3x128xf32> to vector<2x3x3x128xbf16>
    %c0_88 = arith.constant 0 : index
    %c1_89 = arith.constant 1 : index
    %c2_90 = arith.constant 2 : index
    %c0_91 = arith.constant 0 : index
    %84 = vector.load %arg28[%c0_88, %c1_89, %c2_90, %c0_91] : memref<2x5x5x128xf32, #tpu.memory_space<vmem>>, vector<2x3x3x128xf32>
    %85 = arith.truncf %84 : vector<2x3x3x128xf32> to vector<2x3x3x128xbf16>
    %c0_92 = arith.constant 0 : index
    %c2_93 = arith.constant 2 : index
    %c0_94 = arith.constant 0 : index
    %c0_95 = arith.constant 0 : index
    %86 = vector.load %arg28[%c0_92, %c2_93, %c0_94, %c0_95] : memref<2x5x5x128xf32, #tpu.memory_space<vmem>>, vector<2x3x3x128xf32>
    %87 = arith.truncf %86 : vector<2x3x3x128xf32> to vector<2x3x3x128xbf16>
    %c0_96 = arith.constant 0 : index
    %c2_97 = arith.constant 2 : index
    %c1_98 = arith.constant 1 : index
    %c0_99 = arith.constant 0 : index
    %88 = vector.load %arg28[%c0_96, %c2_97, %c1_98, %c0_99] : memref<2x5x5x128xf32, #tpu.memory_space<vmem>>, vector<2x3x3x128xf32>
    %89 = arith.truncf %88 : vector<2x3x3x128xf32> to vector<2x3x3x128xbf16>
    %c0_100 = arith.constant 0 : index
    %c2_101 = arith.constant 2 : index
    %c2_102 = arith.constant 2 : index
    %c0_103 = arith.constant 0 : index
    %90 = vector.load %arg28[%c0_100, %c2_101, %c2_102, %c0_103] : memref<2x5x5x128xf32, #tpu.memory_space<vmem>>, vector<2x3x3x128xf32>
    %91 = arith.truncf %90 : vector<2x3x3x128xf32> to vector<2x3x3x128xbf16>
    %92 = tpu.concatenate %75, %77, %79, %81, %83, %85, %87, %89, %91 in 3 : vector<2x3x3x128xbf16>, vector<2x3x3x128xbf16>, vector<2x3x3x128xbf16>, vector<2x3x3x128xbf16>, vector<2x3x3x128xbf16>, vector<2x3x3x128xbf16>, vector<2x3x3x128xbf16>, vector<2x3x3x128xbf16>, vector<2x3x3x128xbf16> -> vector<2x3x3x1152xbf16>
    %93 = vector.shape_cast %92 : vector<2x3x3x1152xbf16> to vector<18x1152xbf16>
    %c0_104 = arith.constant 0 : index
    %c0_105 = arith.constant 0 : index
    %94 = vector.load %arg8[%c0_104, %c0_105] : memref<1152x256xbf16, #tpu.memory_space<vmem>>, vector<1152x256xbf16>
    %cst_106 = arith.constant dense<0.000000e+00> : vector<18x256xf32>
    %95 = tpu.matmul %93, %94, %cst_106 {dimension_numbers = #tpu.dot_dimension_numbers<[1], [0], [0], [1], [0, 0, 1, 1], [], []>} : vector<18x1152xbf16>, vector<1152x256xbf16>, vector<18x256xf32> -> vector<18x256xf32>
    %c0_107 = arith.constant 0 : index
    %c0_108 = arith.constant 0 : index
    %96 = vector.load %arg9[%c0_107, %c0_108] : memref<1x256xf32, #tpu.memory_space<vmem>>, vector<1x256xf32>
    %97 = vector.broadcast %96 : vector<1x256xf32> to vector<18x256xf32>
    %98 = arith.mulf %95, %97 : vector<18x256xf32>
    %c0_109 = arith.constant 0 : index
    %c0_110 = arith.constant 0 : index
    %99 = vector.load %arg10[%c0_109, %c0_110] : memref<1x256xf32, #tpu.memory_space<vmem>>, vector<1x256xf32>
    %100 = vector.broadcast %99 : vector<1x256xf32> to vector<18x256xf32>
    %101 = arith.addf %98, %100 : vector<18x256xf32>
    %cst_111 = arith.constant 0.000000e+00 : f32
    %102 = vector.broadcast %cst_111 : f32 to vector<18x256xf32>
    %103 = arith.maximumf %101, %102 : vector<18x256xf32>
    %104 = vector.shape_cast %103 : vector<18x256xf32> to vector<2x3x3x256xf32>
    %105 = vector.extract_strided_slice %104 {offsets = [0, 0, 0, 0], sizes = [2, 2, 2, 256], strides = [1, 1, 1, 1]} : vector<2x3x3x256xf32> to vector<2x2x2x256xf32>
    %106 = vector.shape_cast %105 : vector<2x2x2x256xf32> to vector<2x1x2x2x256xf32>
    %107 = vector.extract_strided_slice %106 {offsets = [0, 0, 0, 0, 0], sizes = [2, 1, 1, 2, 256], strides = [1, 1, 1, 1, 1]} : vector<2x1x2x2x256xf32> to vector<2x1x1x2x256xf32>
    %108 = vector.shape_cast %107 : vector<2x1x1x2x256xf32> to vector<2x1x2x256xf32>
    %109 = vector.extract_strided_slice %106 {offsets = [0, 0, 1, 0, 0], sizes = [2, 1, 1, 2, 256], strides = [1, 1, 1, 1, 1]} : vector<2x1x2x2x256xf32> to vector<2x1x1x2x256xf32>
    %110 = vector.shape_cast %109 : vector<2x1x1x2x256xf32> to vector<2x1x2x256xf32>
    %111 = arith.maximumf %108, %110 : vector<2x1x2x256xf32>
    %112 = vector.shape_cast %111 : vector<2x1x2x256xf32> to vector<2x1x1x2x256xf32>
    %113 = vector.extract_strided_slice %112 {offsets = [0, 0, 0, 0, 0], sizes = [2, 1, 1, 1, 256], strides = [1, 1, 1, 1, 1]} : vector<2x1x1x2x256xf32> to vector<2x1x1x1x256xf32>
    %114 = vector.shape_cast %113 : vector<2x1x1x1x256xf32> to vector<2x1x1x256xf32>
    %115 = vector.extract_strided_slice %112 {offsets = [0, 0, 0, 1, 0], sizes = [2, 1, 1, 1, 256], strides = [1, 1, 1, 1, 1]} : vector<2x1x1x2x256xf32> to vector<2x1x1x1x256xf32>
    %116 = vector.shape_cast %115 : vector<2x1x1x1x256xf32> to vector<2x1x1x256xf32>
    %117 = arith.maximumf %114, %116 : vector<2x1x1x256xf32>
    %118 = vector.shape_cast %117 : vector<2x1x1x256xf32> to vector<2x256xf32>
    %119 = arith.truncf %118 : vector<2x256xf32> to vector<2x256xbf16>
    %c0_112 = arith.constant 0 : index
    %c0_113 = arith.constant 0 : index
    %120 = vector.load %arg11[%c0_112, %c0_113] : memref<256x256xbf16, #tpu.memory_space<vmem>>, vector<256x256xbf16>
    %cst_114 = arith.constant dense<0.000000e+00> : vector<2x256xf32>
    %121 = tpu.matmul %119, %120, %cst_114 {dimension_numbers = #tpu.dot_dimension_numbers<[1], [0], [0], [1], [0, 0, 1, 1], [], []>} : vector<2x256xbf16>, vector<256x256xbf16>, vector<2x256xf32> -> vector<2x256xf32>
    %c0_115 = arith.constant 0 : index
    %c0_116 = arith.constant 0 : index
    %122 = vector.load %arg12[%c0_115, %c0_116] : memref<1x256xf32, #tpu.memory_space<vmem>>, vector<1x256xf32>
    %123 = vector.broadcast %122 : vector<1x256xf32> to vector<2x256xf32>
    %124 = arith.mulf %121, %123 : vector<2x256xf32>
    %c0_117 = arith.constant 0 : index
    %c0_118 = arith.constant 0 : index
    %125 = vector.load %arg13[%c0_117, %c0_118] : memref<1x256xf32, #tpu.memory_space<vmem>>, vector<1x256xf32>
    %126 = vector.broadcast %125 : vector<1x256xf32> to vector<2x256xf32>
    %127 = arith.addf %124, %126 : vector<2x256xf32>
    %cst_119 = arith.constant 0.000000e+00 : f32
    %128 = vector.broadcast %cst_119 : f32 to vector<2x256xf32>
    %129 = arith.maximumf %127, %128 : vector<2x256xf32>
    %130 = arith.truncf %129 : vector<2x256xf32> to vector<2x256xbf16>
    %c0_120 = arith.constant 0 : index
    %c0_121 = arith.constant 0 : index
    %131 = vector.load %arg14[%c0_120, %c0_121] : memref<256x512xbf16, #tpu.memory_space<vmem>>, vector<256x512xbf16>
    %cst_122 = arith.constant dense<0.000000e+00> : vector<2x512xf32>
    %132 = tpu.matmul %130, %131, %cst_122 {dimension_numbers = #tpu.dot_dimension_numbers<[1], [0], [0], [1], [0, 0, 1, 1], [], []>} : vector<2x256xbf16>, vector<256x512xbf16>, vector<2x512xf32> -> vector<2x512xf32>
    %c0_123 = arith.constant 0 : index
    %c0_124 = arith.constant 0 : index
    %133 = vector.load %arg15[%c0_123, %c0_124] : memref<1x512xf32, #tpu.memory_space<vmem>>, vector<1x512xf32>
    %134 = vector.broadcast %133 : vector<1x512xf32> to vector<2x512xf32>
    %135 = arith.mulf %132, %134 : vector<2x512xf32>
    %c0_125 = arith.constant 0 : index
    %c0_126 = arith.constant 0 : index
    %136 = vector.load %arg16[%c0_125, %c0_126] : memref<1x512xf32, #tpu.memory_space<vmem>>, vector<1x512xf32>
    %137 = vector.broadcast %136 : vector<1x512xf32> to vector<2x512xf32>
    %138 = arith.addf %135, %137 : vector<2x512xf32>
    %cst_127 = arith.constant 0.000000e+00 : f32
    %139 = vector.broadcast %cst_127 : f32 to vector<2x512xf32>
    %140 = arith.maximumf %138, %139 : vector<2x512xf32>
    %141 = arith.truncf %140 : vector<2x512xf32> to vector<2x512xbf16>
    %c0_128 = arith.constant 0 : index
    %c0_129 = arith.constant 0 : index
    %142 = vector.load %arg17[%c0_128, %c0_129] : memref<512x512xbf16, #tpu.memory_space<vmem>>, vector<512x512xbf16>
    %cst_130 = arith.constant dense<0.000000e+00> : vector<2x512xf32>
    %143 = tpu.matmul %141, %142, %cst_130 {dimension_numbers = #tpu.dot_dimension_numbers<[1], [0], [0], [1], [0, 0, 1, 1], [], []>} : vector<2x512xbf16>, vector<512x512xbf16>, vector<2x512xf32> -> vector<2x512xf32>
    %c0_131 = arith.constant 0 : index
    %c0_132 = arith.constant 0 : index
    %144 = vector.load %arg18[%c0_131, %c0_132] : memref<1x512xf32, #tpu.memory_space<vmem>>, vector<1x512xf32>
    %145 = vector.broadcast %144 : vector<1x512xf32> to vector<2x512xf32>
    %146 = arith.mulf %143, %145 : vector<2x512xf32>
    %c0_133 = arith.constant 0 : index
    %c0_134 = arith.constant 0 : index
    %147 = vector.load %arg19[%c0_133, %c0_134] : memref<1x512xf32, #tpu.memory_space<vmem>>, vector<1x512xf32>
    %148 = vector.broadcast %147 : vector<1x512xf32> to vector<2x512xf32>
    %149 = arith.addf %146, %148 : vector<2x512xf32>
    %cst_135 = arith.constant 0.000000e+00 : f32
    %150 = vector.broadcast %cst_135 : f32 to vector<2x512xf32>
    %151 = arith.maximumf %149, %150 : vector<2x512xf32>
    %152 = arith.truncf %151 : vector<2x512xf32> to vector<2x512xbf16>
    %c0_136 = arith.constant 0 : index
    %c0_137 = arith.constant 0 : index
    %153 = vector.load %arg20[%c0_136, %c0_137] : memref<512x128xbf16, #tpu.memory_space<vmem>>, vector<512x128xbf16>
    %cst_138 = arith.constant dense<0.000000e+00> : vector<2x128xf32>
    %154 = tpu.matmul %152, %153, %cst_138 {dimension_numbers = #tpu.dot_dimension_numbers<[1], [0], [0], [1], [0, 0, 1, 1], [], []>} : vector<2x512xbf16>, vector<512x128xbf16>, vector<2x128xf32> -> vector<2x128xf32>
    %c0_139 = arith.constant 0 : index
    %c0_140 = arith.constant 0 : index
    %155 = vector.load %arg21[%c0_139, %c0_140] : memref<1x128xf32, #tpu.memory_space<vmem>>, vector<1x128xf32>
    %156 = vector.broadcast %155 : vector<1x128xf32> to vector<2x128xf32>
    %157 = arith.addf %154, %156 : vector<2x128xf32>
    %cst_141 = arith.constant 0.000000e+00 : f32
    %158 = vector.broadcast %cst_141 : f32 to vector<2x128xf32>
    %159 = arith.maximumf %157, %158 : vector<2x128xf32>
    %160 = arith.truncf %159 : vector<2x128xf32> to vector<2x128xbf16>
    %c0_142 = arith.constant 0 : index
    %c0_143 = arith.constant 0 : index
    %161 = vector.load %arg22[%c0_142, %c0_143] : memref<128x128xbf16, #tpu.memory_space<vmem>>, vector<128x128xbf16>
    %cst_144 = arith.constant dense<0.000000e+00> : vector<2x128xf32>
    %162 = tpu.matmul %160, %161, %cst_144 {dimension_numbers = #tpu.dot_dimension_numbers<[1], [0], [0], [1], [0, 0, 1, 1], [], []>} : vector<2x128xbf16>, vector<128x128xbf16>, vector<2x128xf32> -> vector<2x128xf32>
    %c0_145 = arith.constant 0 : index
    %c0_146 = arith.constant 0 : index
    %163 = vector.load %arg23[%c0_145, %c0_146] : memref<1x128xf32, #tpu.memory_space<vmem>>, vector<1x128xf32>
    %164 = vector.broadcast %163 : vector<1x128xf32> to vector<2x128xf32>
    %165 = arith.addf %162, %164 : vector<2x128xf32>
    %cst_147 = arith.constant 0.000000e+00 : f32
    %166 = vector.broadcast %cst_147 : f32 to vector<2x128xf32>
    %167 = arith.maximumf %165, %166 : vector<2x128xf32>
    %168 = arith.truncf %167 : vector<2x128xf32> to vector<2x128xbf16>
    %c0_148 = arith.constant 0 : index
    %c0_149 = arith.constant 0 : index
    %169 = vector.load %arg24[%c0_148, %c0_149] : memref<128x128xbf16, #tpu.memory_space<vmem>>, vector<128x128xbf16>
    %cst_150 = arith.constant dense<0.000000e+00> : vector<2x128xf32>
    %170 = tpu.matmul %168, %169, %cst_150 {dimension_numbers = #tpu.dot_dimension_numbers<[1], [0], [0], [1], [0, 0, 1, 1], [], []>} : vector<2x128xbf16>, vector<128x128xbf16>, vector<2x128xf32> -> vector<2x128xf32>
    %c0_151 = arith.constant 0 : index
    %c0_152 = arith.constant 0 : index
    %171 = vector.load %arg25[%c0_151, %c0_152] : memref<1x128xf32, #tpu.memory_space<vmem>>, vector<1x128xf32>
    %172 = vector.broadcast %171 : vector<1x128xf32> to vector<2x128xf32>
    %173 = arith.addf %170, %172 : vector<2x128xf32>
    %c0_153 = arith.constant 0 : index
    %c0_154 = arith.constant 0 : index
    %174 = vector.load %arg26[%c0_153, %c0_154] : memref<2x128xf32, #tpu.memory_space<vmem>>, vector<2x128xf32>
    tpu.vector_store %arg26[%c0_153, %c0_154], %173 {strides = array<i32>} : memref<2x128xf32, #tpu.memory_space<vmem>>, vector<2x128xf32>,
    return
  }
  func.func @transform_0(%arg0: i32) -> (i32, i32) {
    %c0_i32 = arith.constant 0 : i32
    %c0_i32_0 = arith.constant 0 : i32
    return %arg0, %c0_i32 : i32, i32
  }
  func.func @transform_1(%arg0: i32) -> (i32, i32) {
    %c0_i32 = arith.constant 0 : i32
    %c0_i32_0 = arith.constant 0 : i32
    %c0_i32_1 = arith.constant 0 : i32
    return %c0_i32, %c0_i32_0 : i32, i32
  }
  func.func @transform_2(%arg0: i32) -> (i32, i32) {
    %c0_i32 = arith.constant 0 : i32
    %c0_i32_0 = arith.constant 0 : i32
    %c0_i32_1 = arith.constant 0 : i32
    return %c0_i32, %c0_i32_0 : i32, i32
  }
  func.func @transform_3(%arg0: i32) -> (i32, i32) {
    %c0_i32 = arith.constant 0 : i32
    %c0_i32_0 = arith.constant 0 : i32
    %c0_i32_1 = arith.constant 0 : i32
    return %c0_i32, %c0_i32_0 : i32, i32
  }
  func.func @transform_4(%arg0: i32) -> (i32, i32) {
    %c0_i32 = arith.constant 0 : i32
    %c0_i32_0 = arith.constant 0 : i32
    %c0_i32_1 = arith.constant 0 : i32
    return %c0_i32, %c0_i32_0 : i32, i32
  }
  func.func @transform_5(%arg0: i32) -> (i32, i32) {
    %c0_i32 = arith.constant 0 : i32
    %c0_i32_0 = arith.constant 0 : i32
    %c0_i32_1 = arith.constant 0 : i32
    return %c0_i32, %c0_i32_0 : i32, i32
  }
  func.func @transform_6(%arg0: i32) -> (i32, i32) {
    %c0_i32 = arith.constant 0 : i32
    %c0_i32_0 = arith.constant 0 : i32
    %c0_i32_1 = arith.constant 0 : i32
    return %c0_i32, %c0_i32_0 : i32, i32
  }
  func.func @transform_7(%arg0: i32) -> (i32, i32) {
    %c0_i32 = arith.constant 0 : i32
    %c0_i32_0 = arith.constant 0 : i32
    %c0_i32_1 = arith.constant 0 : i32
    return %c0_i32, %c0_i32_0 : i32, i32
  }
  func.func @transform_8(%arg0: i32) -> (i32, i32) {
    %c0_i32 = arith.constant 0 : i32
    %c0_i32_0 = arith.constant 0 : i32
    %c0_i32_1 = arith.constant 0 : i32
    return %c0_i32, %c0_i32_0 : i32, i32
  }
  func.func @transform_9(%arg0: i32) -> (i32, i32) {
    %c0_i32 = arith.constant 0 : i32
    %c0_i32_0 = arith.constant 0 : i32
    %c0_i32_1 = arith.constant 0 : i32
    return %c0_i32, %c0_i32_0 : i32, i32
  }
  func.func @transform_10(%arg0: i32) -> (i32, i32) {
    %c0_i32 = arith.constant 0 : i32
    %c0_i32_0 = arith.constant 0 : i32
    %c0_i32_1 = arith.constant 0 : i32
    return %c0_i32, %c0_i32_0 : i32, i32
  }
  func.func @transform_11(%arg0: i32) -> (i32, i32) {
    %c0_i32 = arith.constant 0 : i32
    %c0_i32_0 = arith.constant 0 : i32
    %c0_i32_1 = arith.constant 0 : i32
    return %c0_i32, %c0_i32_0 : i32, i32
  }
  func.func @transform_12(%arg0: i32) -> (i32, i32) {
    %c0_i32 = arith.constant 0 : i32
    %c0_i32_0 = arith.constant 0 : i32
    %c0_i32_1 = arith.constant 0 : i32
    return %c0_i32, %c0_i32_0 : i32, i32
  }
  func.func @transform_13(%arg0: i32) -> (i32, i32) {
    %c0_i32 = arith.constant 0 : i32
    %c0_i32_0 = arith.constant 0 : i32
    %c0_i32_1 = arith.constant 0 : i32
    return %c0_i32, %c0_i32_0 : i32, i32
  }
  func.func @transform_14(%arg0: i32) -> (i32, i32) {
    %c0_i32 = arith.constant 0 : i32
    %c0_i32_0 = arith.constant 0 : i32
    %c0_i32_1 = arith.constant 0 : i32
    return %c0_i32, %c0_i32_0 : i32, i32
  }
  func.func @transform_15(%arg0: i32) -> (i32, i32) {
    %c0_i32 = arith.constant 0 : i32
    %c0_i32_0 = arith.constant 0 : i32
    %c0_i32_1 = arith.constant 0 : i32
    return %c0_i32, %c0_i32_0 : i32, i32
  }
  func.func @transform_16(%arg0: i32) -> (i32, i32) {
    %c0_i32 = arith.constant 0 : i32
    %c0_i32_0 = arith.constant 0 : i32
    %c0_i32_1 = arith.constant 0 : i32
    return %c0_i32, %c0_i32_0 : i32, i32
  }
  func.func @transform_17(%arg0: i32) -> (i32, i32) {
    %c0_i32 = arith.constant 0 : i32
    %c0_i32_0 = arith.constant 0 : i32
    %c0_i32_1 = arith.constant 0 : i32
    return %c0_i32, %c0_i32_0 : i32, i32
  }
  func.func @transform_18(%arg0: i32) -> (i32, i32) {
    %c0_i32 = arith.constant 0 : i32
    %c0_i32_0 = arith.constant 0 : i32
    %c0_i32_1 = arith.constant 0 : i32
    return %c0_i32, %c0_i32_0 : i32, i32
  }
  func.func @transform_19(%arg0: i32) -> (i32, i32) {
    %c0_i32 = arith.constant 0 : i32
    %c0_i32_0 = arith.constant 0 : i32
    %c0_i32_1 = arith.constant 0 : i32
    return %c0_i32, %c0_i32_0 : i32, i32
  }
  func.func @transform_20(%arg0: i32) -> (i32, i32) {
    %c0_i32 = arith.constant 0 : i32
    %c0_i32_0 = arith.constant 0 : i32
    %c0_i32_1 = arith.constant 0 : i32
    return %c0_i32, %c0_i32_0 : i32, i32
  }
  func.func @transform_21(%arg0: i32) -> (i32, i32) {
    %c0_i32 = arith.constant 0 : i32
    %c0_i32_0 = arith.constant 0 : i32
    %c0_i32_1 = arith.constant 0 : i32
    return %c0_i32, %c0_i32_0 : i32, i32
  }
  func.func @transform_22(%arg0: i32) -> (i32, i32) {
    %c0_i32 = arith.constant 0 : i32
    %c0_i32_0 = arith.constant 0 : i32
    %c0_i32_1 = arith.constant 0 : i32
    return %c0_i32, %c0_i32_0 : i32, i32
  }
  func.func @transform_23(%arg0: i32) -> (i32, i32) {
    %c0_i32 = arith.constant 0 : i32
    %c0_i32_0 = arith.constant 0 : i32
    %c0_i32_1 = arith.constant 0 : i32
    return %c0_i32, %c0_i32_0 : i32, i32
  }
  func.func @transform_24(%arg0: i32) -> (i32, i32) {
    %c0_i32 = arith.constant 0 : i32
    %c0_i32_0 = arith.constant 0 : i32
    %c0_i32_1 = arith.constant 0 : i32
    return %c0_i32, %c0_i32_0 : i32, i32
  }
  func.func @transform_25(%arg0: i32) -> (i32, i32) {
    %c0_i32 = arith.constant 0 : i32
    %c0_i32_0 = arith.constant 0 : i32
    return %arg0, %c0_i32 : i32, i32
  }
}

</mosaic_0001>

<bundles_post_ra>
// kernel: model1_forward_fused.1
= control target key start
LH: loop header
LB: loop body
LE: loop exit
PB: predicated region body
PF: predicated region fallthrough
CT: control target
= control target key end

     0   :  { %vm349_vm0 = vcmask 1041408   ;;  %vm273_vm1 = vcmask 293888   ;;  %vm1572_vm2 = vcmask 523264   ;;  %v10858_v14 = vmov 0.0   ;;  %s10859_s29 = smov 64   ;;  %s15369_s1 = inlined_call_operand.vmem [shape: bf16[36,64], index: 1, kind: input, shape index: {}]   ;;  %s15370_s2 = inlined_call_operand.vmem [shape: f32[1,64], index: 2, kind: input, shape index: {}]   ;;  %s15371_s3 = inlined_call_operand.vmem [shape: f32[1,64], index: 3, kind: input, shape index: {}]   ;;  %s15372_s0 = inlined_call_operand.vmem [shape: bf16[392,36], index: 0, kind: input, shape index: {}]   ;;  %s15373_s4 = inlined_call_operand.vmem [shape: bf16[576,128], index: 4, kind: input, shape index: {}]   ;;  %s15374_s5 = inlined_call_operand.vmem [shape: f32[1,128], index: 5, kind: input, shape index: {}]   ;;  %s15375_s6 = inlined_call_operand.vmem [shape: f32[1,128], index: 6, kind: input, shape index: {}]   ;;  %s15376_s7 = inlined_call_operand.vmem [shape: bf16[1152,256], index: 7, kind: input, shape index: {}]   ;;  %s15377_s10 = inlined_call_operand.vmem [shape: bf16[256,256], index: 10, kind: input, shape index: {}]   ;;  %s15378_s8 = inlined_call_operand.vmem [shape: f32[1,256], index: 8, kind: input, shape index: {}]   ;;  %s15379_s9 = inlined_call_operand.vmem [shape: f32[1,256], index: 9, kind: input, shape index: {}]   ;;  %s15380_s13 = inlined_call_operand.vmem [shape: bf16[256,512], index: 13, kind: input, shape index: {}]   ;;  %s15381_s11 = inlined_call_operand.vmem [shape: f32[1,256], index: 11, kind: input, shape index: {}]   ;;  %s15382_s12 = inlined_call_operand.vmem [shape: f32[1,256], index: 12, kind: input, shape index: {}]   ;;  %s15383_s16 = inlined_call_operand.vmem [shape: bf16[512,512], index: 16, kind: input, shape index: {}]   ;;  %s15384_s14 = inlined_call_operand.vmem [shape: f32[1,512], index: 14, kind: input, shape index: {}]   ;;  %s15385_s15 = inlined_call_operand.vmem [shape: f32[1,512], index: 15, kind: input, shape index: {}]   ;;  %s15386_s19 = inlined_call_operand.vmem [shape: bf16[512,128], index: 19, kind: input, shape index: {}]   ;;  %s15387_s20 = inlined_call_operand.vmem [shape: f32[1,128], index: 20, kind: input, shape index: {}]   ;;  %s15388_s17 = inlined_call_operand.vmem [shape: f32[1,512], index: 17, kind: input, shape index: {}]   ;;  %s15389_s18 = inlined_call_operand.vmem [shape: f32[1,512], index: 18, kind: input, shape index: {}]   ;;  %s15390_s22 = inlined_call_operand.vmem [shape: f32[1,128], index: 22, kind: input, shape index: {}]   ;;  %s15391_s21 = inlined_call_operand.vmem [shape: bf16[128,128], index: 21, kind: input, shape index: {}]   ;;  %s15392_s23 = inlined_call_operand.vmem [shape: bf16[128,128], index: 23, kind: input, shape index: {}]   ;;  %s15393_s24 = inlined_call_operand.vmem [shape: f32[1,128], index: 24, kind: input, shape index: {}]   ;;  %s15394_s25 = inlined_call_operand.vmem [shape: f32[2,128], index: 25, kind: output, shape index: {}]  }
   0x1   :  { %15405 = sst [smem:[#allocation4_spill]] %s15369_s1  ;;  %1576 = vst.msk [vmem:[#allocation2 + $0x10] sm:$0xff] %vm1572_vm2, %v10858_v14  ;;  %vm1574_vm3 = vcmask 516096   ;;  %vm1806_vm4 = vcmask 1041409   ;;  %vm1808_vm5 = vcmask 1042434   ;;  %vm1810_vm6 = vcmask 1043459  }
   0x2   :  { %15406 = sst [smem:[#allocation5_spill]] %s15370_s2  ;;  %1573 = vst.msk [vmem:[#allocation2] sm:$0xff] %vm1572_vm2, %v10858_v14  ;;  %vm1812_vm7 = vcmask 1044484   ;;  %vm1814_vm8 = vcmask 1045509   ;;  %vm1816_vm9 = vcmask 1046534   ;;  %vm15402_vm10 = vcmask 522240  }
   0x3   :  { %15407 = sst [smem:[#allocation6_spill]] %s15371_s3  ;;  %1578 = vst.msk [vmem:[#allocation2 + $0x20] sm:$0xff] %vm1572_vm2, %v10858_v14  ;;  %vm15403_vm11 = vcmask 1040384   ;;  %vm2751_vm12 = vcmask 1042433   ;;  %vm2759_vm13 = vcmask 1043458   ;;  %vm2767_vm14 = vcmask 1044483  }
   0x4   :  { %15408 = sst [smem:[#allocation7_spill]] %s15372_s0  ;;  %1580 = vst.msk [vmem:[#allocation2 + $0x30] sm:$0xff] %vm1572_vm2, %v10858_v14  ;;  %vm2747_vm15 = vcmask 1042432  }
   0x5   :  { %15409 = sst [smem:[#allocation8_spill]] %s15373_s4  ;;  %1582 = vst.msk [vmem:[#allocation2 + $0x40] sm:$0xff] %vm1572_vm2, %v10858_v14 }
   0x6   :  { %15410 = sst [smem:[#allocation9_spill]] %s15374_s5  ;;  %1584 = vst.msk [vmem:[#allocation2 + $0x50] sm:$0xff] %vm1572_vm2, %v10858_v14 }
   0x7   :  { %15411 = sst [smem:[#allocation10_spill]] %s15375_s6  ;;  %1586 = vst.msk [vmem:[#allocation2 + $0x60] sm:$0xff] %vm1572_vm2, %v10858_v14 }
   0x8   :  { %15412 = sst [smem:[#allocation11_spill]] %s15376_s7  ;;  %1588 = vst.msk [vmem:[#allocation2 + $0x70] sm:$0xff] %vm1572_vm2, %v10858_v14 }
   0x9   :  { %15413 = sst [smem:[#allocation12_spill]] %s15377_s10  ;;  %1590 = vst.msk [vmem:[#allocation2 + $0x80] sm:$0xff] %vm1572_vm2, %v10858_v14  ;;  %v1954_v15 = vld [vmem:[#allocation2 + $0x1] sm:$0x7f] }
   0xa   :  { %15414 = sst [smem:[#allocation13_spill]] %s15378_s8  ;;  %1592 = vst.msk [vmem:[#allocation2 + $0x90] sm:$0xff] %vm1572_vm2, %v10858_v14  ;;  %v1968_v16 = vpack.c.bf16 %v1954_v15, %v1954_v15 }
   0xb   :  { %s15415_s6 = sld [smem:[#allocation4_spill]]  ;;  %1594 = vst.msk [vmem:[#allocation2 + $0xa0] sm:$0xff] %vm1572_vm2, %v10858_v14 }
   0xc   :  { %s15416_s27 = sld [smem:[#allocation7_spill]]  ;;  %1596 = vst.msk [vmem:[#allocation2 + $0xb0] sm:$0xff] %vm1572_vm2, %v10858_v14  ;;  %v2193_v19 = vunpack.c.l.b16 %v1968_v16 }
   0xd   :  { %1598 = vst.msk [vmem:[#allocation2 + $0xc0] sm:$0xff] %vm1572_vm2, %v10858_v14  ;;  %s15417_s1 = sld [smem:[#allocation5_spill]] }
   0xe   :  { %1600 = vst.msk [vmem:[#allocation2 + $0xd0] sm:$0xff] %vm1572_vm2, %v10858_v14  ;;  %v2207_v20 = vpack.c.b16 %v2193_v19, %v2193_v19  ;;  %s15418_s30 = sld [smem:[#allocation6_spill]] }
   0xf   :  { %1602 = vst.msk [vmem:[#allocation2 + $0xe0] sm:$0xff] %vm1572_vm2, %v10858_v14  ;;  %s15442_s26 = sld [smem:[#allocation9_spill]] }
  0x10   :  { %1604 = vst.msk [vmem:[#allocation2 + $0xf0] sm:$0xff] %vm1572_vm2, %v10858_v14  ;;  %2221 = vrot.lane.b32.xlu1 %v2207_v20, %s10859_s29  ;;  %v2129_v26 = vld [vmem:[#allocation2 + $0x81] sm:$0x7f]  ;;  %s15451_s28 = sld [smem:[#allocation13_spill]] }
  0x11   :  { %v134_v0 = vld [vmem:[%s15415_s6 + $0x10] sm:$0x3]  ;;  %v10392_v4 = vld [vmem:[%s15415_s6 + $0x8] sm:$0xff]  ;;  %v10391_v5 = vld [vmem:[%s15415_s6] sm:$0xff]  ;;  %1606 = vst.msk [vmem:[#allocation2 + $0x100] sm:$0xff] %vm1572_vm2, %v10858_v14  ;;  %v2143_v29 = vpack.c.bf16 %v2129_v26, %v2129_v26  ;;  %s15419_s6 = sld [smem:[#allocation8_spill]] }
  0x12   :  { %v267_v1 = vunpack.c.l.b16 %v134_v0  ;;  %v10367_v6 = vld [vmem:[%s15416_s27] sm:$0xff]  ;;  %v10368_v7 = vld [vmem:[%s15416_s27 + $0x8] sm:$0xff]  ;;  %v10369_v8 = vld [vmem:[%s15416_s27 + $0x10] sm:$0xff]  ;;  %1608 = vst.msk [vmem:[#allocation2 + $0x110] sm:$0xff] %vm1572_vm2, %v10858_v14 }
  0x13   :  { %v10370_v9 = vld [vmem:[%s15416_s27 + $0x18] sm:$0xff]  ;;  %v10371_v10 = vld [vmem:[%s15416_s27 + $0x20] sm:$0xff]  ;;  %v10372_v11 = vld [vmem:[%s15416_s27 + $0x28] sm:$0xff]  ;;  %4183 = vst [vmem:[#allocation3] sm:$0x1f] %v10858_v14  ;;  %v2409_v33 = vunpack.c.l.b16 %v2143_v29 }
  0x14   :  { %v270_v2 = vpack.c.b16 %v267_v1, %v267_v1  ;;  %v10373_v12 = vld [vmem:[%s15416_s27 + $0x30] sm:$0xff]  ;;  %v10374_v13 = vld [vmem:[%s15416_s27 + $0x38] sm:$0xff]  ;;  %v10375_v17 = vld [vmem:[%s15416_s27 + $0x40] sm:$0xff]  ;;  %4184 = vst [vmem:[#allocation3 + $0x8] sm:$0x1f] %v10858_v14 }
  0x15   :  { %v11069_v21 = vld [vmem:[%s15417_s1] ss:$0 sm:$0xff]  ;;  %4185 = vst [vmem:[#allocation3 + $0x10] sm:$0x1f] %v10858_v14  ;;  %v1961_v27 = vld [vmem:[#allocation2 + $0x91] sm:$0x7f]  ;;  %v2423_v37 = vpack.c.b16 %v2409_v33, %v2409_v33 }
  0x16   :  { %v351_v3 = vsel %vm349_vm0, %v270_v2, 0  ;;  %v11083_v23 = vld [vmem:[%s15418_s30] ss:$0 sm:$0xff]  ;;  %4186 = vst [vmem:[#allocation3 + $0x18] sm:$0x1f] %v10858_v14  ;;  %v1975_v30 = vpack.c.bf16 %v1961_v27, %v1961_v27  ;;  %v10376_v36 = vld [vmem:[%s15416_s27 + $0x48] sm:$0xff] }
  0x17   :  { %358 = vmatpush.bf16.msra.mxu0 %v351_v3  ;;  %4187 = vst [vmem:[#allocation3 + $0x20] sm:$0x1f] %v10858_v14  ;;  %2443 = vrot.lane.b32.xlu2 %v2423_v37, %s10859_s29 }
  0x18   :  { %4188 = vst [vmem:[#allocation3 + $0x28] sm:$0x1f] %v10858_v14  ;;  %v2200_v34 = vunpack.c.l.b16 %v1975_v30 }
  0x19   :  { %4189 = vst [vmem:[#allocation3 + $0x30] sm:$0x1f] %v10858_v14 }
  0x1a   :  { %4190 = vst [vmem:[#allocation3 + $0x38] sm:$0x1f] %v10858_v14  ;;  %v2214_v40 = vpack.c.b16 %v2200_v34, %v2200_v34 }
  0x1b   :  { %359 = vmatpush.bf16.msra.mxu0 %v10392_v4  ;;  %4191 = vst [vmem:[#allocation3 + $0x40] sm:$0x1f] %v10858_v14 }
  0x1c   :  { %4192 = vst [vmem:[#allocation3 + $0x48] sm:$0x1f] %v10858_v14  ;;  %2235 = vrot.lane.b32.xlu1 %v2214_v40, %s10859_s29 }
  0x1d   :  { %1577 = vst.msk [vmem:[#allocation2 + $0x18] sm:$0x1] %vm1574_vm3, %v10858_v14 }
  0x1e   :  { %1575 = vst.msk [vmem:[#allocation2 + $0x8] sm:$0x1] %vm1574_vm3, %v10858_v14 }
  0x1f   :  { %360 = vmatpush.bf16.msra.mxu0 %v10391_v5  ;;  %1579 = vst.msk [vmem:[#allocation2 + $0x28] sm:$0x1] %vm1574_vm3, %v10858_v14 }
  0x20   :  { %1581 = vst.msk [vmem:[#allocation2 + $0x38] sm:$0x1] %vm1574_vm3, %v10858_v14 }
  0x21   :  { %1583 = vst.msk [vmem:[#allocation2 + $0x48] sm:$0x1] %vm1574_vm3, %v10858_v14 }
  0x22   :  { %8389 = vmatmul.msk.bf16.vlgmr.msra.gmra.mxu0 %vm273_vm1, %v10367_v6  ;;  %1585 = vst.msk [vmem:[#allocation2 + $0x58] sm:$0x1] %vm1574_vm3, %v10858_v14 }
  0x23   :  { %1587 = vst.msk [vmem:[#allocation2 + $0x68] sm:$0x1] %vm1574_vm3, %v10858_v14 }
  0x24   :  { %1589 = vst.msk [vmem:[#allocation2 + $0x78] sm:$0x1] %vm1574_vm3, %v10858_v14 }
  0x25   :  { %1591 = vst.msk [vmem:[#allocation2 + $0x88] sm:$0x1] %vm1574_vm3, %v10858_v14 }
  0x26   :  { %1593 = vst.msk [vmem:[#allocation2 + $0x98] sm:$0x1] %vm1574_vm3, %v10858_v14 }
  0x27   :  { %1595 = vst.msk [vmem:[#allocation2 + $0xa8] sm:$0x1] %vm1574_vm3, %v10858_v14 }
  0x28   :  { %1597 = vst.msk [vmem:[#allocation2 + $0xb8] sm:$0x1] %vm1574_vm3, %v10858_v14 }
  0x29   :  { %1599 = vst.msk [vmem:[#allocation2 + $0xc8] sm:$0x1] %vm1574_vm3, %v10858_v14 }
  0x2a   :  { %1601 = vst.msk [vmem:[#allocation2 + $0xd8] sm:$0x1] %vm1574_vm3, %v10858_v14 }
  0x2b   :  { %1603 = vst.msk [vmem:[#allocation2 + $0xe8] sm:$0x1] %vm1574_vm3, %v10858_v14 }
  0x2c   :  { %1605 = vst.msk [vmem:[#allocation2 + $0xf8] sm:$0x1] %vm1574_vm3, %v10858_v14 }
  0x2d   :  { %1607 = vst.msk [vmem:[#allocation2 + $0x108] sm:$0x1] %vm1574_vm3, %v10858_v14 }
  0x2e   :  { %1609 = vst.msk [vmem:[#allocation2 + $0x118] sm:$0x1] %vm1574_vm3, %v10858_v14  ;;  %vm2754_vm3 = vcmask 1043457  }
  0x32   :  { %8390 = vmatmul.msk.bf16.gmra.mxu0 %vm273_vm1, %v10368_v7 }
  0x42   :  { %8391 = vmatmul.msk.bf16.gmra.mxu0 %vm273_vm1, %v10369_v8 }
  0x52   :  { %8392 = vmatmul.msk.bf16.gmra.mxu0 %vm273_vm1, %v10370_v9 }
  0x62   :  { %8393 = vmatmul.msk.bf16.gmra.mxu0 %vm273_vm1, %v10371_v10  ;;  %v10377_v10 = vld [vmem:[%s15416_s27 + $0x50] sm:$0xff] }
  0x72   :  { %8394 = vmatmul.msk.bf16.gmra.mxu0 %vm273_vm1, %v10372_v11 }
  0x82   :  { %8395 = vmatmul.msk.bf16.gmra.mxu0 %vm273_vm1, %v10373_v12 }
  0x92   :  { %8396 = vmatmul.msk.bf16.gmra.mxu0 %vm273_vm1, %v10374_v13 }
  0x9f   :  { %v362_v18 = vpop.f32.mrf.mxu0 }
  0xa0   :  { %v490_v22 = vmul.f32 %v11069_v21, %v362_v18 }
  0xa2   :  { %8397 = vmatmul.msk.bf16.gmra.mxu0 %vm273_vm1, %v10375_v17  ;;  %v543_v31 = vadd.f32 %v11083_v23, %v490_v22 }
  0xa4   :  { %v592_v38 = vmax.f32 %v543_v31, 0.0 }
  0xa6   :  { %v690_v45 = vrot.slane %v592_v38, 2  ;;  %v691_v46 = vrot.slane %v592_v38, 4  ;;  %v692_v48 = vrot.slane %v592_v38, 6 }
  0xa7   :  { %v364_v24 = vpop.f32.mrf.mxu0 }
  0xa8   :  { %v491_v25 = vmul.f32 %v11069_v21, %v364_v24 }
  0xaa   :  { %v544_v28 = vadd.f32 %v11083_v23, %v491_v25 }
  0xac   :  { %v11093_v32 = vmax.f32 %v544_v28, 0.0 }
  0xae   :  { %v695_v35 = vrot.slane %v11093_v32, 6  ;;  %v693_v4 = vrot.slane %v11093_v32, 2  ;;  %v694_v7 = vrot.slane %v11093_v32, 4 }
  0xaf   :  { %v367_v39 = vpop.f32.mrf.mxu0 }
  0xb0   :  { %v492_v41 = vmul.f32 %v11069_v21, %v367_v39  ;;  %v984_v42 = vmax.f32 %v592_v38, %v695_v35 }
  0xb2   :  { %v545_v43 = vadd.f32 %v11083_v23, %v492_v41  ;;  %8398 = vmatmul.msk.bf16.gmra.mxu0 %vm273_vm1, %v10376_v36  ;;  %v8414_v47 = vrot.slane %v984_v42, 9 }
  0xb4   :  { %v594_v44 = vmax.f32 %v545_v43, 0.0  ;;  %v1474_v58 = vmax.f32 %v984_v42, %v8414_v47  ;;  %v10378_v43 = vld [vmem:[%s15416_s27 + $0x58] sm:$0xff] }
  0xb6   :  { %v696_v49 = vrot.slane %v594_v44, 2  ;;  %v697_v50 = vrot.slane %v594_v44, 4  ;;  %v698_v51 = vrot.slane %v594_v44, 6  ;;  %v985_v52 = vmax.f32 %v690_v45, %v594_v44 }
  0xb7   :  { %v369_v53 = vpop.f32.mrf.mxu0  ;;  %v1708_v5 = vperm.slane %v1474_v58, 0 }
  0xb8   :  { %v986_v54 = vmax.f32 %v691_v46, %v696_v49  ;;  %v987_v55 = vmax.f32 %v692_v48, %v697_v50  ;;  %v988_v56 = vmax.f32 %v11093_v32, %v698_v51  ;;  %v493_v57 = vmul.f32 %v11069_v21, %v369_v53 }
  0xb9   :  { %v8415_v59 = vrot.slane %v985_v52, 9 }
  0xba   :  { %v8416_v60 = vrot.slane %v986_v54, 9  ;;  %v8417_v61 = vrot.slane %v987_v55, 9  ;;  %v546_v62 = vadd.f32 %v11083_v23, %v493_v57  ;;  %v8418_v0 = vrot.slane %v988_v56, 9 }
  0xbb   :  { %v1475_v63 = vmax.f32 %v985_v52, %v8415_v59 }
  0xbc   :  { %v1476_v1 = vmax.f32 %v986_v54, %v8416_v60  ;;  %v1477_v2 = vmax.f32 %v987_v55, %v8417_v61  ;;  %v595_v3 = vmax.f32 %v546_v62, 0.0  ;;  %v1478_v16 = vmax.f32 %v988_v56, %v8418_v0 }
  0xbd   :  { %v1709_v6 = vperm.slane %v1475_v63, 0 }
  0xbe   :  { %v1710_v8 = vperm.slane %v1476_v1, 0  ;;  %v699_v9 = vrot.slane %v595_v3, 2  ;;  %v1711_v11 = vperm.slane %v1477_v2, 0  ;;  %v989_v13 = vmax.f32 %v693_v4, %v595_v3 }
  0xbf   :  { %v1807_v12 = vsel %vm1806_vm4, %v1709_v6, %v1708_v5  ;;  %v372_v15 = vpop.f32.mrf.mxu0  ;;  %v1712_v25 = vperm.slane %v1478_v16, 0  ;;  %v700_v37 = vrot.slane %v595_v3, 4  ;;  %v701_v38 = vrot.slane %v595_v3, 6 }
  0xc0   :  { %v1809_v17 = vsel %vm1808_vm5, %v1710_v8, %v1807_v12  ;;  %v990_v18 = vmax.f32 %v694_v7, %v699_v9  ;;  %v8419_v19 = vrot.slane %v989_v13, 9  ;;  %v494_v30 = vmul.f32 %v11069_v21, %v372_v15 }
  0xc1   :  { %v1811_v22 = vsel %vm1810_vm6, %v1711_v11, %v1809_v17 }
  0xc2   :  { %v8420_v20 = vrot.slane %v990_v18, 9  ;;  %8399 = vmatmul.msk.bf16.gmra.mxu0 %vm273_vm1, %v10377_v10  ;;  %v1479_v24 = vmax.f32 %v989_v13, %v8419_v19  ;;  %v1813_v28 = vsel %vm1812_vm7, %v1712_v25, %v1811_v22  ;;  %v547_v34 = vadd.f32 %v11083_v23, %v494_v30 }
  0xc4   :  { %v1480_v26 = vmax.f32 %v990_v18, %v8420_v20  ;;  %v1713_v27 = vperm.slane %v1479_v24, 0  ;;  %v596_v39 = vmax.f32 %v547_v34, 0.0 }
  0xc6   :  { %v1714_v29 = vperm.slane %v1480_v26, 0  ;;  %v1815_v14 = vsel %vm1814_vm8, %v1713_v27, %v1813_v28  ;;  %v702_v60 = vrot.slane %v596_v39, 2  ;;  %v703_v0 = vrot.slane %v596_v39, 4 }
  0xc7   :  { %v374_v31 = vpop.f32.mrf.mxu0  ;;  %v704_v4 = vrot.slane %v596_v39, 6 }
  0xc8   :  { %v1817_v32 = vsel %vm1816_vm9, %v1714_v29, %v1815_v14  ;;  %v495_v33 = vmul.f32 %v11069_v21, %v374_v31 }
  0xc9   :  { %1912 = vst.msk [vmem:[#allocation2 + $0x11] sm:$0x7f] %vm15402_vm10, %v1817_v32 }
  0xca   :  { %v548_v35 = vadd.f32 %v11083_v23, %v495_v33  ;;  %v10379_v33 = vld [vmem:[%s15416_s27 + $0x60] sm:$0xff] }
  0xcc   :  { %v597_v36 = vmax.f32 %v548_v35, 0.0 }
  0xce   :  { %v705_v40 = vrot.slane %v597_v36, 2  ;;  %v706_v41 = vrot.slane %v597_v36, 4  ;;  %v707_v42 = vrot.slane %v597_v36, 6 }
  0xcf   :  { %v377_v44 = vpop.f32.mrf.mxu0 }
  0xd0   :  { %v991_v45 = vmax.f32 %v700_v37, %v705_v40  ;;  %v992_v46 = vmax.f32 %v701_v38, %v706_v41  ;;  %v993_v47 = vmax.f32 %v596_v39, %v707_v42  ;;  %v496_v48 = vmul.f32 %v11069_v21, %v377_v44  ;;  %v2010_v49 = vld [vmem:[#allocation2 + $0x10] sm:$0x7f] }
  0xd1   :  { %v1955_v50 = vld [vmem:[#allocation2 + $0x11] sm:$0x7f]  ;;  %v2024_v51 = vpack.c.bf16 %v2010_v49, %v2010_v49 }
  0xd2   :  { %v1969_v52 = vpack.c.bf16 %v1955_v50, %v1955_v50  ;;  %v8421_v53 = vrot.slane %v991_v45, 9  ;;  %v8422_v54 = vrot.slane %v992_v46, 9  ;;  %v8423_v55 = vrot.slane %v993_v47, 9  ;;  %8400 = vmatmul.msk.bf16.gmra.mxu0 %vm273_vm1, %v10378_v43  ;;  %v2066_v57 = vld [vmem:[#allocation2 + $0x12] sm:$0x7f] }
  0xd3   :  { %v549_v56 = vadd.f32 %v11083_v23, %v496_v48  ;;  %v2263_v58 = vunpack.c.l.b16 %v2024_v51  ;;  %v2080_v3 = vpack.c.bf16 %v2066_v57, %v2066_v57 }
  0xd4   :  { %v2194_v59 = vunpack.c.l.b16 %v1969_v52  ;;  %v1481_v61 = vmax.f32 %v991_v45, %v8421_v53  ;;  %v1482_v62 = vmax.f32 %v992_v46, %v8422_v54  ;;  %v1483_v5 = vmax.f32 %v993_v47, %v8423_v55 }
  0xd5   :  { %v598_v63 = vmax.f32 %v549_v56, 0.0  ;;  %v2277_v1 = vpack.c.b16 %v2263_v58, %v2263_v58  ;;  %v2333_v18 = vunpack.c.l.b16 %v2080_v3  ;;  %v10380_v3 = vld [vmem:[%s15416_s27 + $0x68] sm:$0xff] }
  0xd6   :  { %v2208_v2 = vpack.c.b16 %v2194_v59, %v2194_v59  ;;  %v1715_v6 = vperm.slane %v1481_v61, 0  ;;  %v1716_v8 = vperm.slane %v1482_v62, 0  ;;  %v1717_v19 = vperm.slane %v1483_v5, 0 }
  0xd7   :  { %v708_v7 = vrot.slane %v598_v63, 2  ;;  %v709_v9 = vrot.slane %v598_v63, 4  ;;  %v710_v10 = vrot.slane %v598_v63, 6  ;;  %v994_v11 = vmax.f32 %v702_v60, %v598_v63  ;;  %2291 = vrot.lane.b32.xlu2 %v2277_v1, %s10859_s29  ;;  %v379_v12 = vpop.f32.mrf.mxu0 }
  0xd8   :  { %2223 = vrot.lane.b32.xlu1 %v2208_v2, %s10859_s29  ;;  %v1818_v22 = vsel %vm1806_vm4, %v1716_v8, %v1715_v6  ;;  %v2347_v14 = vpack.c.b16 %v2333_v18, %v2333_v18 }
  0xd9   :  { %v995_v13 = vmax.f32 %v703_v0, %v708_v7  ;;  %v996_v15 = vmax.f32 %v704_v4, %v709_v9  ;;  %v997_v16 = vmax.f32 %v597_v36, %v710_v10  ;;  %v8424_v17 = vrot.slane %v994_v11, 9 }
  0xda   :  { %v1819_v32 = vsel %vm1808_vm5, %v1717_v19, %v1818_v22  ;;  %v497_v36 = vmul.f32 %v11069_v21, %v379_v12 }
  0xdb   :  { %v8425_v20 = vrot.slane %v995_v13, 9  ;;  %v8426_v24 = vrot.slane %v996_v15, 9  ;;  %v8427_v25 = vrot.slane %v997_v16, 9  ;;  %v1484_v26 = vmax.f32 %v994_v11, %v8424_v17 }
  0xdc   :  { %v550_v44 = vadd.f32 %v11083_v23, %v497_v36 }
  0xdd   :  { %v1485_v27 = vmax.f32 %v995_v13, %v8425_v20  ;;  %v1486_v28 = vmax.f32 %v996_v15, %v8426_v24  ;;  %v1487_v29 = vmax.f32 %v997_v16, %v8427_v25  ;;  %v1718_v30 = vperm.slane %v1484_v26, 0 }
  0xde   :  { %v599_v47 = vmax.f32 %v550_v44, 0.0 }
  0xdf   :  { %v1719_v31 = vperm.slane %v1485_v27, 0  ;;  %v1720_v34 = vperm.slane %v1486_v28, 0  ;;  %v1820_v35 = vsel %vm1810_vm6, %v1718_v30, %v1819_v32  ;;  %2361 = vrot.lane.b32.xlu2 %v2347_v14, %s10859_s29  ;;  %v382_v37 = vpop.f32.mrf.mxu0  ;;  %v1721_v38 = vperm.slane %v1487_v29, 0 }
  0xe0   :  { %v498_v40 = vmul.f32 %v11069_v21, %v382_v37  ;;  %v711_v56 = vrot.slane %v599_v47, 2  ;;  %v712_v59 = vrot.slane %v599_v47, 4  ;;  %v713_v63 = vrot.slane %v599_v47, 6 }
  0xe1   :  { %v1821_v39 = vsel %vm1812_vm7, %v1719_v31, %v1820_v35 }
  0xe2   :  { %v1822_v41 = vsel %vm1814_vm8, %v1720_v34, %v1821_v39  ;;  %v551_v43 = vadd.f32 %v11083_v23, %v498_v40  ;;  %8401 = vmatmul.msk.bf16.gmra.mxu0 %vm273_vm1, %v10379_v33 }
  0xe3   :  { %v1823_v42 = vsel %vm1816_vm9, %v1721_v38, %v1822_v41 }
  0xe4   :  { %1913 = vst.msk [vmem:[#allocation2 + $0x21] sm:$0x7f] %vm15402_vm10, %v1823_v42  ;;  %v600_v45 = vmax.f32 %v551_v43, 0.0 }
  0xe6   :  { %v716_v46 = vrot.slane %v600_v45, 6  ;;  %v714_v28 = vrot.slane %v600_v45, 2  ;;  %v715_v14 = vrot.slane %v600_v45, 4 }
  0xe7   :  { %v384_v48 = vpop.f32.mrf.mxu0 }
  0xe8   :  { %v499_v49 = vmul.f32 %v11069_v21, %v384_v48  ;;  %v998_v50 = vmax.f32 %v599_v47, %v716_v46 }
  0xea   :  { %v552_v51 = vadd.f32 %v11083_v23, %v499_v49  ;;  %v8428_v60 = vrot.slane %v998_v50, 9 }
  0xeb   :  { %v2011_v52 = vld [vmem:[#allocation2 + $0x20] sm:$0x7f] }
  0xec   :  { %v1956_v53 = vld [vmem:[#allocation2 + $0x21] sm:$0x7f]  ;;  %v2025_v54 = vpack.c.bf16 %v2011_v52, %v2011_v52  ;;  %v601_v57 = vmax.f32 %v552_v51, 0.0  ;;  %v1488_v13 = vmax.f32 %v998_v50, %v8428_v60 }
  0xed   :  { %v1970_v55 = vpack.c.bf16 %v1956_v53, %v1956_v53  ;;  %v2067_v58 = vld [vmem:[#allocation2 + $0x22] sm:$0x7f] }
  0xee   :  { %v2264_v61 = vunpack.c.l.b16 %v2025_v54  ;;  %v717_v0 = vrot.slane %v601_v57, 2  ;;  %v718_v1 = vrot.slane %v601_v57, 4  ;;  %v719_v2 = vrot.slane %v601_v57, 6  ;;  %v2123_v22 = vld [vmem:[#allocation2 + $0x21] sm:$0x7f]  ;;  %v10381_v53 = vld [vmem:[%s15416_s27 + $0x70] sm:$0xff] }
  0xef   :  { %v2195_v62 = vunpack.c.l.b16 %v1970_v55  ;;  %v999_v4 = vmax.f32 %v711_v56, %v601_v57  ;;  %v387_v5 = vpop.f32.mrf.mxu0  ;;  %v2081_v8 = vpack.c.bf16 %v2067_v58, %v2067_v58  ;;  %v1722_v29 = vperm.slane %v1488_v13, 0 }
  0xf0   :  { %v2278_v6 = vpack.c.b16 %v2264_v61, %v2264_v61  ;;  %v1000_v9 = vmax.f32 %v712_v59, %v717_v0  ;;  %v1001_v10 = vmax.f32 %v713_v63, %v718_v1  ;;  %v1002_v11 = vmax.f32 %v600_v45, %v719_v2 }
  0xf1   :  { %v2209_v7 = vpack.c.b16 %v2195_v62, %v2195_v62  ;;  %v500_v12 = vmul.f32 %v11069_v21, %v387_v5  ;;  %v8429_v15 = vrot.slane %v999_v4, 9  ;;  %v2334_v20 = vunpack.c.l.b16 %v2081_v8 }
  0xf2   :  { %2293 = vrot.lane.b32.xlu0 %v2278_v6, %s10859_s29  ;;  %v8430_v16 = vrot.slane %v1000_v9, 9  ;;  %v8431_v17 = vrot.slane %v1001_v10, 9  ;;  %8402 = vmatmul.msk.bf16.gmra.mxu0 %vm273_vm1, %v10380_v3  ;;  %v8432_v24 = vrot.slane %v1002_v11, 9  ;;  %v2137_v33 = vpack.c.bf16 %v2123_v22, %v2123_v22 }
  0xf3   :  { %2225 = vrot.lane.b32.xlu2 %v2209_v7, %s10859_s29  ;;  %v553_v18 = vadd.f32 %v11083_v23, %v500_v12  ;;  %v1489_v19 = vmax.f32 %v999_v4, %v8429_v15  ;;  %v2348_v38 = vpack.c.b16 %v2334_v20, %v2334_v20 }
  0xf4   :  { %v1490_v25 = vmax.f32 %v1000_v9, %v8430_v16  ;;  %v1491_v26 = vmax.f32 %v1001_v10, %v8431_v17  ;;  %v1492_v39 = vmax.f32 %v1002_v11, %v8432_v24  ;;  %v2403_v46 = vunpack.c.l.b16 %v2137_v33 }
  0xf5   :  { %v602_v27 = vmax.f32 %v553_v18, 0.0  ;;  %v1723_v30 = vperm.slane %v1489_v19, 0 }
  0xf6   :  { %v1724_v31 = vperm.slane %v1490_v25, 0  ;;  %v1725_v34 = vperm.slane %v1491_v26, 0  ;;  %v1726_v47 = vperm.slane %v1492_v39, 0  ;;  %v2417_v56 = vpack.c.b16 %v2403_v46, %v2403_v46 }
  0xf7   :  { %v720_v32 = vrot.slane %v602_v27, 2  ;;  %v1824_v35 = vsel %vm1806_vm4, %v1723_v30, %v1722_v29  ;;  %v1003_v36 = vmax.f32 %v714_v28, %v602_v27  ;;  %v389_v37 = vpop.f32.mrf.mxu0  ;;  %v721_v62 = vrot.slane %v602_v27, 4 }
  0xf8   :  { %v1825_v40 = vsel %vm1808_vm5, %v1724_v31, %v1824_v35  ;;  %v501_v52 = vmul.f32 %v11069_v21, %v389_v37  ;;  %v722_v63 = vrot.slane %v602_v27, 6 }
  0xf9   :  { %v1004_v41 = vmax.f32 %v715_v14, %v720_v32  ;;  %v8433_v42 = vrot.slane %v1003_v36, 9  ;;  %v1826_v44 = vsel %vm1810_vm6, %v1725_v34, %v1825_v40 }
  0xfa   :  { %2363 = vrot.lane.b32.xlu0 %v2348_v38, %s10859_s29  ;;  %v1827_v51 = vsel %vm1812_vm7, %v1726_v47, %v1826_v44  ;;  %v554_v59 = vadd.f32 %v11083_v23, %v501_v52  ;;  %v10382_v38 = vld [vmem:[%s15416_s27 + $0x78] sm:$0xff] }
  0xfb   :  { %v8434_v43 = vrot.slane %v1004_v41, 9  ;;  %v1493_v45 = vmax.f32 %v1003_v36, %v8433_v42 }
  0xfc   :  { %v603_v0 = vmax.f32 %v554_v59, 0.0 }
  0xfd   :  { %v1494_v48 = vmax.f32 %v1004_v41, %v8434_v43  ;;  %v1727_v49 = vperm.slane %v1493_v45, 0 }
  0xfe   :  { %v723_v22 = vrot.slane %v603_v0, 2  ;;  %v724_v27 = vrot.slane %v603_v0, 4  ;;  %v725_v34 = vrot.slane %v603_v0, 6 }
  0xff   :  { %v1728_v50 = vperm.slane %v1494_v48, 0  ;;  %v1828_v54 = vsel %vm1814_vm8, %v1727_v49, %v1827_v51  ;;  %v392_v55 = vpop.f32.mrf.mxu0 }
 0x100   :  { %v502_v58 = vmul.f32 %v11069_v21, %v392_v55 }
 0x101   :  { %v1829_v57 = vsel %vm1816_vm9, %v1728_v50, %v1828_v54 }
 0x102   :  { %1914 = vst.msk [vmem:[#allocation2 + $0x31] sm:$0x7f] %vm15402_vm10, %v1829_v57  ;;  %2431 = vrot.lane.b32.xlu0 %v2417_v56, %s10859_s29  ;;  %v555_v60 = vadd.f32 %v11083_v23, %v502_v58  ;;  %8403 = vmatmul.msk.bf16.gmra.mxu0 %vm273_vm1, %v10381_v53 }
 0x104   :  { %v604_v61 = vmax.f32 %v555_v60, 0.0 }
 0x106   :  { %v726_v1 = vrot.slane %v604_v61, 2  ;;  %v727_v2 = vrot.slane %v604_v61, 4  ;;  %v728_v3 = vrot.slane %v604_v61, 6 }
 0x107   :  { %v394_v4 = vpop.f32.mrf.mxu0 }
 0x108   :  { %v1005_v5 = vmax.f32 %v721_v62, %v726_v1  ;;  %v1006_v6 = vmax.f32 %v722_v63, %v727_v2  ;;  %v1007_v7 = vmax.f32 %v603_v0, %v728_v3  ;;  %v503_v8 = vmul.f32 %v11069_v21, %v394_v4 }
 0x109   :  { %v2124_v9 = vld [vmem:[#allocation2 + $0x31] sm:$0x7f] }
 0x10a   :  { %v2068_v10 = vld [vmem:[#allocation2 + $0x32] sm:$0x7f]  ;;  %v2138_v12 = vpack.c.bf16 %v2124_v9, %v2124_v9  ;;  %v8435_v16 = vrot.slane %v1005_v5, 9  ;;  %v8436_v17 = vrot.slane %v1006_v6, 9  ;;  %v8437_v18 = vrot.slane %v1007_v7, 9 }
 0x10b   :  { %v2012_v11 = vld [vmem:[#allocation2 + $0x30] sm:$0x7f]  ;;  %v2082_v13 = vpack.c.bf16 %v2068_v10, %v2068_v10  ;;  %v556_v19 = vadd.f32 %v11083_v23, %v503_v8 }
 0x10c   :  { %v2026_v15 = vpack.c.bf16 %v2012_v11, %v2012_v11  ;;  %v1957_v20 = vld [vmem:[#allocation2 + $0x31] sm:$0x7f]  ;;  %v2404_v24 = vunpack.c.l.b16 %v2138_v12  ;;  %v1495_v28 = vmax.f32 %v1005_v5, %v8435_v16  ;;  %v1496_v29 = vmax.f32 %v1006_v6, %v8436_v17  ;;  %v10383_v11 = vld [vmem:[%s15416_s27 + $0x80] sm:$0xff] }
 0x10d   :  { %v2335_v25 = vunpack.c.l.b16 %v2082_v13  ;;  %v605_v30 = vmax.f32 %v556_v19, 0.0  ;;  %v1971_v33 = vpack.c.bf16 %v1957_v20, %v1957_v20  ;;  %v1497_v35 = vmax.f32 %v1007_v7, %v8437_v18 }
 0x10e   :  { %v2265_v26 = vunpack.c.l.b16 %v2026_v15  ;;  %v2418_v14 = vpack.c.b16 %v2404_v24, %v2404_v24  ;;  %v1729_v36 = vperm.slane %v1495_v28, 0  ;;  %v1730_v39 = vperm.slane %v1496_v29, 0 }
 0x10f   :  { %v2349_v31 = vpack.c.b16 %v2335_v25, %v2335_v25  ;;  %v729_v37 = vrot.slane %v605_v30, 2  ;;  %v730_v40 = vrot.slane %v605_v30, 4  ;;  %v731_v41 = vrot.slane %v605_v30, 6  ;;  %v397_v43 = vpop.f32.mrf.mxu0 }
 0x110   :  { %v2279_v32 = vpack.c.b16 %v2265_v26, %v2265_v26  ;;  %v1008_v42 = vmax.f32 %v723_v22, %v605_v30  ;;  %2433 = vrot.lane.b32.xlu1 %v2418_v14, %s10859_s29  ;;  %v2196_v48 = vunpack.c.l.b16 %v1971_v33  ;;  %v1731_v49 = vperm.slane %v1497_v35, 0 }
 0x111   :  { %2365 = vrot.lane.b32.xlu0 %v2349_v31, %s10859_s29  ;;  %v1009_v44 = vmax.f32 %v724_v27, %v729_v37  ;;  %v1010_v45 = vmax.f32 %v725_v34, %v730_v40  ;;  %v1011_v46 = vmax.f32 %v604_v61, %v731_v41  ;;  %v1830_v51 = vsel %vm1806_vm4, %v1730_v39, %v1729_v36 }
 0x112   :  { %2295 = vrot.lane.b32.xlu2 %v2279_v32, %s10859_s29  ;;  %v8438_v47 = vrot.slane %v1008_v42, 9  ;;  %8404 = vmatmul.msk.bf16.gmra.mxu0 %vm273_vm1, %v10382_v38  ;;  %v2210_v59 = vpack.c.b16 %v2196_v48, %v2196_v48  ;;  %v1831_v60 = vsel %vm1808_vm5, %v1731_v49, %v1830_v51  ;;  %v504_v0 = vmul.f32 %v11069_v21, %v397_v43 }
 0x113   :  { %v8439_v50 = vrot.slane %v1009_v44, 9  ;;  %v8440_v52 = vrot.slane %v1010_v45, 9  ;;  %v8441_v53 = vrot.slane %v1011_v46, 9 }
 0x114   :  { %v1498_v54 = vmax.f32 %v1008_v42, %v8438_v47  ;;  %v557_v8 = vadd.f32 %v11083_v23, %v504_v0 }
 0x115   :  { %v1499_v55 = vmax.f32 %v1009_v44, %v8439_v50  ;;  %v1500_v56 = vmax.f32 %v1010_v45, %v8440_v52  ;;  %v1501_v57 = vmax.f32 %v1011_v46, %v8441_v53 }
 0x116   :  { %v1732_v58 = vperm.slane %v1498_v54, 0  ;;  %v606_v12 = vmax.f32 %v557_v8, 0.0 }
 0x117   :  { %v1733_v62 = vperm.slane %v1499_v55, 0  ;;  %v1734_v61 = vperm.slane %v1500_v56, 0  ;;  %v399_v1 = vpop.f32.mrf.mxu0  ;;  %v1735_v2 = vperm.slane %v1501_v57, 0 }
 0x118   :  { %v1832_v63 = vsel %vm1810_vm6, %v1732_v58, %v1831_v60  ;;  %v505_v4 = vmul.f32 %v11069_v21, %v399_v1  ;;  %v732_v24 = vrot.slane %v606_v12, 2  ;;  %v733_v27 = vrot.slane %v606_v12, 4 }
 0x119   :  { %2227 = vrot.lane.b32.xlu0 %v2210_v59, %s10859_s29  ;;  %v1833_v3 = vsel %vm1812_vm7, %v1733_v62, %v1832_v63  ;;  %v734_v14 = vrot.slane %v606_v12, 6  ;;  %v10384_v62 = vld [vmem:[%s15416_s27 + $0x88] sm:$0xff] }
 0x11a   :  { %v1834_v5 = vsel %vm1814_vm8, %v1734_v61, %v1833_v3  ;;  %v558_v7 = vadd.f32 %v11083_v23, %v505_v4 }
 0x11b   :  { %v1835_v6 = vsel %vm1816_vm9, %v1735_v2, %v1834_v5 }
 0x11c   :  { %1915 = vst.msk [vmem:[#allocation2 + $0x41] sm:$0x7f] %vm15402_vm10, %v1835_v6  ;;  %v11236_v9 = vmax.f32 %v558_v7, 0.0 }
 0x11e   :  { %v737_v10 = vrot.slane %v11236_v9, 6  ;;  %v735_v55 = vrot.slane %v11236_v9, 2  ;;  %v736_v58 = vrot.slane %v11236_v9, 4 }
 0x11f   :  { %v402_v13 = vpop.f32.mrf.mxu0 }
 0x120   :  { %v506_v15 = vmul.f32 %v11069_v21, %v402_v13  ;;  %v1012_v16 = vmax.f32 %v606_v12, %v737_v10 }
 0x122   :  { %v559_v17 = vadd.f32 %v11083_v23, %v506_v15  ;;  %8405 = vmatmul.msk.bf16.gmra.mxu0 %vm273_vm1, %v10383_v11  ;;  %v8442_v28 = vrot.slane %v1012_v16, 9 }
 0x123   :  { %v2125_v18 = vld [vmem:[#allocation2 + $0x41] sm:$0x7f] }
 0x124   :  { %v2013_v19 = vld [vmem:[#allocation2 + $0x40] sm:$0x7f]  ;;  %v2139_v20 = vpack.c.bf16 %v2125_v18, %v2125_v18  ;;  %v608_v25 = vmax.f32 %v559_v17, 0.0  ;;  %v1502_v43 = vmax.f32 %v1012_v16, %v8442_v28 }
 0x125   :  { %v2027_v22 = vpack.c.bf16 %v2013_v19, %v2013_v19  ;;  %v2069_v26 = vld [vmem:[#allocation2 + $0x42] sm:$0x7f] }
 0x126   :  { %v2405_v29 = vunpack.c.l.b16 %v2139_v20  ;;  %v738_v31 = vrot.slane %v608_v25, 2  ;;  %v739_v32 = vrot.slane %v608_v25, 4  ;;  %v740_v33 = vrot.slane %v608_v25, 6  ;;  %v1958_v50 = vld [vmem:[#allocation2 + $0x41] sm:$0x7f] }
 0x127   :  { %v2266_v30 = vunpack.c.l.b16 %v2027_v22  ;;  %v1013_v34 = vmax.f32 %v732_v24, %v608_v25  ;;  %v404_v35 = vpop.f32.mrf.mxu0  ;;  %v2083_v38 = vpack.c.bf16 %v2069_v26, %v2069_v26  ;;  %v1736_v56 = vperm.slane %v1502_v43, 0 }
 0x128   :  { %v2419_v36 = vpack.c.b16 %v2405_v29, %v2405_v29  ;;  %v1014_v39 = vmax.f32 %v733_v27, %v738_v31  ;;  %v1015_v40 = vmax.f32 %v734_v14, %v739_v32  ;;  %v1016_v41 = vmax.f32 %v11236_v9, %v740_v33 }
 0x129   :  { %v2280_v37 = vpack.c.b16 %v2266_v30, %v2266_v30  ;;  %v507_v42 = vmul.f32 %v11069_v21, %v404_v35  ;;  %v8443_v44 = vrot.slane %v1013_v34, 9  ;;  %v2336_v49 = vunpack.c.l.b16 %v2083_v38 }
 0x12a   :  { %2435 = vrot.lane.b32.xlu1 %v2419_v36, %s10859_s29  ;;  %v8444_v45 = vrot.slane %v1014_v39, 9  ;;  %v8445_v46 = vrot.slane %v1015_v40, 9  ;;  %v8446_v51 = vrot.slane %v1016_v41, 9  ;;  %v1972_v61 = vpack.c.bf16 %v1958_v50, %v1958_v50 }
 0x12b   :  { %2297 = vrot.lane.b32.xlu0 %v2280_v37, %s10859_s29  ;;  %v560_v47 = vadd.f32 %v11083_v23, %v507_v42  ;;  %v1503_v48 = vmax.f32 %v1013_v34, %v8443_v44  ;;  %v2350_v3 = vpack.c.b16 %v2336_v49, %v2336_v49  ;;  %v10385_v34 = vld [vmem:[%s15416_s27 + $0x90] sm:$0xff] }
 0x12c   :  { %v1504_v52 = vmax.f32 %v1014_v39, %v8444_v45  ;;  %v1505_v53 = vmax.f32 %v1015_v40, %v8445_v46  ;;  %v1506_v4 = vmax.f32 %v1016_v41, %v8446_v51  ;;  %v2197_v11 = vunpack.c.l.b16 %v1972_v61 }
 0x12d   :  { %v609_v54 = vmax.f32 %v560_v47, 0.0  ;;  %v1737_v57 = vperm.slane %v1503_v48, 0 }
 0x12e   :  { %v1738_v59 = vperm.slane %v1504_v52, 0  ;;  %v1739_v63 = vperm.slane %v1505_v53, 0  ;;  %v1740_v12 = vperm.slane %v1506_v4, 0  ;;  %v2211_v22 = vpack.c.b16 %v2197_v11, %v2197_v11 }
 0x12f   :  { %v741_v60 = vrot.slane %v609_v54, 2  ;;  %v1836_v0 = vsel %vm1806_vm4, %v1737_v57, %v1736_v56  ;;  %v1017_v1 = vmax.f32 %v735_v55, %v609_v54  ;;  %v407_v2 = vpop.f32.mrf.mxu0  ;;  %v742_v29 = vrot.slane %v609_v54, 4 }
 0x130   :  { %v1837_v5 = vsel %vm1808_vm5, %v1738_v59, %v1836_v0  ;;  %v508_v18 = vmul.f32 %v11069_v21, %v407_v2  ;;  %v743_v30 = vrot.slane %v609_v54, 6 }
 0x131   :  { %v1018_v6 = vmax.f32 %v736_v58, %v741_v60  ;;  %v8447_v7 = vrot.slane %v1017_v1, 9  ;;  %v1838_v9 = vsel %vm1810_vm6, %v1739_v63, %v1837_v5 }
 0x132   :  { %2367 = vrot.lane.b32.xlu1 %v2350_v3, %s10859_s29  ;;  %8406 = vmatmul.msk.bf16.gmra.mxu0 %vm273_vm1, %v10384_v62  ;;  %v1839_v16 = vsel %vm1812_vm7, %v1740_v12, %v1838_v9  ;;  %v561_v26 = vadd.f32 %v11083_v23, %v508_v18 }
 0x133   :  { %v8448_v8 = vrot.slane %v1018_v6, 9  ;;  %v1507_v10 = vmax.f32 %v1017_v1, %v8447_v7 }
 0x134   :  { %v610_v14 = vmax.f32 %v561_v26, 0.0  ;;  %v11282_v26 = vpop.permute.xlu2 %2443 }
 0x135   :  { %v1508_v13 = vmax.f32 %v1018_v6, %v8448_v8  ;;  %v1741_v15 = vperm.slane %v1507_v10, 0 }
 0x136   :  { %v744_v51 = vrot.slane %v610_v14, 2  ;;  %v745_v55 = vrot.slane %v610_v14, 4  ;;  %v746_v58 = vrot.slane %v610_v14, 6 }
 0x137   :  { %v1742_v17 = vperm.slane %v1508_v13, 0  ;;  %v1840_v19 = vsel %vm1814_vm8, %v1741_v15, %v1839_v16  ;;  %v409_v20 = vpop.f32.mrf.mxu0 }
 0x138   :  { %v509_v25 = vmul.f32 %v11069_v21, %v409_v20 }
 0x139   :  { %v1841_v24 = vsel %vm1816_vm9, %v1742_v17, %v1840_v19 }
 0x13a   :  { %1916 = vst.msk [vmem:[#allocation2 + $0x51] sm:$0x7f] %vm15402_vm10, %v1841_v24  ;;  %2229 = vrot.lane.b32.xlu1 %v2211_v22, %s10859_s29  ;;  %v562_v27 = vadd.f32 %v11083_v23, %v509_v25  ;;  %v10386_v25 = vld [vmem:[%s15416_s27 + $0x98] sm:$0xff] }
 0x13c   :  { %v611_v28 = vmax.f32 %v562_v27, 0.0 }
 0x13e   :  { %v747_v31 = vrot.slane %v611_v28, 2  ;;  %v748_v32 = vrot.slane %v611_v28, 4  ;;  %v749_v33 = vrot.slane %v611_v28, 6 }
 0x13f   :  { %v412_v35 = vpop.f32.mrf.mxu0 }
 0x140   :  { %v1019_v36 = vmax.f32 %v742_v29, %v747_v31  ;;  %v1020_v37 = vmax.f32 %v743_v30, %v748_v32  ;;  %v1021_v38 = vmax.f32 %v610_v14, %v749_v33  ;;  %v510_v39 = vmul.f32 %v11069_v21, %v412_v35  ;;  %v11288_v29 = vld [vmem:[%s15417_s1] ss:$0 sm:$0xff] }
 0x141   :  { %v2126_v40 = vld [vmem:[#allocation2 + $0x51] sm:$0x7f] }
 0x142   :  { %v2014_v41 = vld [vmem:[#allocation2 + $0x50] sm:$0x7f]  ;;  %v2140_v42 = vpack.c.bf16 %v2126_v40, %v2126_v40  ;;  %v8449_v44 = vrot.slane %v1019_v36, 9  ;;  %v8450_v45 = vrot.slane %v1020_v37, 9  ;;  %v8451_v46 = vrot.slane %v1021_v38, 9  ;;  %8407 = vmatmul.msk.bf16.gmra.mxu0 %vm273_vm1, %v10385_v34 }
 0x143   :  { %v2028_v43 = vpack.c.bf16 %v2014_v41, %v2014_v41  ;;  %v563_v47 = vadd.f32 %v11083_v23, %v510_v39  ;;  %v2070_v48 = vld [vmem:[#allocation2 + $0x52] sm:$0x7f] }
 0x144   :  { %v2406_v49 = vunpack.c.l.b16 %v2140_v42  ;;  %v1509_v52 = vmax.f32 %v1019_v36, %v8449_v44  ;;  %v1510_v53 = vmax.f32 %v1020_v37, %v8450_v45  ;;  %v2084_v57 = vpack.c.bf16 %v2070_v48, %v2070_v48  ;;  %v1959_v7 = vld [vmem:[#allocation2 + $0x51] sm:$0x7f]  ;;  %v11299_v37 = vld [vmem:[%s15418_s30] ss:$0 sm:$0xff]  ;;  %v11315_v48 = vld [vmem:[#allocation2 + $0x20] sm:$0x7f] }
 0x145   :  { %v2267_v50 = vunpack.c.l.b16 %v2028_v43  ;;  %v612_v54 = vmax.f32 %v563_v47, 0.0  ;;  %v1511_v59 = vmax.f32 %v1021_v38, %v8451_v46  ;;  %v1973_v16 = vpack.c.bf16 %v1959_v7, %v1959_v7  ;;  %v11307_v42 = vld [vmem:[#allocation2 + $0x11] sm:$0x7f] }
 0x146   :  { %v2420_v21 = vpack.c.b16 %v2406_v49, %v2406_v49  ;;  %v1743_v60 = vperm.slane %v1509_v52, 0  ;;  %v1744_v61 = vperm.slane %v1510_v53, 0  ;;  %v2337_v6 = vunpack.c.l.b16 %v2084_v57  ;;  %v11310_v45 = vld [vmem:[#allocation2 + $0x10] sm:$0x7f]  ;;  %v2151_v53 = vld [vmem:[#allocation2 + $0x22] sm:$0x7f] }
 0x147   :  { %v2281_v56 = vpack.c.b16 %v2267_v50, %v2267_v50  ;;  %v750_v62 = vrot.slane %v612_v54, 2  ;;  %v751_v63 = vrot.slane %v612_v54, 4  ;;  %v752_v23 = vrot.slane %v612_v54, 6  ;;  %v414_v1 = vpop.f32.mrf.mxu0  ;;  %v11313_v47 = vld [vmem:[#allocation2 + $0x12] sm:$0x7f] }
 0x148   :  { %v1022_v0 = vmax.f32 %v744_v51, %v612_v54  ;;  %2437 = vrot.lane.b32.xlu2 %v2420_v21, %s10859_s29  ;;  %v1745_v8 = vperm.slane %v1511_v59, 0  ;;  %v1842_v10 = vsel %vm1806_vm4, %v1744_v61, %v1743_v60  ;;  %v2351_v20 = vpack.c.b16 %v2337_v6, %v2337_v6  ;;  %v11318_v50 = vld [vmem:[#allocation2 + $0x22] sm:$0x7f]  ;;  %v11320_v51 = vpop.permute.xlu2 %2291  ;;  %v2152_v54 = vld [vmem:[#allocation2 + $0x32] sm:$0x7f] }
 0x149   :  { %2299 = vrot.lane.b32.xlu1 %v2281_v56, %s10859_s29  ;;  %v1023_v2 = vmax.f32 %v745_v55, %v750_v62  ;;  %v1024_v3 = vmax.f32 %v746_v58, %v751_v63  ;;  %v1025_v4 = vmax.f32 %v611_v28, %v752_v23  ;;  %v511_v30 = vmul.f32 %v11288_v29, %v414_v1 }
 0x14a   :  { %v8452_v5 = vrot.slane %v1022_v0, 9  ;;  %v1843_v24 = vsel %vm1808_vm5, %v1745_v8, %v1842_v10  ;;  %v2198_v35 = vunpack.c.l.b16 %v1973_v16  ;;  %v2052_v55 = vpack.c.bf16 %v11307_v42, %v11307_v42  ;;  %v11337_v10 = vld [vmem:[#allocation2 + $0x20] sm:$0x7f]  ;;  %v10387_v16 = vld [vmem:[%s15416_s27 + $0xa0] sm:$0xff] }
 0x14b   :  { %v8453_v9 = vrot.slane %v1023_v2, 9  ;;  %v8454_v11 = vrot.slane %v1024_v3, 9  ;;  %v8455_v12 = vrot.slane %v1025_v4, 9  ;;  %v564_v39 = vadd.f32 %v11299_v37, %v511_v30 }
 0x14c   :  { %v1512_v13 = vmax.f32 %v1022_v0, %v8452_v5  ;;  %v2212_v41 = vpack.c.b16 %v2198_v35, %v2198_v35  ;;  %v1941_v21 = vpack.c.bf16 %v11310_v45, %v11310_v45  ;;  %v1997_v59 = vpack.c.bf16 %v11313_v47, %v11313_v47  ;;  %v1926_v35 = vld [vmem:[#allocation2] sm:$0x7f] }
 0x14d   :  { %v1513_v15 = vmax.f32 %v1023_v2, %v8453_v9  ;;  %v1514_v17 = vmax.f32 %v1024_v3, %v8454_v11  ;;  %v1515_v18 = vmax.f32 %v1025_v4, %v8455_v12  ;;  %v613_v44 = vmax.f32 %v564_v39, 0.0  ;;  %v11333_v4 = vpop.permute.xlu1 %2221  ;;  %v11335_v9 = vld [vmem:[#allocation2 + $0x21] sm:$0x7f] }
 0x14e   :  { %v1746_v19 = vperm.slane %v1512_v13, 0  ;;  %v1942_v60 = vpack.c.bf16 %v11315_v48, %v11315_v48  ;;  %v1998_v63 = vpack.c.bf16 %v11318_v50, %v11318_v50  ;;  %v2165_v2 = vpack.c.bf16 %v2151_v53, %v2151_v53 }
 0x14f   :  { %v1747_v22 = vperm.slane %v1513_v15, 0  ;;  %v1748_v27 = vperm.slane %v1514_v17, 0  ;;  %v417_v14 = vpop.f32.mrf.mxu0  ;;  %v1749_v31 = vperm.slane %v1515_v18, 0  ;;  %v753_v23 = vrot.slane %v613_v44, 2  ;;  %v1982_v17 = vld [vmem:[#allocation2 + $0x2] sm:$0x7f] }
 0x150   :  { %v1844_v28 = vsel %vm1810_vm6, %v1746_v19, %v1843_v24  ;;  %2369 = vrot.lane.b32.xlu2 %v2351_v20, %s10859_s29  ;;  %v512_v33 = vmul.f32 %v11288_v29, %v417_v14  ;;  %v2166_v3 = vpack.c.bf16 %v2152_v54, %v2152_v54  ;;  %v754_v5 = vrot.slane %v613_v44, 4 }
 0x151   :  { %v1845_v32 = vsel %vm1812_vm7, %v1747_v22, %v1844_v28  ;;  %v755_v11 = vrot.slane %v613_v44, 6 }
 0x152   :  { %v1846_v34 = vsel %vm1814_vm8, %v1748_v27, %v1845_v32  ;;  %v565_v38 = vadd.f32 %v11299_v37, %v512_v33  ;;  %8408 = vmatmul.msk.bf16.gmra.mxu0 %vm273_vm1, %v10386_v25  ;;  %v2053_v32 = vpack.c.bf16 %v11335_v9, %v11335_v9  ;;  %v2109_v33 = vpack.c.bf16 %v11337_v10, %v11337_v10 }
 0x153   :  { %v1847_v36 = vsel %vm1816_vm9, %v1749_v31, %v1846_v34  ;;  %v1996_v34 = vpack.c.bf16 %v1982_v17, %v1982_v17 }
 0x154   :  { %1917 = vst.msk [vmem:[#allocation2 + $0x61] sm:$0x7f] %vm15402_vm10, %v1847_v36  ;;  %v11305_v40 = vmax.f32 %v565_v38, 0.0 }
 0x156   :  { %v758_v43 = vrot.slane %v11305_v40, 6 }
 0x157   :  { %v419_v46 = vpop.f32.mrf.mxu0 }
 0x158   :  { %2231 = vrot.lane.b32.xlu2 %v2212_v41, %s10859_s29  ;;  %v513_v49 = vmul.f32 %v11288_v29, %v419_v46  ;;  %v1026_v52 = vmax.f32 %v613_v44, %v758_v43  ;;  %v2362_v41 = vpop.permute.xlu2 %2361 }
 0x15a   :  { %v566_v56 = vadd.f32 %v11299_v37, %v513_v49  ;;  %v8456_v6 = vrot.slane %v1026_v52, 9  ;;  %v11352_v49 = vrot.slane %v2165_v2, 4 }
 0x15b   :  { %v2127_v57 = vld [vmem:[#allocation2 + $0x61] sm:$0x7f] }
 0x15c   :  { %v2015_v58 = vld [vmem:[#allocation2 + $0x60] sm:$0x7f]  ;;  %v2141_v62 = vpack.c.bf16 %v2127_v57, %v2127_v57  ;;  %v615_v0 = vmax.f32 %v566_v56, 0.0  ;;  %v1516_v14 = vmax.f32 %v1026_v52, %v8456_v6  ;;  %v11354_v52 = vrot.slane %v2166_v3, 4 }
 0x15d   :  { %v2029_v61 = vpack.c.bf16 %v2015_v58, %v2015_v58  ;;  %v2071_v1 = vld [vmem:[#allocation2 + $0x62] sm:$0x7f]  ;;  %v11358_v58 = vld [vmem:[#allocation2 + $0x30] sm:$0x7f]  ;;  %v2503_v3 = vsel %vm1572_vm2, %v1996_v34, %v11320_v51  ;;  %v757_v6 = vrot.slane %v11305_v40, 4 }
 0x15e   :  { %v2407_v7 = vunpack.c.l.b16 %v2141_v62  ;;  %v759_v12 = vrot.slane %v615_v0, 2  ;;  %v760_v13 = vrot.slane %v615_v0, 4  ;;  %v761_v15 = vrot.slane %v615_v0, 6  ;;  %v11360_v62 = vld [vmem:[#allocation2 + $0x31] sm:$0x7f] }
 0x15f   :  { %v2268_v8 = vunpack.c.l.b16 %v2029_v61  ;;  %v1027_v18 = vmax.f32 %v753_v23, %v615_v0  ;;  %v422_v19 = vpop.f32.mrf.mxu0  ;;  %v2085_v24 = vpack.c.bf16 %v2071_v1, %v2071_v1  ;;  %v1940_v61 = vpack.c.bf16 %v1926_v35, %v1926_v35  ;;  %v11362_v23 = vpop.permute.xlu1 %2235  ;;  %v1960_v2 = vld [vmem:[#allocation2 + $0x61] sm:$0x7f] }
 0x160   :  { %v2421_v20 = vpack.c.b16 %v2407_v7, %v2407_v7  ;;  %v1028_v25 = vmax.f32 %v754_v5, %v759_v12  ;;  %v1029_v27 = vmax.f32 %v755_v11, %v760_v13  ;;  %v1030_v28 = vmax.f32 %v11305_v40, %v761_v15  ;;  %v11369_v11 = vld [vmem:[#allocation2 + $0x30] sm:$0x7f]  ;;  %v11388_v34 = vpop.permute.xlu2 %2225 }
 0x161   :  { %v2282_v22 = vpack.c.b16 %v2268_v8, %v2268_v8  ;;  %v514_v30 = vmul.f32 %v11288_v29, %v422_v19  ;;  %v8457_v31 = vrot.slane %v1027_v18, 9  ;;  %v2338_v46 = vunpack.c.l.b16 %v2085_v24 }
 0x162   :  { %2439 = vrot.lane.b32.xlu0 %v2421_v20, %s10859_s29  ;;  %v8458_v36 = vrot.slane %v1028_v25, 9  ;;  %v8459_v38 = vrot.slane %v1029_v27, 9  ;;  %8409 = vmatmul.msk.bf16.gmra.mxu0 %vm273_vm1, %v10387_v16  ;;  %v8460_v53 = vrot.slane %v1030_v28, 9  ;;  %v756_v0 = vrot.slane %v11305_v40, 2 }
 0x163   :  { %2301 = vrot.lane.b32.xlu2 %v2282_v22, %s10859_s29  ;;  %v567_v39 = vadd.f32 %v11299_v37, %v514_v30  ;;  %v1517_v43 = vmax.f32 %v1027_v18, %v8457_v31  ;;  %v1750_v1 = vperm.slane %v1516_v14, 0  ;;  %v2352_v17 = vpack.c.b16 %v2338_v46, %v2338_v46 }
 0x164   :  { %v2294_v44 = vpop.permute.xlu0 %2293  ;;  %v1518_v54 = vmax.f32 %v1028_v25, %v8458_v36  ;;  %v1519_v56 = vmax.f32 %v1029_v27, %v8459_v38  ;;  %v1520_v18 = vmax.f32 %v1030_v28, %v8460_v53  ;;  %v1974_v22 = vpack.c.bf16 %v1960_v2, %v1960_v2 }
 0x165   :  { %v11356_v57 = vmax.f32 %v567_v39, 0.0  ;;  %v1751_v5 = vperm.slane %v1517_v43, 0  ;;  %v2110_v40 = vpack.c.bf16 %v11358_v58, %v11358_v58  ;;  %v2054_v24 = vpack.c.bf16 %v11360_v62, %v11360_v62  ;;  %v10414_v58 = vld [vmem:[%s15419_s6 + $0xa8] sm:$0xff]  ;;  %v10403_v62 = vld [vmem:[%s15419_s6 + $0x50] sm:$0xff] }
 0x166   :  { %v1752_v7 = vperm.slane %v1518_v54, 0  ;;  %v1753_v12 = vperm.slane %v1519_v56, 0  ;;  %v1943_v25 = vpack.c.bf16 %v11369_v11, %v11369_v11  ;;  %v2545_v27 = vsel %vm1572_vm2, %v2052_v55, %v2362_v41  ;;  %v10388_v56 = vld [vmem:[%s15416_s27 + $0xa8] sm:$0xff] }
 0x167   :  { %v762_v8 = vrot.slane %v11356_v57, 2  ;;  %v1848_v13 = vsel %vm1806_vm4, %v1751_v5, %v1750_v1  ;;  %v1031_v15 = vmax.f32 %v756_v0, %v11356_v57  ;;  %v424_v16 = vpop.f32.mrf.mxu0  ;;  %v2683_v14 = vrot.slane %v2503_v3, 7  ;;  %v2224_v5 = vpop.permute.xlu1 %2223 }
 0x168   :  { %v1849_v19 = vsel %vm1808_vm5, %v1752_v7, %v1848_v13  ;;  %v515_v30 = vmul.f32 %v11288_v29, %v424_v16  ;;  %v2461_v31 = vsel %vm1572_vm2, %v1940_v61, %v11333_v4  ;;  %v1754_v39 = vperm.slane %v1520_v18, 0 }
 0x169   :  { %v1032_v20 = vmax.f32 %v757_v6, %v762_v8  ;;  %v8461_v51 = vrot.slane %v1031_v15, 9  ;;  %v1850_v35 = vsel %vm1810_vm6, %v1753_v12, %v1849_v19  ;;  %v2199_v46 = vunpack.c.l.b16 %v1974_v22 }
 0x16a   :  { %2371 = vrot.lane.b32.xlu0 %v2352_v17, %s10859_s29  ;;  %v2684_v42 = vrot.slane %v2545_v27, 6  ;;  %v2506_v41 = vsel %vm1572_vm2, %v1997_v59, %v2294_v44  ;;  %v1851_v53 = vsel %vm1812_vm7, %v1754_v39, %v1850_v35  ;;  %v568_v54 = vadd.f32 %v11299_v37, %v515_v30 }
 0x16b   :  { %v8462_v28 = vrot.slane %v1032_v20, 9  ;;  %v1521_v36 = vmax.f32 %v1031_v15, %v8461_v51  ;;  %v2741_v61 = vsel %vm15403_vm11, %v2461_v31, %v2683_v14  ;;  %v2750_v0 = vsel %vm1806_vm4, %v2461_v31, %v2683_v14 }
 0x16c   :  { %v2364_v38 = vpop.permute.xlu0 %2363  ;;  %v2758_v1 = vsel %vm1808_vm5, %v2461_v31, %v2683_v14  ;;  %v2766_v44 = vsel %vm1810_vm6, %v2461_v31, %v2683_v14  ;;  %v2687_v3 = vrot.slane %v2506_v41, 7  ;;  %v2213_v6 = vpack.c.b16 %v2199_v46, %v2199_v46  ;;  %v2296_v19 = vpop.permute.xlu2 %2295 }
 0x16d   :  { %v1522_v43 = vmax.f32 %v1032_v20, %v8462_v28  ;;  %v1755_v55 = vperm.slane %v1521_v36, 0  ;;  %v2743_v7 = vsel %vm349_vm0, %v2741_v61, %v2684_v42  ;;  %v2752_v8 = vsel %vm2751_vm12, %v2750_v0, %v2684_v42 }
 0x16e   :  { %v2760_v12 = vsel %vm2759_vm13, %v2758_v1, %v2684_v42  ;;  %v11410_v13 = vsel %vm2767_vm14, %v2766_v44, %v2684_v42  ;;  %v2464_v15 = vsel %vm1572_vm2, %v1941_v21, %v2224_v5  ;;  %v11417_v16 = vmax.f32 %v568_v54, 0.0 }
 0x16f   :  { %v1756_v4 = vperm.slane %v1522_v43, 0  ;;  %v1852_v47 = vsel %vm1814_vm8, %v1755_v55, %v1851_v53  ;;  %v427_v59 = vpop.f32.mrf.mxu0  ;;  %v763_v18 = vrot.slane %v11356_v57, 4  ;;  %v2548_v20 = vsel %vm1572_vm2, %v2053_v32, %v2364_v38 }
 0x170   :  { %v516_v17 = vmul.f32 %v11288_v29, %v427_v59  ;;  %v764_v21 = vrot.slane %v11356_v57, 6  ;;  %v2775_v22 = vsel %vm15403_vm11, %v2464_v15, %v2687_v3  ;;  %v2783_v28 = vsel %vm1806_vm4, %v2464_v15, %v2687_v3 }
 0x171   :  { %v1853_v2 = vsel %vm1816_vm9, %v1756_v4, %v1852_v47  ;;  %v11436_v9 = vsel %vm1808_vm5, %v2464_v15, %v2687_v3  ;;  %v11439_v32 = vsel %vm1810_vm6, %v2464_v15, %v2687_v3  ;;  %v765_v57 = vrot.slane %v11417_v16, 2  ;;  %v10408_v3 = vld [vmem:[%s15419_s6 + $0x78] sm:$0xff] }
 0x172   :  { %1918 = vst.msk [vmem:[#allocation2 + $0x71] sm:$0x7f] %vm15402_vm10, %v1853_v2  ;;  %2233 = vrot.lane.b32.xlu0 %v2213_v6, %s10859_s29  ;;  %8410 = vmatmul.msk.bf16.gmra.mxu0 %vm273_vm1, %v10388_v56  ;;  %vm2762_vm10 = vcmask 1044482   ;;  %v569_v51 = vadd.f32 %v11299_v37, %v516_v17  ;;  %v11446_v14 = vsel %vm1572_vm2, %v1998_v63, %v2296_v19  ;;  %v11448_v10 = vrot.slane %v2548_v20, 6  ;;  %v10400_v2 = vld [vmem:[%s15419_s6 + $0x38] sm:$0xff]  ;;  %v10399_v20 = vld [vmem:[%s15419_s6 + $0x30] sm:$0xff] }
 0x173   :  { %v766_v31 = vrot.slane %v11417_v16, 4  ;;  %vm15404_vm11 = vcmask 1045507   ;;  %v767_v55 = vrot.slane %v11417_v16, 6  ;;  %v10416_v6 = vld [vmem:[%s15419_s6 + $0xb8] sm:$0xff]  ;;  %3742 = vmatpush.bf16.msra.mxu1 %v10400_v2  ;;  %3784 = vmatpush.bf16.msra.mxu2 %v10408_v3 }
 0x174   :  { %v2432_v45 = vpop.permute.xlu0 %2431  ;;  %v11465_v5 = vsel %vm349_vm0, %v2775_v22, %v11448_v10  ;;  %3826 = vmatpush.bf16.msra.mxu3 %v10416_v6  ;;  %v10397_v6 = vld [vmem:[%s15419_s6 + $0x20] sm:$0xff] }
 0x175   :  { %v2587_v27 = vsel %vm1572_vm2, %v2109_v33, %v2432_v45  ;;  %v618_v33 = vmax.f32 %v569_v51, 0.0  ;;  %v10407_v45 = vld [vmem:[%s15419_s6 + $0x70] sm:$0xff] }
 0x176   :  { %v2685_v30 = vrot.slane %v2587_v27, 5 }
 0x177   :  { %v429_v39 = vpop.f32.mrf.mxu0  ;;  %v768_v50 = vrot.slane %v618_v33, 2  ;;  %v769_v43 = vrot.slane %v618_v33, 4  ;;  %v770_v63 = vrot.slane %v618_v33, 6  ;;  %3743 = vmatpush.bf16.msra.mxu1 %v10399_v20  ;;  %3785 = vmatpush.bf16.msra.mxu2 %v10407_v45 }
 0x178   :  { %v2746_v35 = vsel %vm1810_vm6, %v2685_v30, %v11352_v49  ;;  %v2753_v36 = vsel %vm1812_vm7, %v2685_v30, %v11352_v49  ;;  %v2761_v38 = vsel %vm1814_vm8, %v2685_v30, %v11352_v49  ;;  %v517_v53 = vmul.f32 %v11288_v29, %v429_v39  ;;  %v10415_v39 = vld [vmem:[%s15419_s6 + $0xb0] sm:$0xff] }
 0x179   :  { %v2748_v46 = vsel %vm2747_vm15, %v2743_v7, %v2746_v35  ;;  %v2128_v42 = vld [vmem:[#allocation2 + $0x71] sm:$0x7f]  ;;  %v2755_v41 = vsel %vm2754_vm3, %v2752_v8, %v2753_v36  ;;  %v2763_v4 = vsel %vm2762_vm10, %v2760_v12, %v2761_v38  ;;  %v1033_v56 = vmax.f32 %v763_v18, %v768_v50  ;;  %v10389_v38 = vld [vmem:[%s15416_s27 + $0xb0] sm:$0xff]  ;;  %3827 = vmatpush.bf16.msra.mxu3 %v10415_v39 }
 0x17a   :  { %3345 = vst [vmem:[#allocation1] ss:$9 sm:$0xff] %v2748_v46  ;;  %v2016_v54 = vld [vmem:[#allocation2 + $0x70] sm:$0x7f]  ;;  %v1034_v61 = vmax.f32 %v764_v21, %v769_v43  ;;  %v1035_v0 = vmax.f32 %v11417_v16, %v770_v63  ;;  %v2757_v1 = vrot.slane %v2755_v41, 1  ;;  %v2765_v47 = vrot.slane %v2763_v4, 2 }
 0x17b   :  { %v570_v59 = vadd.f32 %v11299_v37, %v517_v53  ;;  %v2142_v44 = vpack.c.bf16 %v2128_v42, %v2128_v42  ;;  %v8463_v7 = vrot.slane %v1033_v56, 9  ;;  %v2030_v15 = vpack.c.bf16 %v2016_v54, %v2016_v54 }
 0x17c   :  { %v8464_v8 = vrot.slane %v1034_v61, 9  ;;  %v8465_v12 = vrot.slane %v1035_v0, 9  ;;  %3348 = vst [vmem:[#allocation1 + $0x1] ss:$9 sm:$0xff] %v2757_v1  ;;  %v11479_v16 = vsel %vm2751_vm12, %v2783_v28, %v11448_v10  ;;  %v2769_v17 = vsel %vm1816_vm9, %v2685_v30, %v11352_v49 }
 0x17d   :  { %3351 = vst [vmem:[#allocation1 + $0x2] ss:$9 sm:$0xff] %v2765_v47  ;;  %v619_v18 = vmax.f32 %v570_v59, 0.0  ;;  %v2408_v19 = vunpack.c.l.b16 %v2142_v44  ;;  %v1523_v21 = vmax.f32 %v1033_v56, %v8463_v7  ;;  %v2269_v27 = vunpack.c.l.b16 %v2030_v15  ;;  %v2072_v59 = vld [vmem:[#allocation2 + $0x72] sm:$0x7f]  ;;  %3828 = vmatpush.bf16.msra.mxu3 %v10414_v58 }
 0x17e   :  { %v1524_v22 = vmax.f32 %v1034_v61, %v8464_v8  ;;  %v1525_v51 = vmax.f32 %v1035_v0, %v8465_v12  ;;  %v11498_v50 = vsel %vm2759_vm13, %v11436_v9, %v11448_v10  ;;  %v2796_v54 = vsel %vm2767_vm14, %v11439_v32, %v11448_v10  ;;  %v10406_v32 = vld [vmem:[%s15419_s6 + $0x68] sm:$0xff] }
 0x17f   :  { %v771_v28 = vrot.slane %v619_v18, 2  ;;  %v772_v49 = vrot.slane %v619_v18, 4  ;;  %v773_v30 = vrot.slane %v619_v18, 6  ;;  %v1036_v35 = vmax.f32 %v765_v57, %v619_v18  ;;  %v432_v36 = vpop.f32.mrf.mxu0  ;;  %3786 = vmatpush.bf16.msra.mxu2 %v10406_v32  ;;  %v11575_v32 = vld [vmem:[#allocation2 + $0x40] sm:$0x7f] }
 0x180   :  { %v1757_v43 = vperm.slane %v1523_v21, 0  ;;  %v1758_v63 = vperm.slane %v1524_v22, 0  ;;  %v2422_v46 = vpack.c.b16 %v2408_v19, %v2408_v19  ;;  %v11505_v56 = vsel %vm15404_vm11, %v11410_v13, %v2769_v17  ;;  %v10405_v17 = vld [vmem:[%s15419_s6 + $0x60] sm:$0xff]  ;;  %v11584_v58 = vld [vmem:[#allocation2 + $0x41] sm:$0x7f] }
 0x181   :  { %v1037_v42 = vmax.f32 %v766_v31, %v771_v28  ;;  %v1038_v41 = vmax.f32 %v767_v55, %v772_v49  ;;  %v1039_v57 = vmax.f32 %v618_v33, %v773_v30  ;;  %v8466_v4 = vrot.slane %v1036_v35, 9  ;;  %v10398_v31 = vld [vmem:[%s15419_s6 + $0x28] sm:$0xff]  ;;  %v10413_v22 = vld [vmem:[%s15419_s6 + $0xa0] sm:$0xff] }
 0x182   :  { %v2434_v53 = vpop.permute.xlu1 %2433  ;;  %2441 = vrot.lane.b32.xlu1 %v2422_v46, %s10859_s29  ;;  %v2283_v9 = vpack.c.b16 %v2269_v27, %v2269_v27  ;;  %v1759_v10 = vperm.slane %v1525_v51, 0  ;;  %8411 = vmatmul.msk.bf16.gmra.mxu0 %vm273_vm1, %v10389_v38  ;;  %v518_v1 = vmul.f32 %v11288_v29, %v432_v36  ;;  %v2773_v7 = vrot.slane %v11505_v56, 3  ;;  %v11544_v30 = vld [vmem:[#allocation2 + $0x32] sm:$0x7f] }
 0x183   :  { %v2590_v33 = vsel %vm1572_vm2, %v2110_v40, %v2434_v53  ;;  %v8467_v55 = vrot.slane %v1037_v42, 9  ;;  %v8468_v13 = vrot.slane %v1038_v41, 9  ;;  %v8469_v61 = vrot.slane %v1039_v57, 9  ;;  %3744 = vmatpush.bf16.msra.mxu1 %v10398_v31  ;;  %3787 = vmatpush.bf16.msra.mxu2 %v10405_v17  ;;  %v10394_v17 = vld [vmem:[%s15419_s6 + $0x8] sm:$0xff] }
 0x184   :  { %v1854_v40 = vsel %vm1806_vm4, %v1758_v63, %v1757_v43  ;;  %v1526_v0 = vmax.f32 %v1036_v35, %v8466_v4  ;;  %2303 = vrot.lane.b32.xlu0 %v2283_v9, %s10859_s29  ;;  %v2689_v47 = vrot.slane %v2590_v33, 5  ;;  %v2086_v45 = vpack.c.bf16 %v2072_v59, %v2072_v59  ;;  %v11553_v43 = vld [vmem:[#allocation2 + $0x42] sm:$0x7f]  ;;  %3829 = vmatpush.bf16.msra.mxu3 %v10413_v22  ;;  %v129_v22 = vld [vmem:[%s15416_s27 + $0xc0] sm:$0xf] }
 0x185   :  { %v1527_v44 = vmax.f32 %v1037_v42, %v8467_v55  ;;  %v1528_v2 = vmax.f32 %v1038_v41, %v8468_v13  ;;  %v1529_v3 = vmax.f32 %v1039_v57, %v8469_v61  ;;  %v1855_v18 = vsel %vm1808_vm5, %v1759_v10, %v1854_v40  ;;  %v2366_v41 = vpop.permute.xlu0 %2365 }
 0x186   :  { %v1760_v8 = vperm.slane %v1526_v0, 0  ;;  %v2780_v12 = vsel %vm1810_vm6, %v2689_v47, %v11354_v52  ;;  %v2785_v15 = vsel %vm1812_vm7, %v2689_v47, %v11354_v52  ;;  %v571_v28 = vadd.f32 %v11299_v37, %v518_v1 }
 0x187   :  { %v1761_v19 = vperm.slane %v1527_v44, 0  ;;  %v1762_v20 = vperm.slane %v1528_v2, 0  ;;  %v434_v21 = vpop.f32.mrf.mxu0  ;;  %v1763_v51 = vperm.slane %v1529_v3, 0  ;;  %v2781_v49 = vsel %vm2747_vm15, %v11465_v5, %v2780_v12  ;;  %3745 = vmatpush.bf16.msra.mxu1 %v10397_v6  ;;  %v10390_v3 = vld [vmem:[%s15416_s27 + $0xb8] sm:$0xff]  ;;  %s15444_s27 = sld [smem:[#allocation11_spill]] }
 0x188   :  { %v1856_v27 = vsel %vm1810_vm6, %v1760_v8, %v1855_v18  ;;  %v2786_v36 = vsel %vm2754_vm3, %v11479_v16, %v2785_v15  ;;  %v2791_v38 = vsel %vm1814_vm8, %v2689_v47, %v11354_v52  ;;  %v2797_v39 = vsel %vm1816_vm9, %v2689_v47, %v11354_v52  ;;  %v10396_v16 = vld [vmem:[%s15419_s6 + $0x18] sm:$0xff] }
 0x189   :  { %v1857_v35 = vsel %vm1812_vm7, %v1761_v19, %v1856_v27  ;;  %v2788_v46 = vrot.slane %v2786_v36, 1  ;;  %v2792_v5 = vsel %vm2762_vm10, %v11498_v50, %v2791_v38  ;;  %v2798_v42 = vsel %vm15404_vm11, %v2796_v54, %v2797_v39  ;;  %v10404_v52 = vld [vmem:[%s15419_s6 + $0x58] sm:$0xff]  ;;  %v10410_v39 = vld [vmem:[%s15419_s6 + $0x88] sm:$0xff] }
 0x18a   :  { %v1858_v63 = vsel %vm1814_vm8, %v1762_v20, %v1857_v35  ;;  %v2794_v4 = vrot.slane %v2792_v5, 2  ;;  %v3133_v53 = vunpack.i.h.s16 %v2781_v49  ;;  %v10412_v50 = vld [vmem:[%s15419_s6 + $0x98] sm:$0xff]  ;;  %v1999_v54 = vpack.c.bf16 %v11544_v30, %v11544_v30  ;;  %3788 = vmatpush.bf16.msra.mxu2 %v10404_v52 }
 0x18b   :  { %v1859_v57 = vsel %vm1816_vm9, %v1763_v51, %v1858_v63  ;;  %v2691_v56 = vrot.slane %v11446_v14, 7  ;;  %vm15420_vm11 = vcmask 522240   ;;  %v3135_v9 = vunpack.i.h.s16 %v2788_v46  ;;  %3746 = vmatpush.bf16.msra.mxu1 %v10396_v16  ;;  %v10395_v14 = vld [vmem:[%s15419_s6 + $0x10] sm:$0xff]  ;;  %3830 = vmatpush.bf16.msra.mxu3 %v10412_v50  ;;  %v10402_v51 = vld [vmem:[%s15419_s6 + $0x48] sm:$0xff]  ;;  %v10393_v50 = vld [vmem:[%s15419_s6] sm:$0xff] }
 0x18c   :  { %1919 = vst.msk [vmem:[#allocation2 + $0xa1] sm:$0x7f] %vm15420_vm11, %v1859_v57  ;;  %v8512_v33 = vpack.i.b16 %v2781_v49, %v2773_v7  ;;  %v2167_v31 = vpack.c.bf16 %v11553_v43, %v11553_v43  ;;  %v2800_v10 = vrot.slane %v2798_v42, 3  ;;  %v3137_v55 = vunpack.i.h.s16 %v2794_v4  ;;  %v10411_v7 = vld [vmem:[%s15419_s6 + $0x90] sm:$0xff] }
 0x18d   :  { %v8513_v13 = vpack.i.b16 %v2788_v46, %v3133_v53  ;;  %v2551_v61 = vsel %vm1572_vm2, %v2054_v24, %v2366_v41  ;;  %v11586_v40 = vmax.f32 %v571_v28, 0.0  ;;  %v8514_v0 = vpack.i.b16 %v2794_v4, %v3135_v9  ;;  %v11592_v24 = vld [vmem:[#allocation2 + $0x52] sm:$0x7f]  ;;  %v11650_v42 = vpop.permute.xlu0 %2227 }
 0x18e   :  { %3354 = vst [vmem:[#allocation1 + $0x3] ss:$9 sm:$0xff] %v8512_v33  ;;  %v2339_v1 = vunpack.c.l.b16 %v2086_v45  ;;  %v519_v47 = vmul.f32 %v11288_v29, %v434_v21  ;;  %v2467_v59 = vsel %vm1572_vm2, %v1942_v60, %v11388_v34  ;;  %v8515_v44 = vpack.i.b16 %v2800_v10, %v3137_v55  ;;  %3789 = vmatpush.bf16.msra.mxu2 %v10403_v62  ;;  %v10401_v55 = vld [vmem:[%s15419_s6 + $0x40] sm:$0xff] }
 0x18f   :  { %3357 = vst [vmem:[#allocation1 + $0x4] ss:$9 sm:$0xff] %v8513_v13  ;;  %v437_v2 = vpop.f32.mrf.mxu0  ;;  %v2111_v6 = vpack.c.bf16 %v11575_v32, %v11575_v32  ;;  %v11607_v8 = vrot.slane %v2551_v61, 6  ;;  %vm15421_vm11 = vcmask 1040384   ;;  %3747 = vmatpush.bf16.msra.mxu1 %v10395_v14  ;;  %v2168_v15 = vpack.c.bf16 %v11592_v24, %v11592_v24  ;;  %3831 = vmatpush.bf16.msra.mxu3 %v10411_v7 }
 0x190   :  { %3360 = vst [vmem:[#allocation1 + $0x5] ss:$9 sm:$0xff] %v8514_v0  ;;  %v2353_v48 = vpack.c.b16 %v2339_v1, %v2339_v1  ;;  %v572_v60 = vadd.f32 %v11299_v37, %v519_v47  ;;  %v520_v34 = vmul.f32 %v11288_v29, %v437_v2  ;;  %v2802_v12 = vsel %vm15421_vm11, %v2467_v59, %v2691_v56 }
 0x191   :  { %3363 = vst [vmem:[#allocation1 + $0x6] ss:$9 sm:$0xff] %v8515_v44  ;;  %v2055_v18 = vpack.c.bf16 %v11584_v58, %v11584_v58  ;;  %v774_v19 = vrot.slane %v11586_v40, 2  ;;  %v775_v20 = vrot.slane %v11586_v40, 4  ;;  %v2810_v27 = vsel %vm1806_vm4, %v2467_v59, %v2691_v56 }
 0x192   :  { %2373 = vrot.lane.b32.xlu1 %v2353_v48, %s10859_s29  ;;  %v11622_v45 = vmax.f32 %v572_v60, 0.0  ;;  %v573_v21 = vadd.f32 %v11299_v37, %v520_v34  ;;  %v2816_v28 = vsel %vm1808_vm5, %v2467_v59, %v2691_v56  ;;  %v11634_v49 = vsel %vm1810_vm6, %v2467_v59, %v2691_v56  ;;  %8412 = vmatmul.msk.bf16.gmra.mxu0 %vm273_vm1, %v10390_v3 }
 0x193   :  { %v776_v35 = vrot.slane %v11586_v40, 6  ;;  %v2073_v36 = vld [vmem:[#allocation2 + $0xa2] sm:$0x7f]  ;;  %v11643_v63 = vsel %vm349_vm0, %v2802_v12, %v11607_v8  ;;  %v11647_v46 = vsel %vm2751_vm12, %v2810_v27, %v11607_v8  ;;  %v11654_v52 = vsel %vm2759_vm13, %v2816_v28, %v11607_v8  ;;  %3748 = vmatpush.bf16.msra.mxu1 %v10394_v17  ;;  %3790 = vmatpush.bf16.msra.mxu2 %v10402_v51 }
 0x194   :  { %v2017_v38 = vld [vmem:[#allocation2 + $0xa0] sm:$0x7f]  ;;  %v779_v5 = vrot.slane %v11622_v45, 6  ;;  %v622_v41 = vmax.f32 %v573_v21, 0.0  ;;  %v2087_v57 = vpack.c.bf16 %v2073_v36, %v2073_v36  ;;  %v232_v53 = vunpack.c.l.b16 %v129_v22  ;;  %3832 = vmatpush.bf16.msra.mxu3 %v10410_v39 }
 0x195   :  { %v1962_v16 = vld [vmem:[#allocation2 + $0xa1] sm:$0x7f]  ;;  %v2031_v4 = vpack.c.bf16 %v2017_v38, %v2017_v38  ;;  %v2694_v21 = vrot.slane %v2167_v31, 4  ;;  %v777_v43 = vrot.slane %v11622_v45, 2 }
 0x196   :  { %v1040_v56 = vmax.f32 %v11586_v40, %v779_v5  ;;  %v780_v9 = vrot.slane %v622_v41, 2  ;;  %v781_v33 = vrot.slane %v622_v41, 4  ;;  %v782_v10 = vrot.slane %v622_v41, 6  ;;  %v10409_v40 = vld [vmem:[%s15419_s6 + $0x80] sm:$0xff] }
 0x197   :  { %v1041_v13 = vmax.f32 %v774_v19, %v622_v41  ;;  %v439_v61 = vpop.f32.mrf.mxu0  ;;  %v2340_v14 = vunpack.c.l.b16 %v2087_v57  ;;  %v2270_v0 = vunpack.c.l.b16 %v2031_v4  ;;  %v1976_v1 = vpack.c.bf16 %v1962_v16, %v1962_v16  ;;  %3749 = vmatpush.bf16.msra.mxu1 %v10393_v50  ;;  %3791 = vmatpush.bf16.msra.mxu2 %v10401_v55 }
 0x198   :  { %v8470_v47 = vrot.slane %v1040_v56, 9  ;;  %v1042_v62 = vmax.f32 %v775_v20, %v780_v9  ;;  %v1043_v59 = vmax.f32 %v776_v35, %v781_v33  ;;  %v1044_v44 = vmax.f32 %v11622_v45, %v782_v10  ;;  %3833 = vmatpush.bf16.msra.mxu3 %v10409_v40 }
 0x199   :  { %v8471_v2 = vrot.slane %v1041_v13, 9  ;;  %v521_v3 = vmul.f32 %v11288_v29, %v439_v61  ;;  %v2354_v7 = vpack.c.b16 %v2340_v14, %v2340_v14  ;;  %v2284_v48 = vpack.c.b16 %v2270_v0, %v2270_v0  ;;  %v2098_v14 = vld [vmem:[#allocation2 + $0x50] sm:$0x7f] }
 0x19a   :  { %v1530_v60 = vmax.f32 %v1040_v56, %v8470_v47  ;;  %v8472_v34 = vrot.slane %v1042_v62, 9  ;;  %v8473_v12 = vrot.slane %v1043_v59, 9  ;;  %v8474_v17 = vrot.slane %v1044_v44, 9 }
 0x19b   :  { %v1531_v19 = vmax.f32 %v1041_v13, %v8471_v2  ;;  %v574_v20 = vadd.f32 %v11299_v37, %v521_v3  ;;  %2375 = vrot.lane.b32.xlu2 %v2354_v7, %s10859_s29  ;;  %2305 = vrot.lane.b32.xlu1 %v2284_v48, %s10859_s29  ;;  %v257_v51 = vpack.c.b16 %v232_v53, %v232_v53  ;;  %v2201_v38 = vunpack.c.l.b16 %v1976_v1 }
 0x19c   :  { %v2436_v22 = vpop.permute.xlu1 %2435  ;;  %v1764_v27 = vperm.slane %v1530_v60, 0  ;;  %v1532_v28 = vmax.f32 %v1042_v62, %v8472_v34  ;;  %v1533_v35 = vmax.f32 %v1043_v59, %v8473_v12  ;;  %v1534_v39 = vmax.f32 %v1044_v44, %v8474_v17 }
 0x19d   :  { %v2298_v36 = vpop.permute.xlu0 %2297  ;;  %v1765_v5 = vperm.slane %v1531_v19, 0  ;;  %v11674_v41 = vmax.f32 %v574_v20, 0.0  ;;  %v2593_v16 = vsel %vm1572_vm2, %v2111_v6, %v2436_v22  ;;  %v778_v53 = vrot.slane %v11622_v45, 4 }
 0x19e   :  { %v1766_v31 = vperm.slane %v1532_v28, 0  ;;  %v1767_v57 = vperm.slane %v1533_v35, 0  ;;  %v2693_v4 = vrot.slane %v2593_v16, 5  ;;  %v2512_v9 = vsel %vm1572_vm2, %v1999_v54, %v2298_v36 }
 0x19f   :  { %v1860_v50 = vsel %vm1806_vm4, %v1765_v5, %v1764_v27  ;;  %v783_v56 = vrot.slane %v11674_v41, 2  ;;  %v442_v33 = vpop.f32.mrf.mxu0  ;;  %v1045_v6 = vmax.f32 %v777_v43, %v11674_v41  ;;  %v1768_v13 = vperm.slane %v1534_v39, 0 }
 0x1a0   :  { %v1861_v32 = vsel %vm1808_vm5, %v1766_v31, %v1860_v50  ;;  %v2807_v10 = vsel %vm1810_vm6, %v2693_v4, %v2694_v21  ;;  %v2812_v55 = vsel %vm1812_vm7, %v2693_v4, %v2694_v21  ;;  %v2215_v0 = vpack.c.b16 %v2201_v38, %v2201_v38 }
 0x1a1   :  { %v1046_v45 = vmax.f32 %v778_v53, %v783_v56  ;;  %v2808_v61 = vsel %vm2747_vm15, %v11643_v63, %v2807_v10  ;;  %v1862_v30 = vsel %vm1810_vm6, %v1767_v57, %v1861_v32  ;;  %v8475_v1 = vrot.slane %v1045_v6, 9 }
 0x1a2   :  { %v2813_v54 = vsel %vm2754_vm3, %v11647_v46, %v2812_v55  ;;  %v2818_v47 = vsel %vm1814_vm8, %v2693_v4, %v2694_v21  ;;  %3366 = vst [vmem:[#allocation1 + $0x7] ss:$9 sm:$0xff] %v2808_v61  ;;  %v2824_v44 = vsel %vm1816_vm9, %v2693_v4, %v2694_v21  ;;  %v2695_v40 = vrot.slane %v2512_v9, 7  ;;  %8413 = vmatmul.msk.bf16.gmra.mxu0 %vm273_vm1, %v257_v51  ;;  %v2438_v3 = vpop.permute.xlu2 %2437 }
 0x1a3   :  { %v8476_v62 = vrot.slane %v1046_v45, 9  ;;  %v2819_v59 = vsel %vm2762_vm10, %v11654_v52, %v2818_v47  ;;  %2237 = vrot.lane.b32.xlu2 %v2215_v0, %s10859_s29  ;;  %v2823_v63 = vsel %vm2767_vm14, %v11634_v49, %v11607_v8  ;;  %v1535_v2 = vmax.f32 %v1045_v6, %v8475_v1 }
 0x1a4   :  { %v2698_v46 = vrot.slane %v2168_v15, 4  ;;  %v2112_v7 = vpack.c.bf16 %v2098_v14, %v2098_v14  ;;  %v2368_v48 = vpop.permute.xlu1 %2367  ;;  %v2470_v52 = vsel %vm1572_vm2, %v1943_v25, %v11650_v42  ;;  %v1863_v60 = vsel %vm1812_vm7, %v1768_v13, %v1862_v30 }
 0x1a5   :  { %v1536_v34 = vmax.f32 %v1046_v45, %v8476_v62  ;;  %v522_v12 = vmul.f32 %v11288_v29, %v442_v33  ;;  %v1769_v8 = vperm.slane %v1535_v2, 0  ;;  %v2815_v49 = vrot.slane %v2813_v54, 1 }
 0x1a6   :  { %v2821_v17 = vrot.slane %v2819_v59, 2  ;;  %vm15422_vm1 = vcmask 1045507   ;;  %v2829_v19 = vsel %vm15421_vm11, %v2470_v52, %v2695_v40  ;;  %v2596_v20 = vsel %vm1572_vm2, %v2112_v7, %v2438_v3 }
 0x1a7   :  { %v2825_v24 = vsel %vm15422_vm1, %v2823_v63, %v2824_v44  ;;  %v1770_v15 = vperm.slane %v1536_v34, 0  ;;  %v2554_v11 = vsel %vm1572_vm2, %v2055_v18, %v2368_v48  ;;  %v444_v25 = vpop.f32.mrf.mxu0  ;;  %v1864_v42 = vsel %vm1814_vm8, %v1769_v8, %v1863_v60 }
 0x1a8   :  { %v2837_v21 = vsel %vm1806_vm4, %v2470_v52, %v2695_v40  ;;  %v2697_v22 = vrot.slane %v2596_v20, 5  ;;  %v2696_v51 = vrot.slane %v2554_v11, 6  ;;  %v2843_v38 = vsel %vm1808_vm5, %v2470_v52, %v2695_v40 }
 0x1a9   :  { %v1865_v27 = vsel %vm1816_vm9, %v1770_v15, %v1864_v42  ;;  %v3367_v28 = vld [vmem:[#allocation1] sm:$0xff]  ;;  %v3368_v35 = vld [vmem:[#allocation1 + $0x9] sm:$0xff]  ;;  %v3369_v36 = vld [vmem:[#allocation1 + $0x12] sm:$0xff]  ;;  %v2849_v39 = vsel %vm1810_vm6, %v2470_v52, %v2695_v40  ;;  %v575_v58 = vadd.f32 %v11299_v37, %v522_v12  ;;  %vm15423_vm1 = vcmask 522240  }
 0x1aa   :  { %1920 = vst.msk [vmem:[#allocation2 + $0xb1] sm:$0x7f] %vm15423_vm1, %v1865_v27  ;;  %v11730_v18 = vld [vmem:[#allocation1 + $0x1b] sm:$0xff]  ;;  %v11732_v5 = vld [vmem:[#allocation1 + $0x24] sm:$0xff]  ;;  %v2834_v16 = vsel %vm1810_vm6, %v2697_v22, %v2698_v46  ;;  %v2839_v43 = vsel %vm1812_vm7, %v2697_v22, %v2698_v46  ;;  %v523_v31 = vmul.f32 %v11288_v29, %v444_v25  ;;  %3750 = vmatmul.bf16.vlgmr.msra.gmra.mxu1 %v3367_v28  ;;  %v2827_v57 = vrot.slane %v2825_v24, 3 }
 0x1ab   :  { %3792 = vmatmul.bf16.vlgmr.msra.gmra.mxu2 %v3368_v35  ;;  %3373 = vst [vmem:[#allocation1] ss:$9 sm:$0xff] %v2815_v49  ;;  %v2845_v4 = vsel %vm1814_vm8, %v2697_v22, %v2698_v46  ;;  %v2851_v53 = vsel %vm1816_vm9, %v2697_v22, %v2698_v46  ;;  %v2831_v50 = vsel %vm349_vm0, %v2829_v19, %v2696_v51  ;;  %vm15424_vm11 = vcmask 1045507   ;;  %v11752_v40 = vld [vmem:[%s15417_s1] ss:$0 sm:$0xff]  ;;  %s15443_s1 = sld [smem:[#allocation10_spill]] }
 0x1ac   :  { %3834 = vmatmul.bf16.vlgmr.msra.gmra.mxu3 %v3369_v36  ;;  %3375 = vst [vmem:[#allocation1 + $0x1] ss:$9 sm:$0xff] %v2821_v17  ;;  %v2835_v56 = vsel %vm2747_vm15, %v2831_v50, %v2834_v16  ;;  %v2838_v9 = vsel %vm2751_vm12, %v2837_v21, %v2696_v51  ;;  %v2844_v33 = vsel %vm2759_vm13, %v2843_v38, %v2696_v51  ;;  %v624_v14 = vmax.f32 %v575_v58, 0.0  ;;  %v11759_v12 = vld [vmem:[%s15418_s30] ss:$0 sm:$0xff] }
 0x1ad   :  { %v2850_v29 = vsel %vm2767_vm14, %v2849_v39, %v2696_v51  ;;  %v2840_v32 = vsel %vm2754_vm3, %v2838_v9, %v2839_v43  ;;  %v2846_v6 = vsel %vm2762_vm10, %v2844_v33, %v2845_v4  ;;  %v3147_v55 = vunpack.i.h.s16 %v2835_v56 }
 0x1ae   :  { %v2852_v10 = vsel %vm15424_vm11, %v2850_v29, %v2851_v53  ;;  %v2842_v13 = vrot.slane %v2840_v32, 1  ;;  %v2848_v45 = vrot.slane %v2846_v6, 2  ;;  %v8516_v61 = vpack.i.b16 %v2835_v56, %v2827_v57 }
 0x1af   :  { %v576_v0 = vadd.f32 %v11299_v37, %v523_v31  ;;  %v447_v30 = vpop.f32.mrf.mxu0  ;;  %v2854_v1 = vrot.slane %v2852_v10, 3  ;;  %v784_v59 = vrot.slane %v11674_v41, 4  ;;  %v785_v37 = vrot.slane %v11674_v41, 6 }
 0x1b0   :  { %v3149_v54 = vunpack.i.h.s16 %v2842_v13  ;;  %v3151_v47 = vunpack.i.h.s16 %v2848_v45  ;;  %v8517_v62 = vpack.i.b16 %v2842_v13, %v3147_v55  ;;  %3377 = vst [vmem:[#allocation1 + $0x2] ss:$9 sm:$0xff] %v8516_v61  ;;  %v524_v63 = vmul.f32 %v11752_v40, %v447_v30 }
 0x1b1   :  { %v625_v44 = vmax.f32 %v576_v0, 0.0  ;;  %v2130_v2 = vld [vmem:[#allocation2 + $0xb1] sm:$0x7f]  ;;  %v786_v17 = vrot.slane %v624_v14, 2  ;;  %v787_v24 = vrot.slane %v624_v14, 4  ;;  %v788_v42 = vrot.slane %v624_v14, 6  ;;  %v2230_v0 = vpop.permute.xlu1 %2229 }
 0x1b2   :  { %v2018_v46 = vld [vmem:[#allocation2 + $0xb0] sm:$0x7f]  ;;  %v8518_v3 = vpack.i.b16 %v2848_v45, %v3149_v54  ;;  %v8519_v7 = vpack.i.b16 %v2854_v1, %v3151_v47  ;;  %3379 = vst [vmem:[#allocation1 + $0x3] ss:$9 sm:$0xff] %v8517_v62  ;;  %v2144_v48 = vpack.c.bf16 %v2130_v2, %v2130_v2  ;;  %v577_v8 = vadd.f32 %v11759_v12, %v524_v63 }
 0x1b3   :  { %v789_v52 = vrot.slane %v625_v44, 2  ;;  %v790_v60 = vrot.slane %v625_v44, 4  ;;  %v791_v34 = vrot.slane %v625_v44, 6  ;;  %v2074_v49 = vld [vmem:[#allocation2 + $0xb2] sm:$0x7f]  ;;  %v2032_v41 = vpack.c.bf16 %v2018_v46, %v2018_v46 }
 0x1b4   :  { %3381 = vst [vmem:[#allocation1 + $0x4] ss:$9 sm:$0xff] %v8518_v3  ;;  %v2410_v15 = vunpack.c.l.b16 %v2144_v48  ;;  %v626_v25 = vmax.f32 %v577_v8, 0.0  ;;  %v2088_v51 = vpack.c.bf16 %v2074_v49, %v2074_v49  ;;  %v1963_v61 = vld [vmem:[#allocation2 + $0xb1] sm:$0x7f]  ;;  %vm15425_vm11 = vcmask 1040384  }
 0x1b5   :  { %3383 = vst [vmem:[#allocation1 + $0x5] ss:$9 sm:$0xff] %v8519_v7  ;;  %v1047_v19 = vmax.f32 %v784_v59, %v789_v52  ;;  %v1048_v20 = vmax.f32 %v785_v37, %v790_v60  ;;  %v1049_v11 = vmax.f32 %v624_v14, %v791_v34  ;;  %v2271_v22 = vunpack.c.l.b16 %v2032_v41  ;;  %v1986_v34 = vld [vmem:[#allocation2 + $0x42] sm:$0x7f] }
 0x1b6   :  { %v2424_v21 = vpack.c.b16 %v2410_v15, %v2410_v15  ;;  %v792_v36 = vrot.slane %v626_v25, 2  ;;  %v793_v39 = vrot.slane %v626_v25, 4  ;;  %v794_v58 = vrot.slane %v626_v25, 6  ;;  %v2042_v15 = vld [vmem:[#allocation2 + $0x51] sm:$0x7f] }
 0x1b7   :  { %v8477_v27 = vrot.slane %v1047_v19, 9  ;;  %v8478_v28 = vrot.slane %v1048_v20, 9  ;;  %v8479_v35 = vrot.slane %v1049_v11, 9  ;;  %v449_v38 = vpop.f32.mrf.mxu0  ;;  %v1050_v16 = vmax.f32 %v786_v17, %v626_v25  ;;  %v11776_v25 = vld [vmem:[#allocation2 + $0x62] sm:$0x7f] }
 0x1b8   :  { %2445 = vrot.lane.b32.xlu0 %v2424_v21, %s10859_s29  ;;  %v2285_v43 = vpack.c.b16 %v2271_v22, %v2271_v22  ;;  %v1051_v53 = vmax.f32 %v787_v24, %v792_v36  ;;  %v1052_v50 = vmax.f32 %v788_v42, %v793_v39  ;;  %v1053_v56 = vmax.f32 %v625_v44, %v794_v58  ;;  %v2370_v42 = vpop.permute.xlu2 %2369 }
 0x1b9   :  { %v1537_v31 = vmax.f32 %v1047_v19, %v8477_v27  ;;  %v1538_v57 = vmax.f32 %v1048_v20, %v8478_v28  ;;  %v1539_v4 = vmax.f32 %v1049_v11, %v8479_v35  ;;  %v8480_v9 = vrot.slane %v1050_v16, 9  ;;  %v1930_v19 = vld [vmem:[#allocation2 + $0x40] sm:$0x7f] }
 0x1ba   :  { %2307 = vrot.lane.b32.xlu2 %v2285_v43, %s10859_s29  ;;  %v8481_v6 = vrot.slane %v1051_v53, 9  ;;  %v8482_v10 = vrot.slane %v1052_v50, 9  ;;  %v8483_v55 = vrot.slane %v1053_v56, 9  ;;  %v2341_v45 = vunpack.c.l.b16 %v2088_v51  ;;  %v2099_v28 = vld [vmem:[#allocation2 + $0x60] sm:$0x7f] }
 0x1bb   :  { %v1771_v33 = vperm.slane %v1537_v31, 0  ;;  %v1772_v29 = vperm.slane %v1538_v57, 0  ;;  %v1773_v32 = vperm.slane %v1539_v4, 0  ;;  %v1540_v13 = vmax.f32 %v1050_v16, %v8480_v9  ;;  %v2300_v17 = vpop.permute.xlu1 %2299 }
 0x1bc   :  { %v1541_v30 = vmax.f32 %v1051_v53, %v8481_v6  ;;  %v1542_v1 = vmax.f32 %v1052_v50, %v8482_v10  ;;  %v1543_v54 = vmax.f32 %v1053_v56, %v8483_v55  ;;  %v1977_v63 = vpack.c.bf16 %v1963_v61, %v1963_v61 }
 0x1bd   :  { %v1866_v14 = vsel %vm1806_vm4, %v1772_v29, %v1771_v33  ;;  %v1774_v47 = vperm.slane %v1540_v13, 0  ;;  %v525_v37 = vmul.f32 %v11752_v40, %v449_v38  ;;  %v2355_v3 = vpack.c.b16 %v2341_v45, %v2341_v45 }
 0x1be   :  { %v1775_v62 = vperm.slane %v1541_v30, 0  ;;  %v1867_v59 = vsel %vm1808_vm5, %v1773_v32, %v1866_v14  ;;  %v1776_v2 = vperm.slane %v1542_v1, 0  ;;  %v1777_v7 = vperm.slane %v1543_v54, 0 }
 0x1bf   :  { %v452_v44 = vpop.f32.mrf.mxu0  ;;  %v1868_v46 = vsel %vm1810_vm6, %v1774_v47, %v1867_v59  ;;  %v578_v8 = vadd.f32 %v11759_v12, %v525_v37  ;;  %v2202_v49 = vunpack.c.l.b16 %v1977_v63  ;;  %v2000_v41 = vpack.c.bf16 %v1986_v34, %v1986_v34 }
 0x1c0   :  { %v1869_v48 = vsel %vm1812_vm7, %v1775_v62, %v1868_v46  ;;  %2377 = vrot.lane.b32.xlu0 %v2355_v3, %s10859_s29  ;;  %v526_v24 = vmul.f32 %v11752_v40, %v452_v44  ;;  %v2056_v35 = vpack.c.bf16 %v2042_v15, %v2042_v15  ;;  %v1944_v38 = vpack.c.bf16 %v1930_v19, %v1930_v19 }
 0x1c1   :  { %v1870_v52 = vsel %vm1814_vm8, %v1776_v2, %v1869_v48  ;;  %v627_v21 = vmax.f32 %v578_v8, 0.0  ;;  %v2515_v22 = vsel %vm1572_vm2, %v2000_v41, %v2300_v17  ;;  %v2216_v51 = vpack.c.b16 %v2202_v49, %v2202_v49 }
 0x1c2   :  { %v1871_v60 = vsel %vm1816_vm9, %v1777_v7, %v1870_v52  ;;  %v579_v20 = vadd.f32 %v11759_v12, %v526_v24  ;;  %v2169_v58 = vpack.c.bf16 %v11776_v25, %v11776_v25  ;;  %v2557_v16 = vsel %vm1572_vm2, %v2056_v35, %v2370_v42 }
 0x1c3   :  { %1921 = vst.msk [vmem:[#allocation2 + $0xc1] sm:$0x7f] %vm15423_vm1, %v1871_v60  ;;  %v11787_v43 = vrot.slane %v2515_v22, 7  ;;  %v2113_v4 = vpack.c.bf16 %v2099_v28, %v2099_v28  ;;  %v11791_v53 = vsel %vm1572_vm2, %v1944_v38, %v2230_v0  ;;  %v795_v50 = vrot.slane %v627_v21, 2 }
 0x1c4   :  { %v11780_v36 = vmax.f32 %v579_v20, 0.0  ;;  %v796_v32 = vrot.slane %v627_v21, 4  ;;  %v797_v6 = vrot.slane %v627_v21, 6  ;;  %v11795_v7 = vrot.slane %v2557_v16, 6 }
 0x1c5   :  { %v2856_v34 = vsel %vm15425_vm11, %v11791_v53, %v11787_v43  ;;  %v2864_v8 = vsel %vm1806_vm4, %v11791_v53, %v11787_v43  ;;  %v11813_v35 = vrot.slane %v2169_v58, 4 }
 0x1c6   :  { %v800_v31 = vrot.slane %v11780_v36, 6  ;;  %v798_v25 = vrot.slane %v11780_v36, 2  ;;  %v799_v16 = vrot.slane %v11780_v36, 4 }
 0x1c7   :  { %v454_v11 = vpop.f32.mrf.mxu0 }
 0x1c8   :  { %v527_v27 = vmul.f32 %v11752_v40, %v454_v11  ;;  %2239 = vrot.lane.b32.xlu0 %v2216_v51, %s10859_s29  ;;  %v1054_v10 = vmax.f32 %v627_v21, %v800_v31  ;;  %v11806_v11 = vpop.permute.xlu2 %2231 }
 0x1ca   :  { %v580_v39 = vadd.f32 %v11759_v12, %v527_v27  ;;  %v2131_v57 = vld [vmem:[#allocation2 + $0xc1] sm:$0x7f]  ;;  %v8484_v30 = vrot.slane %v1054_v10, 9 }
 0x1cb   :  { %v2145_v9 = vpack.c.bf16 %v2131_v57, %v2131_v57  ;;  %v2019_v33 = vld [vmem:[#allocation2 + $0xc0] sm:$0x7f] }
 0x1cc   :  { %v629_v56 = vmax.f32 %v580_v39, 0.0  ;;  %v2075_v29 = vld [vmem:[#allocation2 + $0xc2] sm:$0x7f]  ;;  %v2033_v55 = vpack.c.bf16 %v2019_v33, %v2019_v33  ;;  %v1544_v2 = vmax.f32 %v1054_v10, %v8484_v30  ;;  %v2858_v39 = vsel %vm349_vm0, %v2856_v34, %v11795_v7  ;;  %v1931_v34 = vld [vmem:[#allocation2 + $0x50] sm:$0x7f] }
 0x1cd   :  { %v2411_v54 = vunpack.c.l.b16 %v2145_v9  ;;  %v2089_v62 = vpack.c.bf16 %v2075_v29, %v2075_v29  ;;  %v1964_v38 = vld [vmem:[#allocation2 + $0xc1] sm:$0x7f] }
 0x1ce   :  { %v801_v13 = vrot.slane %v629_v56, 2  ;;  %v802_v45 = vrot.slane %v629_v56, 4  ;;  %v803_v61 = vrot.slane %v629_v56, 6  ;;  %v1055_v14 = vmax.f32 %v795_v50, %v629_v56 }
 0x1cf   :  { %v457_v1 = vpop.f32.mrf.mxu0  ;;  %v2272_v47 = vunpack.c.l.b16 %v2033_v55  ;;  %v2425_v37 = vpack.c.b16 %v2411_v54, %v2411_v54  ;;  %v1778_v15 = vperm.slane %v1544_v2, 0  ;;  %v2342_v22 = vunpack.c.l.b16 %v2089_v62 }
 0x1d0   :  { %v1056_v0 = vmax.f32 %v796_v32, %v801_v13  ;;  %v1057_v59 = vmax.f32 %v797_v6, %v802_v45  ;;  %v1058_v44 = vmax.f32 %v11780_v36, %v803_v61  ;;  %v8485_v63 = vrot.slane %v1055_v14, 9  ;;  %v1987_v45 = vld [vmem:[#allocation2 + $0x52] sm:$0x7f]  ;;  %v2302_v62 = vpop.permute.xlu2 %2301 }
 0x1d1   :  { %v528_v46 = vmul.f32 %v11752_v40, %v457_v1  ;;  %v2286_v3 = vpack.c.b16 %v2272_v47, %v2272_v47  ;;  %2447 = vrot.lane.b32.xlu1 %v2425_v37, %s10859_s29  ;;  %v2356_v32 = vpack.c.b16 %v2342_v22, %v2342_v22  ;;  %v1978_v6 = vpack.c.bf16 %v1964_v38, %v1964_v38 }
 0x1d2   :  { %v8486_v48 = vrot.slane %v1056_v0, 9  ;;  %v8487_v52 = vrot.slane %v1057_v59, 9  ;;  %v1545_v60 = vmax.f32 %v1055_v14, %v8485_v63  ;;  %v8488_v49 = vrot.slane %v1058_v44, 9 }
 0x1d3   :  { %v581_v17 = vadd.f32 %v11759_v12, %v528_v46  ;;  %2309 = vrot.lane.b32.xlu0 %v2286_v3, %s10859_s29  ;;  %v2870_v63 = vsel %vm1808_vm5, %v11791_v53, %v11787_v43  ;;  %v2001_v2 = vpack.c.bf16 %v1987_v45, %v1987_v45 }
 0x1d4   :  { %v2440_v24 = vpop.permute.xlu0 %2439  ;;  %v1546_v41 = vmax.f32 %v1056_v0, %v8486_v48  ;;  %v1547_v19 = vmax.f32 %v1057_v59, %v8487_v52  ;;  %v1779_v20 = vperm.slane %v1545_v60, 0  ;;  %v1548_v56 = vmax.f32 %v1058_v44, %v8488_v49 }
 0x1d5   :  { %v11809_v42 = vmax.f32 %v581_v17, 0.0  ;;  %v2599_v21 = vsel %vm1572_vm2, %v2113_v4, %v2440_v24  ;;  %v2865_v4 = vsel %vm2751_vm12, %v2864_v8, %v11795_v7  ;;  %v2203_v44 = vunpack.c.l.b16 %v1978_v6  ;;  %v2156_v17 = vld [vmem:[#allocation2 + $0x72] sm:$0x7f]  ;;  %v11847_v24 = vld [vmem:[#allocation2 + $0x82] sm:$0x7f] }
 0x1d6   :  { %v1780_v51 = vperm.slane %v1546_v41, 0  ;;  %v1781_v27 = vperm.slane %v1547_v19, 0  ;;  %v1872_v28 = vsel %vm1806_vm4, %v1779_v20, %v1778_v15  ;;  %v11823_v33 = vrot.slane %v2599_v21, 5  ;;  %v11849_v15 = vld [vmem:[#allocation2 + $0x80] sm:$0x7f] }
 0x1d7   :  { %v804_v31 = vrot.slane %v11809_v42, 2  ;;  %v1059_v57 = vmax.f32 %v798_v25, %v11809_v42  ;;  %v459_v50 = vpop.f32.mrf.mxu0  ;;  %v1782_v54 = vperm.slane %v1548_v56, 0  ;;  %v2518_v8 = vsel %vm1572_vm2, %v2001_v2, %v2302_v62  ;;  %v2043_v20 = vld [vmem:[#allocation2 + $0x61] sm:$0x7f] }
 0x1d8   :  { %v1873_v9 = vsel %vm1808_vm5, %v1780_v51, %v1872_v28  ;;  %v2861_v36 = vsel %vm1810_vm6, %v11823_v33, %v11813_v35  ;;  %v2866_v55 = vsel %vm1812_vm7, %v11823_v33, %v11813_v35  ;;  %v529_v13 = vmul.f32 %v11752_v40, %v459_v50  ;;  %v11868_v50 = vld [vmem:[#allocation2 + $0x70] sm:$0x7f] }
 0x1d9   :  { %v1060_v58 = vmax.f32 %v799_v16, %v804_v31  ;;  %v8489_v29 = vrot.slane %v1059_v57, 9  ;;  %v1874_v10 = vsel %vm1810_vm6, %v1781_v27, %v1873_v9  ;;  %v2862_v30 = vsel %vm2747_vm15, %v2858_v39, %v2861_v36  ;;  %2379 = vrot.lane.b32.xlu1 %v2356_v32, %s10859_s29 }
 0x1da   :  { %v2867_v1 = vsel %vm2754_vm3, %v2865_v4, %v2866_v55  ;;  %3385 = vst [vmem:[#allocation1 + $0x6] ss:$9 sm:$0xff] %v2862_v30  ;;  %v1875_v46 = vsel %vm1812_vm7, %v1782_v54, %v1874_v10  ;;  %v2872_v48 = vsel %vm1814_vm8, %v11823_v33, %v11813_v35  ;;  %v582_v52 = vadd.f32 %v11759_v12, %v529_v13 }
 0x1db   :  { %v8490_v61 = vrot.slane %v1060_v58, 9  ;;  %v1549_v14 = vmax.f32 %v1059_v57, %v8489_v29  ;;  %v2869_v47 = vrot.slane %v2867_v1, 1  ;;  %v2871_v41 = vsel %vm2759_vm13, %v2870_v63, %v11795_v7 }
 0x1dc   :  { %v2217_v25 = vpack.c.b16 %v2203_v44, %v2203_v44  ;;  %v2873_v21 = vsel %vm2762_vm10, %v2871_v41, %v2872_v48  ;;  %v1945_v51 = vpack.c.bf16 %v1931_v34, %v1931_v34  ;;  %v11857_v27 = vrot.slane %v2518_v8, 7  ;;  %v2372_v13 = vpop.permute.xlu0 %2371 }
 0x1dd   :  { %v1550_v0 = vmax.f32 %v1060_v58, %v8490_v61  ;;  %v1783_v59 = vperm.slane %v1549_v14, 0  ;;  %3387 = vst [vmem:[#allocation1 + $0x7] ss:$9 sm:$0xff] %v2869_v47  ;;  %v11859_v28 = vmax.f32 %v582_v52, 0.0  ;;  %v2170_v38 = vpack.c.bf16 %v2156_v17, %v2156_v17 }
 0x1de   :  { %v2171_v39 = vpack.c.bf16 %v11847_v24, %v11847_v24  ;;  %v2115_v16 = vpack.c.bf16 %v11849_v15, %v11849_v15  ;;  %v2057_v31 = vpack.c.bf16 %v2043_v20, %v2043_v20  ;;  %v11872_v4 = vsel %vm1572_vm2, %v1945_v51, %v11806_v11 }
 0x1df   :  { %v1784_v37 = vperm.slane %v1550_v0, 0  ;;  %v1876_v3 = vsel %vm1814_vm8, %v1783_v59, %v1875_v46  ;;  %v462_v60 = vpop.f32.mrf.mxu0  ;;  %v2876_v56 = vsel %vm1810_vm6, %v11791_v53, %v11787_v43  ;;  %v805_v9 = vrot.slane %v11809_v42, 4 }
 0x1e0   :  { %v530_v49 = vmul.f32 %v11752_v40, %v462_v60  ;;  %v2875_v58 = vrot.slane %v2873_v21, 2  ;;  %v806_v10 = vrot.slane %v11809_v42, 6  ;;  %v11889_v43 = vsel %vm15425_vm11, %v11872_v4, %v11857_v27 }
 0x1e1   :  { %v1877_v19 = vsel %vm1816_vm9, %v1784_v37, %v1876_v3  ;;  %2241 = vrot.lane.b32.xlu1 %v2217_v25, %s10859_s29  ;;  %v807_v53 = vrot.slane %v11859_v28, 2  ;;  %v11892_v14 = vrot.slane %v2170_v38, 4  ;;  %v2114_v30 = vpack.c.bf16 %v11868_v50, %v11868_v50 }
 0x1e2   :  { %1922 = vst.msk [vmem:[#allocation2 + $0xd1] sm:$0x7f] %vm15423_vm1, %v1877_v19  ;;  %v583_v22 = vadd.f32 %v11759_v12, %v530_v49  ;;  %v2877_v0 = vsel %vm2767_vm14, %v2876_v56, %v11795_v7  ;;  %v2891_v59 = vsel %vm1806_vm4, %v11872_v4, %v11857_v27  ;;  %v2878_v44 = vsel %vm1816_vm9, %v11823_v33, %v11813_v35 }
 0x1e3   :  { %v2560_v63 = vsel %vm1572_vm2, %v2057_v31, %v2372_v13  ;;  %v808_v7 = vrot.slane %v11859_v28, 4  ;;  %v809_v41 = vrot.slane %v11859_v28, 6  ;;  %vm15426_vm1 = vcmask 1045507  }
 0x1e4   :  { %v11866_v57 = vmax.f32 %v583_v22, 0.0  ;;  %v3388_v29 = vld [vmem:[#allocation1] sm:$0xff]  ;;  %v3389_v32 = vld [vmem:[#allocation1 + $0x9] sm:$0xff]  ;;  %v3390_v6 = vld [vmem:[#allocation1 + $0x12] sm:$0xff]  ;;  %vm15427_vm11 = vcmask 522240  }
 0x1e5   :  { %v11879_v36 = vld [vmem:[#allocation1 + $0x1b] sm:$0xff]  ;;  %v11881_v55 = vld [vmem:[#allocation1 + $0x24] sm:$0xff]  ;;  %3755 = vmatmul.bf16.gmra.mxu1 %v3388_v29  ;;  %3797 = vmatmul.bf16.gmra.mxu2 %v3389_v32 }
 0x1e6   :  { %v810_v11 = vrot.slane %v11866_v57, 2  ;;  %v811_v45 = vrot.slane %v11866_v57, 4  ;;  %v812_v61 = vrot.slane %v11866_v57, 6  ;;  %3394 = vst [vmem:[#allocation1] ss:$9 sm:$0xff] %v2875_v58  ;;  %3839 = vmatmul.bf16.gmra.mxu3 %v3390_v6 }
 0x1e7   :  { %v464_v42 = vpop.f32.mrf.mxu0 }
 0x1e8   :  { %v1061_v1 = vmax.f32 %v805_v9, %v810_v11  ;;  %v1062_v54 = vmax.f32 %v806_v10, %v811_v45  ;;  %v1063_v47 = vmax.f32 %v11859_v28, %v812_v61  ;;  %v531_v62 = vmul.f32 %v11752_v40, %v464_v42 }
 0x1e9   :  { %v2132_v2 = vld [vmem:[#allocation2 + $0xd1] sm:$0x7f]  ;;  %v2704_v10 = vrot.slane %v2560_v63, 6  ;;  %v2879_v45 = vsel %vm15426_vm1, %v2877_v0, %v2878_v44 }
 0x1ea   :  { %v2076_v46 = vld [vmem:[#allocation2 + $0xd2] sm:$0x7f]  ;;  %v8491_v3 = vrot.slane %v1061_v1, 9  ;;  %v8492_v48 = vrot.slane %v1062_v54, 9  ;;  %v8493_v52 = vrot.slane %v1063_v47, 9  ;;  %v584_v60 = vadd.f32 %v11759_v12, %v531_v62 }
 0x1eb   :  { %v2020_v37 = vld [vmem:[#allocation2 + $0xd0] sm:$0x7f]  ;;  %v2146_v8 = vpack.c.bf16 %v2132_v2, %v2132_v2  ;;  %v2090_v49 = vpack.c.bf16 %v2076_v46, %v2076_v46  ;;  %v2881_v46 = vrot.slane %v2879_v45, 3 }
 0x1ec   :  { %v1965_v34 = vld [vmem:[#allocation2 + $0xd1] sm:$0x7f]  ;;  %v2034_v17 = vpack.c.bf16 %v2020_v37, %v2020_v37  ;;  %v1551_v19 = vmax.f32 %v1061_v1, %v8491_v3  ;;  %v1552_v35 = vmax.f32 %v1062_v54, %v8492_v48  ;;  %v633_v33 = vmax.f32 %v584_v60, 0.0 }
 0x1ed   :  { %v2412_v20 = vunpack.c.l.b16 %v2146_v8  ;;  %v2343_v25 = vunpack.c.l.b16 %v2090_v49  ;;  %v1979_v22 = vpack.c.bf16 %v1965_v34, %v1965_v34  ;;  %v1553_v51 = vmax.f32 %v1063_v47, %v8493_v52  ;;  %v11924_v52 = vpop.permute.xlu0 %2233 }
 0x1ee   :  { %v2273_v21 = vunpack.c.l.b16 %v2034_v17  ;;  %v1785_v38 = vperm.slane %v1551_v19, 0  ;;  %v1786_v31 = vperm.slane %v1552_v35, 0  ;;  %v813_v56 = vrot.slane %v633_v33, 2 }
 0x1ef   :  { %v814_v9 = vrot.slane %v633_v33, 4  ;;  %v815_v58 = vrot.slane %v633_v33, 6  ;;  %v1064_v29 = vmax.f32 %v807_v53, %v633_v33  ;;  %v2426_v32 = vpack.c.b16 %v2412_v20, %v2412_v20  ;;  %v467_v6 = vpop.f32.mrf.mxu0 }
 0x1f0   :  { %v1065_v13 = vmax.f32 %v808_v7, %v813_v56  ;;  %v2357_v11 = vpack.c.b16 %v2343_v25, %v2343_v25  ;;  %v2287_v28 = vpack.c.b16 %v2273_v21, %v2273_v21  ;;  %v2897_v54 = vsel %vm1808_vm5, %v11872_v4, %v11857_v27 }
 0x1f1   :  { %v1066_v61 = vmax.f32 %v809_v41, %v814_v9  ;;  %v1067_v42 = vmax.f32 %v11866_v57, %v815_v58  ;;  %v8494_v1 = vrot.slane %v1064_v29, 9  ;;  %2449 = vrot.lane.b32.xlu2 %v2426_v32, %s10859_s29  ;;  %v1787_v47 = vperm.slane %v1553_v51, 0 }
 0x1f2   :  { %v8495_v53 = vrot.slane %v1065_v13, 9  ;;  %2381 = vrot.lane.b32.xlu0 %v2357_v11, %s10859_s29  ;;  %2311 = vrot.lane.b32.xlu1 %v2287_v28, %s10859_s29  ;;  %v2204_v62 = vunpack.c.l.b16 %v1979_v22  ;;  %v1878_v63 = vsel %vm1806_vm4, %v1786_v31, %v1785_v38  ;;  %v2903_v57 = vsel %vm1810_vm6, %v11872_v4, %v11857_v27 }
 0x1f3   :  { %v8496_v0 = vrot.slane %v1066_v61, 9  ;;  %v8497_v44 = vrot.slane %v1067_v42, 9  ;;  %v1554_v2 = vmax.f32 %v1064_v29, %v8494_v1  ;;  %v2885_v37 = vsel %vm349_vm0, %v11889_v43, %v2704_v10 }
 0x1f4   :  { %v1555_v3 = vmax.f32 %v1065_v13, %v8495_v53  ;;  %v2442_v48 = vpop.permute.xlu1 %2441  ;;  %v2892_v49 = vsel %vm2751_vm12, %v2891_v59, %v2704_v10  ;;  %v1879_v27 = vsel %vm1808_vm5, %v1787_v47, %v1878_v63  ;;  %v2898_v43 = vsel %vm2759_vm13, %v2897_v54, %v2704_v10  ;;  %v1932_v53 = vld [vmem:[#allocation2 + $0x60] sm:$0x7f] }
 0x1f5   :  { %v1556_v60 = vmax.f32 %v1066_v61, %v8496_v0  ;;  %v1557_v34 = vmax.f32 %v1067_v42, %v8497_v44  ;;  %v1788_v7 = vperm.slane %v1554_v2, 0  ;;  %v2602_v8 = vsel %vm1572_vm2, %v2114_v30, %v2442_v48  ;;  %v2044_v44 = vld [vmem:[#allocation2 + $0x71] sm:$0x7f] }
 0x1f6   :  { %v1789_v4 = vperm.slane %v1555_v3, 0  ;;  %v2705_v17 = vrot.slane %v2602_v8, 5  ;;  %v2218_v35 = vpack.c.b16 %v2204_v62, %v2204_v62  ;;  %v2904_v20 = vsel %vm2767_vm14, %v2903_v57, %v2704_v10  ;;  %v1988_v10 = vld [vmem:[#allocation2 + $0x62] sm:$0x7f]  ;;  %v2304_v47 = vpop.permute.xlu0 %2303 }
 0x1f7   :  { %v1790_v41 = vperm.slane %v1556_v60, 0  ;;  %v1880_v19 = vsel %vm1810_vm6, %v1788_v7, %v1879_v27  ;;  %v469_v33 = vpop.f32.mrf.mxu0  ;;  %v1791_v25 = vperm.slane %v1557_v34, 0  ;;  %v532_v30 = vmul.f32 %v11752_v40, %v467_v6 }
 0x1f8   :  { %v1881_v50 = vsel %vm1812_vm7, %v1789_v4, %v1880_v19  ;;  %v2888_v21 = vsel %vm1810_vm6, %v2705_v17, %v11892_v14  ;;  %v2893_v22 = vsel %vm1812_vm7, %v2705_v17, %v11892_v14  ;;  %v2899_v51 = vsel %vm1814_vm8, %v2705_v17, %v11892_v14 }
 0x1f9   :  { %v1882_v59 = vsel %vm1814_vm8, %v1790_v41, %v1881_v50  ;;  %2243 = vrot.lane.b32.xlu2 %v2218_v35, %s10859_s29  ;;  %v2889_v31 = vsel %vm2747_vm15, %v2885_v37, %v2888_v21  ;;  %v2894_v56 = vsel %vm2754_vm3, %v2892_v49, %v2893_v22  ;;  %v2900_v9 = vsel %vm2762_vm10, %v2898_v43, %v2899_v51 }
 0x1fa   :  { %v1883_v38 = vsel %vm1816_vm9, %v1791_v25, %v1882_v59  ;;  %v2896_v58 = vrot.slane %v2894_v56, 1  ;;  %v2902_v29 = vrot.slane %v2900_v9, 2  ;;  %v2905_v32 = vsel %vm1816_vm9, %v2705_v17, %v11892_v14 }
 0x1fb   :  { %1923 = vst.msk [vmem:[#allocation2 + $0xe1] sm:$0x7f] %vm15427_vm11, %v1883_v38  ;;  %v3161_v6 = vunpack.i.h.s16 %v2889_v31  ;;  %v2605_v13 = vsel %vm1572_vm2, %v2115_v16, %v11282_v26  ;;  %v585_v11 = vadd.f32 %v11759_v12, %v532_v30  ;;  %v2906_v28 = vsel %vm15426_vm1, %v2904_v20, %v2905_v32 }
 0x1fc   :  { %v8520_v45 = vpack.i.b16 %v2889_v31, %v2881_v46  ;;  %v2908_v61 = vrot.slane %v2906_v28, 3  ;;  %v3163_v42 = vunpack.i.h.s16 %v2896_v58  ;;  %v3165_v1 = vunpack.i.h.s16 %v2902_v29 }
 0x1fd   :  { %v8521_v54 = vpack.i.b16 %v2896_v58, %v3161_v6  ;;  %v2002_v14 = vpack.c.bf16 %v1988_v10, %v1988_v10  ;;  %v533_v15 = vmul.f32 %v11752_v40, %v469_v33  ;;  %v11963_v26 = vrot.slane %v2171_v39, 4 }
 0x1fe   :  { %3396 = vst [vmem:[#allocation1 + $0x1] ss:$9 sm:$0xff] %v8520_v45  ;;  %v8522_v62 = vpack.i.b16 %v2902_v29, %v3163_v42  ;;  %v8523_v63 = vpack.i.b16 %v2908_v61, %v3165_v1  ;;  %v11965_v16 = vrot.slane %v2605_v13, 5  ;;  %v634_v57 = vmax.f32 %v585_v11, 0.0 }
 0x1ff   :  { %3398 = vst [vmem:[#allocation1 + $0x2] ss:$9 sm:$0xff] %v8521_v54  ;;  %v2521_v0 = vsel %vm1572_vm2, %v2002_v14, %v2304_v47  ;;  %v472_v2 = vpop.f32.mrf.mxu0  ;;  %v586_v46 = vadd.f32 %v11759_v12, %v533_v15  ;;  %v1946_v3 = vpack.c.bf16 %v1932_v53, %v1932_v53  ;;  %v2058_v39 = vpack.c.bf16 %v2044_v44, %v2044_v44 }
 0x200   :  { %3400 = vst [vmem:[#allocation1 + $0x3] ss:$9 sm:$0xff] %v8522_v62  ;;  %v534_v37 = vmul.f32 %v11752_v40, %v472_v2  ;;  %v11970_v34 = vrot.slane %v2521_v0, 7  ;;  %v2915_v8 = vsel %vm1810_vm6, %v11965_v16, %v11963_v26  ;;  %v2920_v49 = vsel %vm1812_vm7, %v11965_v16, %v11963_v26 }
 0x201   :  { %3402 = vst [vmem:[#allocation1 + $0x4] ss:$9 sm:$0xff] %v8523_v63  ;;  %v11972_v24 = vmax.f32 %v586_v46, 0.0  ;;  %v2926_v27 = vsel %vm1814_vm8, %v11965_v16, %v11963_v26  ;;  %v11986_v43 = vsel %vm1572_vm2, %v1946_v3, %v11924_v52  ;;  %v816_v33 = vrot.slane %v634_v57, 2 }
 0x202   :  { %v2077_v48 = vld [vmem:[#allocation2 + $0xe2] sm:$0x7f]  ;;  %v587_v7 = vadd.f32 %v11759_v12, %v534_v37  ;;  %v817_v20 = vrot.slane %v634_v57, 4  ;;  %vm15428_vm11 = vcmask 1040384   ;;  %v2918_v59 = vsel %vm1806_vm4, %v11986_v43, %v11970_v34 }
 0x203   :  { %v2021_v60 = vld [vmem:[#allocation2 + $0xe0] sm:$0x7f]  ;;  %v2091_v17 = vpack.c.bf16 %v2077_v48, %v2077_v48  ;;  %v821_v41 = vrot.slane %v11972_v24, 6  ;;  %v2910_v30 = vsel %vm15428_vm11, %v11986_v43, %v11970_v34  ;;  %v2924_v52 = vsel %vm1808_vm5, %v11986_v43, %v11970_v34 }
 0x204   :  { %v2374_v4 = vpop.permute.xlu1 %2373  ;;  %v2035_v35 = vpack.c.bf16 %v2021_v60, %v2021_v60  ;;  %v636_v50 = vmax.f32 %v587_v7, 0.0  ;;  %v2133_v6 = vld [vmem:[#allocation2 + $0xe1] sm:$0x7f]  ;;  %v818_v45 = vrot.slane %v634_v57, 6  ;;  %v819_v7 = vrot.slane %v11972_v24, 2 }
 0x205   :  { %v2563_v19 = vsel %vm1572_vm2, %v2058_v39, %v2374_v4  ;;  %v1068_v21 = vmax.f32 %v634_v57, %v821_v41  ;;  %v2344_v56 = vunpack.c.l.b16 %v2091_v17  ;;  %v2147_v15 = vpack.c.bf16 %v2133_v6, %v2133_v6  ;;  %v2136_v4 = vld [vmem:[#allocation2 + $0x111] sm:$0x7f] }
 0x206   :  { %v11990_v25 = vrot.slane %v2563_v19, 6  ;;  %v2274_v32 = vunpack.c.l.b16 %v2035_v35  ;;  %v822_v28 = vrot.slane %v636_v50, 2  ;;  %v823_v61 = vrot.slane %v636_v50, 4  ;;  %v2158_v6 = vld [vmem:[#allocation2 + $0xb2] sm:$0x7f] }
 0x207   :  { %v474_v31 = vpop.f32.mrf.mxu0  ;;  %v8498_v10 = vrot.slane %v1068_v21, 9  ;;  %v824_v42 = vrot.slane %v636_v50, 6  ;;  %v1069_v1 = vmax.f32 %v816_v33, %v636_v50  ;;  %v2358_v14 = vpack.c.b16 %v2344_v56, %v2344_v56  ;;  %v1989_v33 = vld [vmem:[#allocation2 + $0x92] sm:$0x7f] }
 0x208   :  { %v2912_v22 = vsel %vm349_vm0, %v2910_v30, %v11990_v25  ;;  %v2919_v51 = vsel %vm2751_vm12, %v2918_v59, %v11990_v25  ;;  %v2925_v38 = vsel %vm2759_vm13, %v2924_v52, %v11990_v25  ;;  %v1070_v54 = vmax.f32 %v817_v20, %v822_v28 }
 0x209   :  { %v2916_v9 = vsel %vm2747_vm15, %v2912_v22, %v2915_v8  ;;  %v2921_v58 = vsel %vm2754_vm3, %v2919_v51, %v2920_v49  ;;  %v2927_v29 = vsel %vm2762_vm10, %v2925_v38, %v2926_v27  ;;  %v535_v47 = vmul.f32 %v11752_v40, %v474_v31  ;;  %2383 = vrot.lane.b32.xlu1 %v2358_v14, %s10859_s29  ;;  %v1933_v38 = vld [vmem:[#allocation2 + $0x90] sm:$0x7f] }
 0x20a   :  { %v2923_v13 = vrot.slane %v2921_v58, 1  ;;  %v2929_v11 = vrot.slane %v2927_v29, 2  ;;  %3404 = vst [vmem:[#allocation1 + $0x5] ss:$9 sm:$0xff] %v2916_v9  ;;  %v1071_v53 = vmax.f32 %v818_v45, %v823_v61  ;;  %v1072_v62 = vmax.f32 %v11972_v24, %v824_v42 }
 0x20b   :  { %v2288_v63 = vpack.c.b16 %v2274_v32, %v2274_v32  ;;  %v1558_v0 = vmax.f32 %v1068_v21, %v8498_v10  ;;  %v8499_v44 = vrot.slane %v1069_v1, 9  ;;  %v8500_v2 = vrot.slane %v1070_v54, 9 }
 0x20c   :  { %3406 = vst [vmem:[#allocation1 + $0x6] ss:$9 sm:$0xff] %v2923_v13  ;;  %v588_v46 = vadd.f32 %v11759_v12, %v535_v47  ;;  %v8501_v57 = vrot.slane %v1071_v53, 9  ;;  %v8502_v37 = vrot.slane %v1072_v62, 9  ;;  %v820_v8 = vrot.slane %v11972_v24, 4 }
 0x20d   :  { %3408 = vst [vmem:[#allocation1 + $0x7] ss:$9 sm:$0xff] %v2929_v11  ;;  %2313 = vrot.lane.b32.xlu2 %v2288_v63, %s10859_s29  ;;  %v1559_v3 = vmax.f32 %v1069_v1, %v8499_v44  ;;  %v1560_v48 = vmax.f32 %v1070_v54, %v8500_v2  ;;  %v2413_v27 = vunpack.c.l.b16 %v2147_v15  ;;  %v1792_v17 = vperm.slane %v1558_v0, 0  ;;  %v2306_v32 = vpop.permute.xlu1 %2305  ;;  %v2045_v54 = vld [vmem:[#allocation2 + $0xa1] sm:$0x7f] }
 0x20e   :  { %v12015_v60 = vmax.f32 %v588_v46, 0.0  ;;  %v1561_v49 = vmax.f32 %v1071_v53, %v8501_v57  ;;  %v1562_v21 = vmax.f32 %v1072_v62, %v8502_v37  ;;  %v2150_v24 = vpack.c.bf16 %v2136_v4, %v2136_v4  ;;  %v12033_v2 = vld [vmem:[#allocation2 + $0xb0] sm:$0x7f]  ;;  %v2376_v57 = vpop.permute.xlu2 %2375 }
 0x20f   :  { %v477_v39 = vpop.f32.mrf.mxu0  ;;  %v1793_v41 = vperm.slane %v1559_v3, 0  ;;  %v1794_v19 = vperm.slane %v1560_v48, 0  ;;  %v2003_v9 = vpack.c.bf16 %v1989_v33, %v1989_v33  ;;  %v2427_v58 = vpack.c.b16 %v2413_v27, %v2413_v27 }
 0x210   :  { %v825_v35 = vrot.slane %v12015_v60, 2  ;;  %v1795_v20 = vperm.slane %v1561_v49, 0  ;;  %v1073_v50 = vmax.f32 %v819_v7, %v12015_v60  ;;  %v536_v11 = vmul.f32 %v11752_v40, %v477_v39 }
 0x211   :  { %v1884_v22 = vsel %vm1806_vm4, %v1793_v41, %v1792_v17  ;;  %v1947_v28 = vpack.c.bf16 %v1933_v38, %v1933_v38  ;;  %v1796_v45 = vperm.slane %v1562_v21, 0  ;;  %v2416_v1 = vunpack.c.l.b16 %v2150_v24 }
 0x212   :  { %v1074_v51 = vmax.f32 %v820_v8, %v825_v35  ;;  %v1885_v31 = vsel %vm1808_vm5, %v1794_v19, %v1884_v22  ;;  %v8503_v56 = vrot.slane %v1073_v50, 9  ;;  %v2524_v14 = vsel %vm1572_vm2, %v2003_v9, %v2306_v32 }
 0x213   :  { %v1886_v10 = vsel %vm1810_vm6, %v1795_v20, %v1885_v31  ;;  %v2172_v62 = vpack.c.bf16 %v2158_v6, %v2158_v6  ;;  %v2930_v63 = vsel %vm1810_vm6, %v11986_v43, %v11970_v34  ;;  %v589_v44 = vadd.f32 %v11759_v12, %v536_v11 }
 0x214   :  { %v3409_v30 = vld [vmem:[#allocation1] sm:$0xff]  ;;  %v3410_v59 = vld [vmem:[#allocation1 + $0x9] sm:$0xff]  ;;  %v3411_v52 = vld [vmem:[#allocation1 + $0x12] sm:$0xff]  ;;  %v8504_v29 = vrot.slane %v1074_v51, 9  ;;  %v1563_v13 = vmax.f32 %v1073_v50, %v8503_v56  ;;  %v1887_v15 = vsel %vm1812_vm7, %v1796_v45, %v1886_v10  ;;  %v2932_v46 = vsel %vm1816_vm9, %v11965_v16, %v11963_v26 }
 0x215   :  { %3760 = vmatmul.bf16.gmra.mxu1 %v3409_v30  ;;  %3802 = vmatmul.bf16.gmra.mxu2 %v3410_v59  ;;  %v2931_v37 = vsel %vm2767_vm14, %v2930_v63, %v11990_v25  ;;  %v2059_v34 = vpack.c.bf16 %v2045_v54, %v2045_v54  ;;  %v2711_v39 = vrot.slane %v2524_v14, 7  ;;  %v2430_v7 = vpack.c.b16 %v2416_v1, %v2416_v1 }
 0x216   :  { %3844 = vmatmul.bf16.gmra.mxu3 %v3411_v52  ;;  %2451 = vrot.lane.b32.xlu2 %v2427_v58, %s10859_s29  ;;  %v1564_v61 = vmax.f32 %v1074_v51, %v8504_v29  ;;  %v1797_v47 = vperm.slane %v1563_v13, 0  ;;  %v2482_v8 = vsel %vm1572_vm2, %v1947_v28, %v11362_v23  ;;  %vm15429_vm1 = vcmask 522240  }
 0x217   :  { %v479_v42 = vpop.f32.mrf.mxu0  ;;  %v12046_v26 = vrot.slane %v2172_v62, 4  ;;  %v2116_v16 = vpack.c.bf16 %v12033_v2, %v12033_v2  ;;  %v2566_v25 = vsel %vm1572_vm2, %v2059_v34, %v2376_v57  ;;  %vm15430_vm11 = vcmask 1045507  }
 0x218   :  { %v537_v53 = vmul.f32 %v11752_v40, %v479_v42  ;;  %v1798_v0 = vperm.slane %v1564_v61, 0  ;;  %v1888_v3 = vsel %vm1814_vm8, %v1797_v47, %v1887_v15  ;;  %v12052_v27 = vsel %vm15430_vm11, %v2931_v37, %v2932_v46 }
 0x219   :  { %v826_v4 = vrot.slane %v12015_v60, 4  ;;  %v638_v17 = vmax.f32 %v589_v44, 0.0  ;;  %v827_v41 = vrot.slane %v12015_v60, 6  ;;  %v2945_v20 = vsel %vm1806_vm4, %v2482_v8, %v2711_v39 }
 0x21a   :  { %v590_v48 = vadd.f32 %v11759_v12, %v537_v53  ;;  %v1889_v43 = vsel %vm1816_vm9, %v1798_v0, %v1888_v3  ;;  %v2951_v50 = vsel %vm1808_vm5, %v2482_v8, %v2711_v39  ;;  %v2957_v30 = vsel %vm1810_vm6, %v2482_v8, %v2711_v39 }
 0x21b   :  { %1924 = vst.msk [vmem:[#allocation2 + $0xf1] sm:$0x7f] %vm15429_vm1, %v1889_v43  ;;  %vm15431_vm1 = vcmask 1040384   ;;  %v2712_v60 = vrot.slane %v2566_v25, 6  ;;  %v2935_v24 = vrot.slane %v12052_v27, 3  ;;  %v828_v38 = vrot.slane %v638_v17, 2 }
 0x21c   :  { %v639_v49 = vmax.f32 %v590_v48, 0.0  ;;  %v2937_v33 = vsel %vm15431_vm1, %v2482_v8, %v2711_v39  ;;  %v829_v31 = vrot.slane %v638_v17, 4  ;;  %v830_v54 = vrot.slane %v638_v17, 6  ;;  %v1990_v27 = vld [vmem:[#allocation2 + $0xa2] sm:$0x7f] }
 0x21d   :  { %v12065_v32 = vsel %vm349_vm0, %v2937_v33, %v2712_v60  ;;  %v12068_v6 = vsel %vm2751_vm12, %v2945_v20, %v2712_v60  ;;  %v12071_v10 = vsel %vm2759_vm13, %v2951_v50, %v2712_v60  ;;  %vm15432_vm1 = vcmask 522240  }
 0x21e   :  { %v831_v19 = vrot.slane %v639_v49, 2  ;;  %v832_v23 = vrot.slane %v639_v49, 4  ;;  %v833_v35 = vrot.slane %v639_v49, 6  ;;  %2457 = vrot.lane.b32.xlu2 %v2430_v7, %s10859_s29 }
 0x21f   :  { %v482_v59 = vpop.f32.mrf.mxu0 }
 0x220   :  { %v1075_v52 = vmax.f32 %v826_v4, %v831_v19  ;;  %v1076_v21 = vmax.f32 %v827_v41, %v832_v23  ;;  %v1077_v22 = vmax.f32 %v638_v17, %v833_v35  ;;  %v538_v51 = vmul.f32 %v11752_v40, %v482_v59 }
 0x221   :  { %v12074_v40 = vsel %vm2767_vm14, %v2957_v30, %v2712_v60 }
 0x222   :  { %v8505_v56 = vrot.slane %v1075_v52, 9  ;;  %v8506_v9 = vrot.slane %v1076_v21, 9  ;;  %v8507_v58 = vrot.slane %v1077_v22, 9  ;;  %v591_v29 = vadd.f32 %v11759_v12, %v538_v51  ;;  %v2134_v13 = vld [vmem:[#allocation2 + $0xf1] sm:$0x7f] }
 0x223   :  { %v2078_v11 = vld [vmem:[#allocation2 + $0xf2] sm:$0x7f]  ;;  %v2148_v47 = vpack.c.bf16 %v2134_v13, %v2134_v13 }
 0x224   :  { %v2022_v28 = vld [vmem:[#allocation2 + $0xf0] sm:$0x7f]  ;;  %v1565_v45 = vmax.f32 %v1075_v52, %v8505_v56  ;;  %v1566_v61 = vmax.f32 %v1076_v21, %v8506_v9  ;;  %v1567_v42 = vmax.f32 %v1077_v22, %v8507_v58  ;;  %v640_v1 = vmax.f32 %v591_v29, 0.0 }
 0x225   :  { %v1967_v12 = vld [vmem:[#allocation2 + $0xf1] sm:$0x7f]  ;;  %v2092_v14 = vpack.c.bf16 %v2078_v11, %v2078_v11  ;;  %v2036_v53 = vpack.c.bf16 %v2022_v28, %v2022_v28  ;;  %v2414_v37 = vunpack.c.l.b16 %v2148_v47 }
 0x226   :  { %v1799_v62 = vperm.slane %v1565_v45, 0  ;;  %v1800_v63 = vperm.slane %v1566_v61, 0  ;;  %v834_v15 = vrot.slane %v640_v1, 2  ;;  %v1981_v0 = vpack.c.bf16 %v1967_v12, %v1967_v12 }
 0x227   :  { %v835_v44 = vrot.slane %v640_v1, 4  ;;  %v836_v46 = vrot.slane %v640_v1, 6  ;;  %v1078_v57 = vmax.f32 %v828_v38, %v640_v1  ;;  %v484_v3 = vpop.f32.mrf.mxu0  ;;  %v1801_v48 = vperm.slane %v1567_v42, 0  ;;  %v3751_v21 = vpop.f32.mrf.mxu1 }
 0x228   :  { %v1079_v34 = vmax.f32 %v829_v31, %v834_v15  ;;  %v2345_v43 = vunpack.c.l.b16 %v2092_v14  ;;  %v2275_v39 = vunpack.c.l.b16 %v2036_v53  ;;  %v1890_v7 = vsel %vm1806_vm4, %v1800_v63, %v1799_v62  ;;  %v12107_v15 = vld [vmem:[#allocation1 + $0x1b] sm:$0xff] }
 0x229   :  { %v1080_v8 = vmax.f32 %v830_v54, %v835_v44  ;;  %v1081_v25 = vmax.f32 %v639_v49, %v836_v46  ;;  %v8508_v4 = vrot.slane %v1078_v57, 9  ;;  %v2428_v19 = vpack.c.b16 %v2414_v37, %v2414_v37 }
 0x22a   :  { %v2446_v17 = vpop.permute.xlu0 %2445  ;;  %v8509_v41 = vrot.slane %v1079_v34, 9  ;;  %v2359_v23 = vpack.c.b16 %v2345_v43, %v2345_v43  ;;  %v2289_v35 = vpack.c.b16 %v2275_v39, %v2275_v39  ;;  %v1891_v59 = vsel %vm1808_vm5, %v1801_v48, %v1890_v7  ;;  %v2046_v43 = vld [vmem:[#allocation2 + $0xb1] sm:$0x7f] }
 0x22b   :  { %v8510_v33 = vrot.slane %v1080_v8, 9  ;;  %v8511_v20 = vrot.slane %v1081_v25, 9  ;;  %v1568_v50 = vmax.f32 %v1078_v57, %v8508_v4  ;;  %v2608_v30 = vsel %vm1572_vm2, %v2116_v16, %v2446_v17  ;;  %2453 = vrot.lane.b32.xlu0 %v2428_v19, %s10859_s29 }
 0x22c   :  { %v1569_v52 = vmax.f32 %v1079_v34, %v8509_v41  ;;  %2385 = vrot.lane.b32.xlu2 %v2359_v23, %s10859_s29  ;;  %v2713_v49 = vrot.slane %v2608_v30, 5  ;;  %v2206_v51 = vunpack.c.l.b16 %v1981_v0  ;;  %2315 = vrot.lane.b32.xlu1 %v2289_v35, %s10859_s29  ;;  %v2004_v4 = vpack.c.bf16 %v1990_v27, %v1990_v27  ;;  %v1935_v27 = vld [vmem:[#allocation2 + $0xb0] sm:$0x7f] }
 0x22d   :  { %v1570_v60 = vmax.f32 %v1080_v8, %v8510_v33  ;;  %v1571_v38 = vmax.f32 %v1081_v25, %v8511_v20  ;;  %v1802_v31 = vperm.slane %v1568_v50, 0  ;;  %v1966_v25 = vld [vmem:[#allocation2 + $0xe1] sm:$0x7f]  ;;  %v2060_v23 = vpack.c.bf16 %v2046_v43, %v2046_v43 }
 0x22e   :  { %v3793_v22 = vpop.f32.mrf.mxu2  ;;  %v1803_v2 = vperm.slane %v1569_v52, 0  ;;  %v2942_v16 = vsel %vm1810_vm6, %v2713_v49, %v12046_v26  ;;  %v2947_v9 = vsel %vm1812_vm7, %v2713_v49, %v12046_v26  ;;  %v2953_v58 = vsel %vm1814_vm8, %v2713_v49, %v12046_v26  ;;  %v2159_v33 = vld [vmem:[#allocation2 + $0xc2] sm:$0x7f] }
 0x22f   :  { %v3794_v56 = vadd.f32 %v3793_v22, %v3751_v21  ;;  %v1804_v29 = vperm.slane %v1570_v60, 0  ;;  %v1805_v13 = vperm.slane %v1571_v38, 0  ;;  %v1892_v11 = vsel %vm1810_vm6, %v1802_v31, %v1891_v59  ;;  %v3835_v63 = vpop.f32.mrf.mxu3  ;;  %v1934_v52 = vld [vmem:[#allocation2 + $0xa0] sm:$0x7f]  ;;  %v1991_v60 = vld [vmem:[#allocation2 + $0xb2] sm:$0x7f] }
 0x230   :  { %v2943_v28 = vsel %vm2747_vm15, %v12065_v32, %v2942_v16  ;;  %v1893_v45 = vsel %vm1812_vm7, %v1803_v2, %v1892_v11  ;;  %v2948_v61 = vsel %vm2754_vm3, %v12068_v6, %v2947_v9  ;;  %v2954_v42 = vsel %vm2762_vm10, %v12071_v10, %v2953_v58  ;;  %v12109_v10 = vld [vmem:[#allocation1 + $0x24] sm:$0xff]  ;;  %v2104_v31 = vld [vmem:[#allocation2 + $0xd0] sm:$0x7f] }
 0x231   :  { %v2959_v1 = vsel %vm1816_vm9, %v2713_v49, %v12046_v26  ;;  %v1894_v12 = vsel %vm1814_vm8, %v1804_v29, %v1893_v45  ;;  %v2950_v54 = vrot.slane %v2948_v61, 1  ;;  %v2956_v47 = vrot.slane %v2954_v42, 2  ;;  %v2103_v49 = vld [vmem:[#allocation2 + $0xc0] sm:$0x7f] }
 0x232   :  { %v2960_v14 = vsel %vm15430_vm11, %v12074_v40, %v2959_v1  ;;  %v1895_v32 = vsel %vm1816_vm9, %v1805_v13, %v1894_v12  ;;  %v3175_v62 = vunpack.i.h.s16 %v2943_v28  ;;  %v8524_v6 = vpack.i.b16 %v2943_v28, %v2935_v24  ;;  %v2238_v40 = vpop.permute.xlu2 %2237  ;;  %v2378_v37 = vpop.permute.xlu0 %2377 }
 0x233   :  { %v2962_v53 = vrot.slane %v2960_v14, 3  ;;  %1925 = vst.msk [vmem:[#allocation2 + $0x101] sm:$0x7f] %vm15432_vm1, %v1895_v32  ;;  %v3177_v26 = vunpack.i.h.s16 %v2950_v54  ;;  %v3179_v0 = vunpack.i.h.s16 %v2956_v47  ;;  %v12112_v44 = vadd.f32 %v3835_v63, %v3794_v56 }
 0x234   :  { %v2220_v46 = vpack.c.b16 %v2206_v51, %v2206_v51  ;;  %v8525_v57 = vpack.i.b16 %v2950_v54, %v3175_v62  ;;  %3415 = vst [vmem:[#allocation1] ss:$9 sm:$0xff] %v8524_v6  ;;  %v1980_v59 = vpack.c.bf16 %v1966_v25, %v1966_v25  ;;  %v2569_v21 = vsel %vm1572_vm2, %v2060_v23, %v2378_v37 }
 0x235   :  { %v8526_v3 = vpack.i.b16 %v2956_v47, %v3177_v26  ;;  %v8527_v48 = vpack.i.b16 %v2962_v53, %v3179_v0  ;;  %v2173_v51 = vpack.c.bf16 %v2159_v33, %v2159_v33  ;;  %v1948_v56 = vpack.c.bf16 %v1934_v52, %v1934_v52  ;;  %v2160_v0 = vld [vmem:[#allocation2 + $0xd2] sm:$0x7f] }
 0x236   :  { %2247 = vrot.lane.b32.xlu0 %v2220_v46, %s10859_s29  ;;  %3417 = vst [vmem:[#allocation1 + $0x1] ss:$9 sm:$0xff] %v8525_v57  ;;  %v2716_v2 = vrot.slane %v2569_v21, 6  ;;  %v2117_v16 = vpack.c.bf16 %v2103_v49, %v2103_v49  ;;  %v2205_v9 = vunpack.c.l.b16 %v1980_v59  ;;  %v2005_v29 = vpack.c.bf16 %v1991_v60, %v1991_v60 }
 0x237   :  { %3419 = vst [vmem:[#allocation1 + $0x2] ss:$9 sm:$0xff] %v8526_v3  ;;  %v2485_v11 = vsel %vm1572_vm2, %v1948_v56, %v2238_v40  ;;  %v2718_v28 = vrot.slane %v2173_v51, 4  ;;  %v2118_v61 = vpack.c.bf16 %v2104_v31, %v2104_v31  ;;  %vm15433_vm11 = vcmask 1040384   ;;  %v2047_v40 = vld [vmem:[#allocation2 + $0xc1] sm:$0x7f] }
 0x238   :  { %3421 = vst [vmem:[#allocation1 + $0x3] ss:$9 sm:$0xff] %v8527_v48  ;;  %v2219_v62 = vpack.c.b16 %v2205_v9, %v2205_v9  ;;  %vm15434_vm1 = vcmask 1045507  }
 0x23a   :  { %v2079_v24 = vld [vmem:[#allocation2 + $0x102] sm:$0x7f]  ;;  %v2308_v8 = vpop.permute.xlu2 %2307  ;;  %v12115_v35 = vpop.permute.xlu0 %2239 }
 0x23b   :  { %v2023_v34 = vld [vmem:[#allocation2 + $0x100] sm:$0x7f]  ;;  %v2093_v39 = vpack.c.bf16 %v2079_v24, %v2079_v24  ;;  %v2527_v20 = vsel %vm1572_vm2, %v2004_v4, %v2308_v8  ;;  %v2061_v8 = vpack.c.bf16 %v2047_v40, %v2047_v40 }
 0x23c   :  { %v2037_v7 = vpack.c.bf16 %v2023_v34, %v2023_v34  ;;  %v2135_v19 = vld [vmem:[#allocation2 + $0x101] sm:$0x7f]  ;;  %v2715_v38 = vrot.slane %v2527_v20, 7 }
 0x23d   :  { %v2346_v17 = vunpack.c.l.b16 %v2093_v39  ;;  %v2149_v22 = vpack.c.bf16 %v2135_v19, %v2135_v19  ;;  %v2174_v39 = vpack.c.bf16 %v2160_v0, %v2160_v0  ;;  %v1949_v19 = vpack.c.bf16 %v1935_v27, %v1935_v27 }
 0x23e   :  { %v2276_v41 = vunpack.c.l.b16 %v2037_v7  ;;  %v2964_v42 = vsel %vm15433_vm11, %v2485_v11, %v2715_v38  ;;  %v2972_v1 = vsel %vm1806_vm4, %v2485_v11, %v2715_v38  ;;  %v2978_v12 = vsel %vm1808_vm5, %v2485_v11, %v2715_v38 }
 0x23f   :  { %v2360_v50 = vpack.c.b16 %v2346_v17, %v2346_v17  ;;  %v2415_v13 = vunpack.c.l.b16 %v2149_v22  ;;  %v2966_v14 = vsel %vm349_vm0, %v2964_v42, %v2716_v2  ;;  %v2973_v32 = vsel %vm2751_vm12, %v2972_v1, %v2716_v2 }
 0x240   :  { %v2290_v30 = vpack.c.b16 %v2276_v41, %v2276_v41  ;;  %v2979_v53 = vsel %vm2759_vm13, %v2978_v12, %v2716_v2  ;;  %v2984_v41 = vsel %vm1810_vm6, %v2485_v11, %v2715_v38  ;;  %v2722_v59 = vrot.slane %v2174_v39, 4 }
 0x241   :  { %2387 = vrot.lane.b32.xlu1 %v2360_v50, %s10859_s29  ;;  %v2429_v46 = vpack.c.b16 %v2415_v13, %v2415_v13  ;;  %v2985_v20 = vsel %vm2767_vm14, %v2984_v41, %v2716_v2  ;;  %v2488_v50 = vsel %vm1572_vm2, %v1949_v19, %v12115_v35 }
 0x242   :  { %2317 = vrot.lane.b32.xlu0 %v2290_v30, %s10859_s29 }
 0x243   :  { %v2448_v58 = vpop.permute.xlu1 %2447 }
 0x244   :  { %v2611_v45 = vsel %vm1572_vm2, %v2117_v16, %v2448_v58 }
 0x245   :  { %v2717_v54 = vrot.slane %v2611_v45, 5  ;;  %v2310_v47 = vpop.permute.xlu0 %2309 }
 0x246   :  { %v2530_v48 = vsel %vm1572_vm2, %v2005_v29, %v2310_v47 }
 0x247   :  { %v2969_v6 = vsel %vm1810_vm6, %v2717_v54, %v2718_v28  ;;  %v2974_v63 = vsel %vm1812_vm7, %v2717_v54, %v2718_v28  ;;  %v2980_v26 = vsel %vm1814_vm8, %v2717_v54, %v2718_v28  ;;  %v2986_v25 = vsel %vm1816_vm9, %v2717_v54, %v2718_v28 }
 0x248   :  { %v2970_v57 = vsel %vm2747_vm15, %v2966_v14, %v2969_v6  ;;  %v2975_v37 = vsel %vm2754_vm3, %v2973_v32, %v2974_v63  ;;  %v2981_v3 = vsel %vm2762_vm10, %v2979_v53, %v2980_v26  ;;  %v2719_v4 = vrot.slane %v2530_v48, 7  ;;  %v1992_v48 = vld [vmem:[#allocation2 + $0xc2] sm:$0x7f] }
 0x249   :  { %2245 = vrot.lane.b32.xlu1 %v2219_v62, %s10859_s29  ;;  %v2977_v24 = vrot.slane %v2975_v37, 1  ;;  %v2983_v34 = vrot.slane %v2981_v3, 2  ;;  %3423 = vst [vmem:[#allocation1 + $0x4] ss:$9 sm:$0xff] %v2970_v57  ;;  %v2987_v30 = vsel %vm15434_vm1, %v2985_v20, %v2986_v25  ;;  %v12168_v57 = vpop.f32.mrf.mxu2  ;;  %v12172_v3 = vpop.f32.mrf.mxu3 }
 0x24a   :  { %2455 = vrot.lane.b32.xlu0 %v2429_v46, %s10859_s29  ;;  %v2991_v21 = vsel %vm15433_vm11, %v2488_v50, %v2719_v4  ;;  %v2999_v49 = vsel %vm1806_vm4, %v2488_v50, %v2719_v4  ;;  %v3005_v22 = vsel %vm1808_vm5, %v2488_v50, %v2719_v4  ;;  %v2989_v56 = vrot.slane %v2987_v30, 3  ;;  %v12166_v46 = vpop.f32.mrf.mxu1  ;;  %v2105_v30 = vld [vmem:[#allocation2 + $0xe0] sm:$0x7f] }
 0x24b   :  { %v2450_v43 = vpop.permute.xlu2 %2449  ;;  %3425 = vst [vmem:[#allocation1 + $0x5] ss:$9 sm:$0xff] %v2977_v24  ;;  %v2380_v17 = vpop.permute.xlu1 %2379  ;;  %v3011_v13 = vsel %vm1810_vm6, %v2488_v50, %v2719_v4 }
 0x24c   :  { %v2614_v7 = vsel %vm1572_vm2, %v2118_v61, %v2450_v43  ;;  %3427 = vst [vmem:[#allocation1 + $0x6] ss:$9 sm:$0xff] %v2983_v34  ;;  %v2572_v33 = vsel %vm1572_vm2, %v2061_v8, %v2380_v17  ;;  %v2048_v34 = vld [vmem:[#allocation2 + $0xd1] sm:$0x7f]  ;;  %v2006_v43 = vpack.c.bf16 %v1992_v48, %v1992_v48  ;;  %v1936_v17 = vld [vmem:[#allocation2 + $0xc0] sm:$0x7f] }
 0x24d   :  { %v2721_v23 = vrot.slane %v2614_v7, 5  ;;  %v2720_v52 = vrot.slane %v2572_v33, 6  ;;  %v2062_v41 = vpack.c.bf16 %v2048_v34, %v2048_v34  ;;  %v2161_v33 = vld [vmem:[#allocation2 + $0xe2] sm:$0x7f] }
 0x24f   :  { %v2996_v51 = vsel %vm1810_vm6, %v2721_v23, %v2722_v59  ;;  %v2993_v60 = vsel %vm349_vm0, %v2991_v21, %v2720_v52  ;;  %v3000_v38 = vsel %vm2751_vm12, %v2999_v49, %v2720_v52  ;;  %v3006_v31 = vsel %vm2759_vm13, %v3005_v22, %v2720_v52 }
 0x250   :  { %v3001_v35 = vsel %vm1812_vm7, %v2721_v23, %v2722_v59  ;;  %v2997_v2 = vsel %vm2747_vm15, %v2993_v60, %v2996_v51  ;;  %v3007_v16 = vsel %vm1814_vm8, %v2721_v23, %v2722_v59  ;;  %v3012_v45 = vsel %vm2767_vm14, %v3011_v13, %v2720_v52 }
 0x251   :  { %v3002_v9 = vsel %vm2754_vm3, %v3000_v38, %v3001_v35  ;;  %v3008_v58 = vsel %vm2762_vm10, %v3006_v31, %v3007_v16  ;;  %v8528_v29 = vpack.i.b16 %v2997_v2, %v2989_v56  ;;  %v3013_v61 = vsel %vm1816_vm9, %v2721_v23, %v2722_v59  ;;  %v10428_v35 = vld [vmem:[%s15419_s6 + $0x118] sm:$0xff] }
 0x252   :  { %v3004_v11 = vrot.slane %v3002_v9, 1  ;;  %v3010_v28 = vrot.slane %v3008_v58, 2  ;;  %v3189_v42 = vunpack.i.h.s16 %v2997_v2  ;;  %v3014_v1 = vsel %vm15434_vm1, %v3012_v45, %v3013_v61  ;;  %3914 = vmatpush.bf16.msrb.mxu2 %v10428_v35  ;;  %vm15435_vm1 = vmmov %vm15433_vm11 }
 0x253   :  { %3429 = vst [vmem:[#allocation1 + $0x7] ss:$9 sm:$0xff] %v8528_v29  ;;  %v3016_v47 = vrot.slane %v3014_v1, 3  ;;  %v2242_v0 = vpop.permute.xlu1 %2241  ;;  %v12170_v37 = vpop.permute.xlu2 %2243  ;;  %v1950_v59 = vpack.c.bf16 %v1936_v17, %v1936_v17  ;;  %v2175_v52 = vpack.c.bf16 %v2161_v33, %v2161_v33  ;;  %v2119_v22 = vpack.c.bf16 %v2105_v30, %v2105_v30  ;;  %v1937_v17 = vld [vmem:[#allocation2 + $0xd0] sm:$0x7f] }
 0x254   :  { %v3191_v12 = vunpack.i.h.s16 %v3004_v11  ;;  %v3193_v54 = vunpack.i.h.s16 %v3010_v28  ;;  %v8529_v14 = vpack.i.b16 %v3004_v11, %v3189_v42  ;;  %v2106_v33 = vld [vmem:[#allocation2 + $0xf0] sm:$0x7f] }
 0x255   :  { %v2491_v21 = vsel %vm1572_vm2, %v1950_v59, %v2242_v0  ;;  %v2726_v2 = vrot.slane %v2175_v52, 4  ;;  %v10422_v0 = vld [vmem:[%s15419_s6 + $0xe8] sm:$0xff]  ;;  %v1951_v52 = vpack.c.bf16 %v1937_v17, %v1937_v17 }
 0x256   :  { %v8530_v6 = vpack.i.b16 %v3010_v28, %v3191_v12  ;;  %v8531_v40 = vpack.i.b16 %v3016_v47, %v3193_v54  ;;  %v10424_v54 = vld [vmem:[%s15419_s6 + $0xf8] sm:$0xff] }
 0x257   :  { %3868 = vmatpush.bf16.msrb.mxu1 %v10424_v54 }
 0x25a   :  { %v3430_v32 = vld [vmem:[#allocation1] sm:$0xff]  ;;  %v3431_v53 = vld [vmem:[#allocation1 + $0x9] sm:$0xff]  ;;  %v3432_v62 = vld [vmem:[#allocation1 + $0x12] sm:$0xff] }
 0x25b   :  { %v12162_v63 = vld [vmem:[#allocation1 + $0x1b] sm:$0xff]  ;;  %v12164_v26 = vld [vmem:[#allocation1 + $0x24] sm:$0xff]  ;;  %3765 = vmatmul.bf16.gmra.mxu1 %v3430_v32  ;;  %3807 = vmatmul.bf16.gmra.mxu2 %v3431_v53  ;;  %v10423_v53 = vld [vmem:[%s15419_s6 + $0xf0] sm:$0xff] }
 0x25c   :  { %3436 = vst [vmem:[#allocation1] ss:$9 sm:$0xff] %v8529_v14  ;;  %3849 = vmatmul.bf16.gmra.mxu3 %v3432_v62  ;;  %v10427_v62 = vld [vmem:[%s15419_s6 + $0x110] sm:$0xff]  ;;  %3869 = vmatpush.bf16.msrb.mxu1 %v10423_v53 }
 0x25d   :  { %3438 = vst [vmem:[#allocation1 + $0x1] ss:$9 sm:$0xff] %v8530_v6  ;;  %v1993_v6 = vld [vmem:[#allocation2 + $0xd2] sm:$0x7f]  ;;  %3915 = vmatpush.bf16.msrb.mxu2 %v10427_v62 }
 0x25e   :  { %3440 = vst [vmem:[#allocation1 + $0x2] ss:$9 sm:$0xff] %v8531_v40  ;;  %v2049_v40 = vld [vmem:[#allocation2 + $0xe1] sm:$0x7f] }
 0x260   :  { %3870 = vmatpush.bf16.msrb.mxu1 %v10422_v0 }
 0x262   :  { %v3756_v24 = vpop.f32.mrf.mxu1 }
 0x264   :  { %v2312_v27 = vpop.permute.xlu1 %2311  ;;  %v2382_v8 = vpop.permute.xlu0 %2381 }
 0x265   :  { %v2533_v25 = vsel %vm1572_vm2, %v2006_v43, %v2312_v27  ;;  %v2575_v20 = vsel %vm1572_vm2, %v2062_v41, %v2382_v8  ;;  %v2007_v27 = vpack.c.bf16 %v1993_v6, %v1993_v6  ;;  %v2063_v43 = vpack.c.bf16 %v2049_v40, %v2049_v40  ;;  %v2108_v6 = vld [vmem:[#allocation2 + $0x110] sm:$0x7f] }
 0x266   :  { %v2723_v50 = vrot.slane %v2533_v25, 7  ;;  %v2724_v49 = vrot.slane %v2575_v20, 6 }
 0x267   :  { %v2314_v39 = vpop.permute.xlu2 %2313 }
 0x268   :  { %v3798_v7 = vpop.f32.mrf.mxu2  ;;  %v3018_v51 = vsel %vm15433_vm11, %v2491_v21, %v2723_v50  ;;  %v3026_v60 = vsel %vm1806_vm4, %v2491_v21, %v2723_v50  ;;  %v3032_v31 = vsel %vm1808_vm5, %v2491_v21, %v2723_v50  ;;  %v2536_v8 = vsel %vm1572_vm2, %v2007_v27, %v2314_v39 }
 0x269   :  { %v3799_v4 = vadd.f32 %v3798_v7, %v3756_v24  ;;  %v3840_v19 = vpop.f32.mrf.mxu3  ;;  %v3020_v9 = vsel %vm349_vm0, %v3018_v51, %v2724_v49  ;;  %v3027_v58 = vsel %vm2751_vm12, %v3026_v60, %v2724_v49  ;;  %v3033_v29 = vsel %vm2759_vm13, %v3032_v31, %v2724_v49 }
 0x26a   :  { %v12198_v47 = vpop.f32.mrf.mxu1  ;;  %v3038_v20 = vsel %vm1810_vm6, %v2491_v21, %v2723_v50  ;;  %v2727_v30 = vrot.slane %v2536_v8, 7  ;;  %v2120_v60 = vpack.c.bf16 %v2106_v33, %v2106_v33  ;;  %v2494_v39 = vsel %vm1572_vm2, %v1951_v52, %v12170_v37 }
 0x26b   :  { %v12175_v23 = vadd.f32 %v3840_v19, %v3799_v4  ;;  %v2162_v4 = vld [vmem:[#allocation2 + $0xf2] sm:$0x7f]  ;;  %v3039_v31 = vsel %vm2767_vm14, %v3038_v20, %v2724_v49  ;;  %vm15436_vm11 = vcmask 1045507   ;;  %v2051_v20 = vld [vmem:[#allocation2 + $0x101] sm:$0x7f] }
 0x26c   :  { %v2176_v59 = vpack.c.bf16 %v2162_v4, %v2162_v4  ;;  %v3045_v35 = vsel %vm15435_vm1, %v2494_v39, %v2727_v30  ;;  %vm15437_vm1 = vmmov %vm15436_vm11 }
 0x26e   :  { %v2730_v50 = vrot.slane %v2176_v59, 4  ;;  %v1995_v59 = vld [vmem:[#allocation2 + $0xf2] sm:$0x7f] }
 0x270   :  { %v2452_v38 = vpop.permute.xlu2 %2451  ;;  %v12200_v14 = vpop.f32.mrf.mxu2 }
 0x271   :  { %v2617_v56 = vsel %vm1572_vm2, %v2119_v22, %v2452_v38  ;;  %v12202_v32 = vpop.f32.mrf.mxu3 }
 0x272   :  { %v2725_v16 = vrot.slane %v2617_v56, 5 }
 0x274   :  { %v3023_v13 = vsel %vm1810_vm6, %v2725_v16, %v2726_v2  ;;  %v3028_v11 = vsel %vm1812_vm7, %v2725_v16, %v2726_v2  ;;  %v3034_v28 = vsel %vm1814_vm8, %v2725_v16, %v2726_v2  ;;  %v3040_v22 = vsel %vm1816_vm9, %v2725_v16, %v2726_v2  ;;  %v10421_v2 = vld [vmem:[%s15419_s6 + $0xe0] sm:$0xff] }
 0x275   :  { %v3024_v45 = vsel %vm2747_vm15, %v3020_v9, %v3023_v13  ;;  %v3029_v61 = vsel %vm2754_vm3, %v3027_v58, %v3028_v11  ;;  %v3035_v42 = vsel %vm2762_vm10, %v3033_v29, %v3034_v28  ;;  %v3041_v9 = vsel %vm15436_vm11, %v3039_v31, %v3040_v22  ;;  %3871 = vmatpush.bf16.msrb.mxu1 %v10421_v2 }
 0x276   :  { %v3031_v1 = vrot.slane %v3029_v61, 1  ;;  %v3037_v12 = vrot.slane %v3035_v42, 2  ;;  %3442 = vst [vmem:[#allocation1 + $0x3] ss:$9 sm:$0xff] %v3024_v45  ;;  %v3053_v16 = vsel %vm1806_vm4, %v2494_v39, %v2727_v30  ;;  %v3059_v11 = vsel %vm1808_vm5, %v2494_v39, %v2727_v30 }
 0x277   :  { %v3043_v28 = vrot.slane %v3041_v9, 3  ;;  %v2065_v2 = vpack.c.bf16 %v2051_v20, %v2051_v20  ;;  %vm15438_vm11 = vcmask 1040384  }
 0x278   :  { %3444 = vst [vmem:[#allocation1 + $0x4] ss:$9 sm:$0xff] %v3031_v1  ;;  %v2458_v27 = vpop.permute.xlu2 %2457 }
 0x279   :  { %3446 = vst [vmem:[#allocation1 + $0x5] ss:$9 sm:$0xff] %v3037_v12 }
 0x27b   :  { %v2384_v48 = vpop.permute.xlu1 %2383 }
 0x27c   :  { %v2578_v41 = vsel %vm1572_vm2, %v2063_v43, %v2384_v48  ;;  %v3065_v48 = vsel %vm1810_vm6, %v2494_v39, %v2727_v30  ;;  %v2164_v43 = vld [vmem:[#allocation2 + $0x112] sm:$0x7f] }
 0x27d   :  { %v2728_v51 = vrot.slane %v2578_v41, 6  ;;  %v2178_v41 = vpack.c.bf16 %v2164_v43, %v2164_v43 }
 0x27f   :  { %v3047_v58 = vsel %vm349_vm0, %v3045_v35, %v2728_v51  ;;  %v3054_v37 = vsel %vm2751_vm12, %v3053_v16, %v2728_v51  ;;  %v3060_v42 = vsel %vm2759_vm13, %v3059_v11, %v2728_v51  ;;  %v1939_v35 = vld [vmem:[#allocation2 + $0xf0] sm:$0x7f]  ;;  %v12248_v9 = vrot.slane %v2178_v41, 4 }
 0x280   :  { %v2009_v16 = vpack.c.bf16 %v1995_v59, %v1995_v59 }
 0x292   :  { %v3761_v24 = vpop.f32.mrf.mxu1 }
 0x298   :  { %v3803_v34 = vpop.f32.mrf.mxu2 }
 0x299   :  { %v3804_v7 = vadd.f32 %v3803_v34, %v3761_v24  ;;  %v3845_v25 = vpop.f32.mrf.mxu3  ;;  %v3066_v24 = vsel %vm2767_vm14, %v3065_v48, %v2728_v51  ;;  %v2122_v34 = vpack.c.bf16 %v2108_v6, %v2108_v6  ;;  %v1938_v48 = vld [vmem:[#allocation2 + $0xe0] sm:$0x7f] }
 0x29b   :  { %v12215_v19 = vadd.f32 %v3845_v25, %v3804_v7  ;;  %v2626_v52 = vsel %vm1572_vm2, %v2122_v34, %v2458_v27 }
 0x29d   :  { %v2454_v38 = vpop.permute.xlu0 %2453 }
 0x29e   :  { %v2620_v56 = vsel %vm1572_vm2, %v2120_v60, %v2454_v38  ;;  %v2316_v25 = vpop.permute.xlu1 %2315 }
 0x29f   :  { %v2729_v21 = vrot.slane %v2620_v56, 5  ;;  %v1994_v56 = vld [vmem:[#allocation2 + $0xe2] sm:$0x7f] }
 0x2a1   :  { %v3050_v49 = vsel %vm1810_vm6, %v2729_v21, %v2730_v50  ;;  %v3055_v29 = vsel %vm1812_vm7, %v2729_v21, %v2730_v50  ;;  %v3061_v13 = vsel %vm1814_vm8, %v2729_v21, %v2730_v50  ;;  %v3067_v40 = vsel %vm1816_vm9, %v2729_v21, %v2730_v50  ;;  %v2050_v21 = vld [vmem:[#allocation2 + $0xf1] sm:$0x7f] }
 0x2a2   :  { %v3051_v45 = vsel %vm2747_vm15, %v3047_v58, %v3050_v49  ;;  %v3056_v61 = vsel %vm2754_vm3, %v3054_v37, %v3055_v29  ;;  %v3062_v54 = vsel %vm2762_vm10, %v3060_v42, %v3061_v13  ;;  %v3068_v7 = vsel %vm15437_vm1, %v3066_v24, %v3067_v40  ;;  %v2386_v49 = vpop.permute.xlu2 %2385  ;;  %vm15439_vm1 = vmmov %vm15438_vm11 }
 0x2a3   :  { %v3058_v1 = vrot.slane %v3056_v61, 1  ;;  %v3203_v12 = vunpack.i.h.s16 %v3051_v45  ;;  %v8532_v53 = vpack.i.b16 %v3051_v45, %v3043_v28  ;;  %v3064_v0 = vrot.slane %v3062_v54, 2 }
 0x2a4   :  { %v3070_v33 = vrot.slane %v3068_v7, 3  ;;  %v12250_v50 = vrot.slane %v2626_v52, 5  ;;  %v1953_v29 = vpack.c.bf16 %v1939_v35, %v1939_v35  ;;  %v2064_v28 = vpack.c.bf16 %v2050_v21, %v2050_v21  ;;  %v2107_v7 = vld [vmem:[#allocation2 + $0x100] sm:$0x7f] }
 0x2a5   :  { %v8533_v62 = vpack.i.b16 %v3058_v1, %v3203_v12  ;;  %3448 = vst [vmem:[#allocation1 + $0x6] ss:$9 sm:$0xff] %v8532_v53  ;;  %v3205_v8 = vunpack.i.h.s16 %v3058_v1  ;;  %v3207_v17 = vunpack.i.h.s16 %v3064_v0  ;;  %v2008_v45 = vpack.c.bf16 %v1994_v56, %v1994_v56  ;;  %v10419_v56 = vld [vmem:[%s15419_s6 + $0xd0] sm:$0xff] }
 0x2a6   :  { %v3104_v1 = vsel %vm1810_vm6, %v12250_v50, %v12248_v9  ;;  %v3109_v12 = vsel %vm1812_vm7, %v12250_v50, %v12248_v9  ;;  %v3115_v54 = vsel %vm1814_vm8, %v12250_v50, %v12248_v9  ;;  %v1952_v52 = vpack.c.bf16 %v1938_v48, %v1938_v48 }
 0x2a7   :  { %3450 = vst [vmem:[#allocation1 + $0x7] ss:$9 sm:$0xff] %v8533_v62  ;;  %v8534_v22 = vpack.i.b16 %v3064_v0, %v3205_v8  ;;  %v8535_v39 = vpack.i.b16 %v3070_v33, %v3207_v17  ;;  %v2581_v62 = vsel %vm1572_vm2, %v2064_v28, %v2386_v49  ;;  %v2539_v27 = vsel %vm1572_vm2, %v2008_v45, %v2316_v25  ;;  %v2163_v8 = vld [vmem:[#allocation2 + $0x102] sm:$0x7f]  ;;  %v10420_v33 = vld [vmem:[%s15419_s6 + $0xd8] sm:$0xff] }
 0x2a8   :  { %v2248_v4 = vpop.permute.xlu0 %2247  ;;  %v10426_v25 = vld [vmem:[%s15419_s6 + $0x108] sm:$0xff]  ;;  %3872 = vmatpush.bf16.msrb.mxu1 %v10420_v33 }
 0x2a9   :  { %v2500_v53 = vsel %vm1572_vm2, %v1953_v29, %v2248_v4  ;;  %3916 = vmatpush.bf16.msrb.mxu2 %v10426_v25 }
 0x2ac   :  { %3873 = vmatpush.bf16.msrb.mxu1 %v10419_v56 }
 0x2ae   :  { %v3451_v60 = vld [vmem:[#allocation1] sm:$0xff]  ;;  %v3452_v30 = vld [vmem:[#allocation1 + $0x9] sm:$0xff]  ;;  %v3453_v38 = vld [vmem:[#allocation1 + $0x12] sm:$0xff] }
 0x2af   :  { %v12244_v51 = vld [vmem:[#allocation1 + $0x1b] sm:$0xff]  ;;  %v12246_v31 = vld [vmem:[#allocation1 + $0x24] sm:$0xff]  ;;  %3770 = vmatmul.bf16.gmra.mxu1 %v3451_v60  ;;  %3812 = vmatmul.bf16.gmra.mxu2 %v3452_v30  ;;  %v2731_v60 = vrot.slane %v2539_v27, 7 }
 0x2b0   :  { %3457 = vst [vmem:[#allocation1] ss:$9 sm:$0xff] %v8534_v22  ;;  %3854 = vmatmul.bf16.gmra.mxu3 %v3453_v38  ;;  %v2732_v22 = vrot.slane %v2581_v62, 6  ;;  %v2121_v38 = vpack.c.bf16 %v2107_v7, %v2107_v7 }
 0x2b1   :  { %3459 = vst [vmem:[#allocation1 + $0x1] ss:$9 sm:$0xff] %v8535_v39  ;;  %v2177_v39 = vpack.c.bf16 %v2163_v8, %v2163_v8 }
 0x2b3   :  { %v2388_v58 = vpop.permute.xlu1 %2387  ;;  %v2734_v45 = vrot.slane %v2177_v39, 4 }
 0x2b4   :  { %v2318_v37 = vpop.permute.xlu0 %2317  ;;  %v2584_v13 = vsel %vm1572_vm2, %v2065_v2, %v2388_v58 }
 0x2b5   :  { %v2542_v11 = vsel %vm1572_vm2, %v2009_v16, %v2318_v37  ;;  %v12254_v61 = vrot.slane %v2584_v13, 6 }
 0x2b6   :  { %v12256_v42 = vrot.slane %v2542_v11, 7 }
 0x2b8   :  { %v3099_v6 = vsel %vm15438_vm11, %v2500_v53, %v12256_v42  ;;  %v3107_v0 = vsel %vm1806_vm4, %v2500_v53, %v12256_v42  ;;  %v3113_v40 = vsel %vm1808_vm5, %v2500_v53, %v12256_v42  ;;  %vm4462_vm11 = vcmask 1045508  }
 0x2b9   :  { %v3101_v24 = vsel %vm349_vm0, %v3099_v6, %v12254_v61  ;;  %v3108_v34 = vsel %vm2751_vm12, %v3107_v0, %v12254_v61  ;;  %v3114_v43 = vsel %vm2759_vm13, %v3113_v40, %v12254_v61  ;;  %v10425_v0 = vld [vmem:[%s15419_s6 + $0x100] sm:$0xff] }
 0x2ba   :  { %v3105_v4 = vsel %vm2747_vm15, %v3101_v24, %v3104_v1  ;;  %v3110_v17 = vsel %vm2754_vm3, %v3108_v34, %v3109_v12  ;;  %v3116_v41 = vsel %vm2762_vm10, %v3114_v43, %v3115_v54  ;;  %3917 = vmatpush.bf16.msrb.mxu2 %v10425_v0 }
 0x2bb   :  { %v3112_v20 = vrot.slane %v3110_v17, 1  ;;  %v3217_v59 = vunpack.i.h.s16 %v3105_v4  ;;  %v2246_v30 = vpop.permute.xlu1 %2245  ;;  %v3118_v35 = vrot.slane %v3116_v41, 2  ;;  %v3119_v17 = vsel %vm1810_vm6, %v2500_v53, %v12256_v42 }
 0x2bc   :  { %v2497_v16 = vsel %vm1572_vm2, %v1952_v52, %v2246_v30  ;;  %v2456_v58 = vpop.permute.xlu0 %2455  ;;  %v3121_v52 = vsel %vm1816_vm9, %v12250_v50, %v12248_v9  ;;  %v12329_v50 = vpop.f32.mrf.mxu1 }
 0x2bd   :  { %v3219_v21 = vunpack.i.h.s16 %v3112_v20  ;;  %v8537_v2 = vpack.i.b16 %v3112_v20, %v3217_v59  ;;  %v3072_v37 = vsel %vm15439_vm1, %v2497_v16, %v2731_v60  ;;  %v3080_v49 = vsel %vm1806_vm4, %v2497_v16, %v2731_v60  ;;  %v10418_v20 = vld [vmem:[%s15419_s6 + $0xc8] sm:$0xff] }
 0x2be   :  { %v3086_v29 = vsel %vm1808_vm5, %v2497_v16, %v2731_v60  ;;  %v3092_v13 = vsel %vm1810_vm6, %v2497_v16, %v2731_v60  ;;  %v3074_v28 = vsel %vm349_vm0, %v3072_v37, %v2732_v22  ;;  %v2623_v1 = vsel %vm1572_vm2, %v2121_v38, %v2456_v58  ;;  %3874 = vmatpush.bf16.msrb.mxu1 %v10418_v20  ;;  %v10417_v60 = vld [vmem:[%s15419_s6 + $0xc0] sm:$0xff]  ;;  %s15450_s6 = sld [smem:[#allocation12_spill]] }
 0x2bf   :  { %v8538_v11 = vpack.i.b16 %v3118_v35, %v3219_v21  ;;  %3469 = vst [vmem:[#allocation1 + $0x6] ss:$9 sm:$0xff] %v8537_v2  ;;  %v3081_v12 = vsel %vm2751_vm12, %v3080_v49, %v2732_v22  ;;  %v3087_v54 = vsel %vm2759_vm13, %v3086_v29, %v2732_v22  ;;  %v3093_v62 = vsel %vm2767_vm14, %v3092_v13, %v2732_v22 }
 0x2c0   :  { %v2733_v6 = vrot.slane %v2623_v1, 5  ;;  %vm15440_vm13 = vcmask 1045507   ;;  %v3120_v22 = vsel %vm2767_vm14, %v3119_v17, %v12254_v61  ;;  %v3221_v53 = vunpack.i.h.s16 %v3118_v35  ;;  %v12331_v61 = vpop.f32.mrf.mxu2  ;;  %v12333_v35 = vpop.f32.mrf.mxu3  ;;  %vm15446_vm14 = vmmov %vm15439_vm1 }
 0x2c1   :  { %3471 = vst [vmem:[#allocation1 + $0x7] ss:$9 sm:$0xff] %v8538_v11 }
 0x2c2   :  { %v3077_v40 = vsel %vm1810_vm6, %v2733_v6, %v2734_v45  ;;  %v3082_v48 = vsel %vm1812_vm7, %v2733_v6, %v2734_v45  ;;  %v3088_v27 = vsel %vm1814_vm8, %v2733_v6, %v2734_v45  ;;  %v3094_v24 = vsel %vm1816_vm9, %v2733_v6, %v2734_v45  ;;  %3875 = vmatpush.bf16.msrb.mxu1 %v10417_v60 }
 0x2c3   :  { %v3078_v34 = vsel %vm2747_vm15, %v3074_v28, %v3077_v40  ;;  %v3083_v43 = vsel %vm2754_vm3, %v3081_v12, %v3082_v48  ;;  %v3089_v7 = vsel %vm2762_vm10, %v3087_v54, %v3088_v27  ;;  %v3095_v8 = vsel %vm15440_vm13, %v3093_v62, %v3094_v24  ;;  %vm15441_vm10 = vmmov %vm15440_vm13 }
 0x2c4   :  { %v3085_v41 = vrot.slane %v3083_v43, 1  ;;  %v3091_v25 = vrot.slane %v3089_v7, 2  ;;  %v3097_v33 = vrot.slane %v3095_v8, 3  ;;  %3461 = vst [vmem:[#allocation1 + $0x2] ss:$9 sm:$0xff] %v3078_v34  ;;  %v3122_v42 = vsel %vm15441_vm10, %v3120_v22, %v3121_v52 }
 0x2c5   :  { %v3124_v30 = vrot.slane %v3122_v42, 3  ;;  %v3796_v52 = vadd.f32 %v12168_v57, %v12166_v46  ;;  %v8761_v46 = vld [vmem:[%s15444_s27 + $0x70] sm:$0xf]  ;;  %v10444_v57 = vld [vmem:[%s15444_s27 + $0x74] sm:$0xf0]  ;;  %vm4471_vm15 = vcmask 1046528  }
 0x2c6   :  { %v8536_v59 = vpack.i.b16 %v3105_v4, %v3097_v33  ;;  %3463 = vst [vmem:[#allocation1 + $0x3] ss:$9 sm:$0xff] %v3085_v41  ;;  %v12380_v33 = vld [vmem:[%s15442_s26] ss:$0 sm:$0xff]  ;;  %vm4473_vm3 = vcmask 1046533   ;;  %vm4464_vm13 = vcmask 1043456  }
 0x2c7   :  { %3465 = vst [vmem:[#allocation1 + $0x4] ss:$9 sm:$0xff] %v3091_v25  ;;  %v8539_v4 = vpack.i.b16 %v3124_v30, %v3221_v53  ;;  %v12388_v53 = vld [vmem:[%s15443_s1] ss:$0 sm:$0xff] }
 0x2c8   :  { %3467 = vst [vmem:[#allocation1 + $0x5] ss:$9 sm:$0xff] %v8536_v59 }
 0x2cf   :  { %v3472_v38 = vld [vmem:[#allocation1] sm:$0xff]  ;;  %v3473_v39 = vld [vmem:[#allocation1 + $0x9] sm:$0xff]  ;;  %v3474_v56 = vld [vmem:[#allocation1 + $0x12] sm:$0xff] }
 0x2d0   :  { %v3475_v21 = vld [vmem:[#allocation1 + $0x1b] sm:$0xff]  ;;  %v3476_v9 = vld [vmem:[#allocation1 + $0x24] sm:$0xff]  ;;  %3775 = vmatmul.bf16.gmra.mxu1 %v3472_v38  ;;  %3817 = vmatmul.bf16.gmra.mxu2 %v3473_v39 }
 0x2d1   :  { %3478 = vst [vmem:[#allocation1] ss:$9 sm:$0xff] %v8539_v4  ;;  %3859 = vmatmul.bf16.gmra.mxu3 %v3474_v56 }
 0x2d8   :  { %v3479_v2 = vld [vmem:[#allocation1] sm:$0xff]  ;;  %v3480_v16 = vld [vmem:[#allocation1 + $0x9] sm:$0xff]  ;;  %v3481_v58 = vld [vmem:[#allocation1 + $0x12] sm:$0xff]  ;;  %v3766_v37 = vpop.f32.mrf.mxu1 }
 0x2d9   :  { %v3483_v54 = vld [vmem:[#allocation1 + $0x24] sm:$0xff] }
 0x2de   :  { %v3808_v49 = vpop.f32.mrf.mxu2 }
 0x2df   :  { %v3809_v29 = vadd.f32 %v3808_v49, %v3766_v37  ;;  %v3850_v13 = vpop.f32.mrf.mxu3 }
 0x2e0   :  { %3780 = vmatmul.bf16.gmra.mxu1 %v3479_v2  ;;  %3822 = vmatmul.bf16.gmra.mxu2 %v3480_v16  ;;  %v12349_v28 = vpop.f32.mrf.mxu1 }
 0x2e1   :  { %3864 = vmatmul.bf16.gmra.mxu3 %v3481_v58  ;;  %v12335_v11 = vadd.f32 %v3850_v13, %v3809_v29  ;;  %v3801_v58 = vadd.f32 %v12200_v14, %v12198_v47 }
 0x2f0   :  { %3876 = vmatmul.bf16.vlgmr.msrb.gmra.mxu1 %v11730_v18  ;;  %8684 = vmatmul.msk.bf16.vlgmr.msrb.gmra.mxu2 %vm1572_vm2, %v11732_v5  ;;  %v12351_v18 = vpop.f32.mrf.mxu2  ;;  %v12353_v5 = vpop.f32.mrf.mxu3 }
 0x300   :  { %3881 = vmatmul.bf16.gmra.mxu1 %v11879_v36  ;;  %8685 = vmatmul.msk.bf16.gmra.mxu2 %vm1572_vm2, %v11881_v55 }
 0x310   :  { %3886 = vmatmul.bf16.gmra.mxu1 %v12107_v15  ;;  %8686 = vmatmul.msk.bf16.gmra.mxu2 %vm1572_vm2, %v12109_v10 }
 0x320   :  { %3891 = vmatmul.bf16.gmra.mxu1 %v12162_v63  ;;  %8687 = vmatmul.msk.bf16.gmra.mxu2 %vm1572_vm2, %v12164_v26 }
 0x32c   :  { %v3771_v36 = vpop.f32.mrf.mxu1 }
 0x330   :  { %3896 = vmatmul.bf16.gmra.mxu1 %v12244_v51  ;;  %8688 = vmatmul.msk.bf16.gmra.mxu2 %vm1572_vm2, %v12246_v31  ;;  %v3482_v51 = vld [vmem:[#allocation1 + $0x1b] sm:$0xff] }
 0x332   :  { %v3813_v55 = vpop.f32.mrf.mxu2 }
 0x333   :  { %v3814_v15 = vadd.f32 %v3813_v55, %v3771_v36  ;;  %v3855_v10 = vpop.f32.mrf.mxu3 }
 0x334   :  { %v12361_v63 = vpop.f32.mrf.mxu1 }
 0x335   :  { %v12358_v45 = vadd.f32 %v3855_v10, %v3814_v15 }
 0x33a   :  { %v12363_v26 = vpop.f32.mrf.mxu2 }
 0x33b   :  { %v12365_v1 = vpop.f32.mrf.mxu3 }
 0x340   :  { %3901 = vmatmul.bf16.gmra.mxu1 %v3475_v21  ;;  %8689 = vmatmul.msk.bf16.gmra.mxu2 %vm1572_vm2, %v3476_v9 }
 0x34d   :  { %v3776_v12 = vpop.f32.mrf.mxu1 }
 0x350   :  { %3906 = vmatmul.bf16.gmra.mxu1 %v3482_v51  ;;  %8690 = vmatmul.msk.bf16.gmra.mxu2 %vm1572_vm2, %v3483_v54  ;;  %vm15445_vm2 = vmmov %vm15439_vm1  ;;  %vm4475_vm1 = vcmask 1044481  }
 0x351   :  { %vm15447_vm10 = vmmov %vm15445_vm2 }
 0x353   :  { %v3818_v31 = vpop.f32.mrf.mxu2 }
 0x354   :  { %v3819_v62 = vadd.f32 %v3818_v31, %v3776_v12  ;;  %v3860_v6 = vpop.f32.mrf.mxu3 }
 0x355   :  { %v12368_v0 = vpop.f32.mrf.mxu1 }
 0x356   :  { %v12370_v40 = vadd.f32 %v3860_v6, %v3819_v62 }
 0x35b   :  { %v12372_v48 = vpop.f32.mrf.mxu2 }
 0x35c   :  { %v12374_v27 = vpop.f32.mrf.mxu3 }
 0x35d   :  { %v3781_v24 = vpop.f32.mrf.mxu1 }
 0x363   :  { %v3823_v34 = vpop.f32.mrf.mxu2 }
 0x364   :  { %v3865_v43 = vpop.f32.mrf.mxu3 }
 0x365   :  { %v3782_v7 = vpop.f32.mrf.mxu1 }
 0x36b   :  { %v3824_v8 = vpop.f32.mrf.mxu2 }
 0x36c   :  { %v3866_v17 = vpop.f32.mrf.mxu3 }
 0x36d   :  { %v3877_v41 = vpop.f32.mrf.mxu1  ;;  %v3843_v17 = vadd.f32 %v12202_v32, %v3801_v58  ;;  %v10442_v32 = vld [vmem:[%s15444_s27 + $0x64] sm:$0xf0] }
 0x36e   :  { %v3878_v25 = vadd.f32 %v3877_v41, %v12112_v44  ;;  %v3838_v44 = vadd.f32 %v12172_v3, %v3796_v52  ;;  %v8762_v3 = vor.u32 %v10444_v57, %v8761_v46 }
 0x370   :  { %5607 = vmatpush.bf16.msrb.mxu3 %v8762_v3 }
 0x373   :  { %v3919_v20 = vpop.f32.mrf.mxu2 }
 0x374   :  { %v3920_v59 = vadd.f32 %v3919_v20, %v3878_v25 }
 0x375   :  { %v3879_v22 = vpop.f32.mrf.mxu1 }
 0x376   :  { %v3956_v42 = vmul.f32 %v12380_v33, %v3920_v59  ;;  %v3880_v30 = vadd.f32 %v3879_v22, %v3838_v44 }
 0x378   :  { %v3972_v60 = vadd.f32 %v12388_v53, %v3956_v42 }
 0x37a   :  { %v3984_v56 = vmax.f32 %v3972_v60, 0.0 }
 0x37b   :  { %v3921_v4 = vpop.f32.mrf.mxu2 }
 0x37c   :  { %v3922_v38 = vadd.f32 %v3921_v4, %v3880_v30  ;;  %v4012_v2 = vrot.slane %v3984_v56, 7  ;;  %v4007_v37 = vrot.slane %v3984_v56, 1  ;;  %v4008_v49 = vrot.slane %v3984_v56, 2 }
 0x37d   :  { %v3882_v39 = vpop.f32.mrf.mxu1  ;;  %v4009_v36 = vrot.slane %v3984_v56, 3  ;;  %v4010_v55 = vrot.slane %v3984_v56, 4  ;;  %v4011_v15 = vrot.slane %v3984_v56, 5 }
 0x37e   :  { %v3957_v21 = vmul.f32 %v12380_v33, %v3922_v38  ;;  %v3883_v16 = vadd.f32 %v3882_v39, %v12175_v23  ;;  %v4129_v6 = vmax.f32 %v3984_v56, %v4012_v2  ;;  %v8753_v38 = vld [vmem:[%s15444_s27 + $0x60] sm:$0xf] }
 0x37f   :  { %v8754_v56 = vor.u32 %v10442_v32, %v8753_v38 }
 0x380   :  { %v3973_v9 = vadd.f32 %v12388_v53, %v3957_v21 }
 0x381   :  { %5608 = vmatpush.bf16.msrb.mxu3 %v8754_v56  ;;  %v10440_v56 = vld [vmem:[%s15444_s27 + $0x54] sm:$0xf0] }
 0x382   :  { %v3985_v29 = vmax.f32 %v3973_v9, 0.0 }
 0x383   :  { %v3924_v13 = vpop.f32.mrf.mxu2 }
 0x384   :  { %v3925_v10 = vadd.f32 %v3924_v13, %v3883_v16  ;;  %v4013_v12 = vrot.slane %v3985_v29, 1  ;;  %v4014_v51 = vrot.slane %v3985_v29, 2  ;;  %v4015_v54 = vrot.slane %v3985_v29, 3 }
 0x385   :  { %v4016_v31 = vrot.slane %v3985_v29, 4  ;;  %v3884_v62 = vpop.f32.mrf.mxu1  ;;  %v4130_v24 = vmax.f32 %v4007_v37, %v3985_v29  ;;  %v4017_v22 = vrot.slane %v3985_v29, 6  ;;  %v4018_v44 = vrot.slane %v3985_v29, 7 }
 0x386   :  { %v3958_v23 = vmul.f32 %v12380_v33, %v3925_v10  ;;  %v4131_v34 = vmax.f32 %v4008_v49, %v4013_v12  ;;  %v4132_v47 = vmax.f32 %v4009_v36, %v4014_v51  ;;  %v4133_v14 = vmax.f32 %v4010_v55, %v4015_v54 }
 0x387   :  { %v4134_v43 = vmax.f32 %v4011_v15, %v4016_v31  ;;  %v4165_v7 = vmax.f32 %v4129_v6, %v4130_v24  ;;  %v3885_v59 = vadd.f32 %v3884_v62, %v3843_v17  ;;  %v3806_v49 = vadd.f32 %v12331_v61, %v12329_v50 }
 0x388   :  { %v3974_v8 = vadd.f32 %v12388_v53, %v3958_v23  ;;  %v4166_v41 = vmax.f32 %v4131_v34, %v4132_v47 }
 0x389   :  { %v4167_v25 = vmax.f32 %v4133_v14, %v4134_v43  ;;  %4211 = vst [vmem:[#allocation1] ss:$9 sm:$0xff] %v4165_v7  ;;  %v3848_v50 = vadd.f32 %v12333_v35, %v3806_v49 }
 0x38a   :  { %v3986_v20 = vmax.f32 %v3974_v8, 0.0  ;;  %4213 = vst [vmem:[#allocation1 + $0x1] ss:$9 sm:$0xff] %v4166_v41 }
 0x38b   :  { %v3926_v52 = vpop.f32.mrf.mxu2  ;;  %4215 = vst [vmem:[#allocation1 + $0x2] ss:$9 sm:$0xff] %v4167_v25 }
 0x38c   :  { %v4022_v42 = vrot.slane %v3986_v20, 5  ;;  %v4023_v60 = vrot.slane %v3986_v20, 6  ;;  %v3927_v30 = vadd.f32 %v3926_v52, %v3885_v59  ;;  %v4024_v3 = vrot.slane %v3986_v20, 7 }
 0x38d   :  { %v3887_v4 = vpop.f32.mrf.mxu1  ;;  %v4019_v29 = vrot.slane %v3986_v20, 1  ;;  %v4020_v36 = vrot.slane %v3986_v20, 2  ;;  %v4021_v55 = vrot.slane %v3986_v20, 3 }
 0x38e   :  { %v4135_v39 = vmax.f32 %v4017_v22, %v4022_v42  ;;  %v4136_v21 = vmax.f32 %v4018_v44, %v4023_v60  ;;  %v3959_v46 = vmul.f32 %v12380_v33, %v3927_v30  ;;  %v3888_v2 = vadd.f32 %v3887_v4, %v12215_v19 }
 0x38f   :  { %v4137_v51 = vmax.f32 %v3986_v20, %v4024_v3 }
 0x390   :  { %v4168_v57 = vmax.f32 %v4135_v39, %v4136_v21  ;;  %v3975_v9 = vadd.f32 %v12388_v53, %v3959_v46  ;;  %v8745_v39 = vld [vmem:[%s15444_s27 + $0x50] sm:$0xf] }
 0x391   :  { %v8746_v21 = vor.u32 %v10440_v56, %v8745_v39 }
 0x392   :  { %v3987_v16 = vmax.f32 %v3975_v9, 0.0  ;;  %v4216_v37 = vld [vmem:[#allocation1] sm:$0xff] }
 0x393   :  { %v3929_v58 = vpop.f32.mrf.mxu2  ;;  %4217 = vst [vmem:[#allocation1] ss:$9 sm:$0xff] %v4168_v57  ;;  %5609 = vmatpush.bf16.msrb.mxu3 %v8746_v21 }
 0x394   :  { %v3930_v13 = vadd.f32 %v3929_v58, %v3888_v2  ;;  %v4025_v15 = vrot.slane %v3987_v16, 1  ;;  %v4026_v10 = vrot.slane %v3987_v16, 2  ;;  %4244 = vst [vmem:[#allocation3 + $0x9] sm:$0x7] %v4216_v37  ;;  %v4138_v54 = vmax.f32 %v4019_v29, %v3987_v16 }
 0x395   :  { %v3889_v12 = vpop.f32.mrf.mxu1  ;;  %v4027_v23 = vrot.slane %v3987_v16, 4  ;;  %v4028_v47 = vrot.slane %v3987_v16, 5  ;;  %v4029_v14 = vrot.slane %v3987_v16, 6  ;;  %v4030_v43 = vrot.slane %v3987_v16, 7 }
 0x396   :  { %v3960_v31 = vmul.f32 %v12380_v33, %v3930_v13  ;;  %v4139_v19 = vmax.f32 %v4020_v36, %v4025_v15  ;;  %v4140_v62 = vmax.f32 %v4021_v55, %v4026_v10  ;;  %v4169_v6 = vmax.f32 %v4137_v51, %v4138_v54  ;;  %v4262_v10 = vld [vmem:[#allocation3 + $0x1] sm:$0x7] }
 0x397   :  { %v3890_v7 = vadd.f32 %v3889_v12, %v3848_v50  ;;  %v3811_v2 = vadd.f32 %v12351_v18, %v12349_v28  ;;  %v4274_v51 = vld [vmem:[#allocation3 + $0x2] sm:$0x7] }
 0x398   :  { %v3976_v24 = vadd.f32 %v12388_v53, %v3960_v31  ;;  %v4170_v61 = vmax.f32 %v4139_v19, %v4140_v62  ;;  %4218 = vst [vmem:[#allocation1 + $0x1] ss:$9 sm:$0xff] %v4169_v6  ;;  %v4250_v18 = vld [vmem:[#allocation3] sm:$0x7]  ;;  %v4268_v62 = vpack.c.bf16 %v4262_v10, %v4262_v10 }
 0x399   :  { %v3853_v36 = vadd.f32 %v12353_v5, %v3811_v2 }
 0x39a   :  { %v3988_v34 = vmax.f32 %v3976_v24, 0.0  ;;  %4219 = vst [vmem:[#allocation1 + $0x2] ss:$9 sm:$0xff] %v4170_v61  ;;  %v4280_v24 = vpack.c.bf16 %v4274_v51, %v4274_v51 }
 0x39b   :  { %v3931_v8 = vpop.f32.mrf.mxu2  ;;  %v4286_v54 = vld [vmem:[#allocation3 + $0x8] sm:$0x7] }
 0x39c   :  { %v4032_v17 = vrot.slane %v3988_v34, 3  ;;  %v4033_v41 = vrot.slane %v3988_v34, 4  ;;  %v4034_v25 = vrot.slane %v3988_v34, 5  ;;  %v4035_v20 = vrot.slane %v3988_v34, 6  ;;  %v4263_v19 = vld [vmem:[#allocation3 + $0x9] sm:$0x7] }
 0x39d   :  { %v3932_v59 = vadd.f32 %v3931_v8, %v3890_v7  ;;  %v3892_v52 = vpop.f32.mrf.mxu1  ;;  %v4036_v32 = vrot.slane %v3988_v34, 7  ;;  %v4031_v9 = vrot.slane %v3988_v34, 1  ;;  %v4275_v6 = vld [vmem:[#allocation3 + $0xa] sm:$0x7] }
 0x39e   :  { %v4141_v22 = vmax.f32 %v4027_v23, %v4032_v17  ;;  %v4142_v42 = vmax.f32 %v4028_v47, %v4033_v41  ;;  %v4143_v44 = vmax.f32 %v4029_v14, %v4034_v25  ;;  %v4144_v35 = vmax.f32 %v4030_v43, %v4035_v20  ;;  %v4298_v50 = vld [vmem:[#allocation3 + $0x9] sm:$0x7]  ;;  %v8737_v23 = vld [vmem:[%s15444_s27 + $0x40] sm:$0xf] }
 0x39f   :  { %v3961_v60 = vmul.f32 %v12380_v33, %v3932_v59  ;;  %v4145_v16 = vmax.f32 %v3988_v34, %v4036_v32  ;;  %v3893_v49 = vadd.f32 %v3892_v52, %v12335_v11  ;;  %v4292_v11 = vpack.c.bf16 %v4286_v54, %v4286_v54  ;;  %v4310_v61 = vld [vmem:[#allocation3 + $0xa] sm:$0x7]  ;;  %v10438_v34 = vld [vmem:[%s15444_s27 + $0x44] sm:$0xf0] }
 0x3a0   :  { %v4171_v30 = vmax.f32 %v4141_v22, %v4142_v42  ;;  %v4172_v4 = vmax.f32 %v4143_v44, %v4144_v35  ;;  %v3816_v14 = vadd.f32 %v12363_v26, %v12361_v63  ;;  %v3821_v43 = vadd.f32 %v12372_v48, %v12368_v0 }
 0x3a1   :  { %v3977_v38 = vadd.f32 %v12388_v53, %v3961_v60  ;;  %v4220_v46 = vld [vmem:[#allocation1] sm:$0xff]  ;;  %v8738_v8 = vor.u32 %v10438_v34, %v8737_v23  ;;  %v4256_v17 = vpack.c.bf16 %v4250_v18, %v4250_v18  ;;  %v4269_v41 = vpack.c.bf16 %v4263_v19, %v4263_v19  ;;  %v9017_v18 = vld [vmem:[%s15444_s27 + $0x270] sm:$0xf]  ;;  %v10508_v19 = vld [vmem:[%s15444_s27 + $0x274] sm:$0xf0] }
 0x3a2   :  { %4221 = vst [vmem:[#allocation1] ss:$9 sm:$0xff] %v4171_v30  ;;  %v4281_v25 = vpack.c.bf16 %v4275_v6, %v4275_v6  ;;  %v4407_v20 = vrot.slane %v4268_v62, 7  ;;  %v4304_v52 = vpack.c.bf16 %v4298_v50, %v4298_v50  ;;  %v4316_v22 = vpack.c.bf16 %v4310_v61, %v4310_v61  ;;  %v9081_v62 = vld [vmem:[%s15444_s27 + $0x2f0] sm:$0xf] }
 0x3a3   :  { %v3989_v57 = vmax.f32 %v3977_v38, 0.0  ;;  %v3934_v3 = vpop.f32.mrf.mxu2  ;;  %4222 = vst [vmem:[#allocation1 + $0x1] ss:$9 sm:$0xff] %v4172_v4  ;;  %5610 = vmatpush.bf16.msrb.mxu3 %v8738_v8  ;;  %v4408_v42 = vrot.slane %v4280_v24, 6  ;;  %v4409_v44 = vrot.slane %v4292_v11, 5  ;;  %v3858_v63 = vadd.f32 %v12365_v1, %v3816_v14 }
 0x3a4   :  { %4245 = vst [vmem:[#allocation3 + $0x11] sm:$0x7] %v4220_v46  ;;  %v3935_v13 = vadd.f32 %v3934_v3, %v3893_v49  ;;  %v12449_v26 = vadd.f32 %v12374_v27, %v3821_v43  ;;  %v4251_v38 = vld [vmem:[#allocation3 + $0x8] sm:$0x7]  ;;  %v12453_v32 = vrot.slane %v4269_v41, 7  ;;  %v12455_v39 = vrot.slane %v4281_v25, 6 }
 0x3a5   :  { %v4146_v58 = vmax.f32 %v4031_v9, %v3989_v57  ;;  %v3894_v37 = vpop.f32.mrf.mxu1  ;;  %v4451_v56 = vsel %vm15445_vm2, %v4256_v17, %v4407_v20  ;;  %v4467_v21 = vsel %vm1806_vm4, %v4256_v17, %v4407_v20  ;;  %v4410_v46 = vrot.slane %v4304_v52, 4  ;;  %v10524_v50 = vld [vmem:[%s15444_s27 + $0x2f4] sm:$0xf0]  ;;  %v8721_v41 = vld [vmem:[%s15444_s27 + $0x20] sm:$0xf] }
 0x3a6   :  { %v3895_v55 = vadd.f32 %v3894_v37, %v3853_v36  ;;  %v3962_v12 = vmul.f32 %v12380_v33, %v3935_v13  ;;  %v4411_v27 = vrot.slane %v4316_v22, 3  ;;  %v4454_v57 = vsel %vm1808_vm5, %v4408_v42, %v4409_v44  ;;  %v10436_v13 = vld [vmem:[%s15444_s27 + $0x34] sm:$0xf0]  ;;  %v10434_v25 = vld [vmem:[%s15444_s27 + $0x24] sm:$0xf0] }
 0x3a7   :  { %v4173_v29 = vmax.f32 %v4145_v16, %v4146_v58  ;;  %v12471_v36 = vpack.c.bf16 %v4251_v38, %v4251_v38  ;;  %v12490_v24 = vsel %vm349_vm0, %v4451_v56, %v4454_v57  ;;  %v9018_v17 = vor.u32 %v10508_v19, %v9017_v18  ;;  %v9009_v52 = vld [vmem:[%s15444_s27 + $0x260] sm:$0xf]  ;;  %v10506_v22 = vld [vmem:[%s15444_s27 + $0x264] sm:$0xf0] }
 0x3a8   :  { %v3978_v5 = vadd.f32 %v12388_v53, %v3962_v12  ;;  %v12493_v11 = vsel %vm1812_vm7, %v4410_v46, %v4411_v27  ;;  %v9082_v20 = vor.u32 %v10524_v50, %v9081_v62 }
 0x3a9   :  { %4223 = vst [vmem:[#allocation1 + $0x2] ss:$9 sm:$0xff] %v4173_v29  ;;  %v8729_v29 = vld [vmem:[%s15444_s27 + $0x30] sm:$0xf]  ;;  %5675 = vmatpush.bf16.msra.mxu1 %v9018_v17 }
 0x3aa   :  { %v12445_v35 = vmax.f32 %v3978_v5, 0.0  ;;  %v8730_v51 = vor.u32 %v10436_v13, %v8729_v29  ;;  %5692 = vmatpush.bf16.msra.mxu2 %v9082_v20  ;;  %v4325_v20 = vld [vmem:[#allocation3 + $0x20] sm:$0x7] }
 0x3ab   :  { %v3936_v15 = vpop.f32.mrf.mxu2  ;;  %v4264_v30 = vld [vmem:[#allocation3 + $0x11] sm:$0x7] }
 0x3ac   :  { %v3937_v31 = vadd.f32 %v3936_v15, %v3895_v55  ;;  %v4323_v4 = vld [vmem:[#allocation3 + $0x10] sm:$0x7]  ;;  %v4037_v9 = vrot.slane %v12445_v35, 1  ;;  %v4270_v3 = vpack.c.bf16 %v4264_v30, %v4264_v30  ;;  %v4039_v37 = vrot.slane %v12445_v35, 3  ;;  %5611 = vmatpush.bf16.msrb.mxu3 %v8730_v51 }
 0x3ad   :  { %v3897_v28 = vpop.f32.mrf.mxu1  ;;  %v4287_v2 = vld [vmem:[#allocation3 + $0x10] sm:$0x7]  ;;  %v4329_v16 = vpack.c.bf16 %v4323_v4, %v4323_v4  ;;  %v4468_v55 = vsel %vm1810_vm6, %v4408_v42, %v4409_v44  ;;  %v4040_v15 = vrot.slane %v12445_v35, 4  ;;  %v4041_v10 = vrot.slane %v12445_v35, 5  ;;  %v9073_v42 = vld [vmem:[%s15444_s27 + $0x2e0] sm:$0xf] }
 0x3ae   :  { %v3963_v7 = vmul.f32 %v12380_v33, %v3937_v31  ;;  %v3898_v48 = vadd.f32 %v3897_v28, %v12358_v45  ;;  %v4038_v45 = vrot.slane %v12445_v35, 2  ;;  %v4335_v58 = vld [vmem:[#allocation3 + $0x11] sm:$0x7]  ;;  %v4042_v12 = vrot.slane %v12445_v35, 6  ;;  %v10522_v4 = vld [vmem:[%s15444_s27 + $0x2e4] sm:$0xf0] }
 0x3af   :  { %v12487_v6 = vld [vmem:[#allocation3 + $0x11] sm:$0x7]  ;;  %v4293_v61 = vpack.c.bf16 %v4287_v2, %v4287_v2  ;;  %v4341_v23 = vpack.c.bf16 %v4335_v58, %v4335_v58  ;;  %v12500_v34 = vrot.slane %v4329_v16, 2  ;;  %v12522_v44 = vsel %vm2751_vm12, %v4467_v21, %v4468_v55  ;;  %v9057_v35 = vld [vmem:[%s15444_s27 + $0x2c0] sm:$0xf] }
 0x3b0   :  { %v4224_v47 = vld [vmem:[#allocation1] sm:$0xff]  ;;  %v3979_v0 = vadd.f32 %v12388_v53, %v3963_v7  ;;  %v12498_v5 = vld [vmem:[#allocation3 + $0x12] sm:$0x7]  ;;  %v9010_v30 = vor.u32 %v10506_v22, %v9009_v52  ;;  %v9074_v21 = vor.u32 %v10522_v4, %v9073_v42  ;;  %v10430_v4 = vld [vmem:[%s15444_s27 + $0x4] sm:$0xf0] }
 0x3b1   :  { %4246 = vst [vmem:[#allocation3 + $0x19] sm:$0x7] %v4224_v47  ;;  %v12502_v47 = vrot.slane %v4270_v3, 7  ;;  %v9065_v3 = vld [vmem:[%s15444_s27 + $0x2d0] sm:$0xf]  ;;  %v4317_v16 = vpack.c.bf16 %v12498_v5, %v12498_v5  ;;  %v12552_v58 = vrot.slane %v4341_v23, 1 }
 0x3b2   :  { %v12463_v49 = vmax.f32 %v3979_v0, 0.0  ;;  %v10520_v2 = vld [vmem:[%s15444_s27 + $0x2d4] sm:$0xf0]  ;;  %v12554_v29 = vrot.slane %v4293_v61, 5  ;;  %5676 = vmatpush.bf16.msra.mxu1 %v9010_v30  ;;  %5693 = vmatpush.bf16.msra.mxu2 %v9074_v21  ;;  %v10502_v5 = vld [vmem:[%s15444_s27 + $0x244] sm:$0xf0] }
 0x3b3   :  { %v3939_v59 = vpop.f32.mrf.mxu2  ;;  %v9066_v61 = vor.u32 %v10520_v2, %v9065_v3  ;;  %v12586_v23 = vld [vmem:[#allocation3 + $0x12] sm:$0x7]  ;;  %v12612_v52 = vrot.slane %v4317_v16, 3  ;;  %v8705_v30 = vld [vmem:[%s15444_s27] sm:$0xf] }
 0x3b4   :  { %v3940_v1 = vadd.f32 %v3939_v59, %v3898_v48  ;;  %v4043_v14 = vrot.slane %v12463_v49, 1  ;;  %v4044_v43 = vrot.slane %v12463_v49, 2  ;;  %v8722_v59 = vor.u32 %v10434_v25, %v8721_v41 }
 0x3b5   :  { %v3899_v60 = vpop.f32.mrf.mxu1  ;;  %v4045_v0 = vrot.slane %v12463_v49, 3  ;;  %v4046_v38 = vrot.slane %v12463_v49, 4  ;;  %v4047_v56 = vrot.slane %v12463_v49, 5  ;;  %v4147_v13 = vmax.f32 %v4037_v9, %v12463_v49 }
 0x3b6   :  { %v3964_v54 = vmul.f32 %v12380_v33, %v3940_v1  ;;  %v3900_v31 = vadd.f32 %v3899_v60, %v3858_v63  ;;  %v12525_v63 = vsel %vm1814_vm8, %v4410_v46, %v4411_v27  ;;  %5612 = vmatpush.bf16.msrb.mxu3 %v8722_v59  ;;  %v9001_v1 = vld [vmem:[%s15444_s27 + $0x250] sm:$0xf]  ;;  %v10504_v46 = vld [vmem:[%s15444_s27 + $0x254] sm:$0xf0]  ;;  %v4305_v27 = vpack.c.bf16 %v12487_v6, %v12487_v6  ;;  %v12610_v59 = vld [vmem:[#allocation3 + $0x21] sm:$0x7] }
 0x3b7   :  { %v4148_v55 = vmax.f32 %v4038_v45, %v4043_v14  ;;  %v12561_v51 = vmax.f32 %v4039_v37, %v4044_v43  ;;  %v4150_v18 = vmax.f32 %v4040_v15, %v4045_v0  ;;  %v9002_v9 = vor.u32 %v10504_v46, %v9001_v1  ;;  %v4252_v45 = vld [vmem:[#allocation3 + $0x10] sm:$0x7]  ;;  %v8993_v15 = vld [vmem:[%s15444_s27 + $0x240] sm:$0xf]  ;;  %5694 = vmatpush.bf16.msra.mxu2 %v9066_v61  ;;  %v9049_v46 = vld [vmem:[%s15444_s27 + $0x2b0] sm:$0xf] }
 0x3b8   :  { %v3980_v48 = vadd.f32 %v12388_v53, %v3964_v54  ;;  %v12574_v37 = vmax.f32 %v4041_v10, %v4046_v38  ;;  %v12596_v43 = vrot.slane %v4305_v27, 4  ;;  %v4048_v17 = vrot.slane %v12463_v49, 7  ;;  %v8985_v49 = vld [vmem:[%s15444_s27 + $0x230] sm:$0xf]  ;;  %v10516_v27 = vld [vmem:[%s15444_s27 + $0x2b4] sm:$0xf0] }
 0x3b9   :  { %v4174_v41 = vmax.f32 %v4147_v13, %v4148_v55  ;;  %v4175_v22 = vmax.f32 %v12561_v51, %v4150_v18  ;;  %5677 = vmatpush.bf16.msra.mxu1 %v9002_v9  ;;  %v12631_v38 = vpack.c.bf16 %v4252_v45, %v4252_v45  ;;  %v4343_v3 = vpack.c.bf16 %v12610_v59, %v12610_v59  ;;  %v12653_v9 = vld [vmem:[#allocation3 + $0x19] sm:$0x7] }
 0x3ba   :  { %v12570_v19 = vmax.f32 %v3980_v48, 0.0  ;;  %v8706_v55 = vor.u32 %v10430_v4, %v8705_v30  ;;  %v4342_v30 = vpack.c.bf16 %v12653_v9, %v12653_v9  ;;  %v9025_v9 = vld [vmem:[%s15444_s27 + $0x280] sm:$0xf] }
 0x3bb   :  { %v3941_v28 = vpop.f32.mrf.mxu2  ;;  %4225 = vst [vmem:[#allocation1] ss:$9 sm:$0xff] %v4174_v41 }
 0x3bc   :  { %v3942_v7 = vadd.f32 %v3941_v28, %v3900_v31  ;;  %v8713_v31 = vld [vmem:[%s15444_s27 + $0x10] sm:$0xf]  ;;  %v10432_v28 = vld [vmem:[%s15444_s27 + $0x14] sm:$0xf0]  ;;  %v4053_v42 = vrot.slane %v12570_v19, 6  ;;  %v4054_v0 = vrot.slane %v12570_v19, 7 }
 0x3bd   :  { %v3902_v8 = vpop.f32.mrf.mxu1  ;;  %v8714_v6 = vor.u32 %v10432_v28, %v8713_v31  ;;  %v4050_v21 = vrot.slane %v12570_v19, 2  ;;  %v4051_v51 = vrot.slane %v12570_v19, 3  ;;  %4226 = vst [vmem:[#allocation1 + $0x1] ss:$9 sm:$0xff] %v4175_v22 }
 0x3be   :  { %v3965_v60 = vmul.f32 %v12380_v33, %v3942_v7  ;;  %v3903_v54 = vadd.f32 %v3902_v8, %v12370_v40  ;;  %v12578_v40 = vmax.f32 %v4042_v12, %v4047_v56  ;;  %v10518_v12 = vld [vmem:[%s15444_s27 + $0x2c4] sm:$0xf0]  ;;  %v12601_v7 = vsel %vm15446_vm14, %v12471_v36, %v12453_v32  ;;  %vm15448_vm14 = vmmov %vm15445_vm2 }
 0x3bf   :  { %5613 = vmatpush.bf16.msrb.mxu3 %v8714_v6  ;;  %v12606_v8 = vsel %vm1806_vm4, %v12471_v36, %v12453_v32  ;;  %v8994_v32 = vor.u32 %v10502_v5, %v8993_v15  ;;  %v9058_v48 = vor.u32 %v10518_v12, %v9057_v35  ;;  %v4282_v56 = vpack.c.bf16 %v12586_v23, %v12586_v23  ;;  %v9041_v23 = vld [vmem:[%s15444_s27 + $0x2a0] sm:$0xf] }
 0x3c0   :  { %v3981_v57 = vadd.f32 %v12388_v53, %v3965_v60  ;;  %v4176_v36 = vmax.f32 %v12574_v37, %v12578_v40  ;;  %v10500_v60 = vld [vmem:[%s15444_s27 + $0x234] sm:$0xf0]  ;;  %v4153_v6 = vmax.f32 %v4048_v17, %v4053_v42  ;;  %v4154_v45 = vmax.f32 %v12570_v19, %v4054_v0  ;;  %v8977_v40 = vld [vmem:[%s15444_s27 + $0x220] sm:$0xf] }
 0x3c1   :  { %5678 = vmatpush.bf16.msra.mxu1 %v8994_v32  ;;  %v8986_v18 = vor.u32 %v10500_v60, %v8985_v49  ;;  %5695 = vmatpush.bf16.msra.mxu2 %v9058_v48  ;;  %v9050_v37 = vor.u32 %v10516_v27, %v9049_v46  ;;  %v12669_v35 = vrot.slane %v4282_v56, 6  ;;  %v4288_v42 = vld [vmem:[#allocation3 + $0x18] sm:$0x7]  ;;  %v12680_v0 = vsel %vm1816_vm9, %v12500_v34, %v12552_v58  ;;  %v10512_v46 = vld [vmem:[%s15444_s27 + $0x294] sm:$0xf0] }
 0x3c2   :  { %v12588_v14 = vmax.f32 %v3981_v57, 0.0  ;;  %v4331_v57 = vpack.c.bf16 %v4325_v20, %v4325_v20  ;;  %4227 = vst [vmem:[#allocation1 + $0x2] ss:$9 sm:$0xff] %v4176_v36  ;;  %v4177_v32 = vmax.f32 %v4153_v6, %v4154_v45  ;;  %v8969_v36 = vld [vmem:[%s15444_s27 + $0x210] sm:$0xf]  ;;  %v4472_v27 = vsel %vm4471_vm15, %v12552_v58, %v12500_v34 }
 0x3c3   :  { %v3944_v62 = vpop.f32.mrf.mxu2  ;;  %5614 = vmatpush.bf16.msrb.mxu3 %v8706_v55  ;;  %v4300_v48 = vld [vmem:[#allocation3 + $0x19] sm:$0x7]  ;;  %v4294_v6 = vpack.c.bf16 %v4288_v42, %v4288_v42 }
 0x3c4   :  { %v3945_v50 = vadd.f32 %v3944_v62, %v3903_v54  ;;  %v4055_v1 = vrot.slane %v12588_v14, 1  ;;  %v4056_v2 = vrot.slane %v12588_v14, 2  ;;  %v4057_v16 = vrot.slane %v12588_v14, 3  ;;  %v12651_v62 = vld [vmem:[#allocation3 + $0x18] sm:$0x7] }
 0x3c5   :  { %v3904_v10 = vpop.f32.mrf.mxu1  ;;  %v4052_v54 = vrot.slane %v12570_v19, 4  ;;  %5679 = vmatpush.bf16.msra.mxu1 %v8986_v18  ;;  %5696 = vmatpush.bf16.msra.mxu2 %v9050_v37  ;;  %v4330_v60 = vpack.c.bf16 %v12651_v62, %v12651_v62  ;;  %v4058_v4 = vrot.slane %v12588_v14, 5  ;;  %v8961_v34 = vld [vmem:[%s15444_s27 + $0x200] sm:$0xf]  ;;  %v10494_v62 = vld [vmem:[%s15444_s27 + $0x204] sm:$0xf0]  ;;  %v4306_v45 = vpack.c.bf16 %v4300_v48, %v4300_v48 }
 0x3c6   :  { %v3966_v25 = vmul.f32 %v12380_v33, %v3945_v50  ;;  %v3905_v31 = vadd.f32 %v3904_v10, %v12449_v26  ;;  %v10498_v26 = vld [vmem:[%s15444_s27 + $0x224] sm:$0xf0]  ;;  %v4049_v50 = vrot.slane %v12570_v19, 1  ;;  %v4156_v61 = vmax.f32 %v4050_v21, %v4055_v1  ;;  %v9033_v1 = vld [vmem:[%s15444_s27 + $0x290] sm:$0xf] }
 0x3c7   :  { %v10514_v10 = vld [vmem:[%s15444_s27 + $0x2a4] sm:$0xf0]  ;;  %v4157_v12 = vmax.f32 %v4051_v51, %v4056_v2  ;;  %v4158_v17 = vmax.f32 %v4052_v54, %v4057_v16  ;;  %v8978_v22 = vor.u32 %v10498_v26, %v8977_v40  ;;  %v9034_v18 = vor.u32 %v10512_v46, %v9033_v1  ;;  %v4265_v46 = vld [vmem:[#allocation3 + $0x29] sm:$0x7] }
 0x3c8   :  { %v3982_v13 = vadd.f32 %v12388_v53, %v3966_v25  ;;  %v12673_v25 = vrot.slane %v4331_v57, 2  ;;  %v4155_v19 = vmax.f32 %v4049_v50, %v12588_v14  ;;  %v9042_v49 = vor.u32 %v10514_v10, %v9041_v23  ;;  %v10510_v50 = vld [vmem:[%s15444_s27 + $0x284] sm:$0xf0] }
 0x3c9   :  { %v4059_v57 = vrot.slane %v12588_v14, 6  ;;  %v4179_v2 = vmax.f32 %v4157_v12, %v4158_v17  ;;  %5680 = vmatpush.bf16.msra.mxu1 %v8978_v22  ;;  %v4228_v58 = vld [vmem:[#allocation1] sm:$0xff]  ;;  %v4060_v37 = vrot.slane %v12588_v14, 7  ;;  %v4419_v12 = vrot.slane %v4330_v60, 2 }
 0x3ca   :  { %v12671_v41 = vmax.f32 %v3982_v13, 0.0  ;;  %v4178_v56 = vmax.f32 %v4155_v19, %v4156_v61  ;;  %5697 = vmatpush.bf16.msra.mxu2 %v9042_v49  ;;  %4229 = vst [vmem:[#allocation1] ss:$9 sm:$0xff] %v4177_v32  ;;  %v8962_v19 = vor.u32 %v10494_v62, %v8961_v34  ;;  %v9026_v32 = vor.u32 %v10510_v50, %v9025_v9  ;;  %v4253_v49 = vld [vmem:[#allocation3 + $0x28] sm:$0x7] }
 0x3cb   :  { %v3946_v28 = vpop.f32.mrf.mxu2  ;;  %4231 = vst [vmem:[#allocation1 + $0x2] ss:$9 sm:$0xff] %v4179_v2  ;;  %v4427_v60 = vrot.slane %v4343_v3, 1  ;;  %v4522_v9 = vsel %vm1806_vm4, %v12631_v38, %v12502_v47 }
 0x3cc   :  { %v3947_v15 = vadd.f32 %v3946_v28, %v3905_v31  ;;  %v4063_v16 = vrot.slane %v12671_v41, 4  ;;  %v4064_v13 = vrot.slane %v12671_v41, 5  ;;  %v4065_v55 = vrot.slane %v12671_v41, 6  ;;  %4230 = vst [vmem:[#allocation1 + $0x1] ss:$9 sm:$0xff] %v4178_v56 }
 0x3cd   :  { %v3907_v5 = vpop.f32.mrf.mxu1  ;;  %v4066_v51 = vrot.slane %v12671_v41, 7  ;;  %v4062_v10 = vrot.slane %v12671_v41, 2  ;;  %4247 = vst [vmem:[#allocation3 + $0x31] sm:$0x7] %v4228_v58  ;;  %v4061_v22 = vrot.slane %v12671_v41, 1  ;;  %v4518_v62 = vsel %vm1816_vm9, %v12673_v25, %v4427_v60 }
 0x3ce   :  { %v3967_v20 = vmul.f32 %v12380_v33, %v3947_v15  ;;  %v10496_v33 = vld [vmem:[%s15444_s27 + $0x214] sm:$0xf0]  ;;  %v4474_v15 = vsel %vm4473_vm3, %v12525_v63, %v4472_v27  ;;  %v4159_v5 = vmax.f32 %v4058_v4, %v4063_v16  ;;  %v4160_v23 = vmax.f32 %v4059_v57, %v4064_v13  ;;  %5698 = vmatpush.bf16.msra.mxu2 %v9034_v18  ;;  %v4277_v27 = vld [vmem:[#allocation3 + $0x2a] sm:$0x7] }
 0x3cf   :  { %v8970_v28 = vor.u32 %v10496_v33, %v8969_v36  ;;  %v4161_v17 = vmax.f32 %v4060_v37, %v4065_v55  ;;  %v4162_v14 = vmax.f32 %v12671_v41, %v4066_v51  ;;  %v4485_v63 = vsel %vm1808_vm5, %v12455_v39, %v12554_v29  ;;  %v4328_v13 = vld [vmem:[#allocation3 + $0x48] sm:$0x7] }
 0x3d0   :  { %v3983_v21 = vadd.f32 %v12388_v53, %v3967_v20  ;;  %v4312_v53 = vld [vmem:[#allocation3 + $0x1a] sm:$0x7]  ;;  %v4420_v20 = vrot.slane %v4342_v30, 1  ;;  %v4423_v36 = vrot.slane %v4294_v6, 5  ;;  %v4424_v33 = vrot.slane %v4306_v45, 4 }
 0x3d1   :  { %v4318_v61 = vpack.c.bf16 %v4312_v53, %v4312_v53  ;;  %5681 = vmatpush.bf16.msra.mxu1 %v8970_v28  ;;  %v4180_v4 = vmax.f32 %v4159_v5, %v4160_v23  ;;  %v12735_v41 = vsel %vm4462_vm11, %v12493_v11, %v12680_v0  ;;  %v12739_v56 = vsel %vm4475_vm1, %v12522_v44, %v4474_v15  ;;  %v4340_v53 = vld [vmem:[#allocation3 + $0x49] sm:$0x7] }
 0x3d2   :  { %v3995_v54 = vmax.f32 %v3983_v21, 0.0  ;;  %v4181_v21 = vmax.f32 %v4161_v17, %v4162_v14  ;;  %v4486_v59 = vsel %vm349_vm0, %v12601_v7, %v4485_v63  ;;  %v4492_v3 = vsel %vm1816_vm9, %v4419_v12, %v4420_v20  ;;  %5699 = vmatpush.bf16.msra.mxu2 %v9026_v32 }
 0x3d3   :  { %v3949_v31 = vpop.f32.mrf.mxu2  ;;  %v4425_v48 = vrot.slane %v4318_v61, 3  ;;  %v4500_v57 = vsel %vm4471_vm15, %v4420_v20, %v4419_v12  ;;  %v12745_v11 = vpack.c.bf16 %v4253_v49, %v4253_v49  ;;  %v4489_v44 = vsel %vm1812_vm7, %v12596_v43, %v12612_v52  ;;  %v4232_v16 = vld [vmem:[#allocation1] sm:$0xff] }
 0x3d4   :  { %v4067_v40 = vrot.slane %v3995_v54, 1  ;;  %v4163_v30 = vmax.f32 %v4061_v22, %v3995_v54  ;;  %v4497_v0 = vsel %vm1810_vm6, %v12455_v39, %v12554_v29  ;;  %v4499_v7 = vsel %vm1814_vm8, %v12596_v43, %v12612_v52  ;;  %4233 = vst [vmem:[#allocation1] ss:$9 sm:$0xff] %v4180_v4  ;;  %v4266_v31 = vld [vmem:[#allocation3 + $0x31] sm:$0x7] }
 0x3d5   :  { %v3908_v26 = vpop.f32.mrf.mxu1  ;;  %5682 = vmatpush.bf16.msra.mxu1 %v8962_v19  ;;  %v4523_v55 = vsel %vm1810_vm6, %v12669_v35, %v4423_v36  ;;  %v4525_v51 = vsel %vm1814_vm8, %v4424_v33, %v4425_v48  ;;  %v4526_v54 = vsel %vm4471_vm15, %v4427_v60, %v12673_v25  ;;  %v4271_v28 = vpack.c.bf16 %v4265_v46, %v4265_v46  ;;  %v4278_v58 = vld [vmem:[#allocation3 + $0x32] sm:$0x7] }
 0x3d6   :  { %v4164_v42 = vmax.f32 %v4062_v10, %v4067_v40  ;;  %v4283_v34 = vpack.c.bf16 %v4277_v27, %v4277_v27  ;;  %v4493_v39 = vsel %vm4462_vm11, %v4489_v44, %v4492_v3  ;;  %v4501_v29 = vsel %vm4473_vm3, %v4499_v7, %v4500_v57  ;;  %4234 = vst [vmem:[#allocation1 + $0x1] ss:$9 sm:$0xff] %v4181_v21  ;;  %v4289_v18 = vld [vmem:[#allocation3 + $0x30] sm:$0x7] }
 0x3d7   :  { %v4511_v43 = vsel %vm1808_vm5, %v12669_v35, %v4423_v36  ;;  %v4515_v52 = vsel %vm1812_vm7, %v4424_v33, %v4425_v48  ;;  %v4301_v6 = vld [vmem:[#allocation3 + $0x31] sm:$0x7]  ;;  %v4334_v37 = vpack.c.bf16 %v4328_v13, %v4328_v13  ;;  %v4346_v40 = vpack.c.bf16 %v4340_v53, %v4340_v53  ;;  %4248 = vst [vmem:[#allocation3 + $0x39] sm:$0x7] %v4232_v16 }
 0x3d8   :  { %v4182_v2 = vmax.f32 %v4163_v30, %v4164_v42  ;;  %v4313_v45 = vld [vmem:[#allocation3 + $0x32] sm:$0x7]  ;;  %v4524_v26 = vsel %vm2751_vm12, %v4522_v9, %v4523_v55  ;;  %v4527_v50 = vsel %vm4473_vm3, %v4525_v51, %v4526_v54  ;;  %v4272_v35 = vpack.c.bf16 %v4266_v31, %v4266_v31 }
 0x3d9   :  { %v4295_v61 = vpack.c.bf16 %v4289_v18, %v4289_v18  ;;  %v4498_v15 = vsel %vm2751_vm12, %v12606_v8, %v4497_v0  ;;  %v4508_v25 = vsel %vm15447_vm10, %v12631_v38, %v12502_v47  ;;  %v4494_v5 = vsel %vm4464_vm13, %v4486_v59, %v4493_v39  ;;  %v4254_v22 = vld [vmem:[#allocation3 + $0x30] sm:$0x7]  ;;  %vm15449_vm10 = vmmov %vm15445_vm2 }
 0x3da   :  { %4235 = vst [vmem:[#allocation1 + $0x2] ss:$9 sm:$0xff] %v4182_v2  ;;  %v4502_v23 = vsel %vm4475_vm1, %v4498_v15, %v4501_v29  ;;  %v4512_v10 = vsel %vm349_vm0, %v4508_v25, %v4511_v43  ;;  %v4519_v12 = vsel %vm4462_vm11, %v4515_v52, %v4518_v62  ;;  %v4284_v17 = vpack.c.bf16 %v4278_v58, %v4278_v58 }
 0x3db   :  { %v3950_v1 = vpop.f32.mrf.mxu2  ;;  %v4307_v14 = vpack.c.bf16 %v4301_v6, %v4301_v6  ;;  %v4319_v19 = vpack.c.bf16 %v4313_v45, %v4313_v45  ;;  %v12783_v20 = vsel %vm4475_vm1, %v4524_v26, %v4527_v50  ;;  %v4428_v8 = vrot.slane %v4271_v28, 7 }
 0x3dc   :  { %v4429_v42 = vrot.slane %v4283_v34, 6  ;;  %v12785_v32 = vrot.slane %v4334_v37, 2  ;;  %v12787_v47 = vrot.slane %v4346_v40, 1  ;;  %v4430_v38 = vrot.slane %v4295_v61, 5 }
 0x3dd   :  { %v4435_v63 = vrot.slane %v4272_v35, 7  ;;  %v4504_v49 = vrot.slane %v4502_v23, 1  ;;  %v4618_v36 = vunpack.i.h.s16 %v4494_v5  ;;  %v4465_v33 = vsel %vm4464_vm13, %v12490_v24, %v12735_v41 }
 0x3de   :  { %v4478_v48 = vrot.slane %v12739_v56, 1  ;;  %v4520_v60 = vsel %vm4464_vm13, %v4512_v10, %v4519_v12  ;;  %v4530_v4 = vrot.slane %v12783_v20, 1  ;;  %v4260_v21 = vpack.c.bf16 %v4254_v22, %v4254_v22  ;;  %v4255_v59 = vld [vmem:[#allocation3 + $0x38] sm:$0x7]  ;;  %v10458_v20 = vld [vmem:[%s15444_s27 + $0xe4] sm:$0xf0] }
 0x3df   :  { %v4431_v1 = vrot.slane %v4307_v14, 4  ;;  %v4432_v46 = vrot.slane %v4319_v19, 3  ;;  %v4436_v27 = vrot.slane %v4284_v17, 6  ;;  %v4267_v3 = vld [vmem:[#allocation3 + $0x39] sm:$0x7]  ;;  %v4534_v57 = vsel %vm15445_vm2, %v12745_v11, %v4428_v8 }
 0x3e0   :  { %v4548_v24 = vsel %vm1806_vm4, %v12745_v11, %v4428_v8  ;;  %v12802_v41 = vsel %vm1816_vm9, %v12785_v32, %v12787_v47  ;;  %v8691_v56 = vpack.i.b16 %v4494_v5, %v4478_v48  ;;  %v4273_v2 = vpack.c.bf16 %v4267_v3, %v4267_v3  ;;  %v4279_v44 = vld [vmem:[#allocation3 + $0x3a] sm:$0x7] }
 0x3e1   :  { %v4236_v30 = vld [vmem:[#allocation1] sm:$0xff]  ;;  %v4537_v13 = vsel %vm1808_vm5, %v4429_v42, %v4430_v38  ;;  %v4560_v53 = vsel %vm15448_vm14, %v4260_v21, %v4435_v63  ;;  %v8693_v7 = vpack.i.b16 %v4504_v49, %v4618_v36  ;;  %v4285_v55 = vpack.c.bf16 %v4279_v44, %v4279_v44 }
 0x3e2   :  { %4249 = vst [vmem:[#allocation3 + $0x41] sm:$0x7] %v4236_v30  ;;  %v4290_v0 = vld [vmem:[#allocation3 + $0x38] sm:$0x7]  ;;  %v4549_v34 = vsel %vm1810_vm6, %v4429_v42, %v4430_v38  ;;  %v12807_v18 = vrot.slane %v4273_v2, 7  ;;  %v4538_v52 = vsel %vm349_vm0, %v4534_v57, %v4537_v13  ;;  %v4541_v62 = vsel %vm1812_vm7, %v4431_v1, %v4432_v46 }
 0x3e3   :  { %v4302_v16 = vld [vmem:[#allocation3 + $0x39] sm:$0x7]  ;;  %v4296_v51 = vpack.c.bf16 %v4290_v0, %v4290_v0  ;;  %4809 = vst [vmem:[#allocation1] ss:$9 sm:$0xff] %v4465_v33  ;;  %v4574_v9 = vsel %vm1806_vm4, %v4260_v21, %v4435_v63  ;;  %v12812_v6 = vpack.c.bf16 %v4255_v59, %v4255_v59  ;;  %v4550_v40 = vsel %vm2751_vm12, %v4548_v24, %v4549_v34  ;;  %v10460_v34 = vld [vmem:[%s15444_s27 + $0xf4] sm:$0xf0] }
 0x3e4   :  { %v4308_v54 = vpack.c.bf16 %v4302_v16, %v4302_v16  ;;  %v4314_v31 = vld [vmem:[#allocation3 + $0x3a] sm:$0x7]  ;;  %4812 = vst [vmem:[#allocation1 + $0x1] ss:$9 sm:$0xff] %v8691_v56  ;;  %v12815_v35 = vrot.slane %v4285_v55, 6  ;;  %v4551_v10 = vsel %vm1814_vm8, %v4431_v1, %v4432_v46 }
 0x3e5   :  { %v4326_v11 = vld [vmem:[#allocation3 + $0x38] sm:$0x7]  ;;  %v4320_v39 = vpack.c.bf16 %v4314_v31, %v4314_v31  ;;  %v4437_v43 = vrot.slane %v4296_v51, 5  ;;  %4815 = vst [vmem:[#allocation1 + $0x2] ss:$9 sm:$0xff] %v8693_v7  ;;  %v4586_v17 = vsel %vm15449_vm10, %v12812_v6, %v12807_v18 }
 0x3e6   :  { %v4338_v28 = vld [vmem:[#allocation3 + $0x39] sm:$0x7]  ;;  %v4332_v29 = vpack.c.bf16 %v4326_v11, %v4326_v11  ;;  %v4438_v26 = vrot.slane %v4308_v54, 4  ;;  %4818 = vst [vmem:[#allocation1 + $0x3] ss:$9 sm:$0xff] %v4520_v60 }
 0x3e7   :  { %v4344_v58 = vpack.c.bf16 %v4338_v28, %v4338_v28  ;;  %v4439_v50 = vrot.slane %v4320_v39, 3  ;;  %v4563_v61 = vsel %vm1808_vm5, %v4436_v27, %v4437_v43  ;;  %v4575_v38 = vsel %vm1810_vm6, %v4436_v27, %v4437_v43  ;;  %v4347_v51 = vld [vmem:[#allocation3 + $0x12] sm:$0x7]  ;;  %v4348_v54 = vld [vmem:[#allocation3 + $0x1a] sm:$0x7] }
 0x3e8   :  { %v4433_v45 = vrot.slane %v4332_v29, 2  ;;  %v4564_v33 = vsel %vm349_vm0, %v4560_v53, %v4563_v61  ;;  %v4576_v24 = vsel %vm2751_vm12, %v4574_v9, %v4575_v38  ;;  %v8825_v28 = vld [vmem:[%s15444_s27 + $0xf0] sm:$0xf]  ;;  %v10572_v9 = vld [vmem:[%s15444_s27 + $0x474] sm:$0xf0] }
 0x3e9   :  { %v4434_v37 = vrot.slane %v4344_v58, 1  ;;  %v4291_v15 = vld [vmem:[#allocation3 + $0x40] sm:$0x7]  ;;  %v4567_v27 = vsel %vm1812_vm7, %v4438_v26, %v4439_v50  ;;  %v4577_v44 = vsel %vm1814_vm8, %v4438_v26, %v4439_v50  ;;  %v9209_v39 = vld [vmem:[%s15444_s27 + $0x3f0] sm:$0xf]  ;;  %v8826_v50 = vor.u32 %v10460_v34, %v8825_v28 }
 0x3ea   :  { %v4303_v25 = vld [vmem:[#allocation3 + $0x41] sm:$0x7]  ;;  %v4297_v14 = vpack.c.bf16 %v4291_v15, %v4291_v15  ;;  %v10556_v58 = vld [vmem:[%s15444_s27 + $0x3f4] sm:$0xf0]  ;;  %v9265_v15 = vld [vmem:[%s15444_s27 + $0x460] sm:$0xf] }
 0x3eb   :  { %v4315_v5 = vld [vmem:[#allocation3 + $0x42] sm:$0x7]  ;;  %v4544_v23 = vsel %vm1816_vm9, %v4433_v45, %v4434_v37  ;;  %v4552_v12 = vsel %vm4471_vm15, %v4434_v37, %v4433_v45  ;;  %v4309_v19 = vpack.c.bf16 %v4303_v25, %v4303_v25  ;;  %v8817_v45 = vld [vmem:[%s15444_s27 + $0xe0] sm:$0xf]  ;;  %v9210_v61 = vor.u32 %v10556_v58, %v9209_v39  ;;  %5624 = vmatpush.bf16.msra.mxu3 %v8826_v50  ;;  %v10552_v38 = vld [vmem:[%s15444_s27 + $0x3d4] sm:$0xf0] }
 0x3ec   :  { %v4321_v22 = vpack.c.bf16 %v4315_v5, %v4315_v5  ;;  %v4327_v8 = vld [vmem:[#allocation3 + $0x40] sm:$0x7]  ;;  %v4545_v36 = vsel %vm4462_vm11, %v4541_v62, %v4544_v23  ;;  %v12827_v48 = vrot.slane %v4297_v14, 5  ;;  %v4553_v21 = vsel %vm4473_vm3, %v4551_v10, %v4552_v12  ;;  %v9273_v62 = vld [vmem:[%s15444_s27 + $0x470] sm:$0xf] }
 0x3ed   :  { %v4339_v42 = vld [vmem:[#allocation3 + $0x41] sm:$0x7]  ;;  %v4333_v63 = vpack.c.bf16 %v4327_v8, %v4327_v8  ;;  %v12829_v60 = vrot.slane %v4309_v19, 4  ;;  %v4554_v59 = vsel %vm4475_vm1, %v4550_v40, %v4553_v21  ;;  %v4546_v3 = vsel %vm4464_vm13, %v4538_v52, %v4545_v36  ;;  %5726 = vmatpush.bf16.msrb.mxu1 %v9210_v61  ;;  %v8809_v8 = vld [vmem:[%s15444_s27 + $0xd0] sm:$0xf] }
 0x3ee   :  { %v4345_v49 = vpack.c.bf16 %v4339_v42, %v4339_v42  ;;  %v12831_v30 = vrot.slane %v4321_v22, 3  ;;  %v4556_v57 = vrot.slane %v4554_v59, 1  ;;  %v4589_v56 = vsel %vm1808_vm5, %v12815_v35, %v12827_v48  ;;  %v10554_v26 = vld [vmem:[%s15444_s27 + $0x3e4] sm:$0xf0]  ;;  %v9193_v42 = vld [vmem:[%s15444_s27 + $0x3d0] sm:$0xf] }
 0x3ef   :  { %v4440_v1 = vrot.slane %v4333_v63, 2  ;;  %v4590_v7 = vsel %vm349_vm0, %v4586_v17, %v4589_v56  ;;  %v8695_v52 = vpack.i.b16 %v4546_v3, %v4530_v4  ;;  %v9201_v4 = vld [vmem:[%s15444_s27 + $0x3e0] sm:$0xf]  ;;  %v10570_v25 = vld [vmem:[%s15444_s27 + $0x464] sm:$0xf0]  ;;  %v12896_v5 = vpack.c.bf16 %v4347_v51, %v4347_v51  ;;  %vm15452_vm0 = vmmov %vm15445_vm2 }
 0x3f0   :  { %v4441_v46 = vrot.slane %v4345_v49, 1  ;;  %v4593_v16 = vsel %vm1812_vm7, %v12829_v60, %v12831_v30  ;;  %v12898_v23 = vpack.c.bf16 %v4348_v54, %v4348_v54  ;;  %v9274_v10 = vor.u32 %v10572_v9, %v9273_v62  ;;  %v4349_v12 = vld [vmem:[#allocation3 + $0x22] sm:$0x7]  ;;  %v4350_v17 = vld [vmem:[#allocation3 + $0x3a] sm:$0x7] }
 0x3f1   :  { %v4597_v55 = vsel %vm4462_vm11, %v4593_v16, %v12802_v41  ;;  %v4630_v41 = vunpack.i.h.s16 %v4546_v3  ;;  %4821 = vst [vmem:[#allocation1 + $0x4] ss:$9 sm:$0xff] %v8695_v52  ;;  %v8818_v14 = vor.u32 %v10458_v20, %v8817_v45  ;;  %v9202_v19 = vor.u32 %v10554_v26, %v9201_v4  ;;  %v10456_v63 = vld [vmem:[%s15444_s27 + $0xd4] sm:$0xf0]  ;;  %v9257_v49 = vld [vmem:[%s15444_s27 + $0x450] sm:$0xf] }
 0x3f2   :  { %v4570_v2 = vsel %vm1816_vm9, %v4440_v1, %v4441_v46  ;;  %v4578_v0 = vsel %vm4471_vm15, %v4441_v46, %v4440_v1  ;;  %v12867_v43 = vsel %vm4464_vm13, %v4590_v7, %v4597_v55  ;;  %5743 = vmatpush.bf16.msrb.mxu2 %v9274_v10  ;;  %v9266_v22 = vor.u32 %v10570_v25, %v9265_v15  ;;  %v10568_v36 = vld [vmem:[%s15444_s27 + $0x454] sm:$0xf0]  ;;  %v4351_v46 = vld [vmem:[#allocation3 + $0x42] sm:$0x7]  ;;  %v9401_v3 = vld [vmem:[%s15450_s6 + $0xf0] sm:$0xf] }
 0x3f3   :  { %v4571_v13 = vsel %vm4462_vm11, %v4567_v27, %v4570_v2  ;;  %v4579_v53 = vsel %vm4473_vm3, %v4577_v44, %v4578_v0  ;;  %v8697_v37 = vpack.i.b16 %v4556_v57, %v4630_v41  ;;  %v4479_v21 = vrot.slane %v12896_v5, 1  ;;  %5625 = vmatpush.bf16.msra.mxu3 %v8818_v14  ;;  %5727 = vmatpush.bf16.msrb.mxu1 %v9202_v19  ;;  %v10604_v57 = vld [vmem:[%s15450_s6 + $0xf4] sm:$0xf0]  ;;  %v8801_v2 = vld [vmem:[%s15444_s27 + $0xc0] sm:$0xf] }
 0x3f4   :  { %v4572_v31 = vsel %vm4464_vm13, %v4564_v33, %v4571_v13  ;;  %v4580_v11 = vsel %vm4475_vm1, %v4576_v24, %v4579_v53  ;;  %v12918_v33 = vpack.c.bf16 %v4349_v12, %v4349_v12  ;;  %v4505_v1 = vrot.slane %v12898_v23, 1  ;;  %v9185_v44 = vld [vmem:[%s15444_s27 + $0x3c0] sm:$0xf]  ;;  %v10550_v0 = vld [vmem:[%s15444_s27 + $0x3c4] sm:$0xf0] }
 0x3f5   :  { %v4582_v29 = vrot.slane %v4580_v11, 1  ;;  %4827 = vst [vmem:[#allocation1 + $0x6] ss:$9 sm:$0xff] %v4572_v31  ;;  %v12922_v59 = vpack.c.bf16 %v4350_v17, %v4350_v17  ;;  %v9194_v27 = vor.u32 %v10552_v38, %v9193_v42  ;;  %v8810_v24 = vor.u32 %v10456_v63, %v8809_v8  ;;  %v4352_v13 = vld [vmem:[#allocation3 + $0x4a] sm:$0x7] }
 0x3f6   :  { %4824 = vst [vmem:[#allocation1 + $0x5] ss:$9 sm:$0xff] %v8697_v37  ;;  %5744 = vmatpush.bf16.msrb.mxu2 %v9266_v22  ;;  %v9258_v56 = vor.u32 %v10568_v36, %v9257_v49  ;;  %v9402_v16 = vor.u32 %v10604_v57, %v9401_v3  ;;  %v4619_v53 = vunpack.i.h.s16 %v12898_v23  ;;  %v10454_v7 = vld [vmem:[%s15444_s27 + $0xc4] sm:$0xf0]  ;;  %v9249_v55 = vld [vmem:[%s15444_s27 + $0x440] sm:$0xf]  ;;  %v4357_v54 = vpack.c.bf16 %v4351_v46, %v4351_v46 }
 0x3f7   :  { %v8699_v40 = vpack.i.b16 %v12867_v43, %v4582_v29  ;;  %v10566_v51 = vld [vmem:[%s15444_s27 + $0x444] sm:$0xf0]  ;;  %v4531_v31 = vrot.slane %v12918_v33, 1  ;;  %v4604_v11 = vsel %vm4471_vm15, %v12787_v47, %v12785_v32  ;;  %v9177_v29 = vld [vmem:[%s15444_s27 + $0x3b0] sm:$0xf]  ;;  %v4557_v41 = vrot.slane %v12922_v59, 1  ;;  %5728 = vmatpush.bf16.msrb.mxu1 %v9194_v27  ;;  %5626 = vmatpush.bf16.msra.mxu3 %v8810_v24 }
 0x3f8   :  { %6207 = vmatpush.bf16.msrb.mxu0 %v9402_v16  ;;  %v4601_v58 = vsel %vm1810_vm6, %v12815_v35, %v12827_v48  ;;  %v8692_v52 = vpack.i.b16 %v12898_v23, %v4479_v21  ;;  %v9186_v9 = vor.u32 %v10550_v0, %v9185_v44  ;;  %v8793_v45 = vld [vmem:[%s15444_s27 + $0xb0] sm:$0xf]  ;;  %v10452_v35 = vld [vmem:[%s15444_s27 + $0xb4] sm:$0xf0]  ;;  %v4603_v48 = vsel %vm1814_vm8, %v12829_v60, %v12831_v30  ;;  %v8785_v12 = vld [vmem:[%s15444_s27 + $0xa0] sm:$0xf] }
 0x3f9   :  { %4830 = vst [vmem:[#allocation1 + $0x7] ss:$9 sm:$0xff] %v8699_v40  ;;  %v4631_v37 = vunpack.i.h.s16 %v12922_v59  ;;  %v8802_v4 = vor.u32 %v10454_v7, %v8801_v2  ;;  %v9250_v26 = vor.u32 %v10566_v51, %v9249_v55  ;;  %v10548_v50 = vld [vmem:[%s15444_s27 + $0x3b4] sm:$0xf0]  ;;  %v4600_v61 = vsel %vm1806_vm4, %v12812_v6, %v12807_v18  ;;  %v9241_v60 = vld [vmem:[%s15444_s27 + $0x430] sm:$0xf] }
 0x3fa   :  { %5745 = vmatpush.bf16.msrb.mxu2 %v9258_v56  ;;  %v8694_v15 = vpack.i.b16 %v4505_v1, %v4619_v53  ;;  %v10564_v30 = vld [vmem:[%s15444_s27 + $0x434] sm:$0xf0]  ;;  %v13003_v25 = vpack.c.bf16 %v4352_v13, %v4352_v13  ;;  %v4583_v23 = vrot.slane %v4357_v54, 1  ;;  %v4602_v18 = vsel %vm2751_vm12, %v4600_v61, %v4601_v58  ;;  %v10450_v17 = vld [vmem:[%s15444_s27 + $0xa4] sm:$0xf0] }
 0x3fb   :  { %v4605_v6 = vsel %vm4473_vm3, %v4603_v48, %v4604_v11  ;;  %v8696_v10 = vpack.i.b16 %v12922_v59, %v4531_v31  ;;  %5729 = vmatpush.bf16.msrb.mxu1 %v9186_v9  ;;  %v8698_v14 = vpack.i.b16 %v4557_v41, %v4631_v37  ;;  %5627 = vmatpush.bf16.msra.mxu3 %v8802_v4  ;;  %v9169_v8 = vld [vmem:[%s15444_s27 + $0x3a0] sm:$0xf]  ;;  %v10546_v42 = vld [vmem:[%s15444_s27 + $0x3a4] sm:$0xf0]  ;;  %v8777_v21 = vld [vmem:[%s15444_s27 + $0x90] sm:$0xf]  ;;  %v4642_v2 = vunpack.i.h.s16 %v12867_v43 }
 0x3fc   :  { %v8794_v19 = vor.u32 %v10452_v35, %v8793_v45  ;;  %v9242_v22 = vor.u32 %v10564_v30, %v9241_v60  ;;  %v9233_v38 = vld [vmem:[%s15444_s27 + $0x420] sm:$0xf]  ;;  %v10562_v63 = vld [vmem:[%s15444_s27 + $0x424] sm:$0xf0]  ;;  %v8700_v49 = vpack.i.b16 %v13003_v25, %v4583_v23  ;;  %v4606_v36 = vsel %vm4475_vm1, %v4602_v18, %v4605_v6  ;;  %v9161_v59 = vld [vmem:[%s15444_s27 + $0x390] sm:$0xf] }
 0x3fd   :  { %v8786_v1 = vor.u32 %v10450_v17, %v8785_v12  ;;  %v9234_v46 = vor.u32 %v10562_v63, %v9233_v38  ;;  %v10544_v27 = vld [vmem:[%s15444_s27 + $0x394] sm:$0xf0]  ;;  %v9225_v57 = vld [vmem:[%s15444_s27 + $0x410] sm:$0xf]  ;;  %v4608_v56 = vrot.slane %v4606_v36, 1 }
 0x3fe   :  { %5746 = vmatpush.bf16.msrb.mxu2 %v9250_v26  ;;  %v10448_v3 = vld [vmem:[%s15444_s27 + $0x94] sm:$0xf0]  ;;  %v9162_v44 = vor.u32 %v10544_v27, %v9161_v59  ;;  %v8769_v0 = vld [vmem:[%s15444_s27 + $0x80] sm:$0xf]  ;;  %v10446_v53 = vld [vmem:[%s15444_s27 + $0x84] sm:$0xf0] }
 0x3ff   :  { %5628 = vmatpush.bf16.msra.mxu3 %v8794_v19  ;;  %v10560_v24 = vld [vmem:[%s15444_s27 + $0x414] sm:$0xf0]  ;;  %v8778_v16 = vor.u32 %v10448_v3, %v8777_v21  ;;  %v9153_v7 = vld [vmem:[%s15444_s27 + $0x380] sm:$0xf]  ;;  %v10542_v43 = vld [vmem:[%s15444_s27 + $0x384] sm:$0xf0]  ;;  %v8701_v31 = vpack.i.b16 %v4608_v56, %v4642_v2  ;;  %v8770_v35 = vor.u32 %v10446_v53, %v8769_v0 }
 0x400   :  { %v12953_v28 = vld [vmem:[#allocation1] sm:$0xff]  ;;  %v12955_v34 = vld [vmem:[#allocation1 + $0x9] sm:$0xff]  ;;  %v12957_v39 = vld [vmem:[#allocation1 + $0x12] sm:$0xff]  ;;  %v9226_v13 = vor.u32 %v10560_v24, %v9225_v57  ;;  %v4609_v26 = vrot.slane %v13003_v25, 1 }
 0x401   :  { %v12967_v32 = vld [vmem:[#allocation1 + $0x1b] sm:$0xff]  ;;  %5615 = vmatmul.bf16.vlgmr.msrb.gmra.mxu3 %v12953_v28  ;;  %v12984_v40 = vld [vmem:[#allocation1 + $0x24] sm:$0xff]  ;;  %v12986_v20 = vld [vmem:[#allocation1 + $0x2d] sm:$0xff] }
 0x402   :  { %v12969_v47 = vld [vmem:[#allocation1 + $0x36] sm:$0xff]  ;;  %v12971_v62 = vld [vmem:[#allocation1 + $0x3f] sm:$0xff]  ;;  %5683 = vmatmul.bf16.vlgmr.msra.gmra.mxu1 %v12984_v40  ;;  %5700 = vmatmul.bf16.vlgmr.msra.gmra.mxu2 %v12986_v20  ;;  %v10558_v51 = vld [vmem:[%s15444_s27 + $0x404] sm:$0xf0] }
 0x403   :  { %4840 = vst [vmem:[#allocation1] ss:$9 sm:$0xff] %v12896_v5  ;;  %v9178_v5 = vor.u32 %v10548_v50, %v9177_v29  ;;  %5747 = vmatpush.bf16.msrb.mxu2 %v9242_v22  ;;  %5629 = vmatpush.bf16.msra.mxu3 %v8786_v1  ;;  %v9217_v55 = vld [vmem:[%s15444_s27 + $0x400] sm:$0xf]  ;;  %v10476_v11 = vld [vmem:[%s15444_s27 + $0x174] sm:$0xf0]  ;;  %v4643_v50 = vunpack.i.h.s16 %v13003_v25 }
 0x404   :  { %4842 = vst [vmem:[#allocation1 + $0x1] ss:$9 sm:$0xff] %v8692_v52  ;;  %v10459_v29 = vld [vmem:[%s15444_s27 + $0xf4] sm:$0xf]  ;;  %v8827_v41 = vld [vmem:[%s15444_s27 + $0xf8] sm:$0xf0]  ;;  %v9154_v52 = vor.u32 %v10542_v43, %v9153_v7  ;;  %v9218_v48 = vor.u32 %v10558_v51, %v9217_v55 }
 0x405   :  { %4844 = vst [vmem:[#allocation1 + $0x2] ss:$9 sm:$0xff] %v8694_v15  ;;  %5730 = vmatpush.bf16.msrb.mxu1 %v9178_v5  ;;  %v10475_v9 = vld [vmem:[%s15444_s27 + $0x174] sm:$0xf]  ;;  %v8891_v45 = vld [vmem:[%s15444_s27 + $0x178] sm:$0xf0]  ;;  %v8830_v4 = vor.u32 %v10459_v29, %v8827_v41  ;;  %v8702_v12 = vpack.i.b16 %v4609_v26, %v4643_v50 }
 0x406   :  { %4846 = vst [vmem:[#allocation1 + $0x3] ss:$9 sm:$0xff] %v12918_v33  ;;  %v9170_v33 = vor.u32 %v10546_v42, %v9169_v8  ;;  %v8894_v61 = vor.u32 %v10475_v9, %v8891_v45  ;;  %v8881_v15 = vld [vmem:[%s15444_s27 + $0x160] sm:$0xf]  ;;  %v10474_v60 = vld [vmem:[%s15444_s27 + $0x164] sm:$0xf0] }
 0x407   :  { %4848 = vst [vmem:[#allocation1 + $0x4] ss:$9 sm:$0xff] %v8696_v10  ;;  %5748 = vmatpush.bf16.msrb.mxu2 %v9234_v46  ;;  %5630 = vmatpush.bf16.msra.mxu3 %v8778_v16  ;;  %v10457_v30 = vld [vmem:[%s15444_s27 + $0xe4] sm:$0xf]  ;;  %v8819_v23 = vld [vmem:[%s15444_s27 + $0xe8] sm:$0xf0]  ;;  %v8882_v17 = vor.u32 %v10474_v60, %v8881_v15 }
 0x408   :  { %4850 = vst [vmem:[#allocation1 + $0x5] ss:$9 sm:$0xff] %v8698_v14  ;;  %v10473_v25 = vld [vmem:[%s15444_s27 + $0x164] sm:$0xf]  ;;  %v8883_v18 = vld [vmem:[%s15444_s27 + $0x168] sm:$0xf0]  ;;  %v8822_v14 = vor.u32 %v10457_v30, %v8819_v23 }
 0x409   :  { %4852 = vst [vmem:[#allocation1 + $0x6] ss:$9 sm:$0xff] %v4357_v54  ;;  %5731 = vmatpush.bf16.msrb.mxu1 %v9170_v33  ;;  %v8889_v54 = vld [vmem:[%s15444_s27 + $0x170] sm:$0xf]  ;;  %v10472_v10 = vld [vmem:[%s15444_s27 + $0x154] sm:$0xf0] }
 0x40a   :  { %4854 = vst [vmem:[#allocation1 + $0x7] ss:$9 sm:$0xff] %v8700_v49  ;;  %v8890_v37 = vor.u32 %v10476_v11, %v8889_v54  ;;  %v8873_v6 = vld [vmem:[%s15444_s27 + $0x150] sm:$0xf]  ;;  %v10455_v5 = vld [vmem:[%s15444_s27 + $0xd4] sm:$0xf]  ;;  %v8886_v49 = vor.u32 %v10473_v25, %v8883_v18 }
 0x40b   :  { %5749 = vmatpush.bf16.msrb.mxu2 %v9226_v13  ;;  %5631 = vmatpush.bf16.msra.mxu3 %v8770_v35  ;;  %v8811_v19 = vld [vmem:[%s15444_s27 + $0xd8] sm:$0xf0]  ;;  %v10471_v22 = vld [vmem:[%s15444_s27 + $0x154] sm:$0xf]  ;;  %v8874_v59 = vor.u32 %v10472_v10, %v8873_v6  ;;  %v8865_v3 = vld [vmem:[%s15444_s27 + $0x140] sm:$0xf] }
 0x40c   :  { %v8875_v8 = vld [vmem:[%s15444_s27 + $0x158] sm:$0xf0]  ;;  %v8814_v27 = vor.u32 %v10455_v5, %v8811_v19  ;;  %v10470_v24 = vld [vmem:[%s15444_s27 + $0x144] sm:$0xf0]  ;;  %v10453_v56 = vld [vmem:[%s15444_s27 + $0xc4] sm:$0xf] }
 0x40d   :  { %5732 = vmatpush.bf16.msrb.mxu1 %v9162_v44  ;;  %v8878_v57 = vor.u32 %v10471_v22, %v8875_v8  ;;  %v8803_v2 = vld [vmem:[%s15444_s27 + $0xc8] sm:$0xf0]  ;;  %v10469_v44 = vld [vmem:[%s15444_s27 + $0x144] sm:$0xf]  ;;  %v8866_v16 = vor.u32 %v10470_v24, %v8865_v3  ;;  %v8857_v53 = vld [vmem:[%s15444_s27 + $0x130] sm:$0xf] }
 0x40e   :  { %v8867_v0 = vld [vmem:[%s15444_s27 + $0x148] sm:$0xf0]  ;;  %v8806_v13 = vor.u32 %v10453_v56, %v8803_v2  ;;  %v10468_v43 = vld [vmem:[%s15444_s27 + $0x134] sm:$0xf0]  ;;  %v10451_v55 = vld [vmem:[%s15444_s27 + $0xb4] sm:$0xf] }
 0x40f   :  { %5750 = vmatpush.bf16.msrb.mxu2 %v9218_v48  ;;  %5641 = vmatpush.bf16.msrb.mxu3 %v8890_v37  ;;  %v8870_v7 = vor.u32 %v10469_v44, %v8867_v0  ;;  %v8795_v51 = vld [vmem:[%s15444_s27 + $0xb8] sm:$0xf0]  ;;  %v10467_v54 = vld [vmem:[%s15444_s27 + $0x134] sm:$0xf]  ;;  %v8858_v11 = vor.u32 %v10468_v43, %v8857_v53  ;;  %v8849_v41 = vld [vmem:[%s15444_s27 + $0x120] sm:$0xf] }
 0x410   :  { %v8798_v29 = vor.u32 %v10451_v55, %v8795_v51  ;;  %v10466_v9 = vld [vmem:[%s15444_s27 + $0x124] sm:$0xf0]  ;;  %v10449_v45 = vld [vmem:[%s15444_s27 + $0xa4] sm:$0xf]  ;;  %v8787_v35 = vld [vmem:[%s15444_s27 + $0xa8] sm:$0xf0] }
 0x411   :  { %v13078_v58 = vld [vmem:[#allocation1] sm:$0xff]  ;;  %5733 = vmatpush.bf16.msrb.mxu1 %v9154_v52  ;;  %v8851_v37 = vld [vmem:[%s15444_s27 + $0x128] sm:$0xf0]  ;;  %v8790_v26 = vor.u32 %v10449_v45, %v8787_v35  ;;  %v8841_v50 = vld [vmem:[%s15444_s27 + $0x110] sm:$0xf] }
 0x412   :  { %4857 = vst [vmem:[#allocation1] ss:$9 sm:$0xff] %v8701_v31  ;;  %v8859_v31 = vld [vmem:[%s15444_s27 + $0x138] sm:$0xf0]  ;;  %v10465_v48 = vld [vmem:[%s15444_s27 + $0x124] sm:$0xf] }
 0x413   :  { %5794 = vmatpush.bf16.msra.mxu2 %v8894_v61  ;;  %5642 = vmatpush.bf16.msrb.mxu3 %v8882_v17  ;;  %v8862_v52 = vor.u32 %v10467_v54, %v8859_v31  ;;  %v8854_v61 = vor.u32 %v10465_v48, %v8851_v37  ;;  %v10464_v15 = vld [vmem:[%s15444_s27 + $0x114] sm:$0xf0]  ;;  %v10447_v60 = vld [vmem:[%s15444_s27 + $0x94] sm:$0xf]  ;;  %v8779_v30 = vld [vmem:[%s15444_s27 + $0x98] sm:$0xf0] }
 0x414   :  { %v10463_v23 = vld [vmem:[%s15444_s27 + $0x114] sm:$0xf]  ;;  %v8843_v25 = vld [vmem:[%s15444_s27 + $0x118] sm:$0xf0]  ;;  %v8833_v18 = vld [vmem:[%s15444_s27 + $0x100] sm:$0xf]  ;;  %v8842_v10 = vor.u32 %v10464_v15, %v8841_v50  ;;  %v8782_v5 = vor.u32 %v10447_v60, %v8779_v30 }
 0x415   :  { %5777 = vmatpush.bf16.msra.mxu1 %v8830_v4  ;;  %v8850_v4 = vor.u32 %v10466_v9, %v8849_v41  ;;  %v10462_v6 = vld [vmem:[%s15444_s27 + $0x104] sm:$0xf0]  ;;  %v8771_v17 = vld [vmem:[%s15444_s27 + $0x88] sm:$0xf0]  ;;  %v8846_v19 = vor.u32 %v10463_v23, %v8843_v25  ;;  %v9393_v8 = vld [vmem:[%s15450_s6 + $0xe0] sm:$0xf] }
 0x416   :  { %v8835_v22 = vld [vmem:[%s15444_s27 + $0x108] sm:$0xf0]  ;;  %v10507_v3 = vld [vmem:[%s15444_s27 + $0x274] sm:$0xf]  ;;  %v9019_v24 = vld [vmem:[%s15444_s27 + $0x278] sm:$0xf0]  ;;  %v8834_v44 = vor.u32 %v10462_v6, %v8833_v18 }
 0x417   :  { %5795 = vmatpush.bf16.msra.mxu2 %v8886_v49  ;;  %5643 = vmatpush.bf16.msrb.mxu3 %v8874_v59  ;;  %v10602_v49 = vld [vmem:[%s15450_s6 + $0xe4] sm:$0xf0]  ;;  %v8953_v59 = vld [vmem:[%s15444_s27 + $0x1f0] sm:$0xf]  ;;  %v10523_v56 = vld [vmem:[%s15444_s27 + $0x2f4] sm:$0xf]  ;;  %v9022_v53 = vor.u32 %v10507_v3, %v9019_v24 }
 0x418   :  { %v9083_v2 = vld [vmem:[%s15444_s27 + $0x2f8] sm:$0xf0]  ;;  %v8945_v43 = vld [vmem:[%s15444_s27 + $0x1e0] sm:$0xf]  ;;  %v10490_v55 = vld [vmem:[%s15444_s27 + $0x1e4] sm:$0xf0] }
 0x419   :  { %v13124_v42 = vld [vmem:[#allocation1] sm:$0xff]  ;;  %v13126_v38 = vld [vmem:[#allocation1 + $0x12] sm:$0xff]  ;;  %v13139_v1 = vld [vmem:[#allocation1 + $0x9] sm:$0xff]  ;;  %5778 = vmatpush.bf16.msra.mxu1 %v8822_v14  ;;  %v8946_v31 = vor.u32 %v10490_v55, %v8945_v43 }
 0x41a   :  { %v13128_v63 = vld [vmem:[#allocation1 + $0x1b] sm:$0xff]  ;;  %5620 = vmatmul.bf16.gmra.mxu3 %v13124_v42  ;;  %v13133_v33 = vld [vmem:[#allocation1 + $0x24] sm:$0xff]  ;;  %v13135_v21 = vld [vmem:[#allocation1 + $0x2d] sm:$0xff] }
 0x41b   :  { %v13130_v36 = vld [vmem:[#allocation1 + $0x36] sm:$0xff]  ;;  %5688 = vmatmul.bf16.gmra.mxu1 %v13133_v33  ;;  %5705 = vmatmul.bf16.gmra.mxu2 %v13135_v21  ;;  %v13141_v46 = vld [vmem:[#allocation1 + $0x3f] sm:$0xff]  ;;  %v9011_v54 = vld [vmem:[%s15444_s27 + $0x268] sm:$0xf0] }
 0x41c   :  { %4867 = vst [vmem:[#allocation1] ss:$9 sm:$0xff] %v8702_v12  ;;  %5796 = vmatpush.bf16.msra.mxu2 %v8878_v57  ;;  %5644 = vmatpush.bf16.msrb.mxu3 %v8866_v16  ;;  %v10445_v12 = vld [vmem:[%s15444_s27 + $0x84] sm:$0xf]  ;;  %v9394_v57 = vor.u32 %v10602_v49, %v9393_v8  ;;  %v10488_v9 = vld [vmem:[%s15444_s27 + $0x1d4] sm:$0xf0] }
 0x41d   :  { %5779 = vmatpush.bf16.msra.mxu1 %v8814_v27  ;;  %v10461_v14 = vld [vmem:[%s15444_s27 + $0x104] sm:$0xf]  ;;  %v10492_v27 = vld [vmem:[%s15444_s27 + $0x1f4] sm:$0xf0]  ;;  %v8774_v0 = vor.u32 %v10445_v12, %v8771_v17  ;;  %v10503_v45 = vld [vmem:[%s15444_s27 + $0x254] sm:$0xf] }
 0x41e   :  { %v8838_v16 = vor.u32 %v10461_v14, %v8835_v22  ;;  %6208 = vmatpush.bf16.msrb.mxu0 %v9394_v57  ;;  %v10505_v51 = vld [vmem:[%s15444_s27 + $0x264] sm:$0xf]  ;;  %v9003_v35 = vld [vmem:[%s15444_s27 + $0x258] sm:$0xf0]  ;;  %v8929_v15 = vld [vmem:[%s15444_s27 + $0x1c0] sm:$0xf] }
 0x41f   :  { %v9014_v41 = vor.u32 %v10505_v51, %v9011_v54  ;;  %v10486_v60 = vld [vmem:[%s15444_s27 + $0x1c4] sm:$0xf0]  ;;  %v10501_v30 = vld [vmem:[%s15444_s27 + $0x244] sm:$0xf]  ;;  %v8995_v23 = vld [vmem:[%s15444_s27 + $0x248] sm:$0xf0] }
 0x420   :  { %5797 = vmatpush.bf16.msra.mxu2 %v8870_v7  ;;  %5645 = vmatpush.bf16.msrb.mxu3 %v8858_v11  ;;  %v9086_v7 = vor.u32 %v10523_v56, %v9083_v2  ;;  %v10521_v11 = vld [vmem:[%s15444_s27 + $0x2e4] sm:$0xf]  ;;  %v8930_v18 = vor.u32 %v10486_v60, %v8929_v15  ;;  %v8921_v12 = vld [vmem:[%s15444_s27 + $0x1b0] sm:$0xf]  ;;  %v10484_v17 = vld [vmem:[%s15444_s27 + $0x1b4] sm:$0xf0] }
 0x421   :  { %5780 = vmatpush.bf16.msra.mxu1 %v8806_v13  ;;  %v8954_v13 = vor.u32 %v10492_v27, %v8953_v59  ;;  %v10517_v6 = vld [vmem:[%s15444_s27 + $0x2c4] sm:$0xf]  ;;  %v10499_v14 = vld [vmem:[%s15444_s27 + $0x234] sm:$0xf]  ;;  %v8922_v8 = vor.u32 %v10484_v17, %v8921_v12  ;;  %v9051_v59 = vld [vmem:[%s15444_s27 + $0x2b8] sm:$0xf0] }
 0x422   :  { %v10515_v49 = vld [vmem:[%s15444_s27 + $0x2b4] sm:$0xf]  ;;  %v8913_v3 = vld [vmem:[%s15444_s27 + $0x1a0] sm:$0xf]  ;;  %v10482_v57 = vld [vmem:[%s15444_s27 + $0x1a4] sm:$0xf0] }
 0x423   :  { %v13297_v50 = vld [vmem:[#allocation1] sm:$0xff]  ;;  %v8979_v56 = vld [vmem:[%s15444_s27 + $0x228] sm:$0xf0]  ;;  %v9054_v2 = vor.u32 %v10515_v49, %v9051_v59  ;;  %v10495_v43 = vld [vmem:[%s15444_s27 + $0x214] sm:$0xf] }
 0x424   :  { %5798 = vmatpush.bf16.msra.mxu2 %v8862_v52  ;;  %5646 = vmatpush.bf16.msrb.mxu3 %v8850_v4  ;;  %v8937_v52 = vld [vmem:[%s15444_s27 + $0x1d0] sm:$0xf]  ;;  %v10519_v4 = vld [vmem:[%s15444_s27 + $0x2d4] sm:$0xf]  ;;  %v10497_v24 = vld [vmem:[%s15444_s27 + $0x224] sm:$0xf] }
 0x425   :  { %5781 = vmatpush.bf16.msra.mxu1 %v8798_v29  ;;  %v9075_v29 = vld [vmem:[%s15444_s27 + $0x2e8] sm:$0xf0]  ;;  %v8938_v37 = vor.u32 %v10488_v9, %v8937_v52  ;;  %v8971_v55 = vld [vmem:[%s15444_s27 + $0x218] sm:$0xf0]  ;;  %v10478_v52 = vld [vmem:[%s15444_s27 + $0x184] sm:$0xf0] }
 0x426   :  { %v9078_v48 = vor.u32 %v10521_v11, %v9075_v29  ;;  %v9035_v11 = vld [vmem:[%s15444_s27 + $0x298] sm:$0xf0]  ;;  %v8974_v29 = vor.u32 %v10495_v43, %v8971_v55  ;;  %v10493_v9 = vld [vmem:[%s15444_s27 + $0x204] sm:$0xf]  ;;  %v9203_v12 = vld [vmem:[%s15444_s27 + $0x3e8] sm:$0xf0] }
 0x427   :  { %v9129_v49 = vld [vmem:[%s15444_s27 + $0x350] sm:$0xf]  ;;  %v10565_v43 = vld [vmem:[%s15444_s27 + $0x444] sm:$0xf]  ;;  %v9251_v55 = vld [vmem:[%s15444_s27 + $0x448] sm:$0xf0] }
 0x428   :  { %5799 = vmatpush.bf16.msra.mxu2 %v8854_v61  ;;  %5647 = vmatpush.bf16.msrb.mxu3 %v8842_v10  ;;  %v9006_v61 = vor.u32 %v10503_v45, %v9003_v35  ;;  %v9059_v10 = vld [vmem:[%s15444_s27 + $0x2c8] sm:$0xf0]  ;;  %v9145_v35 = vld [vmem:[%s15444_s27 + $0x370] sm:$0xf] }
 0x429   :  { %5782 = vmatpush.bf16.msra.mxu1 %v8790_v26  ;;  %v9067_v26 = vld [vmem:[%s15444_s27 + $0x2d8] sm:$0xf0]  ;;  %v9062_v22 = vor.u32 %v10517_v6, %v9059_v10  ;;  %v8963_v45 = vld [vmem:[%s15444_s27 + $0x208] sm:$0xf0]  ;;  %v10538_v6 = vld [vmem:[%s15444_s27 + $0x364] sm:$0xf0] }
 0x42a   :  { %5632 = vmatmul.bf16.vlgmr.msra.gmra.mxu3 %v12955_v34  ;;  %v9070_v25 = vor.u32 %v10519_v4, %v9067_v26  ;;  %v10509_v26 = vld [vmem:[%s15444_s27 + $0x284] sm:$0xf]  ;;  %v8966_v15 = vor.u32 %v10493_v9, %v8963_v45  ;;  %v9385_v9 = vld [vmem:[%s15450_s6 + $0xd0] sm:$0xf]  ;;  %v10600_v45 = vld [vmem:[%s15450_s6 + $0xd4] sm:$0xf0] }
 0x42b   :  { %5734 = vmatmul.bf16.vlgmr.msrb.gmra.mxu1 %v12971_v62  ;;  %5751 = vmatmul.bf16.vlgmr.msrb.gmra.mxu2 %v13078_v58 }
 0x42c   :  { %5800 = vmatpush.bf16.msra.mxu2 %v8846_v19  ;;  %5648 = vmatpush.bf16.msrb.mxu3 %v8834_v44  ;;  %v8987_v19 = vld [vmem:[%s15444_s27 + $0x238] sm:$0xf0]  ;;  %v8914_v44 = vor.u32 %v10482_v57, %v8913_v3  ;;  %v10551_v3 = vld [vmem:[%s15444_s27 + $0x3d4] sm:$0xf] }
 0x42d   :  { %5783 = vmatpush.bf16.msra.mxu1 %v8782_v5  ;;  %v8998_v5 = vor.u32 %v10501_v30, %v8995_v23  ;;  %v8990_v27 = vor.u32 %v10499_v14, %v8987_v19  ;;  %v10571_v30 = vld [vmem:[%s15444_s27 + $0x474] sm:$0xf]  ;;  %v9275_v23 = vld [vmem:[%s15444_s27 + $0x478] sm:$0xf0]  ;;  %v10569_v19 = vld [vmem:[%s15444_s27 + $0x464] sm:$0xf] }
 0x42e   :  { %v9278_v17 = vor.u32 %v10571_v30, %v9275_v23  ;;  %v9195_v57 = vld [vmem:[%s15444_s27 + $0x3d8] sm:$0xf0] }
 0x430   :  { %5801 = vmatpush.bf16.msra.mxu2 %v8838_v16  ;;  %5658 = vmatpush.bf16.msra.mxu3 %v8954_v13  ;;  %v9043_v16 = vld [vmem:[%s15444_s27 + $0x2a8] sm:$0xf0]  ;;  %v8982_v13 = vor.u32 %v10497_v24, %v8979_v56  ;;  %v10567_v24 = vld [vmem:[%s15444_s27 + $0x454] sm:$0xf]  ;;  %v9259_v56 = vld [vmem:[%s15444_s27 + $0x458] sm:$0xf0] }
 0x431   :  { %5784 = vmatpush.bf16.msra.mxu1 %v8774_v0  ;;  %v10513_v0 = vld [vmem:[%s15444_s27 + $0x2a4] sm:$0xf] }
 0x432   :  { %v9046_v51 = vor.u32 %v10513_v0, %v9043_v16  ;;  %v9121_v0 = vld [vmem:[%s15444_s27 + $0x340] sm:$0xf]  ;;  %v9262_v16 = vor.u32 %v10567_v24, %v9259_v56  ;;  %v10443_v24 = vld [vmem:[%s15444_s27 + $0x74] sm:$0xf]  ;;  %v8763_v56 = vld [vmem:[%s15444_s27 + $0x78] sm:$0xf0] }
 0x434   :  { %5845 = vmatpush.bf16.msrb.mxu2 %v9086_v7  ;;  %5659 = vmatpush.bf16.msra.mxu3 %v8946_v31  ;;  %v10480_v7 = vld [vmem:[%s15444_s27 + $0x194] sm:$0xf0]  ;;  %v10511_v31 = vld [vmem:[%s15444_s27 + $0x294] sm:$0xf] }
 0x435   :  { %5828 = vmatpush.bf16.msrb.mxu1 %v9022_v53  ;;  %v8905_v53 = vld [vmem:[%s15444_s27 + $0x190] sm:$0xf] }
 0x436   :  { %v8906_v54 = vor.u32 %v10480_v7, %v8905_v53  ;;  %v10549_v53 = vld [vmem:[%s15444_s27 + $0x3c4] sm:$0xf]  ;;  %v9187_v7 = vld [vmem:[%s15444_s27 + $0x3c8] sm:$0xf0] }
 0x438   :  { %5846 = vmatpush.bf16.msrb.mxu2 %v9078_v48  ;;  %5660 = vmatpush.bf16.msra.mxu3 %v8938_v37  ;;  %v10540_v48 = vld [vmem:[%s15444_s27 + $0x374] sm:$0xf0]  ;;  %v9038_v37 = vor.u32 %v10511_v31, %v9035_v11  ;;  %v9113_v31 = vld [vmem:[%s15444_s27 + $0x330] sm:$0xf]  ;;  %v9254_v11 = vor.u32 %v10565_v43, %v9251_v55  ;;  %v10437_v55 = vld [vmem:[%s15444_s27 + $0x44] sm:$0xf] }
 0x439   :  { %5829 = vmatpush.bf16.msrb.mxu1 %v9014_v41  ;;  %v8897_v41 = vld [vmem:[%s15444_s27 + $0x180] sm:$0xf]  ;;  %v9146_v60 = vor.u32 %v10540_v48, %v9145_v35 }
 0x43a   :  { %5637 = vmatmul.bf16.gmra.mxu3 %v13139_v1  ;;  %v8898_v4 = vor.u32 %v10478_v52, %v8897_v41  ;;  %v10563_v41 = vld [vmem:[%s15444_s27 + $0x434] sm:$0xf]  ;;  %v9243_v52 = vld [vmem:[%s15444_s27 + $0x438] sm:$0xf0] }
 0x43b   :  { %5739 = vmatmul.bf16.gmra.mxu1 %v13141_v46  ;;  %5756 = vmatmul.bf16.gmra.mxu2 %v13297_v50 }
 0x43c   :  { %5847 = vmatpush.bf16.msrb.mxu2 %v9070_v25  ;;  %5661 = vmatpush.bf16.msra.mxu3 %v8930_v18  ;;  %v9137_v18 = vld [vmem:[%s15444_s27 + $0x360] sm:$0xf] }
 0x43d   :  { %5830 = vmatpush.bf16.msrb.mxu1 %v9006_v61  ;;  %v9027_v61 = vld [vmem:[%s15444_s27 + $0x288] sm:$0xf0]  ;;  %v9138_v14 = vor.u32 %v10538_v6, %v9137_v18  ;;  %v10528_v6 = vld [vmem:[%s15444_s27 + $0x314] sm:$0xf0] }
 0x43e   :  { %v9030_v10 = vor.u32 %v10509_v26, %v9027_v61  ;;  %v10545_v26 = vld [vmem:[%s15444_s27 + $0x3a4] sm:$0xf]  ;;  %v9171_v61 = vld [vmem:[%s15444_s27 + $0x3a8] sm:$0xf0] }
 0x43f   :  { %v9174_v23 = vor.u32 %v10545_v26, %v9171_v61 }
 0x440   :  { %5848 = vmatpush.bf16.msrb.mxu2 %v9062_v22  ;;  %5662 = vmatpush.bf16.msra.mxu3 %v8922_v8  ;;  %v9267_v22 = vld [vmem:[%s15444_s27 + $0x468] sm:$0xf0] }
 0x441   :  { %5831 = vmatpush.bf16.msrb.mxu1 %v8998_v5  ;;  %v10553_v5 = vld [vmem:[%s15444_s27 + $0x3e4] sm:$0xf]  ;;  %v9270_v59 = vor.u32 %v10569_v19, %v9267_v22  ;;  %v9089_v22 = vld [vmem:[%s15444_s27 + $0x300] sm:$0xf] }
 0x442   :  { %v9206_v8 = vor.u32 %v10553_v5, %v9203_v12  ;;  %v9163_v5 = vld [vmem:[%s15444_s27 + $0x398] sm:$0xf0]  ;;  %v10559_v12 = vld [vmem:[%s15444_s27 + $0x414] sm:$0xf] }
 0x444   :  { %5849 = vmatpush.bf16.msrb.mxu2 %v9054_v2  ;;  %5663 = vmatpush.bf16.msra.mxu3 %v8914_v44  ;;  %v9198_v44 = vor.u32 %v10551_v3, %v9195_v57  ;;  %v10557_v3 = vld [vmem:[%s15444_s27 + $0x404] sm:$0xf]  ;;  %v9219_v57 = vld [vmem:[%s15444_s27 + $0x408] sm:$0xf0] }
 0x445   :  { %5832 = vmatpush.bf16.msrb.mxu1 %v8990_v27  ;;  %v10536_v27 = vld [vmem:[%s15444_s27 + $0x354] sm:$0xf0] }
 0x446   :  { %v9130_v2 = vor.u32 %v10536_v27, %v9129_v49  ;;  %v10526_v49 = vld [vmem:[%s15444_s27 + $0x304] sm:$0xf0]  ;;  %v9155_v27 = vld [vmem:[%s15444_s27 + $0x388] sm:$0xf0] }
 0x448   :  { %5850 = vmatpush.bf16.msrb.mxu2 %v9046_v51  ;;  %5664 = vmatpush.bf16.msra.mxu3 %v8906_v54  ;;  %v9190_v54 = vor.u32 %v10549_v53, %v9187_v7  ;;  %v10439_v53 = vld [vmem:[%s15444_s27 + $0x54] sm:$0xf]  ;;  %v8747_v7 = vld [vmem:[%s15444_s27 + $0x58] sm:$0xf0] }
 0x449   :  { %5833 = vmatpush.bf16.msrb.mxu1 %v8982_v13  ;;  %v10534_v13 = vld [vmem:[%s15444_s27 + $0x344] sm:$0xf0]  ;;  %v8750_v43 = vor.u32 %v10439_v53, %v8747_v7  ;;  %v10539_v53 = vld [vmem:[%s15444_s27 + $0x374] sm:$0xf]  ;;  %v9147_v7 = vld [vmem:[%s15444_s27 + $0x378] sm:$0xf0] }
 0x44a   :  { %5649 = vmatmul.bf16.vlgmr.msrb.gmra.mxu3 %v12957_v39  ;;  %v9122_v51 = vor.u32 %v10534_v13, %v9121_v0  ;;  %v9222_v0 = vor.u32 %v10557_v3, %v9219_v57  ;;  %v10481_v57 = vld [vmem:[%s15444_s27 + $0x1a4] sm:$0xf] }
 0x44b   :  { %5785 = vmatmul.bf16.vlgmr.msra.gmra.mxu1 %v12955_v34  ;;  %5802 = vmatmul.bf16.vlgmr.msra.gmra.mxu2 %v12957_v39  ;;  %v10555_v34 = vld [vmem:[%s15444_s27 + $0x3f4] sm:$0xf]  ;;  %v9211_v39 = vld [vmem:[%s15444_s27 + $0x3f8] sm:$0xf0] }
 0x44c   :  { %v9214_v25 = vor.u32 %v10555_v34, %v9211_v39  ;;  %5851 = vmatpush.bf16.msrb.mxu2 %v9038_v37  ;;  %5665 = vmatpush.bf16.msra.mxu3 %v8898_v4  ;;  %v9105_v37 = vld [vmem:[%s15444_s27 + $0x320] sm:$0xf]  ;;  %v9386_v34 = vor.u32 %v10600_v45, %v9385_v9  ;;  %v9246_v39 = vor.u32 %v10563_v41, %v9243_v52  ;;  %v10530_v4 = vld [vmem:[%s15444_s27 + $0x324] sm:$0xf0]  ;;  %v8715_v41 = vld [vmem:[%s15444_s27 + $0x18] sm:$0xf0] }
 0x44d   :  { %5834 = vmatpush.bf16.msrb.mxu1 %v8974_v29  ;;  %v10532_v29 = vld [vmem:[%s15444_s27 + $0x334] sm:$0xf0]  ;;  %v9106_v30 = vor.u32 %v10530_v4, %v9105_v37  ;;  %v10429_v45 = vld [vmem:[%s15444_s27 + $0x4] sm:$0xf]  ;;  %v8955_v4 = vld [vmem:[%s15444_s27 + $0x1f8] sm:$0xf0] }
 0x44e   :  { %v9114_v35 = vor.u32 %v10532_v29, %v9113_v31  ;;  %6209 = vmatpush.bf16.msrb.mxu0 %v9386_v34  ;;  %v10435_v31 = vld [vmem:[%s15444_s27 + $0x34] sm:$0xf] }
 0x450   :  { %5709 = vmatpush.bf16.msrb.mxu3 %v9146_v60  ;;  %5852 = vmatpush.bf16.msrb.mxu2 %v9030_v10  ;;  %v9235_v60 = vld [vmem:[%s15444_s27 + $0x428] sm:$0xf0]  ;;  %v10543_v10 = vld [vmem:[%s15444_s27 + $0x394] sm:$0xf] }
 0x451   :  { %5835 = vmatpush.bf16.msrb.mxu1 %v8966_v15  ;;  %v10561_v15 = vld [vmem:[%s15444_s27 + $0x424] sm:$0xf]  ;;  %v9166_v19 = vor.u32 %v10543_v10, %v9163_v5 }
 0x452   :  { %v9238_v18 = vor.u32 %v10561_v15, %v9235_v60  ;;  %v10489_v15 = vld [vmem:[%s15444_s27 + $0x1e4] sm:$0xf]  ;;  %v8947_v60 = vld [vmem:[%s15444_s27 + $0x1e8] sm:$0xf0] }
 0x454   :  { %5896 = vmatpush.bf16.msra.mxu2 %v9278_v17  ;;  %5710 = vmatpush.bf16.msrb.mxu3 %v9138_v14  ;;  %v9227_v17 = vld [vmem:[%s15444_s27 + $0x418] sm:$0xf0] }
 0x455   :  { %5879 = vmatpush.bf16.msra.mxu1 %v9214_v25  ;;  %v9097_v25 = vld [vmem:[%s15444_s27 + $0x310] sm:$0xf] }
 0x456   :  { %v9098_v14 = vor.u32 %v10528_v6, %v9097_v25  ;;  %v8939_v25 = vld [vmem:[%s15444_s27 + $0x1d8] sm:$0xf0] }
 0x458   :  { %5897 = vmatpush.bf16.msra.mxu2 %v9270_v59  ;;  %5711 = vmatpush.bf16.msrb.mxu3 %v9130_v2  ;;  %v10541_v59 = vld [vmem:[%s15444_s27 + $0x384] sm:$0xf]  ;;  %v9090_v2 = vor.u32 %v10526_v49, %v9089_v22  ;;  %v10483_v22 = vld [vmem:[%s15444_s27 + $0x1b4] sm:$0xf] }
 0x459   :  { %5880 = vmatpush.bf16.msra.mxu1 %v9206_v8  ;;  %v9230_v8 = vor.u32 %v10559_v12, %v9227_v17  ;;  %v10485_v17 = vld [vmem:[%s15444_s27 + $0x1c4] sm:$0xf] }
 0x45a   :  { %5654 = vmatmul.bf16.gmra.mxu3 %v13126_v38 }
 0x45b   :  { %5790 = vmatmul.bf16.gmra.mxu1 %v13139_v1  ;;  %5807 = vmatmul.bf16.gmra.mxu2 %v13126_v38  ;;  %v10547_v1 = vld [vmem:[%s15444_s27 + $0x3b4] sm:$0xf]  ;;  %v9179_v38 = vld [vmem:[%s15444_s27 + $0x3b8] sm:$0xf0] }
 0x45c   :  { %5898 = vmatpush.bf16.msra.mxu2 %v9262_v16  ;;  %5712 = vmatpush.bf16.msrb.mxu3 %v9122_v51  ;;  %v9182_v48 = vor.u32 %v10547_v1, %v9179_v38  ;;  %v8766_v16 = vor.u32 %v10443_v24, %v8763_v56  ;;  %v8739_v51 = vld [vmem:[%s15444_s27 + $0x48] sm:$0xf0]  ;;  %v10433_v1 = vld [vmem:[%s15444_s27 + $0x24] sm:$0xf]  ;;  %v10431_v38 = vld [vmem:[%s15444_s27 + $0x14] sm:$0xf] }
 0x45d   :  { %5881 = vmatpush.bf16.msra.mxu1 %v9198_v44  ;;  %v9158_v44 = vor.u32 %v10541_v59, %v9155_v27  ;;  %v8718_v9 = vor.u32 %v10431_v38, %v8715_v41  ;;  %v8915_v24 = vld [vmem:[%s15444_s27 + $0x1a8] sm:$0xf0] }
 0x45e   :  { %v8918_v56 = vor.u32 %v10481_v57, %v8915_v24 }
 0x460   :  { %5899 = vmatpush.bf16.msra.mxu2 %v9254_v11  ;;  %5713 = vmatpush.bf16.msrb.mxu3 %v9114_v35  ;;  %v8731_v11 = vld [vmem:[%s15444_s27 + $0x38] sm:$0xf0]  ;;  %v8707_v35 = vld [vmem:[%s15444_s27 + $0x8] sm:$0xf0] }
 0x461   :  { %5882 = vmatpush.bf16.msra.mxu1 %v9190_v54  ;;  %v8742_v54 = vor.u32 %v10437_v55, %v8739_v51  ;;  %v8734_v29 = vor.u32 %v10435_v31, %v8731_v11  ;;  %v8710_v37 = vor.u32 %v10429_v45, %v8707_v35  ;;  %v9139_v11 = vld [vmem:[%s15444_s27 + $0x368] sm:$0xf0]  ;;  %v10533_v35 = vld [vmem:[%s15444_s27 + $0x344] sm:$0xf] }
 0x464   :  { %5900 = vmatpush.bf16.msra.mxu2 %v9246_v39  ;;  %5714 = vmatpush.bf16.msrb.mxu3 %v9106_v30  ;;  %v10491_v39 = vld [vmem:[%s15444_s27 + $0x1f4] sm:$0xf]  ;;  %v9377_v30 = vld [vmem:[%s15450_s6 + $0xc0] sm:$0xf] }
 0x465   :  { %5883 = vmatpush.bf16.msra.mxu1 %v9182_v48  ;;  %v8958_v26 = vor.u32 %v10491_v39, %v8955_v4  ;;  %v10531_v39 = vld [vmem:[%s15444_s27 + $0x334] sm:$0xf]  ;;  %v9115_v4 = vld [vmem:[%s15444_s27 + $0x338] sm:$0xf0] }
 0x468   :  { %5901 = vmatpush.bf16.msra.mxu2 %v9238_v18  ;;  %5715 = vmatpush.bf16.msrb.mxu3 %v9098_v14  ;;  %v8931_v14 = vld [vmem:[%s15444_s27 + $0x1c8] sm:$0xf0] }
 0x469   :  { %5884 = vmatpush.bf16.msra.mxu1 %v9174_v23  ;;  %v10487_v23 = vld [vmem:[%s15444_s27 + $0x1d4] sm:$0xf] }
 0x46a   :  { %5666 = vmatmul.bf16.vlgmr.msra.gmra.mxu3 %v12967_v32  ;;  %v8942_v10 = vor.u32 %v10487_v23, %v8939_v25  ;;  %v9099_v25 = vld [vmem:[%s15444_s27 + $0x318] sm:$0xf0] }
 0x46b   :  { %5836 = vmatmul.bf16.vlgmr.msrb.gmra.mxu1 %v12984_v40  ;;  %5853 = vmatmul.bf16.vlgmr.msrb.gmra.mxu2 %v12986_v20  ;;  %v10441_v40 = vld [vmem:[%s15444_s27 + $0x64] sm:$0xf]  ;;  %v8755_v20 = vld [vmem:[%s15444_s27 + $0x68] sm:$0xf0] }
 0x46c   :  { %5902 = vmatpush.bf16.msra.mxu2 %v9230_v8  ;;  %5716 = vmatpush.bf16.msrb.mxu3 %v9090_v2  ;;  %v8758_v13 = vor.u32 %v10441_v40, %v8755_v20  ;;  %v8923_v8 = vld [vmem:[%s15444_s27 + $0x1b8] sm:$0xf0]  ;;  %v10477_v40 = vld [vmem:[%s15444_s27 + $0x184] sm:$0xf]  ;;  %v8899_v20 = vld [vmem:[%s15444_s27 + $0x188] sm:$0xf0] }
 0x46d   :  { %5885 = vmatpush.bf16.msra.mxu1 %v9166_v19  ;;  %v8934_v19 = vor.u32 %v10485_v17, %v8931_v14  ;;  %v8926_v49 = vor.u32 %v10483_v22, %v8923_v8  ;;  %v10525_v22 = vld [vmem:[%s15444_s27 + $0x304] sm:$0xf]  ;;  %v9091_v8 = vld [vmem:[%s15444_s27 + $0x308] sm:$0xf0] }
 0x470   :  { %5903 = vmatpush.bf16.msra.mxu2 %v9222_v0  ;;  %5760 = vmatpush.bf16.msra.mxu3 %v8766_v16 }
 0x471   :  { %5886 = vmatpush.bf16.msra.mxu1 %v9158_v44 }
 0x474   :  { %5761 = vmatpush.bf16.msra.mxu3 %v8758_v13  ;;  %v8902_v13 = vor.u32 %v10477_v40, %v8899_v20 }
 0x478   :  { %5762 = vmatpush.bf16.msra.mxu3 %v8750_v43  ;;  %v9150_v43 = vor.u32 %v10539_v53, %v9147_v7 }
 0x47a   :  { %5671 = vmatmul.bf16.gmra.mxu3 %v13128_v63 }
 0x47b   :  { %5841 = vmatmul.bf16.gmra.mxu1 %v13133_v33  ;;  %5858 = vmatmul.bf16.gmra.mxu2 %v13135_v21  ;;  %v8723_v33 = vld [vmem:[%s15444_s27 + $0x28] sm:$0xf0] }
 0x47c   :  { %5763 = vmatpush.bf16.msra.mxu3 %v8742_v54  ;;  %v8726_v21 = vor.u32 %v10433_v1, %v8723_v33  ;;  %v9131_v33 = vld [vmem:[%s15444_s27 + $0x358] sm:$0xf0] }
 0x47f   :  { %v13595_v52 = vpop.f32.mrf.mxu1 }
 0x480   :  { %5764 = vmatpush.bf16.msra.mxu3 %v8734_v29  ;;  %v10535_v29 = vld [vmem:[%s15444_s27 + $0x354] sm:$0xf] }
 0x484   :  { %5765 = vmatpush.bf16.msra.mxu3 %v8726_v21  ;;  %v13603_v48 = vpop.f32.mrf.mxu3  ;;  %v9134_v21 = vor.u32 %v10535_v29, %v9131_v33  ;;  %v9361_v29 = vld [vmem:[%s15450_s6 + $0xa0] sm:$0xf] }
 0x485   :  { %v13606_v34 = vpop.f32.mrf.mxu2 }
 0x487   :  { %v13616_v61 = vpop.f32.mrf.mxu1 }
 0x488   :  { %5766 = vmatpush.bf16.msra.mxu3 %v8718_v9 }
 0x48a   :  { %5717 = vmatmul.bf16.vlgmr.msrb.gmra.mxu3 %v12969_v47 }
 0x48b   :  { %5887 = vmatmul.bf16.vlgmr.msra.gmra.mxu1 %v12971_v62  ;;  %5904 = vmatmul.bf16.vlgmr.msra.gmra.mxu2 %v13078_v58  ;;  %v8950_v62 = vor.u32 %v10489_v15, %v8947_v60  ;;  %v10598_v58 = vld [vmem:[%s15450_s6 + $0xc4] sm:$0xf0] }
 0x48c   :  { %5767 = vmatpush.bf16.msra.mxu3 %v8710_v37  ;;  %v9378_v18 = vor.u32 %v10598_v58, %v9377_v30  ;;  %v5618_v6 = vpop.f32.mrf.mxu3  ;;  %v10527_v58 = vld [vmem:[%s15444_s27 + $0x314] sm:$0xf] }
 0x48d   :  { %v13636_v5 = vpop.f32.mrf.mxu2 }
 0x48e   :  { %6210 = vmatpush.bf16.msrb.mxu0 %v9378_v18  ;;  %v9369_v18 = vld [vmem:[%s15450_s6 + $0xb0] sm:$0xf] }
 0x490   :  { %5811 = vmatpush.bf16.msrb.mxu3 %v8958_v26  ;;  %v9118_v26 = vor.u32 %v10531_v39, %v9115_v4 }
 0x494   :  { %5812 = vmatpush.bf16.msrb.mxu3 %v8950_v62  ;;  %v10529_v62 = vld [vmem:[%s15444_s27 + $0x324] sm:$0xf] }
 0x498   :  { %5813 = vmatpush.bf16.msrb.mxu3 %v8942_v10  ;;  %v5689_v12 = vpop.f32.mrf.mxu1 }
 0x499   :  { %v9102_v12 = vor.u32 %v10527_v58, %v9099_v25 }
 0x49a   :  { %5722 = vmatmul.bf16.gmra.mxu3 %v13130_v36 }
 0x49b   :  { %5892 = vmatmul.bf16.gmra.mxu1 %v13141_v46  ;;  %5909 = vmatmul.bf16.gmra.mxu2 %v13297_v50  ;;  %v10479_v46 = vld [vmem:[%s15444_s27 + $0x194] sm:$0xf]  ;;  %v8907_v50 = vld [vmem:[%s15444_s27 + $0x198] sm:$0xf0] }
 0x49c   :  { %5814 = vmatpush.bf16.msrb.mxu3 %v8934_v19  ;;  %v8910_v2 = vor.u32 %v10479_v46, %v8907_v50 }
 0x49d   :  { %v5621_v59 = vpop.f32.mrf.mxu3 }
 0x49e   :  { %v5706_v27 = vpop.f32.mrf.mxu2 }
 0x4a0   :  { %v5690_v3 = vpop.f32.mrf.mxu1  ;;  %5815 = vmatpush.bf16.msrb.mxu3 %v8926_v49  ;;  %v9094_v49 = vor.u32 %v10525_v22, %v9091_v8 }
 0x4a4   :  { %5816 = vmatpush.bf16.msrb.mxu3 %v8918_v56 }
 0x4a5   :  { %v5622_v44 = vpop.f32.mrf.mxu3 }
 0x4a6   :  { %v5707_v0 = vpop.f32.mrf.mxu2 }
 0x4a8   :  { %v13665_v16 = vpop.f32.mrf.mxu1  ;;  %5817 = vmatpush.bf16.msrb.mxu3 %v8910_v2 }
 0x4aa   :  { %5768 = vmatmul.bf16.vlgmr.msra.gmra.mxu3 %v12953_v28  ;;  %v10537_v28 = vld [vmem:[%s15444_s27 + $0x364] sm:$0xf] }
 0x4ab   :  { %v9142_v1 = vor.u32 %v10537_v28, %v9139_v11 }
 0x4ac   :  { %5818 = vmatpush.bf16.msrb.mxu3 %v8902_v13 }
 0x4ad   :  { %v5633_v55 = vpop.f32.mrf.mxu3 }
 0x4ae   :  { %v5634_v51 = vadd.f32 %v5633_v55, %v13603_v48  ;;  %v13681_v54 = vpop.f32.mrf.mxu2  ;;  %v9123_v48 = vld [vmem:[%s15444_s27 + $0x348] sm:$0xf0] }
 0x4af   :  { %v9126_v37 = vor.u32 %v10533_v35, %v9123_v48 }
 0x4b0   :  { %5862 = vmatpush.bf16.msra.mxu3 %v9150_v43  ;;  %v13683_v31 = vpop.f32.mrf.mxu1 }
 0x4b4   :  { %5863 = vmatpush.bf16.msra.mxu3 %v9142_v1 }
 0x4b5   :  { %v5635_v38 = vpop.f32.mrf.mxu3 }
 0x4b6   :  { %v13697_v41 = vadd.f32 %v5635_v38, %v5618_v6  ;;  %v13699_v9 = vpop.f32.mrf.mxu2  ;;  %v10596_v6 = vld [vmem:[%s15450_s6 + $0xb4] sm:$0xf0] }
 0x4b7   :  { %v9370_v10 = vor.u32 %v10596_v6, %v9369_v18 }
 0x4b8   :  { %5864 = vmatpush.bf16.msra.mxu3 %v9134_v21  ;;  %v5740_v45 = vpop.f32.mrf.mxu1 }
 0x4b9   :  { %6211 = vmatpush.bf16.msrb.mxu0 %v9370_v10 }
 0x4ba   :  { %5773 = vmatmul.bf16.gmra.mxu3 %v13124_v42  ;;  %v9107_v42 = vld [vmem:[%s15444_s27 + $0x328] sm:$0xf0] }
 0x4bb   :  { %v9110_v23 = vor.u32 %v10529_v62, %v9107_v42 }
 0x4bc   :  { %5865 = vmatpush.bf16.msra.mxu3 %v9126_v37 }
 0x4bd   :  { %v5638_v15 = vpop.f32.mrf.mxu3 }
 0x4be   :  { %v5757_v60 = vpop.f32.mrf.mxu2 }
 0x4c0   :  { %5866 = vmatpush.bf16.msra.mxu3 %v9118_v26  ;;  %v5741_v30 = vpop.f32.mrf.mxu1 }
 0x4c4   :  { %5867 = vmatpush.bf16.msra.mxu3 %v9110_v23 }
 0x4c5   :  { %v5639_v17 = vpop.f32.mrf.mxu3 }
 0x4c6   :  { %v5758_v14 = vpop.f32.mrf.mxu2 }
 0x4c8   :  { %5868 = vmatpush.bf16.msra.mxu3 %v9102_v12  ;;  %v13732_v19 = vpop.f32.mrf.mxu1 }
 0x4ca   :  { %5819 = vmatmul.bf16.vlgmr.msrb.gmra.mxu3 %v12967_v32 }
 0x4cc   :  { %5869 = vmatpush.bf16.msra.mxu3 %v9094_v49 }
 0x4cd   :  { %v5650_v59 = vpop.f32.mrf.mxu3 }
 0x4ce   :  { %v5651_v27 = vadd.f32 %v5650_v59, %v5634_v51  ;;  %v5803_v3 = vpop.f32.mrf.mxu2 }
 0x4d0   :  { %v5788_v57 = vpop.f32.mrf.mxu1 }
 0x4d5   :  { %v5652_v24 = vpop.f32.mrf.mxu3 }
 0x4d6   :  { %v13741_v56 = vpop.f32.mrf.mxu2  ;;  %v5653_v8 = vadd.f32 %v5652_v24, %v13697_v41  ;;  %v10587_v41 = vld [vmem:[%s15450_s6 + $0x74] sm:$0xf] }
 0x4d7   :  { %v10603_v24 = vld [vmem:[%s15450_s6 + $0xf4] sm:$0xf] }
 0x4d8   :  { %v5791_v46 = vpop.f32.mrf.mxu1 }
 0x4da   :  { %5824 = vmatmul.bf16.gmra.mxu3 %v13128_v63 }
 0x4dd   :  { %v5655_v50 = vpop.f32.mrf.mxu3 }
 0x4de   :  { %v5808_v2 = vpop.f32.mrf.mxu2 }
 0x4e0   :  { %v5792_v44 = vpop.f32.mrf.mxu1 }
 0x4e5   :  { %v5656_v0 = vpop.f32.mrf.mxu3 }
 0x4e6   :  { %v5809_v40 = vpop.f32.mrf.mxu2  ;;  %v9337_v0 = vld [vmem:[%s15450_s6 + $0x70] sm:$0xf] }
 0x4e7   :  { %v10588_v40 = vld [vmem:[%s15450_s6 + $0x74] sm:$0xf0] }
 0x4e8   :  { %v5837_v20 = vpop.f32.mrf.mxu1 }
 0x4ea   :  { %5870 = vmatmul.bf16.vlgmr.msra.gmra.mxu3 %v12969_v47  ;;  %v10594_v47 = vld [vmem:[%s15450_s6 + $0xa4] sm:$0xf0] }
 0x4eb   :  { %v9362_v1 = vor.u32 %v10594_v47, %v9361_v29  ;;  %v10586_v47 = vld [vmem:[%s15450_s6 + $0x64] sm:$0xf0] }
 0x4ed   :  { %v5667_v32 = vpop.f32.mrf.mxu3  ;;  %6212 = vmatpush.bf16.msrb.mxu0 %v9362_v1  ;;  %v10585_v1 = vld [vmem:[%s15450_s6 + $0x64] sm:$0xf] }
 0x4ee   :  { %v5668_v13 = vadd.f32 %v5667_v32, %v5651_v27  ;;  %v13745_v53 = vpop.f32.mrf.mxu2 }
 0x4f0   :  { %v13747_v7 = vpop.f32.mrf.mxu1  ;;  %v5685_v38 = vadd.f32 %v13595_v52, %v5668_v13  ;;  %v9353_v52 = vld [vmem:[%s15450_s6 + $0x90] sm:$0xf]  ;;  %v13807_v13 = vld [vmem:[%s15379_s9] sm:$0x3] }
 0x4f5   :  { %v5669_v43 = vpop.f32.mrf.mxu3 }
 0x4f6   :  { %v13749_v55 = vpop.f32.mrf.mxu2  ;;  %v5670_v59 = vadd.f32 %v5669_v43, %v5653_v8  ;;  %v10597_v8 = vld [vmem:[%s15450_s6 + $0xc4] sm:$0xf] }
 0x4f8   :  { %v5842_v51 = vpop.f32.mrf.mxu1  ;;  %v5687_v2 = vadd.f32 %v13616_v61, %v5670_v59 }
 0x4f9   :  { %v9345_v51 = vld [vmem:[%s15450_s6 + $0x80] sm:$0xf] }
 0x4fa   :  { %5875 = vmatmul.bf16.gmra.mxu3 %v13130_v36  ;;  %v5702_v36 = vadd.f32 %v13606_v34, %v5685_v38  ;;  %v10592_v34 = vld [vmem:[%s15450_s6 + $0x94] sm:$0xf0] }
 0x4fb   :  { %v9354_v23 = vor.u32 %v10592_v34, %v9353_v52 }
 0x4fd   :  { %v5672_v63 = vpop.f32.mrf.mxu3  ;;  %6213 = vmatpush.bf16.msrb.mxu0 %v9354_v23  ;;  %v10599_v23 = vld [vmem:[%s15450_s6 + $0xd4] sm:$0xf] }
 0x4fe   :  { %v5859_v28 = vpop.f32.mrf.mxu2  ;;  %v10590_v63 = vld [vmem:[%s15450_s6 + $0x84] sm:$0xf0] }
 0x4ff   :  { %v9329_v28 = vld [vmem:[%s15450_s6 + $0x60] sm:$0xf]  ;;  %v9346_v29 = vor.u32 %v10590_v63, %v9345_v51 }
 0x500   :  { %v5843_v11 = vpop.f32.mrf.mxu1  ;;  %v9297_v51 = vld [vmem:[%s15450_s6 + $0x20] sm:$0xf] }
 0x501   :  { %6214 = vmatpush.bf16.msrb.mxu0 %v9346_v29 }
 0x505   :  { %v5673_v33 = vpop.f32.mrf.mxu3 }
 0x506   :  { %v5860_v21 = vpop.f32.mrf.mxu2  ;;  %v9331_v33 = vld [vmem:[%s15450_s6 + $0x68] sm:$0xf0] }
 0x507   :  { %v9334_v38 = vor.u32 %v10585_v1, %v9331_v33  ;;  %v10593_v1 = vld [vmem:[%s15450_s6 + $0xa4] sm:$0xf]  ;;  %v9363_v33 = vld [vmem:[%s15450_s6 + $0xa8] sm:$0xf0] }
 0x508   :  { %v13759_v45 = vpop.f32.mrf.mxu1 }
 0x50d   :  { %v5718_v35 = vpop.f32.mrf.mxu3 }
 0x50e   :  { %v5719_v48 = vadd.f32 %v5718_v35, %v5702_v36  ;;  %v13762_v37 = vpop.f32.mrf.mxu2  ;;  %v10601_v36 = vld [vmem:[%s15450_s6 + $0xe4] sm:$0xf]  ;;  %v9395_v35 = vld [vmem:[%s15450_s6 + $0xe8] sm:$0xf0] }
 0x510   :  { %v13764_v39 = vpop.f32.mrf.mxu1  ;;  %v5736_v32 = vadd.f32 %v13665_v16, %v5719_v48  ;;  %v5704_v16 = vadd.f32 %v13636_v5, %v5687_v2  ;;  %v9330_v5 = vor.u32 %v10586_v47, %v9329_v28  ;;  %v9321_v48 = vld [vmem:[%s15450_s6 + $0x50] sm:$0xf]  ;;  %v10577_v28 = vld [vmem:[%s15450_s6 + $0x24] sm:$0xf] }
 0x515   :  { %v13766_v4 = vpop.f32.mrf.mxu3 }
 0x516   :  { %v13768_v26 = vpop.f32.mrf.mxu2  ;;  %v5721_v34 = vadd.f32 %v13766_v4, %v5704_v16  ;;  %v9299_v16 = vld [vmem:[%s15450_s6 + $0x28] sm:$0xf0] }
 0x518   :  { %v5893_v15 = vpop.f32.mrf.mxu1 }
 0x51d   :  { %v5723_v60 = vpop.f32.mrf.mxu3 }
 0x51e   :  { %v5910_v30 = vpop.f32.mrf.mxu2  ;;  %v9398_v60 = vor.u32 %v10601_v36, %v9395_v35 }
 0x51f   :  { %v10583_v30 = vld [vmem:[%s15450_s6 + $0x54] sm:$0xf] }
 0x520   :  { %v5894_v62 = vpop.f32.mrf.mxu1 }
 0x521   :  { %v9323_v62 = vld [vmem:[%s15450_s6 + $0x58] sm:$0xf0] }
 0x522   :  { %v9326_v4 = vor.u32 %v10583_v30, %v9323_v62  ;;  %v9366_v30 = vor.u32 %v10593_v1, %v9363_v33  ;;  %v10576_v62 = vld [vmem:[%s15450_s6 + $0x14] sm:$0xf0]  ;;  %v9601_v1 = vld [vmem:[%s15380_s13 + $0x180] sm:$0xf]  ;;  %v10655_v33 = vld [vmem:[%s15380_s13 + $0x18c] sm:$0xf0] }
 0x525   :  { %v5724_v42 = vpop.f32.mrf.mxu3 }
 0x526   :  { %v5911_v58 = vpop.f32.mrf.mxu2  ;;  %v5753_v42 = vadd.f32 %v13681_v54, %v5736_v32 }
 0x52d   :  { %v5769_v25 = vpop.f32.mrf.mxu3 }
 0x52e   :  { %v5787_v22 = vadd.f32 %v13732_v19, %v5769_v25  ;;  %v13791_v19 = vld [vmem:[%s15451_s28] sm:$0x3]  ;;  %v9387_v25 = vld [vmem:[%s15450_s6 + $0xd8] sm:$0xf0] }
 0x52f   :  { %v5915_v52 = vperm.slane %v13791_v19, 0 }
 0x530   :  { %v5804_v49 = vadd.f32 %v5803_v3, %v5787_v22  ;;  %v9338_v3 = vor.u32 %v10588_v40, %v9337_v0  ;;  %v10582_v22 = vld [vmem:[%s15450_s6 + $0x44] sm:$0xf0] }
 0x531   :  { %v5919_v59 = vmul.f32 %v5915_v52, %v5753_v42  ;;  %v9291_v42 = vld [vmem:[%s15450_s6 + $0x18] sm:$0xf0] }
 0x532   :  { %6194 = vmatpush.bf16.msrb.mxu3 %v9338_v3  ;;  %v9307_v3 = vld [vmem:[%s15450_s6 + $0x38] sm:$0xf0] }
 0x535   :  { %v5771_v18 = vpop.f32.mrf.mxu3 }
 0x536   :  { %v5789_v46 = vadd.f32 %v5788_v57, %v5771_v18  ;;  %v9339_v57 = vld [vmem:[%s15450_s6 + $0x78] sm:$0xf0]  ;;  %v5925_v18 = vperm.slane %v13807_v13, 0  ;;  %6195 = vmatpush.bf16.msrb.mxu3 %v9330_v5  ;;  %v9649_v5 = vld [vmem:[%s15380_s13 + $0x1e0] sm:$0xf] }
 0x538   :  { %v5806_v61 = vadd.f32 %v13741_v56, %v5789_v46  ;;  %v9342_v56 = vor.u32 %v10587_v41, %v9339_v57  ;;  %v5929_v57 = vadd.f32 %v5925_v18, %v5919_v59  ;;  %v10574_v59 = vld [vmem:[%s15450_s6 + $0x4] sm:$0xf0] }
 0x53a   :  { %6220 = vmatpush.bf16.msrb.mxu1 %v9342_v56  ;;  %v10595_v56 = vld [vmem:[%s15450_s6 + $0xb4] sm:$0xf] }
 0x53d   :  { %v5774_v6 = vpop.f32.mrf.mxu3 }
 0x53e   :  { %6221 = vmatpush.bf16.msrb.mxu1 %v9334_v38  ;;  %v5933_v38 = vmax.f32 %v5929_v57, 0.0 }
 0x542   :  { %6222 = vmatpush.bf16.msrb.mxu1 %v9326_v4 }
 0x545   :  { %v5775_v10 = vpop.f32.mrf.mxu3 }
 0x546   :  { %v5916_v10 = vperm.slane %v13791_v19, 1  ;;  %v10573_v19 = vld [vmem:[%s15450_s6 + $0x4] sm:$0xf] }
 0x54d   :  { %v5820_v12 = vpop.f32.mrf.mxu3 }
 0x54e   :  { %v5821_v27 = vadd.f32 %v5820_v12, %v5804_v49  ;;  %v9379_v49 = vld [vmem:[%s15450_s6 + $0xc8] sm:$0xf0] }
 0x54f   :  { %v9382_v41 = vor.u32 %v10597_v8, %v9379_v49  ;;  %v9281_v49 = vld [vmem:[%s15450_s6] sm:$0xf] }
 0x550   :  { %v5838_v44 = vadd.f32 %v5837_v20, %v5821_v27  ;;  %v9403_v20 = vld [vmem:[%s15450_s6 + $0xf8] sm:$0xf0]  ;;  %v5738_v27 = vadd.f32 %v13683_v31, %v5721_v34  ;;  %v10580_v31 = vld [vmem:[%s15450_s6 + $0x34] sm:$0xf0] }
 0x551   :  { %v9406_v43 = vor.u32 %v10603_v24, %v9403_v20 }
 0x552   :  { %v5855_v21 = vadd.f32 %v13745_v53, %v5838_v44  ;;  %v10584_v53 = vld [vmem:[%s15450_s6 + $0x54] sm:$0xf0]  ;;  %v5755_v24 = vadd.f32 %v13699_v9, %v5738_v27  ;;  %v10578_v9 = vld [vmem:[%s15450_s6 + $0x24] sm:$0xf0] }
 0x553   :  { %6233 = vmatpush.bf16.msrb.mxu2 %v9406_v43  ;;  %v9322_v54 = vor.u32 %v10584_v53, %v9321_v48  ;;  %v9371_v43 = vld [vmem:[%s15450_s6 + $0xb8] sm:$0xf0]  ;;  %v9289_v48 = vld [vmem:[%s15450_s6 + $0x10] sm:$0xf]  ;;  %v9302_v53 = vor.u32 %v10577_v28, %v9299_v16 }
 0x554   :  { %v5921_v36 = vmul.f32 %v5915_v52, %v5755_v24 }
 0x555   :  { %v5822_v17 = vpop.f32.mrf.mxu3  ;;  %6196 = vmatpush.bf16.msrb.mxu3 %v9322_v54  ;;  %v9355_v54 = vld [vmem:[%s15450_s6 + $0x98] sm:$0xf0] }
 0x556   :  { %v5823_v11 = vadd.f32 %v5822_v17, %v5806_v61  ;;  %v9390_v17 = vor.u32 %v10599_v23, %v9387_v25  ;;  %v9305_v61 = vld [vmem:[%s15450_s6 + $0x30] sm:$0xf]  ;;  %v5931_v8 = vadd.f32 %v5925_v18, %v5921_v36 }
 0x557   :  { %6234 = vmatpush.bf16.msrb.mxu2 %v9398_v60  ;;  %v9306_v63 = vor.u32 %v10580_v31, %v9305_v61  ;;  %v9298_v60 = vor.u32 %v10578_v9, %v9297_v51  ;;  %v10635_v61 = vld [vmem:[%s15380_s13 + $0xec] sm:$0xf0]  ;;  %v9523_v31 = vld [vmem:[%s15380_s13 + $0xf0] sm:$0xf0] }
 0x558   :  { %v5840_v6 = vadd.f32 %v13747_v7, %v5823_v11  ;;  %v10581_v7 = vld [vmem:[%s15450_s6 + $0x44] sm:$0xf] }
 0x55a   :  { %v5857_v2 = vadd.f32 %v13749_v55, %v5840_v6  ;;  %v10579_v55 = vld [vmem:[%s15450_s6 + $0x34] sm:$0xf] }
 0x55b   :  { %6235 = vmatpush.bf16.msrb.mxu2 %v9390_v17  ;;  %v9310_v47 = vor.u32 %v10579_v55, %v9307_v3  ;;  %v10591_v6 = vld [vmem:[%s15450_s6 + $0x94] sm:$0xf]  ;;  %v10659_v55 = vld [vmem:[%s15380_s13 + $0x1ac] sm:$0xf0] }
 0x55c   :  { %v9358_v57 = vor.u32 %v10591_v6, %v9355_v54  ;;  %v9489_v54 = vld [vmem:[%s15380_s13 + $0xa0] sm:$0xf] }
 0x55d   :  { %v5825_v14 = vpop.f32.mrf.mxu3 }
 0x55e   :  { %v9313_v14 = vld [vmem:[%s15450_s6 + $0x40] sm:$0xf] }
 0x55f   :  { %v9314_v44 = vor.u32 %v10582_v22, %v9313_v14  ;;  %6236 = vmatpush.bf16.msrb.mxu2 %v9382_v41  ;;  %v9521_v41 = vld [vmem:[%s15380_s13 + $0xe0] sm:$0xf] }
 0x560   :  { %v9522_v16 = vor.u32 %v10635_v61, %v9521_v41  ;;  %v9473_v61 = vld [vmem:[%s15380_s13 + $0x80] sm:$0xf] }
 0x561   :  { %6197 = vmatpush.bf16.msrb.mxu3 %v9314_v44  ;;  %v9290_v44 = vor.u32 %v10576_v62, %v9289_v48  ;;  %v10629_v48 = vld [vmem:[%s15380_s13 + $0xc4] sm:$0xf] }
 0x565   :  { %v5826_v50 = vpop.f32.mrf.mxu3  ;;  %6198 = vmatpush.bf16.msrb.mxu3 %v9306_v63  ;;  %v9282_v63 = vor.u32 %v10574_v59, %v9281_v49  ;;  %v10657_v49 = vld [vmem:[%s15380_s13 + $0x1a4] sm:$0xf]  ;;  %v9619_v59 = vld [vmem:[%s15380_s13 + $0x1b0] sm:$0xf0] }
 0x566   :  { %v5926_v50 = vperm.slane %v13807_v13, 1  ;;  %v10633_v13 = vld [vmem:[%s15380_s13 + $0xe4] sm:$0xf]  ;;  %v9622_v41 = vor.u32 %v10657_v49, %v9619_v59  ;;  %v9409_v49 = vld [vmem:[%s15380_s13] sm:$0xf] }
 0x567   :  { %v10607_v59 = vld [vmem:[%s15380_s13 + $0xc] sm:$0xf0] }
 0x569   :  { %6199 = vmatpush.bf16.msrb.mxu3 %v9298_v60 }
 0x56d   :  { %v5871_v15 = vpop.f32.mrf.mxu3  ;;  %6200 = vmatpush.bf16.msrb.mxu3 %v9290_v44 }
 0x56e   :  { %v5872_v58 = vadd.f32 %v5871_v15, %v5855_v21  ;;  %v9374_v21 = vor.u32 %v10595_v56, %v9371_v43  ;;  %v10667_v15 = vld [vmem:[%s15380_s13 + $0x1ec] sm:$0xf0]  ;;  %v5935_v43 = vmax.f32 %v5931_v8, 0.0  ;;  %v9491_v8 = vld [vmem:[%s15380_s13 + $0xb0] sm:$0xf0] }
 0x56f   :  { %v9650_v52 = vor.u32 %v10667_v15, %v9649_v5  ;;  %v9507_v15 = vld [vmem:[%s15380_s13 + $0xd0] sm:$0xf0] }
 0x570   :  { %v5889_v12 = vadd.f32 %v13759_v45, %v5872_v58  ;;  %v9315_v45 = vld [vmem:[%s15450_s6 + $0x48] sm:$0xf0]  ;;  %6237 = vmatpush.bf16.msrb.mxu2 %v9374_v21 }
 0x571   :  { %v9318_v40 = vor.u32 %v10581_v7, %v9315_v45  ;;  %6663 = vmatpush.bf16.msra.mxu0 %v9650_v52  ;;  %v10663_v45 = vld [vmem:[%s15380_s13 + $0x1cc] sm:$0xf0]  ;;  %6201 = vmatpush.bf16.msrb.mxu3 %v9282_v63  ;;  %v9602_v52 = vor.u32 %v10655_v33, %v9601_v1  ;;  %v10617_v33 = vld [vmem:[%s15380_s13 + $0x64] sm:$0xf] }
 0x572   :  { %v5906_v46 = vadd.f32 %v13762_v37, %v5889_v12  ;;  %v9633_v12 = vld [vmem:[%s15380_s13 + $0x1c0] sm:$0xf] }
 0x573   :  { %6223 = vmatpush.bf16.msrb.mxu1 %v9318_v40  ;;  %v9634_v27 = vor.u32 %v10663_v45, %v9633_v12  ;;  %v9347_v40 = vld [vmem:[%s15450_s6 + $0x88] sm:$0xf0] }
 0x574   :  { %v5920_v0 = vmul.f32 %v5916_v10, %v5906_v46  ;;  %6238 = vmatpush.bf16.msrb.mxu2 %v9366_v30 }
 0x575   :  { %v5873_v37 = vpop.f32.mrf.mxu3  ;;  %6664 = vmatpush.bf16.msra.mxu0 %v9634_v27  ;;  %6650 = vmatpush.bf16.msra.mxu3 %v9522_v16  ;;  %v10647_v27 = vld [vmem:[%s15380_s13 + $0x14c] sm:$0xf0]  ;;  %v9457_v16 = vld [vmem:[%s15380_s13 + $0x60] sm:$0xf] }
 0x576   :  { %v5930_v20 = vadd.f32 %v5926_v50, %v5920_v0  ;;  %v5874_v32 = vadd.f32 %v5873_v37, %v5857_v2  ;;  %v10589_v0 = vld [vmem:[%s15450_s6 + $0x84] sm:$0xf]  ;;  %v9617_v37 = vld [vmem:[%s15380_s13 + $0x1a0] sm:$0xf] }
 0x577   :  { %6224 = vmatpush.bf16.msrb.mxu1 %v9310_v47  ;;  %v9618_v56 = vor.u32 %v10659_v55, %v9617_v37  ;;  %v9350_v28 = vor.u32 %v10589_v0, %v9347_v40  ;;  %v9505_v47 = vld [vmem:[%s15380_s13 + $0xc0] sm:$0xf]  ;;  %v9475_v55 = vld [vmem:[%s15380_s13 + $0x90] sm:$0xf0] }
 0x578   :  { %v5934_v11 = vmax.f32 %v5930_v20, 0.0  ;;  %v5891_v29 = vadd.f32 %v13764_v39, %v5874_v32  ;;  %v10665_v20 = vld [vmem:[%s15380_s13 + $0x1e4] sm:$0xf]  ;;  %v9651_v32 = vld [vmem:[%s15380_s13 + $0x1f0] sm:$0xf0]  ;;  %6239 = vmatpush.bf16.msrb.mxu2 %v9358_v57 }
 0x579   :  { %6665 = vmatpush.bf16.msra.mxu0 %v9618_v56  ;;  %v9603_v57 = vld [vmem:[%s15380_s13 + $0x190] sm:$0xf0] }
 0x57a   :  { %v5941_v35 = vrot.slane %v5934_v11, 7  ;;  %v5908_v39 = vadd.f32 %v13768_v26, %v5891_v29  ;;  %v10575_v26 = vld [vmem:[%s15450_s6 + $0x14] sm:$0xf]  ;;  %v9526_v11 = vor.u32 %v10633_v13, %v9523_v31  ;;  %v9654_v29 = vor.u32 %v10665_v20, %v9651_v32  ;;  %v10623_v13 = vld [vmem:[%s15380_s13 + $0x8c] sm:$0xf0] }
 0x57b   :  { %6225 = vmatpush.bf16.msrb.mxu1 %v9302_v53  ;;  %v9553_v20 = vld [vmem:[%s15380_s13 + $0x120] sm:$0xf]  ;;  %v10643_v32 = vld [vmem:[%s15380_s13 + $0x12c] sm:$0xf0] }
 0x57c   :  { %v5943_v34 = vsel %vm15452_vm0, %v5933_v38, %v5941_v35  ;;  %v5944_v58 = vsel %vm1806_vm4, %v5933_v38, %v5941_v35  ;;  %v5946_v23 = vsel %vm1810_vm6, %v5933_v38, %v5941_v35  ;;  %v5948_v25 = vsel %vm1812_vm7, %v5933_v38, %v5941_v35  ;;  %6240 = vmatpush.bf16.msrb.mxu2 %v9350_v28 }
 0x57d   :  { %v5945_v4 = vrot.slane %v5944_v58, 1  ;;  %v5947_v17 = vrot.slane %v5946_v23, 3  ;;  %v5949_v14 = vrot.slane %v5948_v25, 4  ;;  %v5922_v22 = vmul.f32 %v5916_v10, %v5908_v39  ;;  %v5876_v7 = vpop.f32.mrf.mxu3  ;;  %v9283_v10 = vld [vmem:[%s15450_s6 + $0x8] sm:$0xf0]  ;;  %6666 = vmatpush.bf16.msra.mxu0 %v9602_v52 }
 0x57e   :  { %v9286_v9 = vor.u32 %v10573_v19, %v9283_v10  ;;  %v10631_v39 = vld [vmem:[%s15380_s13 + $0xcc] sm:$0xf0]  ;;  %v9569_v10 = vld [vmem:[%s15380_s13 + $0x140] sm:$0xf]  ;;  %v9443_v52 = vld [vmem:[%s15380_s13 + $0x50] sm:$0xf0] }
 0x57f   :  { %v5966_v46 = vmax.f32 %v5943_v34, %v5947_v17  ;;  %v5967_v2 = vmax.f32 %v5945_v4, %v5949_v14  ;;  %v5932_v18 = vadd.f32 %v5926_v50, %v5922_v22  ;;  %v9294_v50 = vor.u32 %v10575_v26, %v9291_v42  ;;  %v10661_v26 = vld [vmem:[%s15380_s13 + $0x1c4] sm:$0xf]  ;;  %v9635_v42 = vld [vmem:[%s15380_s13 + $0x1d0] sm:$0xf0]  ;;  %v9585_v34 = vld [vmem:[%s15380_s13 + $0x160] sm:$0xf] }
 0x580   :  { %v10651_v58 = vld [vmem:[%s15380_s13 + $0x16c] sm:$0xf0]  ;;  %v9506_v6 = vor.u32 %v10631_v39, %v9505_v47  ;;  %v9510_v17 = vor.u32 %v10629_v48, %v9507_v15  ;;  %v10625_v22 = vld [vmem:[%s15380_s13 + $0xa4] sm:$0xf]  ;;  %6689 = vmatpush.bf16.msra.mxu2 %v9654_v29  ;;  %v9638_v45 = vor.u32 %v10661_v26, %v9635_v42 }
 0x581   :  { %v5936_v3 = vmax.f32 %v5932_v18, 0.0  ;;  %v14003_v24 = vmax.f32 %v5966_v46, %v5967_v2  ;;  %6226 = vmatpush.bf16.msrb.mxu1 %v9294_v50  ;;  %v10627_v14 = vld [vmem:[%s15380_s13 + $0xac] sm:$0xf0]  ;;  %v9586_v19 = vor.u32 %v10651_v58, %v9585_v34  ;;  %v9494_v40 = vor.u32 %v10625_v22, %v9491_v8  ;;  %v10621_v50 = vld [vmem:[%s15380_s13 + $0x84] sm:$0xf] }
 0x582   :  { %6651 = vmatpush.bf16.msra.mxu3 %v9506_v6  ;;  %v9490_v18 = vor.u32 %v10627_v14, %v9489_v54  ;;  %v10615_v26 = vld [vmem:[%s15380_s13 + $0x4c] sm:$0xf0]  ;;  %v10613_v42 = vld [vmem:[%s15380_s13 + $0x44] sm:$0xf]  ;;  %v9571_v58 = vld [vmem:[%s15380_s13 + $0x150] sm:$0xf0] }
 0x583   :  { %v5942_v51 = vrot.slane %v5936_v3, 7  ;;  %v5974_v12 = vperm.slane %v14003_v24, 0  ;;  %v5975_v4 = vperm.slane %v14003_v24, 1  ;;  %v10653_v3 = vld [vmem:[%s15380_s13 + $0x184] sm:$0xf]  ;;  %6667 = vmatpush.bf16.msra.mxu0 %v9586_v19  ;;  %v9570_v24 = vor.u32 %v10647_v27, %v9569_v10 }
 0x584   :  { %6690 = vmatpush.bf16.msra.mxu2 %v9638_v45  ;;  %v9606_v28 = vor.u32 %v10653_v3, %v9603_v57  ;;  %v10645_v34 = vld [vmem:[%s15380_s13 + $0x144] sm:$0xf]  ;;  %v9425_v6 = vld [vmem:[%s15380_s13 + $0x20] sm:$0xf]  ;;  %v9555_v22 = vld [vmem:[%s15380_s13 + $0x130] sm:$0xf0]  ;;  %v9410_v10 = vor.u32 %v10607_v59, %v9409_v49 }
 0x585   :  { %v5950_v21 = vsel %vm1806_vm4, %v5935_v43, %v5942_v51  ;;  %v5952_v5 = vsel %vm1808_vm5, %v5935_v43, %v5942_v51  ;;  %v5954_v38 = vsel %vm1812_vm7, %v5935_v43, %v5942_v51  ;;  %v5956_v36 = vsel %vm1814_vm8, %v5935_v43, %v5942_v51  ;;  %v5877_v35 = vpop.f32.mrf.mxu3  ;;  %6227 = vmatpush.bf16.msrb.mxu1 %v9286_v9  ;;  %v10641_v14 = vld [vmem:[%s15380_s13 + $0x124] sm:$0xf]  ;;  %v9537_v19 = vld [vmem:[%s15380_s13 + $0x100] sm:$0xf]  ;;  %v10639_v27 = vld [vmem:[%s15380_s13 + $0x10c] sm:$0xf0] }
 0x586   :  { %v5951_v60 = vrot.slane %v5950_v21, 1  ;;  %v5953_v53 = vrot.slane %v5952_v5, 2  ;;  %v5955_v30 = vrot.slane %v5954_v38, 4  ;;  %v5957_v62 = vrot.slane %v5956_v36, 5  ;;  %6652 = vmatpush.bf16.msra.mxu3 %v9490_v18  ;;  %v9459_v21 = vld [vmem:[%s15380_s13 + $0x70] sm:$0xf0] }
 0x587   :  { %v5982_v44 = vpack.c.bf16 %v5974_v12, %v5974_v12  ;;  %v5983_v0 = vpack.c.bf16 %v5975_v4, %v5975_v4  ;;  %v9474_v51 = vor.u32 %v10623_v13, %v9473_v61  ;;  %v9478_v9 = vor.u32 %v10621_v50, %v9475_v55  ;;  %6668 = vmatpush.bf16.msra.mxu0 %v9570_v24  ;;  %v10649_v38 = vld [vmem:[%s15380_s13 + $0x164] sm:$0xf]  ;;  %v9587_v36 = vld [vmem:[%s15380_s13 + $0x170] sm:$0xf0]  ;;  %v10611_v12 = vld [vmem:[%s15380_s13 + $0x2c] sm:$0xf0] }
 0x588   :  { %v5968_v23 = vmax.f32 %v5951_v60, %v5955_v30  ;;  %v5969_v25 = vmax.f32 %v5953_v53, %v5957_v62  ;;  %6691 = vmatpush.bf16.msra.mxu2 %v9622_v41  ;;  %v9554_v5 = vor.u32 %v10643_v32, %v9553_v20  ;;  %v9462_v53 = vor.u32 %v10617_v33, %v9459_v21  ;;  %v9441_v30 = vld [vmem:[%s15380_s13 + $0x40] sm:$0xf]  ;;  %v10609_v4 = vld [vmem:[%s15380_s13 + $0x24] sm:$0xf]  ;;  %v9529_v41 = vld [vmem:[%s15380_s13 + $0xe8] sm:$0xf] }
 0x589   :  { %6676 = vmatpush.bf16.msra.mxu1 %v9526_v11  ;;  %v6022_v63 = vunpack.c.l.b16 %v5982_v44  ;;  %v10619_v11 = vld [vmem:[%s15380_s13 + $0x6c] sm:$0xf0]  ;;  %v6023_v47 = vunpack.c.l.b16 %v5983_v0  ;;  %v9590_v62 = vor.u32 %v10649_v38, %v9587_v36  ;;  %v9574_v54 = vor.u32 %v10645_v34, %v9571_v58  ;;  %v10637_v0 = vld [vmem:[%s15380_s13 + $0x104] sm:$0xf]  ;;  %v10636_v13 = vld [vmem:[%s15380_s13 + $0xf4] sm:$0xf0] }
 0x58a   :  { %v5971_v7 = vmax.f32 %v5968_v23, %v5969_v25  ;;  %6653 = vmatpush.bf16.msra.mxu3 %v9474_v51  ;;  %v9458_v60 = vor.u32 %v10619_v11, %v9457_v16  ;;  %v9442_v23 = vor.u32 %v10615_v26, %v9441_v30  ;;  %v9446_v25 = vor.u32 %v10613_v42, %v9443_v52  ;;  %v9657_v50 = vld [vmem:[%s15380_s13 + $0x1e8] sm:$0xf]  ;;  %v10634_v3 = vld [vmem:[%s15380_s13 + $0xec] sm:$0xf]  ;;  %v9531_v57 = vld [vmem:[%s15380_s13 + $0xf8] sm:$0xf0] }
 0x58b   :  { %6669 = vmatpush.bf16.msra.mxu0 %v9554_v5  ;;  %v9558_v8 = vor.u32 %v10641_v14, %v9555_v22  ;;  %v9538_v18 = vor.u32 %v10639_v27, %v9537_v19  ;;  %v10666_v24 = vld [vmem:[%s15380_s13 + $0x1ec] sm:$0xf]  ;;  %v9534_v20 = vor.u32 %v10634_v3, %v9531_v57  ;;  %v9659_v32 = vld [vmem:[%s15380_s13 + $0x1f8] sm:$0xf0]  ;;  %v10632_v51 = vld [vmem:[%s15380_s13 + $0xd4] sm:$0xf0] }
 0x58c   :  { %v5976_v46 = vperm.slane %v5971_v7, 0  ;;  %v5977_v2 = vperm.slane %v5971_v7, 1  ;;  %6692 = vmatpush.bf16.msra.mxu2 %v9606_v28  ;;  %v9426_v7 = vor.u32 %v10611_v12, %v9425_v6  ;;  %v10664_v28 = vld [vmem:[%s15380_s13 + $0x1d4] sm:$0xf0]  ;;  %v10630_v16 = vld [vmem:[%s15380_s13 + $0xcc] sm:$0xf] }
 0x58d   :  { %6677 = vmatpush.bf16.msra.mxu1 %v9510_v17  ;;  %v9427_v17 = vld [vmem:[%s15380_s13 + $0x30] sm:$0xf0]  ;;  %v9515_v11 = vld [vmem:[%s15380_s13 + $0xd8] sm:$0xf0]  ;;  %v9497_v21 = vld [vmem:[%s15380_s13 + $0xa8] sm:$0xf] }
 0x58e   :  { %v5984_v31 = vpack.c.bf16 %v5976_v46, %v5976_v46  ;;  %v5985_v37 = vpack.c.bf16 %v5977_v2, %v5977_v2  ;;  %6654 = vmatpush.bf16.msra.mxu3 %v9458_v60  ;;  %v9430_v45 = vor.u32 %v10609_v4, %v9427_v17  ;;  %v10605_v46 = vld [vmem:[%s15380_s13 + $0x4] sm:$0xf]  ;;  %v9411_v2 = vld [vmem:[%s15380_s13 + $0x10] sm:$0xf0]  ;;  %v9643_v33 = vld [vmem:[%s15380_s13 + $0x1d8] sm:$0xf0] }
 0x58f   :  { %v9414_v44 = vor.u32 %v10605_v46, %v9411_v2  ;;  %6670 = vmatpush.bf16.msra.mxu0 %v9538_v18  ;;  %v10628_v38 = vld [vmem:[%s15380_s13 + $0xb4] sm:$0xf0]  ;;  %v9625_v36 = vld [vmem:[%s15380_s13 + $0x1a8] sm:$0xf]  ;;  %v9499_v60 = vld [vmem:[%s15380_s13 + $0xb8] sm:$0xf0] }
 0x590   :  { %v6024_v56 = vunpack.c.l.b16 %v5984_v31  ;;  %v6025_v43 = vunpack.c.l.b16 %v5985_v37  ;;  %6693 = vmatpush.bf16.msra.mxu2 %v9590_v62  ;;  %v10668_v31 = vld [vmem:[%s15380_s13 + $0x1f4] sm:$0xf0]  ;;  %v9530_v37 = vor.u32 %v10636_v13, %v9529_v41  ;;  %v9627_v62 = vld [vmem:[%s15380_s13 + $0x1b8] sm:$0xf0]  ;;  %v9481_v26 = vld [vmem:[%s15380_s13 + $0x88] sm:$0xf] }
 0x591   :  { %6678 = vmatpush.bf16.msra.mxu1 %v9494_v40  ;;  %v9539_v40 = vld [vmem:[%s15380_s13 + $0x110] sm:$0xf0]  ;;  %v9658_v55 = vor.u32 %v10668_v31, %v9657_v50  ;;  %v10624_v42 = vld [vmem:[%s15380_s13 + $0x94] sm:$0xf0]  ;;  %v9609_v34 = vld [vmem:[%s15380_s13 + $0x188] sm:$0xf] }
 0x592   :  { %v6026_v29 = vrot.slane %v6024_v56, 7  ;;  %v6028_v1 = vrot.slane %v6025_v43, 7  ;;  %6655 = vmatpush.bf16.msra.mxu3 %v9442_v23  ;;  %v9542_v61 = vor.u32 %v10637_v0, %v9539_v40  ;;  %v9662_v56 = vor.u32 %v10666_v24, %v9659_v32  ;;  %v9513_v43 = vld [vmem:[%s15380_s13 + $0xc8] sm:$0xf]  ;;  %v10656_v58 = vld [vmem:[%s15380_s13 + $0x194] sm:$0xf0] }
 0x593   :  { %v10622_v23 = vld [vmem:[%s15380_s13 + $0x8c] sm:$0xf]  ;;  %v9483_v6 = vld [vmem:[%s15380_s13 + $0x98] sm:$0xf0]  ;;  %v9610_v4 = vor.u32 %v10656_v58, %v9609_v34  ;;  %v9465_v14 = vld [vmem:[%s15380_s13 + $0x68] sm:$0xf] }
 0x594   :  { %v6027_v35 = vsel %vm1806_vm4, %v6026_v29, %v6022_v63  ;;  %v6029_v39 = vsel %vm1806_vm4, %v6028_v1, %v6023_v47  ;;  %6694 = vmatpush.bf16.msra.mxu2 %v9574_v54  ;;  %v9641_v63 = vld [vmem:[%s15380_s13 + $0x1c8] sm:$0xf]  ;;  %v9518_v47 = vor.u32 %v10630_v16, %v9515_v11  ;;  %v10662_v1 = vld [vmem:[%s15380_s13 + $0x1cc] sm:$0xf]  ;;  %v9611_v12 = vld [vmem:[%s15380_s13 + $0x198] sm:$0xf0]  ;;  %v9486_v17 = vor.u32 %v10622_v23, %v9483_v6 }
 0x595   :  { %v6030_v48 = vpack.c.b16 %v6027_v35, %v6027_v35  ;;  %v6031_v15 = vpack.c.b16 %v6029_v39, %v6029_v39  ;;  %6679 = vmatpush.bf16.msra.mxu1 %v9478_v9  ;;  %v9514_v9 = vor.u32 %v10632_v51, %v9513_v43  ;;  %v9642_v29 = vor.u32 %v10664_v28, %v9641_v63  ;;  %v10660_v35 = vld [vmem:[%s15380_s13 + $0x1b4] sm:$0xf0]  ;;  %v10654_v54 = vld [vmem:[%s15380_s13 + $0x18c] sm:$0xf]  ;;  %v9467_v59 = vld [vmem:[%s15380_s13 + $0x78] sm:$0xf0] }
 0x596   :  { %6656 = vmatpush.bf16.msra.mxu3 %v9426_v7  ;;  %v9646_v5 = vor.u32 %v10662_v1, %v9643_v33  ;;  %v9498_v39 = vor.u32 %v10628_v38, %v9497_v21  ;;  %v10620_v22 = vld [vmem:[%s15380_s13 + $0x74] sm:$0xf0]  ;;  %v9593_v7 = vld [vmem:[%s15380_s13 + $0x168] sm:$0xf]  ;;  %v10618_v49 = vld [vmem:[%s15380_s13 + $0x6c] sm:$0xf] }
 0x597   :  { %6202 = vmatmul.bf16.vlgmr.msrb.gmra.mxu3 %v6030_v48  ;;  %6215 = vmatmul.bf16.vlgmr.msrb.gmra.mxu0 %v6031_v15  ;;  %v10650_v19 = vld [vmem:[%s15380_s13 + $0x16c] sm:$0xf]  ;;  %v9466_v27 = vor.u32 %v10620_v22, %v9465_v14  ;;  %v9470_v2 = vor.u32 %v10618_v49, %v9467_v59  ;;  %v9449_v18 = vld [vmem:[%s15380_s13 + $0x48] sm:$0xf]  ;;  %v10648_v41 = vld [vmem:[%s15380_s13 + $0x154] sm:$0xf0] }
 0x598   :  { %6228 = vmatmul.bf16.vlgmr.msrb.gmra.mxu1 %v6030_v48  ;;  %6241 = vmatmul.bf16.vlgmr.msrb.gmra.mxu2 %v6031_v15  ;;  %v9626_v48 = vor.u32 %v10660_v35, %v9625_v36  ;;  %v10626_v15 = vld [vmem:[%s15380_s13 + $0xac] sm:$0xf]  ;;  %v9577_v0 = vld [vmem:[%s15380_s13 + $0x148] sm:$0xf]  ;;  %v9451_v13 = vld [vmem:[%s15380_s13 + $0x58] sm:$0xf0] }
 0x599   :  { %6680 = vmatpush.bf16.msra.mxu1 %v9462_v53  ;;  %6695 = vmatpush.bf16.msra.mxu2 %v9558_v8  ;;  %v10658_v53 = vld [vmem:[%s15380_s13 + $0x1ac] sm:$0xf]  ;;  %v9502_v30 = vor.u32 %v10626_v15, %v9499_v60  ;;  %v10652_v8 = vld [vmem:[%s15380_s13 + $0x174] sm:$0xf0]  ;;  %v9579_v31 = vld [vmem:[%s15380_s13 + $0x158] sm:$0xf0]  ;;  %v9578_v57 = vor.u32 %v10648_v41, %v9577_v0 }
 0x59a   :  { %6657 = vmatpush.bf16.msra.mxu3 %v9410_v10  ;;  %6715 = vmatpush.bf16.msrb.mxu0 %v9658_v55  ;;  %v9630_v52 = vor.u32 %v10658_v53, %v9627_v62  ;;  %v9595_v10 = vld [vmem:[%s15380_s13 + $0x178] sm:$0xf0]  ;;  %v9594_v46 = vor.u32 %v10652_v8, %v9593_v7  ;;  %v10646_v50 = vld [vmem:[%s15380_s13 + $0x14c] sm:$0xf]  ;;  %v10612_v32 = vld [vmem:[%s15380_s13 + $0x34] sm:$0xf0] }
 0x59b   :  { %v9598_v40 = vor.u32 %v10650_v19, %v9595_v10  ;;  %v9582_v51 = vor.u32 %v10646_v50, %v9579_v31  ;;  %v10644_v63 = vld [vmem:[%s15380_s13 + $0x134] sm:$0xf0]  ;;  %v9435_v28 = vld [vmem:[%s15380_s13 + $0x38] sm:$0xf0]  ;;  %v10642_v16 = vld [vmem:[%s15380_s13 + $0x12c] sm:$0xf] }
 0x59c   :  { %v9563_v11 = vld [vmem:[%s15380_s13 + $0x138] sm:$0xf0]  ;;  %v10608_v38 = vld [vmem:[%s15380_s13 + $0x14] sm:$0xf0]  ;;  %v9545_v36 = vld [vmem:[%s15380_s13 + $0x108] sm:$0xf] }
 0x59d   :  { %6681 = vmatpush.bf16.msra.mxu1 %v9446_v25  ;;  %6696 = vmatpush.bf16.msra.mxu2 %v9542_v61  ;;  %v9482_v25 = vor.u32 %v10624_v42, %v9481_v26  ;;  %v10614_v61 = vld [vmem:[%s15380_s13 + $0x4c] sm:$0xf]  ;;  %v9566_v35 = vor.u32 %v10642_v16, %v9563_v11  ;;  %v9419_v15 = vld [vmem:[%s15380_s13 + $0x18] sm:$0xf0]  ;;  %v9777_v7 = vld [vmem:[%s15383_s16 + $0xe0] sm:$0xf] }
 0x59e   :  { %6702 = vmatpush.bf16.msrb.mxu3 %v9530_v37  ;;  %6716 = vmatpush.bf16.msrb.mxu0 %v9642_v29  ;;  %v6246_v37 = vld [vmem:[%s15381_s11] sm:$0x3]  ;;  %v9454_v24 = vor.u32 %v10614_v61, %v9451_v13  ;;  %v9547_v62 = vld [vmem:[%s15380_s13 + $0x118] sm:$0xf0]  ;;  %v10731_v59 = vld [vmem:[%s15383_s16 + $0x1ec] sm:$0xf0] }
 0x59f   :  { %v6248_v29 = vperm.slane %v6246_v37, 0  ;;  %v6249_v53 = vperm.slane %v6246_v37, 1  ;;  %v9905_v8 = vld [vmem:[%s15383_s16 + $0x1e0] sm:$0xf]  ;;  %v10763_v10 = vld [vmem:[%s15383_s16 + $0x2ec] sm:$0xf0] }
 0x5a0   :  { %v10033_v19 = vld [vmem:[%s15383_s16 + $0x2e0] sm:$0xf]  ;;  %v9906_v61 = vor.u32 %v10731_v59, %v9905_v8  ;;  %v10695_v50 = vld [vmem:[%s15383_s16 + $0xcc] sm:$0xf0] }
 0x5a1   :  { %6682 = vmatpush.bf16.msra.mxu1 %v9430_v45  ;;  %6741 = vmatpush.bf16.msrb.mxu2 %v9662_v56  ;;  %v9614_v45 = vor.u32 %v10654_v54, %v9611_v12  ;;  %v9561_v56 = vld [vmem:[%s15380_s13 + $0x128] sm:$0xf]  ;;  %v9761_v13 = vld [vmem:[%s15383_s16 + $0xc0] sm:$0xf]  ;;  %v10723_v16 = vld [vmem:[%s15383_s16 + $0x1ac] sm:$0xf0] }
 0x5a2   :  { %6703 = vmatpush.bf16.msrb.mxu3 %v9514_v9  ;;  %6717 = vmatpush.bf16.msrb.mxu0 %v9626_v48  ;;  %v10610_v9 = vld [vmem:[%s15380_s13 + $0x2c] sm:$0xf]  ;;  %v9562_v33 = vor.u32 %v10644_v63, %v9561_v56  ;;  %v9889_v37 = vld [vmem:[%s15383_s16 + $0x1c0] sm:$0xf]  ;;  %v10791_v56 = vld [vmem:[%s15383_s16 + $0x3cc] sm:$0xf0] }
 0x5a3   :  { %v9438_v21 = vor.u32 %v10610_v9, %v9435_v28  ;;  %v10606_v48 = vld [vmem:[%s15380_s13 + $0xc] sm:$0xf]  ;;  %v9745_v63 = vld [vmem:[%s15383_s16 + $0xa0] sm:$0xf]  ;;  %v10691_v9 = vld [vmem:[%s15383_s16 + $0xac] sm:$0xf0] }
 0x5a4   :  { %v9422_v54 = vor.u32 %v10606_v48, %v9419_v15  ;;  %v9873_v28 = vld [vmem:[%s15383_s16 + $0x1a0] sm:$0xf]  ;;  %v10719_v48 = vld [vmem:[%s15383_s16 + $0x18c] sm:$0xf0] }
 0x5a5   :  { %6683 = vmatpush.bf16.msra.mxu1 %v9414_v44  ;;  %6742 = vmatpush.bf16.msrb.mxu2 %v9646_v5  ;;  %v10616_v44 = vld [vmem:[%s15380_s13 + $0x54] sm:$0xf0]  ;;  %v9417_v5 = vld [vmem:[%s15380_s13 + $0x8] sm:$0xf]  ;;  %v10679_v8 = vld [vmem:[%s15383_s16 + $0x4c] sm:$0xf0] }
 0x5a6   :  { %6704 = vmatpush.bf16.msrb.mxu3 %v9498_v39  ;;  %6718 = vmatpush.bf16.msrb.mxu0 %v9610_v4  ;;  %v9450_v55 = vor.u32 %v10616_v44, %v9449_v18  ;;  %v10640_v39 = vld [vmem:[%s15380_s13 + $0x114] sm:$0xf0]  ;;  %v9418_v34 = vor.u32 %v10608_v38, %v9417_v5  ;;  %v9746_v5 = vor.u32 %v10691_v9, %v9745_v63  ;;  %v10711_v59 = vld [vmem:[%s15383_s16 + $0x14c] sm:$0xf0]  ;;  %v10697_v63 = vld [vmem:[%s15383_s16 + $0xe4] sm:$0xf] }
 0x5a7   :  { %v9546_v6 = vor.u32 %v10640_v39, %v9545_v36  ;;  %v9874_v38 = vor.u32 %v10723_v16, %v9873_v28  ;;  %v9729_v36 = vld [vmem:[%s15383_s16 + $0x80] sm:$0xf]  ;;  %v9779_v16 = vld [vmem:[%s15383_s16 + $0xf0] sm:$0xf0] }
 0x5a8   :  { %v9857_v39 = vld [vmem:[%s15383_s16 + $0x180] sm:$0xf] }
 0x5a9   :  { %6728 = vmatpush.bf16.msrb.mxu1 %v9534_v20  ;;  %6743 = vmatpush.bf16.msrb.mxu2 %v9630_v52  ;;  %v9433_v20 = vld [vmem:[%s15380_s13 + $0x28] sm:$0xf] }
 0x5aa   :  { %6705 = vmatpush.bf16.msrb.mxu3 %v9482_v25  ;;  %6719 = vmatpush.bf16.msrb.mxu0 %v9594_v46  ;;  %v9434_v1 = vor.u32 %v10612_v32, %v9433_v20  ;;  %v10161_v46 = vld [vmem:[%s15383_s16 + $0x3e0] sm:$0xf]  ;;  %v10759_v20 = vld [vmem:[%s15383_s16 + $0x2cc] sm:$0xf0] }
 0x5ab   :  { %v10145_v32 = vld [vmem:[%s15383_s16 + $0x3c0] sm:$0xf] }
 0x5ad   :  { %6729 = vmatpush.bf16.msrb.mxu1 %v9518_v47  ;;  %6744 = vmatpush.bf16.msrb.mxu2 %v9614_v45  ;;  %v6254_v47 = vld [vmem:[%s15382_s12] sm:$0x3]  ;;  %v10699_v45 = vld [vmem:[%s15383_s16 + $0xec] sm:$0xf0] }
 0x5ae   :  { %6706 = vmatpush.bf16.msrb.mxu3 %v9466_v27  ;;  %6720 = vmatpush.bf16.msrb.mxu0 %v9578_v57  ;;  %v6256_v42 = vperm.slane %v6254_v47, 0  ;;  %v6257_v23 = vperm.slane %v6254_v47, 1  ;;  %v9778_v41 = vor.u32 %v10699_v45, %v9777_v7  ;;  %v10001_v47 = vld [vmem:[%s15383_s16 + $0x2a0] sm:$0xf] }
 0x5af   :  { %v9697_v45 = vld [vmem:[%s15383_s16 + $0x40] sm:$0xf] }
 0x5b1   :  { %6730 = vmatpush.bf16.msrb.mxu1 %v9502_v30  ;;  %6745 = vmatpush.bf16.msrb.mxu2 %v9598_v40  ;;  %v10638_v30 = vld [vmem:[%s15380_s13 + $0x10c] sm:$0xf] }
 0x5b2   :  { %6707 = vmatpush.bf16.msrb.mxu3 %v9450_v55  ;;  %6721 = vmatpush.bf16.msrb.mxu0 %v9562_v33  ;;  %v10727_v55 = vld [vmem:[%s15383_s16 + $0x1cc] sm:$0xf0]  ;;  %v10129_v33 = vld [vmem:[%s15383_s16 + $0x3a0] sm:$0xf] }
 0x5b5   :  { %6731 = vmatpush.bf16.msrb.mxu1 %v9486_v17  ;;  %6746 = vmatpush.bf16.msrb.mxu2 %v9582_v51  ;;  %v9550_v17 = vor.u32 %v10638_v30, %v9547_v62  ;;  %v9890_v51 = vor.u32 %v10727_v55, %v9889_v37  ;;  %v10751_v30 = vld [vmem:[%s15383_s16 + $0x28c] sm:$0xf0]  ;;  %v10113_v62 = vld [vmem:[%s15383_s16 + $0x380] sm:$0xf] }
 0x5b6   :  { %6708 = vmatpush.bf16.msrb.mxu3 %v9434_v1  ;;  %6722 = vmatpush.bf16.msrb.mxu0 %v9546_v6  ;;  %v10755_v1 = vld [vmem:[%s15383_s16 + $0x2ac] sm:$0xf0]  ;;  %v9937_v37 = vld [vmem:[%s15383_s16 + $0x220] sm:$0xf] }
 0x5b7   :  { %v10002_v15 = vor.u32 %v10755_v1, %v10001_v47  ;;  %v10739_v55 = vld [vmem:[%s15383_s16 + $0x22c] sm:$0xf0] }
 0x5b8   :  { %v9938_v9 = vor.u32 %v10739_v55, %v9937_v37  ;;  %v10789_v55 = vld [vmem:[%s15383_s16 + $0x3c4] sm:$0xf] }
 0x5b9   :  { %6732 = vmatpush.bf16.msrb.mxu1 %v9470_v2  ;;  %6747 = vmatpush.bf16.msrb.mxu2 %v9566_v35  ;;  %v10795_v2 = vld [vmem:[%s15383_s16 + $0x3ec] sm:$0xf0] }
 0x5ba   :  { %6709 = vmatpush.bf16.msrb.mxu3 %v9418_v34  ;;  %v10162_v57 = vor.u32 %v10795_v2, %v10161_v46  ;;  %v10687_v35 = vld [vmem:[%s15383_s16 + $0x8c] sm:$0xf0]  ;;  %v9713_v34 = vld [vmem:[%s15383_s16 + $0x60] sm:$0xf] }
 0x5bb   :  { %v10743_v46 = vld [vmem:[%s15383_s16 + $0x24c] sm:$0xf0]  ;;  %v10081_v2 = vld [vmem:[%s15383_s16 + $0x340] sm:$0xf] }
 0x5bd   :  { %6733 = vmatpush.bf16.msrb.mxu1 %v9454_v24  ;;  %6748 = vmatpush.bf16.msrb.mxu2 %v9550_v17  ;;  %v10017_v24 = vld [vmem:[%s15383_s16 + $0x2c0] sm:$0xf] }
 0x5be   :  { %v10018_v11 = vor.u32 %v10759_v20, %v10017_v24  ;;  %v10097_v17 = vld [vmem:[%s15383_s16 + $0x360] sm:$0xf] }
 0x5c1   :  { %6734 = vmatpush.bf16.msrb.mxu1 %v9438_v21  ;;  %v10787_v21 = vld [vmem:[%s15383_s16 + $0x3ac] sm:$0xf0] }
 0x5c5   :  { %6735 = vmatpush.bf16.msrb.mxu1 %v9422_v54 }
 0x614   :  { %v6216_v3 = vpop.f32.mrf.mxu0 }
 0x615   :  { %v6229_v43 = vpop.f32.mrf.mxu1 }
 0x61a   :  { %v6203_v60 = vpop.f32.mrf.mxu3 }
 0x61b   :  { %v6217_v26 = vadd.f32 %v6216_v3, %v6203_v60  ;;  %v6242_v52 = vpop.f32.mrf.mxu2  ;;  %v10034_v3 = vor.u32 %v10763_v10, %v10033_v19  ;;  %v10130_v60 = vor.u32 %v10787_v21, %v10129_v33  ;;  %v9782_v33 = vor.u32 %v10697_v63, %v9779_v16  ;;  %v10753_v63 = vld [vmem:[%s15383_s16 + $0x2a4] sm:$0xf] }
 0x61c   :  { %v6243_v58 = vadd.f32 %v6242_v52, %v6229_v43  ;;  %v6218_v25 = vpop.f32.mrf.mxu0  ;;  %v9762_v43 = vor.u32 %v10695_v50, %v9761_v13  ;;  %v9858_v52 = vor.u32 %v10719_v48, %v9857_v39  ;;  %v10707_v13 = vld [vmem:[%s15383_s16 + $0x12c] sm:$0xf0] }
 0x61d   :  { %v6252_v12 = vmul.f32 %v6248_v29, %v6217_v26  ;;  %v6231_v4 = vpop.f32.mrf.mxu1  ;;  %v10146_v29 = vor.u32 %v10791_v56, %v10145_v32  ;;  %v10783_v26 = vld [vmem:[%s15383_s16 + $0x38c] sm:$0xf0]  ;;  %v9665_v32 = vld [vmem:[%s15383_s16] sm:$0xf] }
 0x61e   :  { %v6253_v14 = vmul.f32 %v6249_v53, %v6243_v58  ;;  %v9985_v53 = vld [vmem:[%s15383_s16 + $0x280] sm:$0xf]  ;;  %v10683_v58 = vld [vmem:[%s15383_s16 + $0x6c] sm:$0xf0]  ;;  %v10114_v54 = vor.u32 %v10783_v26, %v10113_v62 }
 0x61f   :  { %v6260_v22 = vadd.f32 %v6256_v42, %v6252_v12  ;;  %v9730_v42 = vor.u32 %v10687_v35, %v9729_v36  ;;  %v10715_v25 = vld [vmem:[%s15383_s16 + $0x16c] sm:$0xf0]  ;;  %v9986_v6 = vor.u32 %v10751_v30, %v9985_v53  ;;  %v9969_v12 = vld [vmem:[%s15383_s16 + $0x260] sm:$0xf]  ;;  %v10725_v36 = vld [vmem:[%s15383_s16 + $0x1c4] sm:$0xf] }
 0x620   :  { %v6261_v49 = vadd.f32 %v6257_v23, %v6253_v14  ;;  %v9841_v23 = vld [vmem:[%s15383_s16 + $0x160] sm:$0xf]  ;;  %v10747_v4 = vld [vmem:[%s15383_s16 + $0x26c] sm:$0xf0]  ;;  %v9891_v35 = vld [vmem:[%s15383_s16 + $0x1d0] sm:$0xf0] }
 0x621   :  { %v6262_v27 = vmax.f32 %v6260_v22, 0.0  ;;  %v10779_v14 = vld [vmem:[%s15383_s16 + $0x36c] sm:$0xf0]  ;;  %v9714_v22 = vor.u32 %v10683_v58, %v9713_v34  ;;  %v9842_v7 = vor.u32 %v10715_v25, %v9841_v23  ;;  %v9970_v19 = vor.u32 %v10747_v4, %v9969_v12  ;;  %v10721_v53 = vld [vmem:[%s15383_s16 + $0x1a4] sm:$0xf] }
 0x622   :  { %v6263_v18 = vmax.f32 %v6261_v49, 0.0  ;;  %v6205_v44 = vpop.f32.mrf.mxu3  ;;  %v9825_v49 = vld [vmem:[%s15383_s16 + $0x140] sm:$0xf]  ;;  %v10098_v10 = vor.u32 %v10779_v14, %v10097_v17  ;;  %v10671_v56 = vld [vmem:[%s15383_s16 + $0xc] sm:$0xf0]  ;;  %v9894_v48 = vor.u32 %v10725_v36, %v9891_v35 }
 0x623   :  { %v14397_v0 = vpack.c.bf16 %v6262_v27, %v6262_v27  ;;  %v6244_v40 = vpop.f32.mrf.mxu2  ;;  %v9953_v27 = vld [vmem:[%s15383_s16 + $0x240] sm:$0xf]  ;;  %v9698_v44 = vor.u32 %v10679_v8, %v9697_v45  ;;  %v9666_v47 = vor.u32 %v10671_v56, %v9665_v32  ;;  %v9875_v30 = vld [vmem:[%s15383_s16 + $0x1b0] sm:$0xf0]  ;;  %v10717_v34 = vld [vmem:[%s15383_s16 + $0x184] sm:$0xf] }
 0x624   :  { %v14405_v31 = vpack.c.bf16 %v6263_v18, %v6263_v18  ;;  %v10775_v18 = vld [vmem:[%s15383_s16 + $0x34c] sm:$0xf0]  ;;  %v9681_v40 = vld [vmem:[%s15383_s16 + $0x20] sm:$0xf]  ;;  %v9954_v50 = vor.u32 %v10743_v46, %v9953_v27  ;;  %v9878_v26 = vor.u32 %v10721_v53, %v9875_v30  ;;  %v9859_v23 = vld [vmem:[%s15383_s16 + $0x190] sm:$0xf0] }
 0x625   :  { %6658 = vmatmul.bf16.vlgmr.msra.gmra.mxu3 %v14397_v0  ;;  %6684 = vmatmul.bf16.vlgmr.msra.gmra.mxu1 %v14397_v0  ;;  %v9921_v25 = vld [vmem:[%s15383_s16 + $0x200] sm:$0xf]  ;;  %v10767_v17 = vld [vmem:[%s15383_s16 + $0x30c] sm:$0xf0]  ;;  %v10681_v14 = vld [vmem:[%s15383_s16 + $0x64] sm:$0xf] }
 0x626   :  { %6671 = vmatmul.bf16.vlgmr.msra.gmra.mxu0 %v14405_v31  ;;  %6697 = vmatmul.bf16.vlgmr.msra.gmra.mxu2 %v14405_v31  ;;  %v10049_v4 = vld [vmem:[%s15383_s16 + $0x300] sm:$0xf]  ;;  %v10713_v45 = vld [vmem:[%s15383_s16 + $0x164] sm:$0xf]  ;;  %v9843_v8 = vld [vmem:[%s15383_s16 + $0x170] sm:$0xf0] }
 0x627   :  { %7558 = vmatpush.bf16.msra.mxu3 %v9778_v41  ;;  %7571 = vmatpush.bf16.msra.mxu0 %v9906_v61  ;;  %v10675_v41 = vld [vmem:[%s15383_s16 + $0x2c] sm:$0xf0]  ;;  %v9809_v61 = vld [vmem:[%s15383_s16 + $0x120] sm:$0xf]  ;;  %v10793_v27 = vld [vmem:[%s15383_s16 + $0x3e4] sm:$0xf] }
 0x628   :  { %7584 = vmatpush.bf16.msra.mxu1 %v10034_v3  ;;  %7597 = vmatpush.bf16.msra.mxu2 %v10162_v57  ;;  %v10065_v3 = vld [vmem:[%s15383_s16 + $0x320] sm:$0xf]  ;;  %v10771_v57 = vld [vmem:[%s15383_s16 + $0x32c] sm:$0xf0]  ;;  %v9682_v24 = vor.u32 %v10675_v41, %v9681_v40  ;;  %v9810_v20 = vor.u32 %v10707_v13, %v9809_v61  ;;  %v10709_v40 = vld [vmem:[%s15383_s16 + $0x144] sm:$0xf] }
 0x629   :  { %v10066_v28 = vor.u32 %v10771_v57, %v10065_v3  ;;  %v9827_v61 = vld [vmem:[%s15383_s16 + $0x150] sm:$0xf0]  ;;  %v10757_v13 = vld [vmem:[%s15383_s16 + $0x2c4] sm:$0xf] }
 0x62a   :  { %v10147_v3 = vld [vmem:[%s15383_s16 + $0x3d0] sm:$0xf0]  ;;  %v10673_v57 = vld [vmem:[%s15383_s16 + $0x24] sm:$0xf] }
 0x62b   :  { %7559 = vmatpush.bf16.msra.mxu3 %v9762_v43  ;;  %7572 = vmatpush.bf16.msra.mxu0 %v9890_v51  ;;  %v9793_v43 = vld [vmem:[%s15383_s16 + $0x100] sm:$0xf]  ;;  %v10703_v51 = vld [vmem:[%s15383_s16 + $0x10c] sm:$0xf0]  ;;  %v10705_v32 = vld [vmem:[%s15383_s16 + $0x124] sm:$0xf] }
 0x62c   :  { %7585 = vmatpush.bf16.msra.mxu1 %v10018_v11  ;;  %7598 = vmatpush.bf16.msra.mxu2 %v10146_v29  ;;  %v10729_v11 = vld [vmem:[%s15383_s16 + $0x1e4] sm:$0xf]  ;;  %v9907_v29 = vld [vmem:[%s15383_s16 + $0x1f0] sm:$0xf0]  ;;  %v9794_v1 = vor.u32 %v10703_v51, %v9793_v43 }
 0x62d   :  { %v9910_v21 = vor.u32 %v10729_v11, %v9907_v29  ;;  %v9811_v56 = vld [vmem:[%s15383_s16 + $0x130] sm:$0xf0]  ;;  %v10669_v29 = vld [vmem:[%s15383_s16 + $0x4] sm:$0xf] }
 0x62e   :  { %v9814_v51 = vor.u32 %v10705_v32, %v9811_v56  ;;  %v10131_v11 = vld [vmem:[%s15383_s16 + $0x3b0] sm:$0xf0]  ;;  %v10781_v35 = vld [vmem:[%s15383_s16 + $0x384] sm:$0xf]  ;;  %v10700_v32 = vld [vmem:[%s15383_s16 + $0xf4] sm:$0xf0] }
 0x62f   :  { %7560 = vmatpush.bf16.msra.mxu3 %v9746_v5  ;;  %7573 = vmatpush.bf16.msra.mxu0 %v9874_v38  ;;  %v10693_v5 = vld [vmem:[%s15383_s16 + $0xc4] sm:$0xf]  ;;  %v9763_v38 = vld [vmem:[%s15383_s16 + $0xd0] sm:$0xf0] }
 0x630   :  { %7586 = vmatpush.bf16.msra.mxu1 %v10002_v15  ;;  %7599 = vmatpush.bf16.msra.mxu2 %v10130_v60  ;;  %v9766_v39 = vor.u32 %v10693_v5, %v9763_v38  ;;  %v10689_v15 = vld [vmem:[%s15383_s16 + $0xa4] sm:$0xf]  ;;  %v9747_v60 = vld [vmem:[%s15383_s16 + $0xb0] sm:$0xf0] }
 0x631   :  { %v9750_v62 = vor.u32 %v10689_v15, %v9747_v60  ;;  %v10749_v5 = vld [vmem:[%s15383_s16 + $0x284] sm:$0xf]  ;;  %v9987_v36 = vld [vmem:[%s15383_s16 + $0x290] sm:$0xf0] }
 0x632   :  { %v9990_v15 = vor.u32 %v10749_v5, %v9987_v36  ;;  %v10745_v53 = vld [vmem:[%s15383_s16 + $0x264] sm:$0xf]  ;;  %v9971_v30 = vld [vmem:[%s15383_s16 + $0x270] sm:$0xf0]  ;;  %v10728_v36 = vld [vmem:[%s15383_s16 + $0x1d4] sm:$0xf0] }
 0x633   :  { %7561 = vmatpush.bf16.msra.mxu3 %v9730_v42  ;;  %7574 = vmatpush.bf16.msra.mxu0 %v9858_v52  ;;  %v10685_v42 = vld [vmem:[%s15383_s16 + $0x84] sm:$0xf]  ;;  %v9731_v52 = vld [vmem:[%s15383_s16 + $0x90] sm:$0xf0] }
 0x634   :  { %7587 = vmatpush.bf16.msra.mxu1 %v9986_v6  ;;  %7600 = vmatpush.bf16.msra.mxu2 %v10114_v54  ;;  %v9734_v58 = vor.u32 %v10685_v42, %v9731_v52  ;;  %v10735_v6 = vld [vmem:[%s15383_s16 + $0x20c] sm:$0xf0]  ;;  %v9862_v54 = vor.u32 %v10717_v34, %v9859_v23  ;;  %v9974_v42 = vor.u32 %v10745_v53, %v9971_v30  ;;  %v9955_v23 = vld [vmem:[%s15383_s16 + $0x250] sm:$0xf0]  ;;  %v9881_v53 = vld [vmem:[%s15383_s16 + $0x1a8] sm:$0xf] }
 0x635   :  { %6710 = vmatmul.bf16.vlgmr.msrb.gmra.mxu3 %v14397_v0  ;;  %6736 = vmatmul.bf16.vlgmr.msrb.gmra.mxu1 %v14397_v0  ;;  %v9826_v0 = vor.u32 %v10711_v59, %v9825_v49  ;;  %v9922_v12 = vor.u32 %v10735_v6, %v9921_v25  ;;  %v9846_v59 = vor.u32 %v10713_v45, %v9843_v8  ;;  %v10773_v25 = vld [vmem:[%s15383_s16 + $0x344] sm:$0xf]  ;;  %v10067_v45 = vld [vmem:[%s15383_s16 + $0x330] sm:$0xf0]  ;;  %v14765_v8 = vld [vmem:[%s15385_s15] sm:$0xf] }
 0x636   :  { %6723 = vmatmul.bf16.vlgmr.msrb.gmra.mxu0 %v14405_v31  ;;  %6749 = vmatmul.bf16.vlgmr.msrb.gmra.mxu2 %v14405_v31  ;;  %v10082_v31 = vor.u32 %v10775_v18, %v10081_v2  ;;  %v10163_v2 = vld [vmem:[%s15383_s16 + $0x3f0] sm:$0xf0]  ;;  %v10724_v30 = vld [vmem:[%s15383_s16 + $0x1b4] sm:$0xf0] }
 0x637   :  { %7562 = vmatpush.bf16.msra.mxu3 %v9714_v22  ;;  %7575 = vmatpush.bf16.msra.mxu0 %v9842_v7  ;;  %v10050_v22 = vor.u32 %v10767_v17, %v10049_v4  ;;  %v9715_v7 = vld [vmem:[%s15383_s16 + $0x70] sm:$0xf0]  ;;  %v10166_v18 = vor.u32 %v10793_v27, %v10163_v2  ;;  %v14748_v4 = vld [vmem:[%s15384_s14] sm:$0xf] }
 0x638   :  { %7588 = vmatpush.bf16.msra.mxu1 %v9970_v19  ;;  %7601 = vmatpush.bf16.msra.mxu2 %v10098_v10  ;;  %v9718_v49 = vor.u32 %v10681_v14, %v9715_v7  ;;  %v10761_v19 = vld [vmem:[%s15383_s16 + $0x2e4] sm:$0xf]  ;;  %v10035_v10 = vld [vmem:[%s15383_s16 + $0x2f0] sm:$0xf0]  ;;  %v6757_v2 = vperm.slane %v14748_v4, 1 }
 0x639   :  { %v10038_v46 = vor.u32 %v10761_v19, %v10035_v10  ;;  %v10737_v14 = vld [vmem:[%s15383_s16 + $0x224] sm:$0xf]  ;;  %v9923_v27 = vld [vmem:[%s15383_s16 + $0x210] sm:$0xf0] }
 0x63a   :  { %v10769_v7 = vld [vmem:[%s15383_s16 + $0x324] sm:$0xf] }
 0x63b   :  { %7563 = vmatpush.bf16.msra.mxu3 %v9698_v44  ;;  %7576 = vmatpush.bf16.msra.mxu0 %v9826_v0  ;;  %v10677_v44 = vld [vmem:[%s15383_s16 + $0x44] sm:$0xf]  ;;  %v9699_v0 = vld [vmem:[%s15383_s16 + $0x50] sm:$0xf0]  ;;  %v10070_v19 = vor.u32 %v10769_v7, %v10067_v45 }
 0x63c   :  { %7589 = vmatpush.bf16.msra.mxu1 %v9954_v50  ;;  %7602 = vmatpush.bf16.msra.mxu2 %v10082_v31  ;;  %v9702_v41 = vor.u32 %v10677_v44, %v9699_v0  ;;  %v10019_v50 = vld [vmem:[%s15383_s16 + $0x2d0] sm:$0xf0]  ;;  %v9830_v31 = vor.u32 %v10709_v40, %v9827_v61  ;;  %v10733_v10 = vld [vmem:[%s15383_s16 + $0x204] sm:$0xf]  ;;  %v6770_v40 = vperm.slane %v14765_v8, 0 }
 0x63d   :  { %v10022_v37 = vor.u32 %v10757_v13, %v10019_v50  ;;  %v10051_v44 = vld [vmem:[%s15383_s16 + $0x310] sm:$0xf0]  ;;  %v6771_v13 = vperm.slane %v14765_v8, 1 }
 0x63f   :  { %7564 = vmatpush.bf16.msra.mxu3 %v9682_v24  ;;  %7577 = vmatpush.bf16.msra.mxu0 %v9810_v20  ;;  %v10150_v24 = vor.u32 %v10789_v55, %v10147_v3  ;;  %v9683_v20 = vld [vmem:[%s15383_s16 + $0x30] sm:$0xf0] }
 0x640   :  { %7590 = vmatpush.bf16.msra.mxu1 %v9938_v9  ;;  %7603 = vmatpush.bf16.msra.mxu2 %v10066_v28  ;;  %v9686_v43 = vor.u32 %v10673_v57, %v9683_v20  ;;  %v10003_v9 = vld [vmem:[%s15383_s16 + $0x2b0] sm:$0xf0]  ;;  %v10785_v28 = vld [vmem:[%s15383_s16 + $0x3a4] sm:$0xf]  ;;  %v9785_v20 = vld [vmem:[%s15383_s16 + $0xe8] sm:$0xf] }
 0x641   :  { %v10006_v16 = vor.u32 %v10753_v63, %v10003_v9 }
 0x643   :  { %7565 = vmatpush.bf16.msra.mxu3 %v9666_v47  ;;  %7578 = vmatpush.bf16.msra.mxu0 %v9794_v1  ;;  %v9667_v47 = vld [vmem:[%s15383_s16 + $0x10] sm:$0xf0]  ;;  %v10134_v1 = vor.u32 %v10785_v28, %v10131_v11 }
 0x644   :  { %7591 = vmatpush.bf16.msra.mxu1 %v9922_v12  ;;  %7604 = vmatpush.bf16.msra.mxu2 %v10050_v22  ;;  %v9670_v38 = vor.u32 %v10669_v29, %v9667_v47  ;;  %v10083_v12 = vld [vmem:[%s15383_s16 + $0x350] sm:$0xf0] }
 0x645   :  { %v10086_v17 = vor.u32 %v10773_v25, %v10083_v12  ;;  %v9939_v22 = vld [vmem:[%s15383_s16 + $0x230] sm:$0xf0]  ;;  %v9882_v25 = vor.u32 %v10724_v30, %v9881_v53 }
 0x647   :  { %7610 = vmatpush.bf16.msrb.mxu3 %v9782_v33  ;;  %7623 = vmatpush.bf16.msrb.mxu0 %v9910_v21  ;;  %v10701_v33 = vld [vmem:[%s15383_s16 + $0x104] sm:$0xf]  ;;  %v9795_v21 = vld [vmem:[%s15383_s16 + $0x110] sm:$0xf0] }
 0x648   :  { %7636 = vmatpush.bf16.msrb.mxu1 %v10038_v46  ;;  %7649 = vmatpush.bf16.msrb.mxu2 %v10166_v18  ;;  %v10765_v18 = vld [vmem:[%s15383_s16 + $0x304] sm:$0xf] }
 0x649   :  { %v10054_v3 = vor.u32 %v10765_v18, %v10051_v44  ;;  %v10716_v18 = vld [vmem:[%s15383_s16 + $0x174] sm:$0xf0]  ;;  %v10041_v44 = vld [vmem:[%s15383_s16 + $0x2e8] sm:$0xf] }
 0x64b   :  { %7611 = vmatpush.bf16.msrb.mxu3 %v9766_v39  ;;  %7624 = vmatpush.bf16.msrb.mxu0 %v9894_v48  ;;  %v10115_v39 = vld [vmem:[%s15383_s16 + $0x390] sm:$0xf0]  ;;  %v9798_v48 = vor.u32 %v10701_v33, %v9795_v21  ;;  %v10696_v33 = vld [vmem:[%s15383_s16 + $0xd4] sm:$0xf0] }
 0x64c   :  { %7637 = vmatpush.bf16.msrb.mxu1 %v10022_v37  ;;  %7650 = vmatpush.bf16.msrb.mxu2 %v10150_v24  ;;  %v10118_v60 = vor.u32 %v10781_v35, %v10115_v39 }
 0x64f   :  { %7612 = vmatpush.bf16.msrb.mxu3 %v9750_v62  ;;  %7625 = vmatpush.bf16.msrb.mxu0 %v9878_v26  ;;  %v10777_v62 = vld [vmem:[%s15383_s16 + $0x364] sm:$0xf]  ;;  %v10099_v26 = vld [vmem:[%s15383_s16 + $0x370] sm:$0xf0] }
 0x650   :  { %7638 = vmatpush.bf16.msrb.mxu1 %v10006_v16  ;;  %7651 = vmatpush.bf16.msrb.mxu2 %v10134_v1  ;;  %v10102_v52 = vor.u32 %v10777_v62, %v10099_v26  ;;  %v9786_v16 = vor.u32 %v10700_v32, %v9785_v20  ;;  %v9769_v1 = vld [vmem:[%s15383_s16 + $0xc8] sm:$0xf]  ;;  %v6758_v62 = vperm.slane %v14748_v4, 2 }
 0x651   :  { %v9770_v39 = vor.u32 %v10696_v33, %v9769_v1  ;;  %v9689_v1 = vld [vmem:[%s15383_s16 + $0x28] sm:$0xf]  ;;  %v10676_v33 = vld [vmem:[%s15383_s16 + $0x34] sm:$0xf0] }
 0x652   :  { %v9690_v53 = vor.u32 %v10676_v33, %v9689_v1  ;;  %v10686_v1 = vld [vmem:[%s15383_s16 + $0x8c] sm:$0xf]  ;;  %v9739_v33 = vld [vmem:[%s15383_s16 + $0x98] sm:$0xf0] }
 0x653   :  { %7613 = vmatpush.bf16.msrb.mxu3 %v9734_v58  ;;  %7626 = vmatpush.bf16.msrb.mxu0 %v9862_v54  ;;  %v10741_v58 = vld [vmem:[%s15383_s16 + $0x244] sm:$0xf] }
 0x654   :  { %7639 = vmatpush.bf16.msrb.mxu1 %v9990_v15  ;;  %7652 = vmatpush.bf16.msrb.mxu2 %v10118_v60  ;;  %v9958_v54 = vor.u32 %v10741_v58, %v9955_v23  ;;  %v9753_v15 = vld [vmem:[%s15383_s16 + $0xa8] sm:$0xf]  ;;  %v10692_v60 = vld [vmem:[%s15383_s16 + $0xb4] sm:$0xf0]  ;;  %v6772_v58 = vperm.slane %v14765_v8, 2 }
 0x657   :  { %7614 = vmatpush.bf16.msrb.mxu3 %v9718_v49  ;;  %7627 = vmatpush.bf16.msrb.mxu0 %v9846_v59  ;;  %v9942_v49 = vor.u32 %v10737_v14, %v9939_v22  ;;  %v6756_v59 = vperm.slane %v14748_v4, 0  ;;  %v10720_v22 = vld [vmem:[%s15383_s16 + $0x194] sm:$0xf0] }
 0x658   :  { %7640 = vmatpush.bf16.msrb.mxu1 %v9974_v42  ;;  %7653 = vmatpush.bf16.msrb.mxu2 %v10102_v52  ;;  %v6759_v42 = vperm.slane %v14748_v4, 3  ;;  %v9754_v52 = vor.u32 %v10692_v60, %v9753_v15  ;;  %v9865_v4 = vld [vmem:[%s15383_s16 + $0x188] sm:$0xf]  ;;  %v10788_v60 = vld [vmem:[%s15383_s16 + $0x3b4] sm:$0xf0] }
 0x659   :  { %v10137_v15 = vld [vmem:[%s15383_s16 + $0x3a8] sm:$0xf] }
 0x65b   :  { %7615 = vmatpush.bf16.msrb.mxu3 %v9702_v41  ;;  %7628 = vmatpush.bf16.msrb.mxu0 %v9830_v31  ;;  %v9926_v31 = vor.u32 %v10733_v10, %v9923_v27  ;;  %v9866_v10 = vor.u32 %v10720_v22, %v9865_v4  ;;  %v10684_v27 = vld [vmem:[%s15383_s16 + $0x74] sm:$0xf0]  ;;  %v9915_v4 = vld [vmem:[%s15383_s16 + $0x1f8] sm:$0xf0] }
 0x65c   :  { %7641 = vmatpush.bf16.msrb.mxu1 %v9958_v54  ;;  %7654 = vmatpush.bf16.msrb.mxu2 %v10086_v17  ;;  %v10688_v54 = vld [vmem:[%s15383_s16 + $0x94] sm:$0xf0]  ;;  %v6773_v17 = vperm.slane %v14765_v8, 3  ;;  %v9721_v8 = vld [vmem:[%s15383_s16 + $0x68] sm:$0xf] }
 0x65f   :  { %7616 = vmatpush.bf16.msrb.mxu3 %v9686_v43  ;;  %7629 = vmatpush.bf16.msrb.mxu0 %v9814_v51  ;;  %v9913_v43 = vld [vmem:[%s15383_s16 + $0x1e8] sm:$0xf]  ;;  %v10732_v51 = vld [vmem:[%s15383_s16 + $0x1f4] sm:$0xf0] }
 0x660   :  { %7642 = vmatpush.bf16.msrb.mxu1 %v9942_v49  ;;  %7655 = vmatpush.bf16.msrb.mxu2 %v10070_v19  ;;  %v9914_v47 = vor.u32 %v10732_v51, %v9913_v43  ;;  %v9833_v43 = vld [vmem:[%s15383_s16 + $0x148] sm:$0xf]  ;;  %v10712_v51 = vld [vmem:[%s15383_s16 + $0x154] sm:$0xf0] }
 0x663   :  { %7617 = vmatpush.bf16.msrb.mxu3 %v9670_v38  ;;  %7630 = vmatpush.bf16.msrb.mxu0 %v9798_v48  ;;  %v9897_v38 = vld [vmem:[%s15383_s16 + $0x1c8] sm:$0xf] }
 0x664   :  { %7643 = vmatpush.bf16.msrb.mxu1 %v9926_v31  ;;  %7656 = vmatpush.bf16.msrb.mxu2 %v10054_v3  ;;  %v9898_v48 = vor.u32 %v10728_v36, %v9897_v38  ;;  %v9817_v36 = vld [vmem:[%s15383_s16 + $0x128] sm:$0xf] }
 0x6a2   :  { %v6685_v34 = vpop.f32.mrf.mxu1 }
 0x6a3   :  { %v6672_v6 = vpop.f32.mrf.mxu0 }
 0x6a8   :  { %v6659_v46 = vpop.f32.mrf.mxu3 }
 0x6a9   :  { %v6673_v0 = vadd.f32 %v6672_v6, %v6659_v46  ;;  %v6698_v41 = vpop.f32.mrf.mxu2  ;;  %v9737_v6 = vld [vmem:[%s15383_s16 + $0x88] sm:$0xf] }
 0x6aa   :  { %v6699_v61 = vadd.f32 %v6698_v41, %v6685_v34  ;;  %v6687_v50 = vpop.f32.mrf.mxu1  ;;  %v9849_v46 = vld [vmem:[%s15383_s16 + $0x168] sm:$0xf] }
 0x6ab   :  { %v6764_v37 = vmul.f32 %v6756_v59, %v6673_v0  ;;  %v6674_v55 = vpop.f32.mrf.mxu0  ;;  %v9738_v59 = vor.u32 %v10688_v54, %v9737_v6  ;;  %v10764_v0 = vld [vmem:[%s15383_s16 + $0x2f4] sm:$0xf0]  ;;  %v10169_v41 = vld [vmem:[%s15383_s16 + $0x3e8] sm:$0xf]  ;;  %v9850_v3 = vor.u32 %v10716_v18, %v9849_v46  ;;  %v9771_v18 = vld [vmem:[%s15383_s16 + $0xd8] sm:$0xf0] }
 0x6ac   :  { %v6765_v57 = vmul.f32 %v6757_v2, %v6699_v61  ;;  %v10796_v61 = vld [vmem:[%s15383_s16 + $0x3f4] sm:$0xf0]  ;;  %v9722_v55 = vor.u32 %v10684_v27, %v9721_v8  ;;  %v10042_v32 = vor.u32 %v10764_v0, %v10041_v44  ;;  %v10121_v6 = vld [vmem:[%s15383_s16 + $0x388] sm:$0xf]  ;;  %v10726_v44 = vld [vmem:[%s15383_s16 + $0x1cc] sm:$0xf] }
 0x6ad   :  { %v6778_v24 = vadd.f32 %v6770_v40, %v6764_v37  ;;  %v10784_v54 = vld [vmem:[%s15383_s16 + $0x394] sm:$0xf0]  ;;  %v10105_v27 = vld [vmem:[%s15383_s16 + $0x368] sm:$0xf]  ;;  %v9899_v0 = vld [vmem:[%s15383_s16 + $0x1d8] sm:$0xf0] }
 0x6ae   :  { %v6779_v56 = vadd.f32 %v6771_v13, %v6765_v57  ;;  %v9705_v57 = vld [vmem:[%s15383_s16 + $0x48] sm:$0xf]  ;;  %v10780_v46 = vld [vmem:[%s15383_s16 + $0x374] sm:$0xf0] }
 0x6af   :  { %v6782_v63 = vmax.f32 %v6778_v24, 0.0  ;;  %v10680_v24 = vld [vmem:[%s15383_s16 + $0x54] sm:$0xf0] }
 0x6b0   :  { %v6783_v9 = vmax.f32 %v6779_v56, 0.0  ;;  %v6661_v28 = vpop.f32.mrf.mxu3  ;;  %v10170_v56 = vor.u32 %v10796_v61, %v10169_v41  ;;  %v10106_v41 = vor.u32 %v10780_v46, %v10105_v27  ;;  %v9961_v61 = vld [vmem:[%s15383_s16 + $0x248] sm:$0xf] }
 0x6b1   :  { %v14795_v11 = vpack.c.bf16 %v6782_v63, %v6782_v63  ;;  %v6700_v29 = vpop.f32.mrf.mxu2  ;;  %v10025_v63 = vld [vmem:[%s15383_s16 + $0x2c8] sm:$0xf] }
 0x6b2   :  { %v14803_v21 = vpack.c.bf16 %v6783_v9, %v6783_v9  ;;  %v6737_v5 = vpop.f32.mrf.mxu1  ;;  %v10760_v9 = vld [vmem:[%s15383_s16 + $0x2d4] sm:$0xf0]  ;;  %v10153_v28 = vld [vmem:[%s15383_s16 + $0x3c8] sm:$0xf]  ;;  %v9706_v29 = vor.u32 %v10680_v24, %v9705_v57  ;;  %v10690_v57 = vld [vmem:[%s15383_s16 + $0xac] sm:$0xf] }
 0x6b3   :  { %v6724_v35 = vpop.f32.mrf.mxu0  ;;  %7566 = vmatmul.bf16.vlgmr.msra.gmra.mxu3 %v14795_v11  ;;  %v9755_v24 = vld [vmem:[%s15383_s16 + $0xb8] sm:$0xf0] }
 0x6b4   :  { %7579 = vmatmul.bf16.vlgmr.msra.gmra.mxu0 %v14803_v21  ;;  %7662 = vmatpush.bf16.msra.mxu3 %v9786_v16  ;;  %v10792_v16 = vld [vmem:[%s15383_s16 + $0x3d4] sm:$0xf0] }
 0x6b5   :  { %7675 = vmatpush.bf16.msra.mxu0 %v9914_v47  ;;  %v9834_v47 = vor.u32 %v10712_v51, %v9833_v43  ;;  %v10154_v38 = vor.u32 %v10792_v16, %v10153_v28  ;;  %v9758_v28 = vor.u32 %v10690_v57, %v9755_v24  ;;  %v10670_v57 = vld [vmem:[%s15383_s16 + $0xc] sm:$0xf]  ;;  %v9675_v24 = vld [vmem:[%s15383_s16 + $0x18] sm:$0xf0] }
 0x6b8   :  { %7663 = vmatpush.bf16.msra.mxu3 %v9770_v39  ;;  %v6711_v26 = vpop.f32.mrf.mxu3  ;;  %v10009_v39 = vld [vmem:[%s15383_s16 + $0x2a8] sm:$0xf] }
 0x6b9   :  { %7676 = vmatpush.bf16.msra.mxu0 %v9898_v48  ;;  %v6725_v34 = vadd.f32 %v6724_v35, %v6711_v26  ;;  %v6750_v23 = vpop.f32.mrf.mxu2  ;;  %v10708_v35 = vld [vmem:[%s15383_s16 + $0x134] sm:$0xf0] }
 0x6ba   :  { %v6751_v12 = vadd.f32 %v6750_v23, %v6737_v5  ;;  %v6739_v14 = vpop.f32.mrf.mxu1  ;;  %v10026_v5 = vor.u32 %v10760_v9, %v10025_v63  ;;  %v10756_v48 = vld [vmem:[%s15383_s16 + $0x2b4] sm:$0xf0]  ;;  %v9818_v30 = vor.u32 %v10708_v35, %v9817_v36  ;;  %v9993_v23 = vld [vmem:[%s15383_s16 + $0x288] sm:$0xf] }
 0x6bb   :  { %v6766_v7 = vmul.f32 %v6758_v62, %v6725_v34  ;;  %v6726_v45 = vpop.f32.mrf.mxu0  ;;  %v9673_v62 = vld [vmem:[%s15383_s16 + $0x8] sm:$0xf]  ;;  %v10672_v26 = vld [vmem:[%s15383_s16 + $0x14] sm:$0xf0]  ;;  %v10138_v34 = vor.u32 %v10788_v60, %v10137_v15  ;;  %v10730_v14 = vld [vmem:[%s15383_s16 + $0x1ec] sm:$0xf]  ;;  %v9742_v60 = vor.u32 %v10686_v1, %v9739_v33 }
 0x6bc   :  { %v6767_v49 = vmul.f32 %v6759_v42, %v6751_v12  ;;  %7664 = vmatpush.bf16.msra.mxu3 %v9754_v52  ;;  %v9801_v42 = vld [vmem:[%s15383_s16 + $0x108] sm:$0xf]  ;;  %v10010_v52 = vor.u32 %v10756_v48, %v10009_v39  ;;  %v10698_v12 = vld [vmem:[%s15383_s16 + $0xec] sm:$0xf]  ;;  %v9674_v22 = vor.u32 %v10672_v26, %v9673_v62  ;;  %v9918_v8 = vor.u32 %v10730_v14, %v9915_v4  ;;  %v10740_v9 = vld [vmem:[%s15383_s16 + $0x234] sm:$0xf0] }
 0x6bd   :  { %v6780_v19 = vadd.f32 %v6772_v58, %v6766_v7  ;;  %7677 = vmatpush.bf16.msra.mxu0 %v9882_v25  ;;  %v10704_v58 = vld [vmem:[%s15383_s16 + $0x114] sm:$0xf0]  ;;  %v9945_v63 = vld [vmem:[%s15383_s16 + $0x228] sm:$0xf]  ;;  %v10682_v62 = vld [vmem:[%s15383_s16 + $0x6c] sm:$0xf] }
 0x6be   :  { %v6781_v2 = vadd.f32 %v6773_v17, %v6767_v49  ;;  %v10752_v25 = vld [vmem:[%s15383_s16 + $0x294] sm:$0xf0]  ;;  %v9787_v17 = vld [vmem:[%s15383_s16 + $0xf8] sm:$0xf0]  ;;  %v9802_v7 = vor.u32 %v10704_v58, %v9801_v42  ;;  %v10122_v49 = vor.u32 %v10784_v54, %v10121_v6  ;;  %v9946_v36 = vor.u32 %v10740_v9, %v9945_v63  ;;  %v9929_v39 = vld [vmem:[%s15383_s16 + $0x208] sm:$0xf] }
 0x6bf   :  { %v6784_v40 = vmax.f32 %v6780_v19, 0.0  ;;  %v9994_v45 = vor.u32 %v10752_v25, %v9993_v23  ;;  %v10748_v19 = vld [vmem:[%s15383_s16 + $0x274] sm:$0xf0]  ;;  %v10057_v15 = vld [vmem:[%s15383_s16 + $0x308] sm:$0xf] }
 0x6c0   :  { %v6785_v13 = vmax.f32 %v6781_v2, 0.0  ;;  %7665 = vmatpush.bf16.msra.mxu3 %v9738_v59  ;;  %v6713_v50 = vpop.f32.mrf.mxu3  ;;  %v9977_v59 = vld [vmem:[%s15383_s16 + $0x268] sm:$0xf]  ;;  %v10694_v2 = vld [vmem:[%s15383_s16 + $0xcc] sm:$0xf] }
 0x6c1   :  { %v14865_v31 = vpack.c.bf16 %v6784_v40, %v6784_v40  ;;  %7678 = vmatpush.bf16.msra.mxu0 %v9866_v10  ;;  %v6752_v37 = vpop.f32.mrf.mxu2  ;;  %v9790_v10 = vor.u32 %v10698_v12, %v9787_v17  ;;  %v9978_v40 = vor.u32 %v10748_v19, %v9977_v59  ;;  %v9774_v50 = vor.u32 %v10694_v2, %v9771_v18  ;;  %v10736_v48 = vld [vmem:[%s15383_s16 + $0x214] sm:$0xf0]  ;;  %v9723_v26 = vld [vmem:[%s15383_s16 + $0x78] sm:$0xf0]  ;;  %v10714_v42 = vld [vmem:[%s15383_s16 + $0x16c] sm:$0xf] }
 0x6c2   :  { %v14873_v20 = vpack.c.bf16 %v6785_v13, %v6785_v13  ;;  %v10744_v13 = vld [vmem:[%s15383_s16 + $0x254] sm:$0xf0]  ;;  %v9902_v37 = vor.u32 %v10726_v44, %v9899_v0  ;;  %v10043_v58 = vld [vmem:[%s15383_s16 + $0x2f8] sm:$0xf0]  ;;  %v10794_v23 = vld [vmem:[%s15383_s16 + $0x3ec] sm:$0xf]  ;;  %v9930_v6 = vor.u32 %v10736_v48, %v9929_v39  ;;  %v9726_v12 = vor.u32 %v10682_v62, %v9723_v26 }
 0x6c3   :  { %7592 = vmatmul.bf16.vlgmr.msra.gmra.mxu1 %v14865_v31  ;;  %7618 = vmatmul.bf16.vlgmr.msrb.gmra.mxu3 %v14795_v11  ;;  %v9962_v43 = vor.u32 %v10744_v13, %v9961_v61  ;;  %v10171_v25 = vld [vmem:[%s15383_s16 + $0x3f8] sm:$0xf0]  ;;  %v10678_v14 = vld [vmem:[%s15383_s16 + $0x4c] sm:$0xf] }
 0x6c4   :  { %7605 = vmatmul.bf16.vlgmr.msra.gmra.mxu2 %v14873_v20  ;;  %7631 = vmatmul.bf16.vlgmr.msrb.gmra.mxu0 %v14803_v21  ;;  %v9707_v4 = vld [vmem:[%s15383_s16 + $0x58] sm:$0xf0]  ;;  %v10758_v59 = vld [vmem:[%s15383_s16 + $0x2cc] sm:$0xf] }
 0x6c5   :  { %7666 = vmatpush.bf16.msra.mxu3 %v9722_v55  ;;  %7679 = vmatpush.bf16.msra.mxu0 %v9850_v3  ;;  %v10089_v55 = vld [vmem:[%s15383_s16 + $0x348] sm:$0xf]  ;;  %v10776_v3 = vld [vmem:[%s15383_s16 + $0x354] sm:$0xf0]  ;;  %v10027_v19 = vld [vmem:[%s15383_s16 + $0x2d8] sm:$0xf0]  ;;  %v9710_v27 = vor.u32 %v10678_v14, %v9707_v4 }
 0x6c6   :  { %7688 = vmatpush.bf16.msra.mxu1 %v10042_v32  ;;  %7701 = vmatpush.bf16.msra.mxu2 %v10170_v56  ;;  %v10722_v32 = vld [vmem:[%s15383_s16 + $0x1ac] sm:$0xf]  ;;  %v9883_v56 = vld [vmem:[%s15383_s16 + $0x1b8] sm:$0xf0]  ;;  %v10090_v51 = vor.u32 %v10776_v3, %v10089_v55  ;;  %v10030_v44 = vor.u32 %v10758_v59, %v10027_v19  ;;  %v10803_v4 = vld [vmem:[%s15386_s19 + $0x30] sm:$0xff] }
 0x6c7   :  { %v9886_v16 = vor.u32 %v10722_v32, %v9883_v56  ;;  %v10674_v2 = vld [vmem:[%s15383_s16 + $0x2c] sm:$0xf]  ;;  %v9691_v18 = vld [vmem:[%s15383_s16 + $0x38] sm:$0xf0] }
 0x6c8   :  { %v10754_v61 = vld [vmem:[%s15383_s16 + $0x2ac] sm:$0xf]  ;;  %v10011_v13 = vld [vmem:[%s15383_s16 + $0x2b8] sm:$0xf0]  ;;  %v9694_v55 = vor.u32 %v10674_v2, %v9691_v18  ;;  %v10809_v2 = vld [vmem:[%s15386_s19 + $0x60] sm:$0xff] }
 0x6c9   :  { %7667 = vmatpush.bf16.msra.mxu3 %v9706_v29  ;;  %7680 = vmatpush.bf16.msra.mxu0 %v9834_v47  ;;  %v10073_v29 = vld [vmem:[%s15383_s16 + $0x328] sm:$0xf]  ;;  %v10772_v47 = vld [vmem:[%s15383_s16 + $0x334] sm:$0xf0]  ;;  %v10014_v32 = vor.u32 %v10754_v61, %v10011_v13  ;;  %v10750_v63 = vld [vmem:[%s15383_s16 + $0x28c] sm:$0xf] }
 0x6ca   :  { %7689 = vmatpush.bf16.msra.mxu1 %v10026_v5  ;;  %7702 = vmatpush.bf16.msra.mxu2 %v10154_v38  ;;  %v10718_v5 = vld [vmem:[%s15383_s16 + $0x18c] sm:$0xf]  ;;  %v9867_v38 = vld [vmem:[%s15383_s16 + $0x198] sm:$0xf0]  ;;  %v10074_v35 = vor.u32 %v10772_v47, %v10073_v29  ;;  %v9678_v29 = vor.u32 %v10670_v57, %v9675_v24  ;;  %v10819_v61 = vld [vmem:[%s15386_s19 + $0xb0] sm:$0xff] }
 0x6cb   :  { %v9995_v9 = vld [vmem:[%s15383_s16 + $0x298] sm:$0xf0]  ;;  %v10798_v19 = vld [vmem:[%s15386_s19 + $0x8] sm:$0xff]  ;;  %v15257_v57 = vld [vmem:[%s15389_s18] sm:$0xf] }
 0x6cc   :  { %v9998_v1 = vor.u32 %v10750_v63, %v9995_v9  ;;  %v10804_v14 = vld [vmem:[%s15386_s19 + $0x38] sm:$0xff] }
 0x6cd   :  { %7668 = vmatpush.bf16.msra.mxu3 %v9690_v53  ;;  %7681 = vmatpush.bf16.msra.mxu0 %v9818_v30  ;;  %v9870_v53 = vor.u32 %v10718_v5, %v9867_v38  ;;  %v10768_v30 = vld [vmem:[%s15383_s16 + $0x314] sm:$0xf0]  ;;  %v10746_v5 = vld [vmem:[%s15383_s16 + $0x26c] sm:$0xf]  ;;  %v9979_v38 = vld [vmem:[%s15383_s16 + $0x278] sm:$0xf0] }
 0x6ce   :  { %7690 = vmatpush.bf16.msra.mxu1 %v10010_v52  ;;  %7703 = vmatpush.bf16.msra.mxu2 %v10138_v34  ;;  %v9851_v52 = vld [vmem:[%s15383_s16 + $0x178] sm:$0xf0]  ;;  %v10762_v34 = vld [vmem:[%s15383_s16 + $0x2ec] sm:$0xf]  ;;  %v10058_v54 = vor.u32 %v10768_v30, %v10057_v15  ;;  %v9982_v39 = vor.u32 %v10746_v5, %v9979_v38 }
 0x6cf   :  { %v9854_v17 = vor.u32 %v10714_v42, %v9851_v52  ;;  %v10742_v15 = vld [vmem:[%s15383_s16 + $0x24c] sm:$0xf]  ;;  %v10091_v30 = vld [vmem:[%s15383_s16 + $0x358] sm:$0xf0] }
 0x6d0   :  { %v10738_v42 = vld [vmem:[%s15383_s16 + $0x22c] sm:$0xf]  ;;  %v9947_v52 = vld [vmem:[%s15383_s16 + $0x238] sm:$0xf0] }
 0x6d1   :  { %7669 = vmatpush.bf16.msra.mxu3 %v9674_v22  ;;  %7682 = vmatpush.bf16.msra.mxu0 %v9802_v7  ;;  %v10046_v22 = vor.u32 %v10762_v34, %v10043_v58  ;;  %v10174_v7 = vor.u32 %v10794_v23, %v10171_v25  ;;  %v10770_v34 = vld [vmem:[%s15383_s16 + $0x32c] sm:$0xf]  ;;  %v9931_v25 = vld [vmem:[%s15383_s16 + $0x218] sm:$0xf0] }
 0x6d2   :  { %7691 = vmatpush.bf16.msra.mxu1 %v9994_v45  ;;  %7704 = vmatpush.bf16.msra.mxu2 %v10122_v49  ;;  %v10710_v45 = vld [vmem:[%s15383_s16 + $0x14c] sm:$0xf]  ;;  %v9835_v49 = vld [vmem:[%s15383_s16 + $0x158] sm:$0xf0] }
 0x6d3   :  { %7644 = vmatmul.bf16.vlgmr.msrb.gmra.mxu1 %v14865_v31  ;;  %v9838_v46 = vor.u32 %v10710_v45, %v9835_v49  ;;  %v10734_v23 = vld [vmem:[%s15383_s16 + $0x20c] sm:$0xf]  ;;  %v10799_v45 = vld [vmem:[%s15386_s19 + $0x10] sm:$0xff] }
 0x6d4   :  { %7657 = vmatmul.bf16.vlgmr.msrb.gmra.mxu2 %v14873_v20  ;;  %7670 = vmatmul.bf16.vlgmr.msra.gmra.mxu3 %v14795_v11  ;;  %v10811_v49 = vld [vmem:[%s15386_s19 + $0x70] sm:$0xff] }
 0x6d5   :  { %7714 = vmatpush.bf16.msrb.mxu3 %v9790_v10  ;;  %7727 = vmatpush.bf16.msrb.mxu0 %v9918_v8  ;;  %v10790_v10 = vld [vmem:[%s15383_s16 + $0x3cc] sm:$0xf]  ;;  %v10155_v8 = vld [vmem:[%s15383_s16 + $0x3d8] sm:$0xf0] }
 0x6d6   :  { %7683 = vmatmul.bf16.vlgmr.msra.gmra.mxu0 %v14803_v21  ;;  %7692 = vmatpush.bf16.msra.mxu1 %v9978_v40  ;;  %v10158_v0 = vor.u32 %v10790_v10, %v10155_v8  ;;  %v10706_v40 = vld [vmem:[%s15383_s16 + $0x12c] sm:$0xf]  ;;  %v10820_v8 = vld [vmem:[%s15386_s19 + $0xb8] sm:$0xff] }
 0x6d7   :  { %7705 = vmatpush.bf16.msra.mxu2 %v10106_v41  ;;  %v9819_v41 = vld [vmem:[%s15383_s16 + $0x138] sm:$0xf0]  ;;  %v10810_v10 = vld [vmem:[%s15386_s19 + $0x68] sm:$0xff] }
 0x6d8   :  { %v9822_v3 = vor.u32 %v10706_v40, %v9819_v41  ;;  %v10807_v41 = vld [vmem:[%s15386_s19 + $0x50] sm:$0xff] }
 0x6d9   :  { %7715 = vmatpush.bf16.msrb.mxu3 %v9774_v50  ;;  %7728 = vmatpush.bf16.msrb.mxu0 %v9902_v37  ;;  %v10786_v50 = vld [vmem:[%s15383_s16 + $0x3ac] sm:$0xf]  ;;  %v10139_v37 = vld [vmem:[%s15383_s16 + $0x3b8] sm:$0xf0] }
 0x6da   :  { %7693 = vmatpush.bf16.msra.mxu1 %v9962_v43  ;;  %v10142_v56 = vor.u32 %v10786_v50, %v10139_v37  ;;  %v10702_v43 = vld [vmem:[%s15383_s16 + $0x10c] sm:$0xf] }
 0x6db   :  { %7706 = vmatpush.bf16.msra.mxu2 %v10090_v51  ;;  %v9803_v51 = vld [vmem:[%s15383_s16 + $0x118] sm:$0xf0]  ;;  %v10806_v50 = vld [vmem:[%s15386_s19 + $0x48] sm:$0xff] }
 0x6dc   :  { %v9806_v47 = vor.u32 %v10702_v43, %v9803_v51  ;;  %v10818_v37 = vld [vmem:[%s15386_s19 + $0xa8] sm:$0xff]  ;;  %v10805_v43 = vld [vmem:[%s15386_s19 + $0x40] sm:$0xff] }
 0x6dd   :  { %7716 = vmatpush.bf16.msrb.mxu3 %v9758_v28  ;;  %7729 = vmatpush.bf16.msrb.mxu0 %v9886_v16  ;;  %v10782_v28 = vld [vmem:[%s15383_s16 + $0x38c] sm:$0xf]  ;;  %v10123_v16 = vld [vmem:[%s15383_s16 + $0x398] sm:$0xf0]  ;;  %v10817_v51 = vld [vmem:[%s15386_s19 + $0xa0] sm:$0xff] }
 0x6de   :  { %7694 = vmatpush.bf16.msra.mxu1 %v9946_v36  ;;  %v10126_v33 = vor.u32 %v10782_v28, %v10123_v16  ;;  %v10778_v36 = vld [vmem:[%s15383_s16 + $0x36c] sm:$0xf]  ;;  %v7782_v28 = vperm.slane %v15257_v57, 0 }
 0x6df   :  { %7707 = vmatpush.bf16.msra.mxu2 %v10074_v35  ;;  %v10107_v35 = vld [vmem:[%s15383_s16 + $0x378] sm:$0xf0] }
 0x6e0   :  { %v10110_v48 = vor.u32 %v10778_v36, %v10107_v35 }
 0x6e1   :  { %7717 = vmatpush.bf16.msrb.mxu3 %v9742_v60  ;;  %7730 = vmatpush.bf16.msrb.mxu0 %v9870_v53  ;;  %v9963_v60 = vld [vmem:[%s15383_s16 + $0x258] sm:$0xf0]  ;;  %v10774_v53 = vld [vmem:[%s15383_s16 + $0x34c] sm:$0xf] }
 0x6e2   :  { %7695 = vmatpush.bf16.msra.mxu1 %v9930_v6  ;;  %v9966_v62 = vor.u32 %v10742_v15, %v9963_v60  ;;  %v10094_v26 = vor.u32 %v10774_v53, %v10091_v30  ;;  %v10766_v6 = vld [vmem:[%s15383_s16 + $0x30c] sm:$0xf]  ;;  %v10828_v60 = vld [vmem:[%s15386_s19 + $0xf8] sm:$0xff] }
 0x6e3   :  { %7708 = vmatpush.bf16.msra.mxu2 %v10058_v54  ;;  %v10059_v54 = vld [vmem:[%s15383_s16 + $0x318] sm:$0xf0]  ;;  %v10814_v53 = vld [vmem:[%s15386_s19 + $0x88] sm:$0xff] }
 0x6e5   :  { %7718 = vmatpush.bf16.msrb.mxu3 %v9726_v12  ;;  %7731 = vmatpush.bf16.msrb.mxu0 %v9854_v17  ;;  %v9934_v12 = vor.u32 %v10734_v23, %v9931_v25  ;;  %v10062_v17 = vor.u32 %v10766_v6, %v10059_v54  ;;  %v10826_v23 = vld [vmem:[%s15386_s19 + $0xe8] sm:$0xff] }
 0x6e6   :  { %7740 = vmatpush.bf16.msrb.mxu1 %v10046_v22  ;;  %7709 = vmatmul.bf16.vlgmr.msra.gmra.mxu2 %v14873_v20  ;;  %v10802_v22 = vld [vmem:[%s15386_s19 + $0x28] sm:$0xff] }
 0x6e7   :  { %7753 = vmatpush.bf16.msrb.mxu2 %v10174_v7  ;;  %7696 = vmatmul.bf16.vlgmr.msra.gmra.mxu1 %v14865_v31  ;;  %v10812_v7 = vld [vmem:[%s15386_s19 + $0x78] sm:$0xff] }
 0x6e9   :  { %7719 = vmatpush.bf16.msrb.mxu3 %v9710_v27  ;;  %7732 = vmatpush.bf16.msrb.mxu0 %v9838_v46  ;;  %v10797_v46 = vld [vmem:[%s15386_s19] sm:$0xff] }
 0x6ea   :  { %7741 = vmatpush.bf16.msrb.mxu1 %v10030_v44  ;;  %v10808_v44 = vld [vmem:[%s15386_s19 + $0x58] sm:$0xff] }
 0x6eb   :  { %7754 = vmatpush.bf16.msrb.mxu2 %v10158_v0 }
 0x6ed   :  { %7720 = vmatpush.bf16.msrb.mxu3 %v9694_v55  ;;  %7733 = vmatpush.bf16.msrb.mxu0 %v9822_v3  ;;  %v15252_v55 = vld [vmem:[%s15388_s17] sm:$0xf] }
 0x6ee   :  { %7742 = vmatpush.bf16.msrb.mxu1 %v10014_v32  ;;  %v7768_v32 = vperm.slane %v15252_v55, 0 }
 0x6ef   :  { %7755 = vmatpush.bf16.msrb.mxu2 %v10142_v56 }
 0x6f1   :  { %7721 = vmatpush.bf16.msrb.mxu3 %v9678_v29  ;;  %7734 = vmatpush.bf16.msrb.mxu0 %v9806_v47 }
 0x6f2   :  { %7743 = vmatpush.bf16.msrb.mxu1 %v9998_v1  ;;  %v10816_v1 = vld [vmem:[%s15386_s19 + $0x98] sm:$0xff] }
 0x6f3   :  { %7756 = vmatpush.bf16.msrb.mxu2 %v10126_v33 }
 0x6f4   :  { %7722 = vmatmul.bf16.vlgmr.msrb.gmra.mxu3 %v14795_v11  ;;  %7735 = vmatmul.bf16.vlgmr.msrb.gmra.mxu0 %v14803_v21  ;;  %v10075_v11 = vld [vmem:[%s15383_s16 + $0x338] sm:$0xf0]  ;;  %v9950_v21 = vor.u32 %v10738_v42, %v9947_v52  ;;  %v10827_v42 = vld [vmem:[%s15386_s19 + $0xf0] sm:$0xff] }
 0x6f5   :  { %v10078_v58 = vor.u32 %v10770_v34, %v10075_v11  ;;  %8062 = vmatpush.bf16.msra.mxu3 %v10804_v14  ;;  %8075 = vmatpush.bf16.msra.mxu0 %v10812_v7  ;;  %v10813_v34 = vld [vmem:[%s15386_s19 + $0x80] sm:$0xff] }
 0x6f6   :  { %7744 = vmatpush.bf16.msrb.mxu1 %v9982_v39 }
 0x6f7   :  { %7757 = vmatpush.bf16.msrb.mxu2 %v10110_v48  ;;  %v10815_v48 = vld [vmem:[%s15386_s19 + $0x90] sm:$0xff] }
 0x6f9   :  { %8063 = vmatpush.bf16.msra.mxu3 %v10803_v4  ;;  %8076 = vmatpush.bf16.msra.mxu0 %v10811_v49 }
 0x6fa   :  { %7745 = vmatpush.bf16.msrb.mxu1 %v9966_v62 }
 0x6fb   :  { %7758 = vmatpush.bf16.msrb.mxu2 %v10094_v26  ;;  %v7769_v26 = vperm.slane %v15252_v55, 1 }
 0x6fd   :  { %8064 = vmatpush.bf16.msra.mxu3 %v10802_v22  ;;  %8077 = vmatpush.bf16.msra.mxu0 %v10810_v10 }
 0x6fe   :  { %7746 = vmatpush.bf16.msrb.mxu1 %v9950_v21  ;;  %v7783_v21 = vperm.slane %v15257_v57, 1 }
 0x6ff   :  { %7759 = vmatpush.bf16.msrb.mxu2 %v10078_v58 }
 0x701   :  { %8078 = vmatpush.bf16.msra.mxu0 %v10809_v2 }
 0x702   :  { %7747 = vmatpush.bf16.msrb.mxu1 %v9934_v12 }
 0x703   :  { %7760 = vmatpush.bf16.msrb.mxu2 %v10062_v17  ;;  %v10825_v17 = vld [vmem:[%s15386_s19 + $0xe0] sm:$0xff] }
 0x705   :  { %7748 = vmatmul.bf16.vlgmr.msrb.gmra.mxu1 %v14865_v31  ;;  %v10801_v31 = vld [vmem:[%s15386_s19 + $0x20] sm:$0xff]  ;;  %8079 = vmatpush.bf16.msra.mxu0 %v10808_v44 }
 0x706   :  { %7761 = vmatmul.bf16.vlgmr.msrb.gmra.mxu2 %v14873_v20  ;;  %8065 = vmatpush.bf16.msra.mxu3 %v10801_v31  ;;  %v10800_v20 = vld [vmem:[%s15386_s19 + $0x18] sm:$0xff] }
 0x707   :  { %8088 = vmatpush.bf16.msra.mxu1 %v10820_v8  ;;  %8101 = vmatpush.bf16.msra.mxu2 %v10828_v60  ;;  %v7784_v8 = vperm.slane %v15257_v57, 2  ;;  %v10831_v60 = vld [vmem:[%s15391_s21 + $0x10] sm:$0xff] }
 0x709   :  { %8080 = vmatpush.bf16.msra.mxu0 %v10807_v41 }
 0x70a   :  { %8066 = vmatpush.bf16.msra.mxu3 %v10800_v20  ;;  %v10824_v20 = vld [vmem:[%s15386_s19 + $0xd8] sm:$0xff] }
 0x70b   :  { %8089 = vmatpush.bf16.msra.mxu1 %v10819_v61  ;;  %8102 = vmatpush.bf16.msra.mxu2 %v10827_v42  ;;  %v10822_v61 = vld [vmem:[%s15386_s19 + $0xc8] sm:$0xff]  ;;  %v10844_v42 = vld [vmem:[%s15392_s23 + $0x38] sm:$0xff] }
 0x70d   :  { %8081 = vmatpush.bf16.msra.mxu0 %v10806_v50  ;;  %v10821_v50 = vld [vmem:[%s15386_s19 + $0xc0] sm:$0xff] }
 0x70e   :  { %8067 = vmatpush.bf16.msra.mxu3 %v10799_v45 }
 0x70f   :  { %8090 = vmatpush.bf16.msra.mxu1 %v10818_v37  ;;  %8103 = vmatpush.bf16.msra.mxu2 %v10826_v23  ;;  %v10839_v23 = vld [vmem:[%s15392_s23 + $0x10] sm:$0xff] }
 0x711   :  { %8082 = vmatpush.bf16.msra.mxu0 %v10805_v43  ;;  %v7771_v43 = vperm.slane %v15252_v55, 3 }
 0x712   :  { %8068 = vmatpush.bf16.msra.mxu3 %v10798_v19 }
 0x713   :  { %8091 = vmatpush.bf16.msra.mxu1 %v10817_v51  ;;  %8104 = vmatpush.bf16.msra.mxu2 %v10825_v17 }
 0x715   :  { %8267 = vmatpush.bf16.msrb.mxu0 %v10844_v42 }
 0x716   :  { %8069 = vmatpush.bf16.msra.mxu3 %v10797_v46 }
 0x717   :  { %8092 = vmatpush.bf16.msra.mxu1 %v10816_v1  ;;  %8105 = vmatpush.bf16.msra.mxu2 %v10824_v20  ;;  %v10837_v20 = vld [vmem:[%s15392_s23] sm:$0xff] }
 0x71b   :  { %8093 = vmatpush.bf16.msra.mxu1 %v10815_v48  ;;  %v10832_v48 = vld [vmem:[%s15391_s21 + $0x18] sm:$0xff] }
 0x71f   :  { %8094 = vmatpush.bf16.msra.mxu1 %v10814_v53 }
 0x723   :  { %8095 = vmatpush.bf16.msra.mxu1 %v10813_v34  ;;  %v10842_v34 = vld [vmem:[%s15392_s23 + $0x28] sm:$0xff] }
 0x731   :  { %v7580_v59 = vpop.f32.mrf.mxu0 }
 0x736   :  { %v7567_v27 = vpop.f32.mrf.mxu3 }
 0x737   :  { %v7581_v3 = vadd.f32 %v7580_v59, %v7567_v27  ;;  %v7770_v59 = vperm.slane %v15252_v55, 2  ;;  %v10835_v55 = vld [vmem:[%s15391_s21 + $0x30] sm:$0xff] }
 0x739   :  { %v7582_v18 = vpop.f32.mrf.mxu0 }
 0x73e   :  { %v7569_v0 = vpop.f32.mrf.mxu3 }
 0x73f   :  { %v10823_v0 = vld [vmem:[%s15386_s19 + $0xd0] sm:$0xff] }
 0x740   :  { %v7593_v40 = vpop.f32.mrf.mxu1  ;;  %8106 = vmatpush.bf16.msra.mxu2 %v10823_v0 }
 0x741   :  { %v7632_v13 = vpop.f32.mrf.mxu0  ;;  %v7594_v24 = vadd.f32 %v7593_v40, %v7581_v3 }
 0x744   :  { %8107 = vmatpush.bf16.msra.mxu2 %v10822_v61 }
 0x746   :  { %v7619_v56 = vpop.f32.mrf.mxu3 }
 0x747   :  { %v7606_v63 = vpop.f32.mrf.mxu2  ;;  %v7633_v30 = vadd.f32 %v7632_v13, %v7619_v56 }
 0x748   :  { %v7607_v9 = vadd.f32 %v7606_v63, %v7594_v24  ;;  %v7595_v16 = vpop.f32.mrf.mxu1  ;;  %8108 = vmatpush.bf16.msra.mxu2 %v10821_v50 }
 0x749   :  { %v7634_v29 = vpop.f32.mrf.mxu0 }
 0x74a   :  { %v7776_v47 = vmul.f32 %v7768_v32, %v7607_v9  ;;  %v7785_v9 = vperm.slane %v15257_v57, 3  ;;  %v10834_v57 = vld [vmem:[%s15391_s21 + $0x28] sm:$0xff] }
 0x74c   :  { %v7790_v33 = vadd.f32 %v7782_v28, %v7776_v47 }
 0x74e   :  { %v7794_v5 = vmax.f32 %v7790_v33, 0.0  ;;  %v7621_v38 = vpop.f32.mrf.mxu3 }
 0x74f   :  { %v7608_v36 = vpop.f32.mrf.mxu2  ;;  %v10836_v38 = vld [vmem:[%s15391_s21 + $0x38] sm:$0xff] }
 0x750   :  { %v7798_v35 = vpack.c.bf16 %v7794_v5, %v7794_v5  ;;  %v7645_v39 = vpop.f32.mrf.mxu1  ;;  %8184 = vmatpush.bf16.msrb.mxu3 %v10836_v38 }
 0x751   :  { %v7646_v62 = vadd.f32 %v7645_v39, %v7633_v30  ;;  %v10833_v39 = vld [vmem:[%s15391_s21 + $0x20] sm:$0xff] }
 0x752   :  { %8070 = vmatmul.bf16.vlgmr.msra.gmra.mxu3 %v7798_v35 }
 0x753   :  { %v7684_v15 = vpop.f32.mrf.mxu0 }
 0x754   :  { %8185 = vmatpush.bf16.msrb.mxu3 %v10835_v55 }
 0x757   :  { %v7658_v52 = vpop.f32.mrf.mxu2  ;;  %v7671_v58 = vpop.f32.mrf.mxu3 }
 0x758   :  { %v7659_v11 = vadd.f32 %v7658_v52, %v7646_v62  ;;  %v7647_v25 = vpop.f32.mrf.mxu1  ;;  %v7685_v45 = vadd.f32 %v7684_v15, %v7671_v58  ;;  %8186 = vmatpush.bf16.msrb.mxu3 %v10834_v57  ;;  %v10830_v62 = vld [vmem:[%s15391_s21 + $0x8] sm:$0xff]  ;;  %v10843_v52 = vld [vmem:[%s15392_s23 + $0x30] sm:$0xff]  ;;  %v10851_v58 = vld [vmem:[%s15387_s20] ss:$0 sm:$0xff] }
 0x759   :  { %8268 = vmatpush.bf16.msrb.mxu0 %v10843_v52 }
 0x75a   :  { %v7777_v6 = vmul.f32 %v7769_v26, %v7659_v11  ;;  %v10829_v26 = vld [vmem:[%s15391_s21] sm:$0xff] }
 0x75b   :  { %v7686_v54 = vpop.f32.mrf.mxu0  ;;  %v10841_v11 = vld [vmem:[%s15392_s23 + $0x20] sm:$0xff] }
 0x75c   :  { %v7791_v12 = vadd.f32 %v7783_v21, %v7777_v6  ;;  %8187 = vmatpush.bf16.msrb.mxu3 %v10833_v39  ;;  %v10840_v21 = vld [vmem:[%s15392_s23 + $0x18] sm:$0xff] }
 0x75d   :  { %8269 = vmatpush.bf16.msrb.mxu0 %v10842_v34 }
 0x75e   :  { %v7795_v14 = vmax.f32 %v7791_v12, 0.0 }
 0x75f   :  { %v7660_v4 = vpop.f32.mrf.mxu2  ;;  %v7673_v31 = vpop.f32.mrf.mxu3 }
 0x760   :  { %v7799_v22 = vpack.c.bf16 %v7795_v14, %v7795_v14  ;;  %8188 = vmatpush.bf16.msrb.mxu3 %v10832_v48  ;;  %v10838_v31 = vld [vmem:[%s15392_s23 + $0x8] sm:$0xff] }
 0x761   :  { %8270 = vmatpush.bf16.msrb.mxu0 %v10841_v11 }
 0x762   :  { %8083 = vmatmul.bf16.vlgmr.msra.gmra.mxu0 %v7799_v22 }
 0x764   :  { %v7697_v7 = vpop.f32.mrf.mxu1  ;;  %8189 = vmatpush.bf16.msrb.mxu3 %v10831_v60 }
 0x765   :  { %v7698_v49 = vadd.f32 %v7697_v7, %v7685_v45  ;;  %8271 = vmatpush.bf16.msrb.mxu0 %v10840_v21  ;;  %v10852_v7 = vld [vmem:[%s15390_s22] ss:$0 sm:$0xff] }
 0x768   :  { %8190 = vmatpush.bf16.msrb.mxu3 %v10830_v62 }
 0x769   :  { %v7710_v19 = vpop.f32.mrf.mxu2  ;;  %8272 = vmatpush.bf16.msrb.mxu0 %v10839_v23 }
 0x76a   :  { %v7711_v10 = vadd.f32 %v7710_v19, %v7698_v49 }
 0x76c   :  { %v7699_v27 = vpop.f32.mrf.mxu1  ;;  %v7778_v46 = vmul.f32 %v7770_v59, %v7711_v10  ;;  %8191 = vmatpush.bf16.msrb.mxu3 %v10829_v26 }
 0x76d   :  { %8273 = vmatpush.bf16.msrb.mxu0 %v10838_v31 }
 0x76e   :  { %v7792_v2 = vadd.f32 %v7784_v8, %v7778_v46  ;;  %v10853_v8 = vld [vmem:[%s15393_s24] ss:$0 sm:$0xff] }
 0x770   :  { %v7796_v18 = vmax.f32 %v7792_v2, 0.0 }
 0x771   :  { %v7736_v44 = vpop.f32.mrf.mxu0  ;;  %v7712_v40 = vpop.f32.mrf.mxu2  ;;  %8274 = vmatpush.bf16.msrb.mxu0 %v10837_v20 }
 0x772   :  { %v7800_v41 = vpack.c.bf16 %v7796_v18, %v7796_v18 }
 0x774   :  { %8096 = vmatmul.bf16.vlgmr.msra.gmra.mxu1 %v7800_v41 }
 0x777   :  { %v7723_v13 = vpop.f32.mrf.mxu3 }
 0x778   :  { %v7737_v32 = vadd.f32 %v7736_v44, %v7723_v13 }
 0x779   :  { %v7738_v37 = vpop.f32.mrf.mxu0 }
 0x77f   :  { %v7725_v3 = vpop.f32.mrf.mxu3 }
 0x782   :  { %v7749_v24 = vpop.f32.mrf.mxu1 }
 0x783   :  { %v7750_v56 = vadd.f32 %v7749_v24, %v7737_v32 }
 0x789   :  { %v7762_v51 = vpop.f32.mrf.mxu2 }
 0x78a   :  { %v7763_v63 = vadd.f32 %v7762_v51, %v7750_v56  ;;  %v7751_v28 = vpop.f32.mrf.mxu1 }
 0x78c   :  { %v7779_v16 = vmul.f32 %v7771_v43, %v7763_v63 }
 0x78e   :  { %v7793_v29 = vadd.f32 %v7785_v9, %v7779_v16 }
 0x790   :  { %v7797_v47 = vmax.f32 %v7793_v29, 0.0 }
 0x791   :  { %v7764_v1 = vpop.f32.mrf.mxu2 }
 0x792   :  { %v7801_v33 = vpack.c.bf16 %v7797_v47, %v7797_v47 }
 0x794   :  { %8109 = vmatmul.bf16.vlgmr.msra.gmra.mxu2 %v7801_v33 }
 0x7d5   :  { %v8071_v5 = vpop.f32.mrf.mxu3 }
 0x7d6   :  { %v8072_v25 = vadd.f32 %v10851_v58, %v8071_v5 }
 0x7dd   :  { %v8073_v36 = vpop.f32.mrf.mxu3 }
 0x7df   :  { %v8084_v35 = vpop.f32.mrf.mxu0 }
 0x7e0   :  { %v8085_v6 = vadd.f32 %v8084_v35, %v8072_v25 }
 0x7e7   :  { %v8086_v15 = vpop.f32.mrf.mxu0 }
 0x7f1   :  { %v8097_v53 = vpop.f32.mrf.mxu1 }
 0x7f2   :  { %v8098_v54 = vadd.f32 %v8097_v53, %v8085_v6 }
 0x7f9   :  { %v8099_v30 = vpop.f32.mrf.mxu1 }
 0x817   :  { %v8110_v12 = vpop.f32.mrf.mxu2 }
 0x818   :  { %v8111_v17 = vadd.f32 %v8110_v12, %v8098_v54 }
 0x81a   :  { %v8114_v14 = vmax.f32 %v8111_v17, 0.0 }
 0x81c   :  { %v8115_v4 = vpack.c.bf16 %v8114_v14, %v8114_v14 }
 0x81e   :  { %8192 = vmatmul.bf16.vlgmr.msrb.gmra.mxu3 %v8115_v4 }
 0x81f   :  { %v8112_v22 = vpop.f32.mrf.mxu2 }
 0x8a1   :  { %v8193_v45 = vpop.f32.mrf.mxu3 }
 0x8a2   :  { %v8194_v49 = vadd.f32 %v10852_v7, %v8193_v45 }
 0x8a4   :  { %v8197_v59 = vmax.f32 %v8194_v49, 0.0 }
 0x8a6   :  { %v8198_v19 = vpack.c.bf16 %v8197_v59, %v8197_v59 }
 0x8a8   :  { %8275 = vmatmul.bf16.vlgmr.msrb.gmra.mxu0 %v8198_v19 }
 0x8a9   :  { %v8195_v10 = vpop.f32.mrf.mxu3 }
 0x925   :  { %v8276_v27 = vpop.f32.mrf.mxu0 }
 0x926   :  { %v8277_v46 = vadd.f32 %v10853_v8, %v8276_v27 }
 0x928   :  { %8280 = vst [vmem:[%s15394_s25] sm:$0x3] %v8277_v46 }
 0x92d   :  { %v8278_v2 = vpop.f32.mrf.mxu0 }

</bundles_post_ra>
